<compile_context>
chip_gen: v7x
topology: tpu7x:2x2x1
jax: 0.10.0
libtpu: 0.0.40
codegen_flags: <defaults>
</compile_context>

<pallas_src>
import jax
import jax.numpy as jnp
from jax.experimental import pallas as pl
from jax.experimental.pallas import tpu as pltpu

# Set to jnp.bfloat16 on v6e/v7x to halve weight DMA bytes and double MXU rate
# (accumulation / bias / ReLU / softmax stay f32).  f32 default matches the
# PyTorch module's numerics (and the in-script reference check).
MATMUL_DTYPE = jnp.float32


# ------------------------------ fused kernel --------------------------------

def _lenet_kernel(x_ref, w1_ref, b1_ref, w2_ref, b2_ref,
                  wf1_ref, bf1_ref, wf2_ref, bf2_ref, o_ref):
    tb = x_ref.shape[0]
    f32 = jnp.float32
    K = 5

    def matmul_bias_relu(p2d, w_ref, b_ref):
        z = jnp.dot(p2d.astype(w_ref.dtype), w_ref[...],
                    preferred_element_type=f32)
        return jnp.maximum(z + b_ref[...].astype(f32), 0.0)

    def maxpool2x2(x):
        # (TB, H, W, C) -> (TB, H//2, W//2, C); channels stay on lanes.
        _, h, w, c = x.shape
        xh = jnp.max(x.reshape(tb, h // 2, 2, w, c), axis=2)          # pool H
        parts = [jnp.maximum(xh[:, :, 2 * j:2 * j + 1, :],
                             xh[:, :, 2 * j + 1:2 * j + 2, :])
                 for j in range(w // 2)]                               # pool W
        return jnp.concatenate(parts, axis=2)

    # ---- conv1 (1 -> 20, 5x5) + ReLU + 2x2 max-pool ------------------------
    # x_ref is (TB, 28, 1, 28): the unit channel dim sits on sublanes so the
    # in-kernel im2col uses only leading/lane slices, a sublane concat and one
    # minor-dim transpose (no lane-collapsing reshapes).
    x = x_ref[...]
    oh1 = x.shape[1] - K + 1                          # 24
    ow1 = x.shape[3] - K + 1                          # 24
    cols = [x[:, i:i + oh1, :, j:j + ow1]             # (TB, 24, 1, 24)
            for i in range(K) for j in range(K)]
    p1 = jnp.concatenate(cols, axis=2)                # (TB, 24, 25, 24)
    p1 = p1.reshape(tb * oh1, K * K, ow1)             # (TB*24, 25, 24)
    p1 = jnp.swapaxes(p1, 1, 2)                       # (TB*24, 24, 25)
    p1 = p1.reshape(tb * oh1 * ow1, K * K)            # (TB*576, 25)
    h1 = matmul_bias_relu(p1, w1_ref, b1_ref)         # (TB*576, 20)
    h1 = h1.reshape(tb, oh1, ow1, 20)                 # (TB, 24, 24, 20)
    h1 = maxpool2x2(h1)                               # (TB, 12, 12, 20)

    # ---- conv2 (20 -> 50, 5x5) + ReLU + 2x2 max-pool ------------------------
    _, hh2, ww2, c2 = h1.shape                        # 12, 12, 20
    oh2, ow2 = hh2 - K + 1, ww2 - K + 1               # 8, 8
    cols = [h1[:, i:i + oh2, j:j + ow2, :]            # (TB, 8, 8, 20)
            for i in range(K) for j in range(K)]
    p2 = jnp.concatenate(cols, axis=3)                # (TB, 8, 8, 500)
    p2 = p2.reshape(tb * oh2 * ow2, K * K * c2)       # (TB*64, 500)
    h2 = matmul_bias_relu(p2, w2_ref, b2_ref)         # (TB*64, 50)
    h2 = h2.reshape(tb, oh2, ow2, 50)                 # (TB, 8, 8, 50)
    h2 = maxpool2x2(h2)                               # (TB, 4, 4, 50)

    # ---- fc1 (800 -> 500) + ReLU --------------------------------------------
    # wf1_ref is (16, 50, 500), position index p = h*4 + w; the PyTorch NCHW
    # flatten permutation was folded into the weight at prep time, so no
    # lane-collapsing (TB,4,4,50)->(TB,800) reshape is needed in-kernel.
    acc = jnp.zeros((tb, 500), f32)
    for p in range(16):
        vec = h2[:, p // 4, p % 4, :].astype(wf1_ref.dtype)   # (TB, 50)
        acc = acc + jnp.dot(vec, wf1_ref[p], preferred_element_type=f32)
    z1 = jnp.maximum(acc + bf1_ref[...].astype(f32), 0.0)     # (TB, 500)

    # ---- fc2 (500 -> 10) + log_softmax --------------------------------------
    z2 = jnp.dot(z1.astype(wf2_ref.dtype), wf2_ref[...],
                 preferred_element_type=f32) + bf2_ref[...].astype(f32)
    m = jnp.max(z2, axis=-1, keepdims=True)
    lse = jnp.log(jnp.sum(jnp.exp(z2 - m), axis=-1, keepdims=True)) + m
    o_ref[...] = (z2 - lse).reshape(tb, 1, 10).astype(o_ref.dtype)


# ------------------------------ wrapper --------------------------------------

def _pick_batch_tile(n):
    # Largest tile that (a) divides the batch, (b) keeps per-step VMEM at a
    # few MB, and (c) still leaves >= 2 grid steps when N >= 2 so both v7x
    # TensorCores get work on the "parallel" batch axis.
    for tb in (8, 4, 2):
        if n % tb == 0 and n // tb >= 2:
            return tb
    return 1 if n >= 2 else n


@jax.jit
def lenet_forward(prep, x_nchw):
    # x_nchw: (N, 1, 28, 28) float32, PyTorch layout.  With C == 1 the
    # (N, 28, 1, 28) view below is a free metadata-only reshape.
    n = x_nchw.shape[0]
    x = x_nchw.reshape(n, 28, 1, 28)
    tb = _pick_batch_tile(n)
    out = pl.pallas_call(
        _lenet_kernel,
        out_shape=jax.ShapeDtypeStruct((n, 1, 10), jnp.float32),
        grid=(n // tb,),
        in_specs=[
            pl.BlockSpec((tb, 28, 1, 28), lambda b: (b, 0, 0, 0)),  # x
            pl.BlockSpec((25, 20), lambda b: (0, 0)),               # w1
            pl.BlockSpec((1, 20), lambda b: (0, 0)),                # b1
            pl.BlockSpec((500, 50), lambda b: (0, 0)),              # w2
            pl.BlockSpec((1, 50), lambda b: (0, 0)),                # b2
            pl.BlockSpec((16, 50, 500), lambda b: (0, 0, 0)),       # wf1
            pl.BlockSpec((1, 500), lambda b: (0, 0)),               # bf1
            pl.BlockSpec((500, 10), lambda b: (0, 0)),              # wf2
            pl.BlockSpec((1, 10), lambda b: (0, 0)),                # bf2
        ],
        out_specs=pl.BlockSpec((tb, 1, 10), lambda b: (b, 0, 0)),
        compiler_params=pltpu.CompilerParams(
            dimension_semantics=("parallel",),
            vmem_limit_bytes=32 * 1024 * 1024,
        ),
    )(x, prep["w1"], prep["b1"], prep["w2"], prep["b2"],
      prep["wf1"], prep["bf1"], prep["wf2"], prep["bf2"])
    return out.reshape(n, 10)


# ------------------------------ params ---------------------------------------

def init_params(key):
    # PyTorch-layout parameters (Conv2d: (OC, IC, KH, KW); Linear: (out, in)).
    ks = jax.random.split(key, 8)
    s = 0.05
    return {
        "w1": s * jax.random.normal(ks[0], (20, 1, 5, 5), jnp.float32),
        "b1": s * jax.random.normal(ks[1], (20,), jnp.float32),
        "w2": s * jax.random.normal(ks[2], (50, 20, 5, 5), jnp.float32),
        "b2": s * jax.random.normal(ks[3], (50,), jnp.float32),
        "w_fc1": s * jax.random.normal(ks[4], (500, 4 * 4 * 50), jnp.float32),
        "b_fc1": s * jax.random.normal(ks[5], (500,), jnp.float32),
        "w_fc2": s * jax.random.normal(ks[6], (10, 500), jnp.float32),
        "b_fc2": s * jax.random.normal(ks[7], (10,), jnp.float32),
    }


def prepare_params(params, matmul_dtype=jnp.float32):
    # One-time layout preparation (kernel-friendly matmul layouts).
    wdt = matmul_dtype
    w1 = jnp.transpose(params["w1"], (2, 3, 1, 0)).reshape(25, 20)     # (i,j,ic)->rows
    w2 = jnp.transpose(params["w2"], (2, 3, 1, 0)).reshape(500, 50)
    # fc1: fold PyTorch's NCHW flatten (c*16 + h*4 + w) into the weight so the
    # kernel consumes NHWC activations directly; rows grouped by p = h*4 + w.
    wf1 = (params["w_fc1"].reshape(500, 50, 4, 4)
           .transpose(2, 3, 1, 0).reshape(16, 50, 500))
    wf2 = jnp.transpose(params["w_fc2"], (1, 0))                       # (500, 10)
    return {
        "w1": w1.astype(wdt), "b1": params["b1"].reshape(1, 20).astype(jnp.float32),
        "w2": w2.astype(wdt), "b2": params["b2"].reshape(1, 50).astype(jnp.float32),
        "wf1": wf1.astype(wdt), "bf1": params["b_fc1"].reshape(1, 500).astype(jnp.float32),
        "wf2": wf2.astype(wdt), "bf2": params["b_fc2"].reshape(1, 10).astype(jnp.float32),
    }


# ------------------------------ reference ------------------------------------

def _reference_forward(params, x_nchw):
    # Pure-JAX (XLA) reference with exact PyTorch semantics, for validation.
    dn = ("NCHW", "OIHW", "NCHW")
    x = jax.lax.conv_general_dilated(x_nchw, params["w1"], (1, 1), "VALID",
                                     dimension_numbers=dn)
    x = jax.nn.relu(x + params["b1"][None, :, None, None])
    x = jax.lax.reduce_window(x, -jnp.inf, jax.lax.max,
                              (1, 1, 2, 2), (1, 1, 2, 2), "VALID")
    x = jax.lax.conv_general_dilated(x, params["w2"], (1, 1), "VALID",
                                     dimension_numbers=dn)
    x = jax.nn.relu(x + params["b2"][None, :, None, None])
    x = jax.lax.reduce_window(x, -jnp.inf, jax.lax.max,
                              (1, 1, 2, 2), (1, 1, 2, 2), "VALID")
    x = x.reshape(x.shape[0], 4 * 4 * 50)
    x = jax.nn.relu(x @ params["w_fc1"].T + params["b_fc1"])
    x = x @ params["w_fc2"].T + params["b_fc2"]
    return jax.nn.log_softmax(x, axis=-1)


# ------------------------------ main ------------------------------------------

if __name__ == "__main__":
    key = jax.random.PRNGKey(0)
    k_x, k_p = jax.random.split(key)
    # The module's forward implies 28x28 single-channel inputs (4*4*50 flatten).
    x = jax.random.normal(k_x, (2, 1, 28, 28), jnp.float32)
    params = init_params(k_p)
    prep = prepare_params(params, MATMUL_DTYPE)

    out = jax.block_until_ready(lenet_forward(prep, x))

    assert out.shape == (2, 10), out.shape
    assert bool(jnp.all(jnp.isfinite(out)))
    # log_softmax sanity: rows of exp(out) sum to ~1.
    assert jnp.allclose(jnp.sum(jnp.exp(out), axis=1), 1.0, atol=1e-4)
    if MATMUL_DTYPE == jnp.float32:
        ref = _reference_forward(params, x)
        err = float(jnp.max(jnp.abs(out - ref)))
        assert err < 5e-3, err
    print("KERNEL_OK")
</pallas_src>

<mosaic_0001>
module attributes {stable_mosaic.version = 11 : i64} {
  func.func @_lenet_kernel(%arg0: i32, %arg1: memref<1x28x1x28xf32, #tpu.memory_space<vmem>>, %arg2: memref<25x20xf32, #tpu.memory_space<vmem>>, %arg3: memref<1x20xf32, #tpu.memory_space<vmem>>, %arg4: memref<500x50xf32, #tpu.memory_space<vmem>>, %arg5: memref<1x50xf32, #tpu.memory_space<vmem>>, %arg6: memref<16x50x500xf32, #tpu.memory_space<vmem>>, %arg7: memref<1x500xf32, #tpu.memory_space<vmem>>, %arg8: memref<500x10xf32, #tpu.memory_space<vmem>>, %arg9: memref<1x10xf32, #tpu.memory_space<vmem>>, %arg10: memref<1x1x10xf32, #tpu.memory_space<vmem>>) attributes {dimension_semantics = [#tpu.dimension_semantics<parallel>], iteration_bounds = array<i64: 2>, scalar_prefetch = 0 : i64, scratch_operands = 0 : i64, tpu.core_type = #tpu.core_type<tc>, window_params = [{transform_indices = @transform_0, window_bounds = array<i64: 1, 28, 1, 28>}, {pipeline_mode = #tpu.pipeline_mode<synchronous>, transform_indices = @transform_1, window_bounds = array<i64: 25, 20>}, {pipeline_mode = #tpu.pipeline_mode<synchronous>, transform_indices = @transform_2, window_bounds = array<i64: 1, 20>}, {pipeline_mode = #tpu.pipeline_mode<synchronous>, transform_indices = @transform_3, window_bounds = array<i64: 500, 50>}, {pipeline_mode = #tpu.pipeline_mode<synchronous>, transform_indices = @transform_4, window_bounds = array<i64: 1, 50>}, {pipeline_mode = #tpu.pipeline_mode<synchronous>, transform_indices = @transform_5, window_bounds = array<i64: 16, 50, 500>}, {pipeline_mode = #tpu.pipeline_mode<synchronous>, transform_indices = @transform_6, window_bounds = array<i64: 1, 500>}, {pipeline_mode = #tpu.pipeline_mode<synchronous>, transform_indices = @transform_7, window_bounds = array<i64: 500, 10>}, {pipeline_mode = #tpu.pipeline_mode<synchronous>, transform_indices = @transform_8, window_bounds = array<i64: 1, 10>}, {transform_indices = @transform_9, window_bounds = array<i64: 1, 1, 10>}]} {
    %c0 = arith.constant 0 : index
    %c0_0 = arith.constant 0 : index
    %c0_1 = arith.constant 0 : index
    %c0_2 = arith.constant 0 : index
    %0 = vector.load %arg1[%c0, %c0_0, %c0_1, %c0_2] : memref<1x28x1x28xf32, #tpu.memory_space<vmem>>, vector<1x28x1x28xf32>
    %1 = vector.extract_strided_slice %0 {offsets = [0, 0, 0, 0], sizes = [1, 24, 1, 24], strides = [1, 1, 1, 1]} : vector<1x28x1x28xf32> to vector<1x24x1x24xf32>
    %2 = vector.extract_strided_slice %0 {offsets = [0, 0, 0, 1], sizes = [1, 24, 1, 24], strides = [1, 1, 1, 1]} : vector<1x28x1x28xf32> to vector<1x24x1x24xf32>
    %3 = vector.extract_strided_slice %0 {offsets = [0, 0, 0, 2], sizes = [1, 24, 1, 24], strides = [1, 1, 1, 1]} : vector<1x28x1x28xf32> to vector<1x24x1x24xf32>
    %4 = vector.extract_strided_slice %0 {offsets = [0, 0, 0, 3], sizes = [1, 24, 1, 24], strides = [1, 1, 1, 1]} : vector<1x28x1x28xf32> to vector<1x24x1x24xf32>
    %5 = vector.extract_strided_slice %0 {offsets = [0, 0, 0, 4], sizes = [1, 24, 1, 24], strides = [1, 1, 1, 1]} : vector<1x28x1x28xf32> to vector<1x24x1x24xf32>
    %6 = vector.extract_strided_slice %0 {offsets = [0, 1, 0, 0], sizes = [1, 24, 1, 24], strides = [1, 1, 1, 1]} : vector<1x28x1x28xf32> to vector<1x24x1x24xf32>
    %7 = vector.extract_strided_slice %0 {offsets = [0, 1, 0, 1], sizes = [1, 24, 1, 24], strides = [1, 1, 1, 1]} : vector<1x28x1x28xf32> to vector<1x24x1x24xf32>
    %8 = vector.extract_strided_slice %0 {offsets = [0, 1, 0, 2], sizes = [1, 24, 1, 24], strides = [1, 1, 1, 1]} : vector<1x28x1x28xf32> to vector<1x24x1x24xf32>
    %9 = vector.extract_strided_slice %0 {offsets = [0, 1, 0, 3], sizes = [1, 24, 1, 24], strides = [1, 1, 1, 1]} : vector<1x28x1x28xf32> to vector<1x24x1x24xf32>
    %10 = vector.extract_strided_slice %0 {offsets = [0, 1, 0, 4], sizes = [1, 24, 1, 24], strides = [1, 1, 1, 1]} : vector<1x28x1x28xf32> to vector<1x24x1x24xf32>
    %11 = vector.extract_strided_slice %0 {offsets = [0, 2, 0, 0], sizes = [1, 24, 1, 24], strides = [1, 1, 1, 1]} : vector<1x28x1x28xf32> to vector<1x24x1x24xf32>
    %12 = vector.extract_strided_slice %0 {offsets = [0, 2, 0, 1], sizes = [1, 24, 1, 24], strides = [1, 1, 1, 1]} : vector<1x28x1x28xf32> to vector<1x24x1x24xf32>
    %13 = vector.extract_strided_slice %0 {offsets = [0, 2, 0, 2], sizes = [1, 24, 1, 24], strides = [1, 1, 1, 1]} : vector<1x28x1x28xf32> to vector<1x24x1x24xf32>
    %14 = vector.extract_strided_slice %0 {offsets = [0, 2, 0, 3], sizes = [1, 24, 1, 24], strides = [1, 1, 1, 1]} : vector<1x28x1x28xf32> to vector<1x24x1x24xf32>
    %15 = vector.extract_strided_slice %0 {offsets = [0, 2, 0, 4], sizes = [1, 24, 1, 24], strides = [1, 1, 1, 1]} : vector<1x28x1x28xf32> to vector<1x24x1x24xf32>
    %16 = vector.extract_strided_slice %0 {offsets = [0, 3, 0, 0], sizes = [1, 24, 1, 24], strides = [1, 1, 1, 1]} : vector<1x28x1x28xf32> to vector<1x24x1x24xf32>
    %17 = vector.extract_strided_slice %0 {offsets = [0, 3, 0, 1], sizes = [1, 24, 1, 24], strides = [1, 1, 1, 1]} : vector<1x28x1x28xf32> to vector<1x24x1x24xf32>
    %18 = vector.extract_strided_slice %0 {offsets = [0, 3, 0, 2], sizes = [1, 24, 1, 24], strides = [1, 1, 1, 1]} : vector<1x28x1x28xf32> to vector<1x24x1x24xf32>
    %19 = vector.extract_strided_slice %0 {offsets = [0, 3, 0, 3], sizes = [1, 24, 1, 24], strides = [1, 1, 1, 1]} : vector<1x28x1x28xf32> to vector<1x24x1x24xf32>
    %20 = vector.extract_strided_slice %0 {offsets = [0, 3, 0, 4], sizes = [1, 24, 1, 24], strides = [1, 1, 1, 1]} : vector<1x28x1x28xf32> to vector<1x24x1x24xf32>
    %21 = vector.extract_strided_slice %0 {offsets = [0, 4, 0, 0], sizes = [1, 24, 1, 24], strides = [1, 1, 1, 1]} : vector<1x28x1x28xf32> to vector<1x24x1x24xf32>
    %22 = vector.extract_strided_slice %0 {offsets = [0, 4, 0, 1], sizes = [1, 24, 1, 24], strides = [1, 1, 1, 1]} : vector<1x28x1x28xf32> to vector<1x24x1x24xf32>
    %23 = vector.extract_strided_slice %0 {offsets = [0, 4, 0, 2], sizes = [1, 24, 1, 24], strides = [1, 1, 1, 1]} : vector<1x28x1x28xf32> to vector<1x24x1x24xf32>
    %24 = vector.extract_strided_slice %0 {offsets = [0, 4, 0, 3], sizes = [1, 24, 1, 24], strides = [1, 1, 1, 1]} : vector<1x28x1x28xf32> to vector<1x24x1x24xf32>
    %25 = vector.extract_strided_slice %0 {offsets = [0, 4, 0, 4], sizes = [1, 24, 1, 24], strides = [1, 1, 1, 1]} : vector<1x28x1x28xf32> to vector<1x24x1x24xf32>
    %26 = tpu.concatenate %1, %2, %3, %4, %5, %6, %7, %8, %9, %10, %11, %12, %13, %14, %15, %16 in 2 : vector<1x24x1x24xf32>, vector<1x24x1x24xf32>, vector<1x24x1x24xf32>, vector<1x24x1x24xf32>, vector<1x24x1x24xf32>, vector<1x24x1x24xf32>, vector<1x24x1x24xf32>, vector<1x24x1x24xf32>, vector<1x24x1x24xf32>, vector<1x24x1x24xf32>, vector<1x24x1x24xf32>, vector<1x24x1x24xf32>, vector<1x24x1x24xf32>, vector<1x24x1x24xf32>, vector<1x24x1x24xf32>, vector<1x24x1x24xf32> -> vector<1x24x16x24xf32>
    %27 = tpu.concatenate %17, %18, %19, %20, %21, %22, %23, %24, %25 in 2 : vector<1x24x1x24xf32>, vector<1x24x1x24xf32>, vector<1x24x1x24xf32>, vector<1x24x1x24xf32>, vector<1x24x1x24xf32>, vector<1x24x1x24xf32>, vector<1x24x1x24xf32>, vector<1x24x1x24xf32>, vector<1x24x1x24xf32> -> vector<1x24x9x24xf32>
    %28 = tpu.concatenate %26, %27 in 2 : vector<1x24x16x24xf32>, vector<1x24x9x24xf32> -> vector<1x24x25x24xf32>
    %29 = vector.shape_cast %28 : vector<1x24x25x24xf32> to vector<24x25x24xf32>
    %30 = tpu.transpose %29, [0, 2, 1] : vector<24x25x24xf32> -> vector<24x24x25xf32>
    %31 = vector.shape_cast %30 : vector<24x24x25xf32> to vector<576x25xf32>
    %c0_3 = arith.constant 0 : index
    %c0_4 = arith.constant 0 : index
    %32 = vector.load %arg2[%c0_3, %c0_4] : memref<25x20xf32, #tpu.memory_space<vmem>>, vector<25x20xf32>
    %cst = arith.constant dense<0.000000e+00> : vector<576x20xf32>
    %33 = tpu.matmul %31, %32, %cst {dimension_numbers = #tpu.dot_dimension_numbers<[1], [0], [0], [1], [0, 0, 1, 1], [], []>} : vector<576x25xf32>, vector<25x20xf32>, vector<576x20xf32> -> vector<576x20xf32>
    %c0_5 = arith.constant 0 : index
    %c0_6 = arith.constant 0 : index
    %34 = vector.load %arg3[%c0_5, %c0_6] : memref<1x20xf32, #tpu.memory_space<vmem>>, vector<1x20xf32>
    %35 = vector.broadcast %34 : vector<1x20xf32> to vector<576x20xf32>
    %36 = arith.addf %33, %35 : vector<576x20xf32>
    %cst_7 = arith.constant 0.000000e+00 : f32
    %37 = vector.broadcast %cst_7 : f32 to vector<576x20xf32>
    %38 = arith.maximumf %36, %37 : vector<576x20xf32>
    %39 = vector.shape_cast %38 : vector<576x20xf32> to vector<1x24x24x20xf32>
    %40 = vector.shape_cast %39 : vector<1x24x24x20xf32> to vector<1x12x2x24x20xf32>
    %cst_8 = arith.constant dense<0xFF800000> : vector<1x12x24x20xf32>
    %41 = vector.multi_reduction <maximumf>, %40, %cst_8 [2] : vector<1x12x2x24x20xf32> to vector<1x12x24x20xf32>
    %42 = vector.extract_strided_slice %41 {offsets = [0, 0, 0, 0], sizes = [1, 12, 1, 20], strides = [1, 1, 1, 1]} : vector<1x12x24x20xf32> to vector<1x12x1x20xf32>
    %43 = vector.extract_strided_slice %41 {offsets = [0, 0, 1, 0], sizes = [1, 12, 1, 20], strides = [1, 1, 1, 1]} : vector<1x12x24x20xf32> to vector<1x12x1x20xf32>
    %44 = arith.maximumf %42, %43 : vector<1x12x1x20xf32>
    %45 = vector.extract_strided_slice %41 {offsets = [0, 0, 2, 0], sizes = [1, 12, 1, 20], strides = [1, 1, 1, 1]} : vector<1x12x24x20xf32> to vector<1x12x1x20xf32>
    %46 = vector.extract_strided_slice %41 {offsets = [0, 0, 3, 0], sizes = [1, 12, 1, 20], strides = [1, 1, 1, 1]} : vector<1x12x24x20xf32> to vector<1x12x1x20xf32>
    %47 = arith.maximumf %45, %46 : vector<1x12x1x20xf32>
    %48 = vector.extract_strided_slice %41 {offsets = [0, 0, 4, 0], sizes = [1, 12, 1, 20], strides = [1, 1, 1, 1]} : vector<1x12x24x20xf32> to vector<1x12x1x20xf32>
    %49 = vector.extract_strided_slice %41 {offsets = [0, 0, 5, 0], sizes = [1, 12, 1, 20], strides = [1, 1, 1, 1]} : vector<1x12x24x20xf32> to vector<1x12x1x20xf32>
    %50 = arith.maximumf %48, %49 : vector<1x12x1x20xf32>
    %51 = vector.extract_strided_slice %41 {offsets = [0, 0, 6, 0], sizes = [1, 12, 1, 20], strides = [1, 1, 1, 1]} : vector<1x12x24x20xf32> to vector<1x12x1x20xf32>
    %52 = vector.extract_strided_slice %41 {offsets = [0, 0, 7, 0], sizes = [1, 12, 1, 20], strides = [1, 1, 1, 1]} : vector<1x12x24x20xf32> to vector<1x12x1x20xf32>
    %53 = arith.maximumf %51, %52 : vector<1x12x1x20xf32>
    %54 = vector.extract_strided_slice %41 {offsets = [0, 0, 8, 0], sizes = [1, 12, 1, 20], strides = [1, 1, 1, 1]} : vector<1x12x24x20xf32> to vector<1x12x1x20xf32>
    %55 = vector.extract_strided_slice %41 {offsets = [0, 0, 9, 0], sizes = [1, 12, 1, 20], strides = [1, 1, 1, 1]} : vector<1x12x24x20xf32> to vector<1x12x1x20xf32>
    %56 = arith.maximumf %54, %55 : vector<1x12x1x20xf32>
    %57 = vector.extract_strided_slice %41 {offsets = [0, 0, 10, 0], sizes = [1, 12, 1, 20], strides = [1, 1, 1, 1]} : vector<1x12x24x20xf32> to vector<1x12x1x20xf32>
    %58 = vector.extract_strided_slice %41 {offsets = [0, 0, 11, 0], sizes = [1, 12, 1, 20], strides = [1, 1, 1, 1]} : vector<1x12x24x20xf32> to vector<1x12x1x20xf32>
    %59 = arith.maximumf %57, %58 : vector<1x12x1x20xf32>
    %60 = vector.extract_strided_slice %41 {offsets = [0, 0, 12, 0], sizes = [1, 12, 1, 20], strides = [1, 1, 1, 1]} : vector<1x12x24x20xf32> to vector<1x12x1x20xf32>
    %61 = vector.extract_strided_slice %41 {offsets = [0, 0, 13, 0], sizes = [1, 12, 1, 20], strides = [1, 1, 1, 1]} : vector<1x12x24x20xf32> to vector<1x12x1x20xf32>
    %62 = arith.maximumf %60, %61 : vector<1x12x1x20xf32>
    %63 = vector.extract_strided_slice %41 {offsets = [0, 0, 14, 0], sizes = [1, 12, 1, 20], strides = [1, 1, 1, 1]} : vector<1x12x24x20xf32> to vector<1x12x1x20xf32>
    %64 = vector.extract_strided_slice %41 {offsets = [0, 0, 15, 0], sizes = [1, 12, 1, 20], strides = [1, 1, 1, 1]} : vector<1x12x24x20xf32> to vector<1x12x1x20xf32>
    %65 = arith.maximumf %63, %64 : vector<1x12x1x20xf32>
    %66 = vector.extract_strided_slice %41 {offsets = [0, 0, 16, 0], sizes = [1, 12, 1, 20], strides = [1, 1, 1, 1]} : vector<1x12x24x20xf32> to vector<1x12x1x20xf32>
    %67 = vector.extract_strided_slice %41 {offsets = [0, 0, 17, 0], sizes = [1, 12, 1, 20], strides = [1, 1, 1, 1]} : vector<1x12x24x20xf32> to vector<1x12x1x20xf32>
    %68 = arith.maximumf %66, %67 : vector<1x12x1x20xf32>
    %69 = vector.extract_strided_slice %41 {offsets = [0, 0, 18, 0], sizes = [1, 12, 1, 20], strides = [1, 1, 1, 1]} : vector<1x12x24x20xf32> to vector<1x12x1x20xf32>
    %70 = vector.extract_strided_slice %41 {offsets = [0, 0, 19, 0], sizes = [1, 12, 1, 20], strides = [1, 1, 1, 1]} : vector<1x12x24x20xf32> to vector<1x12x1x20xf32>
    %71 = arith.maximumf %69, %70 : vector<1x12x1x20xf32>
    %72 = vector.extract_strided_slice %41 {offsets = [0, 0, 20, 0], sizes = [1, 12, 1, 20], strides = [1, 1, 1, 1]} : vector<1x12x24x20xf32> to vector<1x12x1x20xf32>
    %73 = vector.extract_strided_slice %41 {offsets = [0, 0, 21, 0], sizes = [1, 12, 1, 20], strides = [1, 1, 1, 1]} : vector<1x12x24x20xf32> to vector<1x12x1x20xf32>
    %74 = arith.maximumf %72, %73 : vector<1x12x1x20xf32>
    %75 = vector.extract_strided_slice %41 {offsets = [0, 0, 22, 0], sizes = [1, 12, 1, 20], strides = [1, 1, 1, 1]} : vector<1x12x24x20xf32> to vector<1x12x1x20xf32>
    %76 = vector.extract_strided_slice %41 {offsets = [0, 0, 23, 0], sizes = [1, 12, 1, 20], strides = [1, 1, 1, 1]} : vector<1x12x24x20xf32> to vector<1x12x1x20xf32>
    %77 = arith.maximumf %75, %76 : vector<1x12x1x20xf32>
    %78 = tpu.concatenate %44, %47, %50, %53, %56, %59, %62, %65, %68, %71, %74, %77 in 2 : vector<1x12x1x20xf32>, vector<1x12x1x20xf32>, vector<1x12x1x20xf32>, vector<1x12x1x20xf32>, vector<1x12x1x20xf32>, vector<1x12x1x20xf32>, vector<1x12x1x20xf32>, vector<1x12x1x20xf32>, vector<1x12x1x20xf32>, vector<1x12x1x20xf32>, vector<1x12x1x20xf32>, vector<1x12x1x20xf32> -> vector<1x12x12x20xf32>
    %79 = vector.extract_strided_slice %78 {offsets = [0, 0, 0, 0], sizes = [1, 8, 8, 20], strides = [1, 1, 1, 1]} : vector<1x12x12x20xf32> to vector<1x8x8x20xf32>
    %80 = vector.extract_strided_slice %78 {offsets = [0, 0, 1, 0], sizes = [1, 8, 8, 20], strides = [1, 1, 1, 1]} : vector<1x12x12x20xf32> to vector<1x8x8x20xf32>
    %81 = vector.extract_strided_slice %78 {offsets = [0, 0, 2, 0], sizes = [1, 8, 8, 20], strides = [1, 1, 1, 1]} : vector<1x12x12x20xf32> to vector<1x8x8x20xf32>
    %82 = vector.extract_strided_slice %78 {offsets = [0, 0, 3, 0], sizes = [1, 8, 8, 20], strides = [1, 1, 1, 1]} : vector<1x12x12x20xf32> to vector<1x8x8x20xf32>
    %83 = vector.extract_strided_slice %78 {offsets = [0, 0, 4, 0], sizes = [1, 8, 8, 20], strides = [1, 1, 1, 1]} : vector<1x12x12x20xf32> to vector<1x8x8x20xf32>
    %84 = vector.extract_strided_slice %78 {offsets = [0, 1, 0, 0], sizes = [1, 8, 8, 20], strides = [1, 1, 1, 1]} : vector<1x12x12x20xf32> to vector<1x8x8x20xf32>
    %85 = vector.extract_strided_slice %78 {offsets = [0, 1, 1, 0], sizes = [1, 8, 8, 20], strides = [1, 1, 1, 1]} : vector<1x12x12x20xf32> to vector<1x8x8x20xf32>
    %86 = vector.extract_strided_slice %78 {offsets = [0, 1, 2, 0], sizes = [1, 8, 8, 20], strides = [1, 1, 1, 1]} : vector<1x12x12x20xf32> to vector<1x8x8x20xf32>
    %87 = vector.extract_strided_slice %78 {offsets = [0, 1, 3, 0], sizes = [1, 8, 8, 20], strides = [1, 1, 1, 1]} : vector<1x12x12x20xf32> to vector<1x8x8x20xf32>
    %88 = vector.extract_strided_slice %78 {offsets = [0, 1, 4, 0], sizes = [1, 8, 8, 20], strides = [1, 1, 1, 1]} : vector<1x12x12x20xf32> to vector<1x8x8x20xf32>
    %89 = vector.extract_strided_slice %78 {offsets = [0, 2, 0, 0], sizes = [1, 8, 8, 20], strides = [1, 1, 1, 1]} : vector<1x12x12x20xf32> to vector<1x8x8x20xf32>
    %90 = vector.extract_strided_slice %78 {offsets = [0, 2, 1, 0], sizes = [1, 8, 8, 20], strides = [1, 1, 1, 1]} : vector<1x12x12x20xf32> to vector<1x8x8x20xf32>
    %91 = vector.extract_strided_slice %78 {offsets = [0, 2, 2, 0], sizes = [1, 8, 8, 20], strides = [1, 1, 1, 1]} : vector<1x12x12x20xf32> to vector<1x8x8x20xf32>
    %92 = vector.extract_strided_slice %78 {offsets = [0, 2, 3, 0], sizes = [1, 8, 8, 20], strides = [1, 1, 1, 1]} : vector<1x12x12x20xf32> to vector<1x8x8x20xf32>
    %93 = vector.extract_strided_slice %78 {offsets = [0, 2, 4, 0], sizes = [1, 8, 8, 20], strides = [1, 1, 1, 1]} : vector<1x12x12x20xf32> to vector<1x8x8x20xf32>
    %94 = vector.extract_strided_slice %78 {offsets = [0, 3, 0, 0], sizes = [1, 8, 8, 20], strides = [1, 1, 1, 1]} : vector<1x12x12x20xf32> to vector<1x8x8x20xf32>
    %95 = vector.extract_strided_slice %78 {offsets = [0, 3, 1, 0], sizes = [1, 8, 8, 20], strides = [1, 1, 1, 1]} : vector<1x12x12x20xf32> to vector<1x8x8x20xf32>
    %96 = vector.extract_strided_slice %78 {offsets = [0, 3, 2, 0], sizes = [1, 8, 8, 20], strides = [1, 1, 1, 1]} : vector<1x12x12x20xf32> to vector<1x8x8x20xf32>
    %97 = vector.extract_strided_slice %78 {offsets = [0, 3, 3, 0], sizes = [1, 8, 8, 20], strides = [1, 1, 1, 1]} : vector<1x12x12x20xf32> to vector<1x8x8x20xf32>
    %98 = vector.extract_strided_slice %78 {offsets = [0, 3, 4, 0], sizes = [1, 8, 8, 20], strides = [1, 1, 1, 1]} : vector<1x12x12x20xf32> to vector<1x8x8x20xf32>
    %99 = vector.extract_strided_slice %78 {offsets = [0, 4, 0, 0], sizes = [1, 8, 8, 20], strides = [1, 1, 1, 1]} : vector<1x12x12x20xf32> to vector<1x8x8x20xf32>
    %100 = vector.extract_strided_slice %78 {offsets = [0, 4, 1, 0], sizes = [1, 8, 8, 20], strides = [1, 1, 1, 1]} : vector<1x12x12x20xf32> to vector<1x8x8x20xf32>
    %101 = vector.extract_strided_slice %78 {offsets = [0, 4, 2, 0], sizes = [1, 8, 8, 20], strides = [1, 1, 1, 1]} : vector<1x12x12x20xf32> to vector<1x8x8x20xf32>
    %102 = vector.extract_strided_slice %78 {offsets = [0, 4, 3, 0], sizes = [1, 8, 8, 20], strides = [1, 1, 1, 1]} : vector<1x12x12x20xf32> to vector<1x8x8x20xf32>
    %103 = vector.extract_strided_slice %78 {offsets = [0, 4, 4, 0], sizes = [1, 8, 8, 20], strides = [1, 1, 1, 1]} : vector<1x12x12x20xf32> to vector<1x8x8x20xf32>
    %104 = tpu.concatenate %79, %80, %81, %82, %83, %84, %85, %86, %87, %88, %89, %90, %91, %92, %93, %94 in 3 : vector<1x8x8x20xf32>, vector<1x8x8x20xf32>, vector<1x8x8x20xf32>, vector<1x8x8x20xf32>, vector<1x8x8x20xf32>, vector<1x8x8x20xf32>, vector<1x8x8x20xf32>, vector<1x8x8x20xf32>, vector<1x8x8x20xf32>, vector<1x8x8x20xf32>, vector<1x8x8x20xf32>, vector<1x8x8x20xf32>, vector<1x8x8x20xf32>, vector<1x8x8x20xf32>, vector<1x8x8x20xf32>, vector<1x8x8x20xf32> -> vector<1x8x8x320xf32>
    %105 = tpu.concatenate %95, %96, %97, %98, %99, %100, %101, %102, %103 in 3 : vector<1x8x8x20xf32>, vector<1x8x8x20xf32>, vector<1x8x8x20xf32>, vector<1x8x8x20xf32>, vector<1x8x8x20xf32>, vector<1x8x8x20xf32>, vector<1x8x8x20xf32>, vector<1x8x8x20xf32>, vector<1x8x8x20xf32> -> vector<1x8x8x180xf32>
    %106 = tpu.concatenate %104, %105 in 3 : vector<1x8x8x320xf32>, vector<1x8x8x180xf32> -> vector<1x8x8x500xf32>
    %107 = vector.shape_cast %106 : vector<1x8x8x500xf32> to vector<64x500xf32>
    %c0_9 = arith.constant 0 : index
    %c0_10 = arith.constant 0 : index
    %108 = vector.load %arg4[%c0_9, %c0_10] : memref<500x50xf32, #tpu.memory_space<vmem>>, vector<500x50xf32>
    %cst_11 = arith.constant dense<0.000000e+00> : vector<64x50xf32>
    %109 = tpu.matmul %107, %108, %cst_11 {dimension_numbers = #tpu.dot_dimension_numbers<[1], [0], [0], [1], [0, 0, 1, 1], [], []>} : vector<64x500xf32>, vector<500x50xf32>, vector<64x50xf32> -> vector<64x50xf32>
    %c0_12 = arith.constant 0 : index
    %c0_13 = arith.constant 0 : index
    %110 = vector.load %arg5[%c0_12, %c0_13] : memref<1x50xf32, #tpu.memory_space<vmem>>, vector<1x50xf32>
    %111 = vector.broadcast %110 : vector<1x50xf32> to vector<64x50xf32>
    %112 = arith.addf %109, %111 : vector<64x50xf32>
    %cst_14 = arith.constant 0.000000e+00 : f32
    %113 = vector.broadcast %cst_14 : f32 to vector<64x50xf32>
    %114 = arith.maximumf %112, %113 : vector<64x50xf32>
    %115 = vector.shape_cast %114 : vector<64x50xf32> to vector<1x8x8x50xf32>
    %116 = vector.shape_cast %115 : vector<1x8x8x50xf32> to vector<1x4x2x8x50xf32>
    %cst_15 = arith.constant dense<0xFF800000> : vector<1x4x8x50xf32>
    %117 = vector.multi_reduction <maximumf>, %116, %cst_15 [2] : vector<1x4x2x8x50xf32> to vector<1x4x8x50xf32>
    %118 = vector.extract_strided_slice %117 {offsets = [0, 0, 0, 0], sizes = [1, 4, 1, 50], strides = [1, 1, 1, 1]} : vector<1x4x8x50xf32> to vector<1x4x1x50xf32>
    %119 = vector.extract_strided_slice %117 {offsets = [0, 0, 1, 0], sizes = [1, 4, 1, 50], strides = [1, 1, 1, 1]} : vector<1x4x8x50xf32> to vector<1x4x1x50xf32>
    %120 = arith.maximumf %118, %119 : vector<1x4x1x50xf32>
    %121 = vector.extract_strided_slice %117 {offsets = [0, 0, 2, 0], sizes = [1, 4, 1, 50], strides = [1, 1, 1, 1]} : vector<1x4x8x50xf32> to vector<1x4x1x50xf32>
    %122 = vector.extract_strided_slice %117 {offsets = [0, 0, 3, 0], sizes = [1, 4, 1, 50], strides = [1, 1, 1, 1]} : vector<1x4x8x50xf32> to vector<1x4x1x50xf32>
    %123 = arith.maximumf %121, %122 : vector<1x4x1x50xf32>
    %124 = vector.extract_strided_slice %117 {offsets = [0, 0, 4, 0], sizes = [1, 4, 1, 50], strides = [1, 1, 1, 1]} : vector<1x4x8x50xf32> to vector<1x4x1x50xf32>
    %125 = vector.extract_strided_slice %117 {offsets = [0, 0, 5, 0], sizes = [1, 4, 1, 50], strides = [1, 1, 1, 1]} : vector<1x4x8x50xf32> to vector<1x4x1x50xf32>
    %126 = arith.maximumf %124, %125 : vector<1x4x1x50xf32>
    %127 = vector.extract_strided_slice %117 {offsets = [0, 0, 6, 0], sizes = [1, 4, 1, 50], strides = [1, 1, 1, 1]} : vector<1x4x8x50xf32> to vector<1x4x1x50xf32>
    %128 = vector.extract_strided_slice %117 {offsets = [0, 0, 7, 0], sizes = [1, 4, 1, 50], strides = [1, 1, 1, 1]} : vector<1x4x8x50xf32> to vector<1x4x1x50xf32>
    %129 = arith.maximumf %127, %128 : vector<1x4x1x50xf32>
    %130 = tpu.concatenate %120, %123, %126, %129 in 2 : vector<1x4x1x50xf32>, vector<1x4x1x50xf32>, vector<1x4x1x50xf32>, vector<1x4x1x50xf32> -> vector<1x4x4x50xf32>
    %cst_16 = arith.constant 0.000000e+00 : f32
    %131 = vector.broadcast %cst_16 : f32 to vector<1x500xf32>
    %132 = vector.extract_strided_slice %130 {offsets = [0, 0, 0, 0], sizes = [1, 1, 1, 50], strides = [1, 1, 1, 1]} : vector<1x4x4x50xf32> to vector<1x1x1x50xf32>
    %133 = vector.shape_cast %132 : vector<1x1x1x50xf32> to vector<1x50xf32>
    %c0_17 = arith.constant 0 : index
    %c0_18 = arith.constant 0 : index
    %c0_19 = arith.constant 0 : index
    %134 = vector.load %arg6[%c0_17, %c0_18, %c0_19] : memref<16x50x500xf32, #tpu.memory_space<vmem>>, vector<1x50x500xf32>
    %135 = vector.shape_cast %134 : vector<1x50x500xf32> to vector<50x500xf32>
    %cst_20 = arith.constant dense<0.000000e+00> : vector<1x500xf32>
    %136 = tpu.matmul %133, %135, %cst_20 {dimension_numbers = #tpu.dot_dimension_numbers<[1], [0], [0], [1], [0, 0, 1, 1], [], []>} : vector<1x50xf32>, vector<50x500xf32>, vector<1x500xf32> -> vector<1x500xf32>
    %137 = arith.addf %131, %136 : vector<1x500xf32>
    %138 = vector.extract_strided_slice %130 {offsets = [0, 0, 1, 0], sizes = [1, 1, 1, 50], strides = [1, 1, 1, 1]} : vector<1x4x4x50xf32> to vector<1x1x1x50xf32>
    %139 = vector.shape_cast %138 : vector<1x1x1x50xf32> to vector<1x50xf32>
    %c1 = arith.constant 1 : index
    %c0_21 = arith.constant 0 : index
    %c0_22 = arith.constant 0 : index
    %140 = vector.load %arg6[%c1, %c0_21, %c0_22] : memref<16x50x500xf32, #tpu.memory_space<vmem>>, vector<1x50x500xf32>
    %141 = vector.shape_cast %140 : vector<1x50x500xf32> to vector<50x500xf32>
    %cst_23 = arith.constant dense<0.000000e+00> : vector<1x500xf32>
    %142 = tpu.matmul %139, %141, %cst_23 {dimension_numbers = #tpu.dot_dimension_numbers<[1], [0], [0], [1], [0, 0, 1, 1], [], []>} : vector<1x50xf32>, vector<50x500xf32>, vector<1x500xf32> -> vector<1x500xf32>
    %143 = arith.addf %137, %142 : vector<1x500xf32>
    %144 = vector.extract_strided_slice %130 {offsets = [0, 0, 2, 0], sizes = [1, 1, 1, 50], strides = [1, 1, 1, 1]} : vector<1x4x4x50xf32> to vector<1x1x1x50xf32>
    %145 = vector.shape_cast %144 : vector<1x1x1x50xf32> to vector<1x50xf32>
    %c2 = arith.constant 2 : index
    %c0_24 = arith.constant 0 : index
    %c0_25 = arith.constant 0 : index
    %146 = vector.load %arg6[%c2, %c0_24, %c0_25] : memref<16x50x500xf32, #tpu.memory_space<vmem>>, vector<1x50x500xf32>
    %147 = vector.shape_cast %146 : vector<1x50x500xf32> to vector<50x500xf32>
    %cst_26 = arith.constant dense<0.000000e+00> : vector<1x500xf32>
    %148 = tpu.matmul %145, %147, %cst_26 {dimension_numbers = #tpu.dot_dimension_numbers<[1], [0], [0], [1], [0, 0, 1, 1], [], []>} : vector<1x50xf32>, vector<50x500xf32>, vector<1x500xf32> -> vector<1x500xf32>
    %149 = arith.addf %143, %148 : vector<1x500xf32>
    %150 = vector.extract_strided_slice %130 {offsets = [0, 0, 3, 0], sizes = [1, 1, 1, 50], strides = [1, 1, 1, 1]} : vector<1x4x4x50xf32> to vector<1x1x1x50xf32>
    %151 = vector.shape_cast %150 : vector<1x1x1x50xf32> to vector<1x50xf32>
    %c3 = arith.constant 3 : index
    %c0_27 = arith.constant 0 : index
    %c0_28 = arith.constant 0 : index
    %152 = vector.load %arg6[%c3, %c0_27, %c0_28] : memref<16x50x500xf32, #tpu.memory_space<vmem>>, vector<1x50x500xf32>
    %153 = vector.shape_cast %152 : vector<1x50x500xf32> to vector<50x500xf32>
    %cst_29 = arith.constant dense<0.000000e+00> : vector<1x500xf32>
    %154 = tpu.matmul %151, %153, %cst_29 {dimension_numbers = #tpu.dot_dimension_numbers<[1], [0], [0], [1], [0, 0, 1, 1], [], []>} : vector<1x50xf32>, vector<50x500xf32>, vector<1x500xf32> -> vector<1x500xf32>
    %155 = arith.addf %149, %154 : vector<1x500xf32>
    %156 = vector.extract_strided_slice %130 {offsets = [0, 1, 0, 0], sizes = [1, 1, 1, 50], strides = [1, 1, 1, 1]} : vector<1x4x4x50xf32> to vector<1x1x1x50xf32>
    %157 = vector.shape_cast %156 : vector<1x1x1x50xf32> to vector<1x50xf32>
    %c4 = arith.constant 4 : index
    %c0_30 = arith.constant 0 : index
    %c0_31 = arith.constant 0 : index
    %158 = vector.load %arg6[%c4, %c0_30, %c0_31] : memref<16x50x500xf32, #tpu.memory_space<vmem>>, vector<1x50x500xf32>
    %159 = vector.shape_cast %158 : vector<1x50x500xf32> to vector<50x500xf32>
    %cst_32 = arith.constant dense<0.000000e+00> : vector<1x500xf32>
    %160 = tpu.matmul %157, %159, %cst_32 {dimension_numbers = #tpu.dot_dimension_numbers<[1], [0], [0], [1], [0, 0, 1, 1], [], []>} : vector<1x50xf32>, vector<50x500xf32>, vector<1x500xf32> -> vector<1x500xf32>
    %161 = arith.addf %155, %160 : vector<1x500xf32>
    %162 = vector.extract_strided_slice %130 {offsets = [0, 1, 1, 0], sizes = [1, 1, 1, 50], strides = [1, 1, 1, 1]} : vector<1x4x4x50xf32> to vector<1x1x1x50xf32>
    %163 = vector.shape_cast %162 : vector<1x1x1x50xf32> to vector<1x50xf32>
    %c5 = arith.constant 5 : index
    %c0_33 = arith.constant 0 : index
    %c0_34 = arith.constant 0 : index
    %164 = vector.load %arg6[%c5, %c0_33, %c0_34] : memref<16x50x500xf32, #tpu.memory_space<vmem>>, vector<1x50x500xf32>
    %165 = vector.shape_cast %164 : vector<1x50x500xf32> to vector<50x500xf32>
    %cst_35 = arith.constant dense<0.000000e+00> : vector<1x500xf32>
    %166 = tpu.matmul %163, %165, %cst_35 {dimension_numbers = #tpu.dot_dimension_numbers<[1], [0], [0], [1], [0, 0, 1, 1], [], []>} : vector<1x50xf32>, vector<50x500xf32>, vector<1x500xf32> -> vector<1x500xf32>
    %167 = arith.addf %161, %166 : vector<1x500xf32>
    %168 = vector.extract_strided_slice %130 {offsets = [0, 1, 2, 0], sizes = [1, 1, 1, 50], strides = [1, 1, 1, 1]} : vector<1x4x4x50xf32> to vector<1x1x1x50xf32>
    %169 = vector.shape_cast %168 : vector<1x1x1x50xf32> to vector<1x50xf32>
    %c6 = arith.constant 6 : index
    %c0_36 = arith.constant 0 : index
    %c0_37 = arith.constant 0 : index
    %170 = vector.load %arg6[%c6, %c0_36, %c0_37] : memref<16x50x500xf32, #tpu.memory_space<vmem>>, vector<1x50x500xf32>
    %171 = vector.shape_cast %170 : vector<1x50x500xf32> to vector<50x500xf32>
    %cst_38 = arith.constant dense<0.000000e+00> : vector<1x500xf32>
    %172 = tpu.matmul %169, %171, %cst_38 {dimension_numbers = #tpu.dot_dimension_numbers<[1], [0], [0], [1], [0, 0, 1, 1], [], []>} : vector<1x50xf32>, vector<50x500xf32>, vector<1x500xf32> -> vector<1x500xf32>
    %173 = arith.addf %167, %172 : vector<1x500xf32>
    %174 = vector.extract_strided_slice %130 {offsets = [0, 1, 3, 0], sizes = [1, 1, 1, 50], strides = [1, 1, 1, 1]} : vector<1x4x4x50xf32> to vector<1x1x1x50xf32>
    %175 = vector.shape_cast %174 : vector<1x1x1x50xf32> to vector<1x50xf32>
    %c7 = arith.constant 7 : index
    %c0_39 = arith.constant 0 : index
    %c0_40 = arith.constant 0 : index
    %176 = vector.load %arg6[%c7, %c0_39, %c0_40] : memref<16x50x500xf32, #tpu.memory_space<vmem>>, vector<1x50x500xf32>
    %177 = vector.shape_cast %176 : vector<1x50x500xf32> to vector<50x500xf32>
    %cst_41 = arith.constant dense<0.000000e+00> : vector<1x500xf32>
    %178 = tpu.matmul %175, %177, %cst_41 {dimension_numbers = #tpu.dot_dimension_numbers<[1], [0], [0], [1], [0, 0, 1, 1], [], []>} : vector<1x50xf32>, vector<50x500xf32>, vector<1x500xf32> -> vector<1x500xf32>
    %179 = arith.addf %173, %178 : vector<1x500xf32>
    %180 = vector.extract_strided_slice %130 {offsets = [0, 2, 0, 0], sizes = [1, 1, 1, 50], strides = [1, 1, 1, 1]} : vector<1x4x4x50xf32> to vector<1x1x1x50xf32>
    %181 = vector.shape_cast %180 : vector<1x1x1x50xf32> to vector<1x50xf32>
    %c8 = arith.constant 8 : index
    %c0_42 = arith.constant 0 : index
    %c0_43 = arith.constant 0 : index
    %182 = vector.load %arg6[%c8, %c0_42, %c0_43] : memref<16x50x500xf32, #tpu.memory_space<vmem>>, vector<1x50x500xf32>
    %183 = vector.shape_cast %182 : vector<1x50x500xf32> to vector<50x500xf32>
    %cst_44 = arith.constant dense<0.000000e+00> : vector<1x500xf32>
    %184 = tpu.matmul %181, %183, %cst_44 {dimension_numbers = #tpu.dot_dimension_numbers<[1], [0], [0], [1], [0, 0, 1, 1], [], []>} : vector<1x50xf32>, vector<50x500xf32>, vector<1x500xf32> -> vector<1x500xf32>
    %185 = arith.addf %179, %184 : vector<1x500xf32>
    %186 = vector.extract_strided_slice %130 {offsets = [0, 2, 1, 0], sizes = [1, 1, 1, 50], strides = [1, 1, 1, 1]} : vector<1x4x4x50xf32> to vector<1x1x1x50xf32>
    %187 = vector.shape_cast %186 : vector<1x1x1x50xf32> to vector<1x50xf32>
    %c9 = arith.constant 9 : index
    %c0_45 = arith.constant 0 : index
    %c0_46 = arith.constant 0 : index
    %188 = vector.load %arg6[%c9, %c0_45, %c0_46] : memref<16x50x500xf32, #tpu.memory_space<vmem>>, vector<1x50x500xf32>
    %189 = vector.shape_cast %188 : vector<1x50x500xf32> to vector<50x500xf32>
    %cst_47 = arith.constant dense<0.000000e+00> : vector<1x500xf32>
    %190 = tpu.matmul %187, %189, %cst_47 {dimension_numbers = #tpu.dot_dimension_numbers<[1], [0], [0], [1], [0, 0, 1, 1], [], []>} : vector<1x50xf32>, vector<50x500xf32>, vector<1x500xf32> -> vector<1x500xf32>
    %191 = arith.addf %185, %190 : vector<1x500xf32>
    %192 = vector.extract_strided_slice %130 {offsets = [0, 2, 2, 0], sizes = [1, 1, 1, 50], strides = [1, 1, 1, 1]} : vector<1x4x4x50xf32> to vector<1x1x1x50xf32>
    %193 = vector.shape_cast %192 : vector<1x1x1x50xf32> to vector<1x50xf32>
    %c10 = arith.constant 10 : index
    %c0_48 = arith.constant 0 : index
    %c0_49 = arith.constant 0 : index
    %194 = vector.load %arg6[%c10, %c0_48, %c0_49] : memref<16x50x500xf32, #tpu.memory_space<vmem>>, vector<1x50x500xf32>
    %195 = vector.shape_cast %194 : vector<1x50x500xf32> to vector<50x500xf32>
    %cst_50 = arith.constant dense<0.000000e+00> : vector<1x500xf32>
    %196 = tpu.matmul %193, %195, %cst_50 {dimension_numbers = #tpu.dot_dimension_numbers<[1], [0], [0], [1], [0, 0, 1, 1], [], []>} : vector<1x50xf32>, vector<50x500xf32>, vector<1x500xf32> -> vector<1x500xf32>
    %197 = arith.addf %191, %196 : vector<1x500xf32>
    %198 = vector.extract_strided_slice %130 {offsets = [0, 2, 3, 0], sizes = [1, 1, 1, 50], strides = [1, 1, 1, 1]} : vector<1x4x4x50xf32> to vector<1x1x1x50xf32>
    %199 = vector.shape_cast %198 : vector<1x1x1x50xf32> to vector<1x50xf32>
    %c11 = arith.constant 11 : index
    %c0_51 = arith.constant 0 : index
    %c0_52 = arith.constant 0 : index
    %200 = vector.load %arg6[%c11, %c0_51, %c0_52] : memref<16x50x500xf32, #tpu.memory_space<vmem>>, vector<1x50x500xf32>
    %201 = vector.shape_cast %200 : vector<1x50x500xf32> to vector<50x500xf32>
    %cst_53 = arith.constant dense<0.000000e+00> : vector<1x500xf32>
    %202 = tpu.matmul %199, %201, %cst_53 {dimension_numbers = #tpu.dot_dimension_numbers<[1], [0], [0], [1], [0, 0, 1, 1], [], []>} : vector<1x50xf32>, vector<50x500xf32>, vector<1x500xf32> -> vector<1x500xf32>
    %203 = arith.addf %197, %202 : vector<1x500xf32>
    %204 = vector.extract_strided_slice %130 {offsets = [0, 3, 0, 0], sizes = [1, 1, 1, 50], strides = [1, 1, 1, 1]} : vector<1x4x4x50xf32> to vector<1x1x1x50xf32>
    %205 = vector.shape_cast %204 : vector<1x1x1x50xf32> to vector<1x50xf32>
    %c12 = arith.constant 12 : index
    %c0_54 = arith.constant 0 : index
    %c0_55 = arith.constant 0 : index
    %206 = vector.load %arg6[%c12, %c0_54, %c0_55] : memref<16x50x500xf32, #tpu.memory_space<vmem>>, vector<1x50x500xf32>
    %207 = vector.shape_cast %206 : vector<1x50x500xf32> to vector<50x500xf32>
    %cst_56 = arith.constant dense<0.000000e+00> : vector<1x500xf32>
    %208 = tpu.matmul %205, %207, %cst_56 {dimension_numbers = #tpu.dot_dimension_numbers<[1], [0], [0], [1], [0, 0, 1, 1], [], []>} : vector<1x50xf32>, vector<50x500xf32>, vector<1x500xf32> -> vector<1x500xf32>
    %209 = arith.addf %203, %208 : vector<1x500xf32>
    %210 = vector.extract_strided_slice %130 {offsets = [0, 3, 1, 0], sizes = [1, 1, 1, 50], strides = [1, 1, 1, 1]} : vector<1x4x4x50xf32> to vector<1x1x1x50xf32>
    %211 = vector.shape_cast %210 : vector<1x1x1x50xf32> to vector<1x50xf32>
    %c13 = arith.constant 13 : index
    %c0_57 = arith.constant 0 : index
    %c0_58 = arith.constant 0 : index
    %212 = vector.load %arg6[%c13, %c0_57, %c0_58] : memref<16x50x500xf32, #tpu.memory_space<vmem>>, vector<1x50x500xf32>
    %213 = vector.shape_cast %212 : vector<1x50x500xf32> to vector<50x500xf32>
    %cst_59 = arith.constant dense<0.000000e+00> : vector<1x500xf32>
    %214 = tpu.matmul %211, %213, %cst_59 {dimension_numbers = #tpu.dot_dimension_numbers<[1], [0], [0], [1], [0, 0, 1, 1], [], []>} : vector<1x50xf32>, vector<50x500xf32>, vector<1x500xf32> -> vector<1x500xf32>
    %215 = arith.addf %209, %214 : vector<1x500xf32>
    %216 = vector.extract_strided_slice %130 {offsets = [0, 3, 2, 0], sizes = [1, 1, 1, 50], strides = [1, 1, 1, 1]} : vector<1x4x4x50xf32> to vector<1x1x1x50xf32>
    %217 = vector.shape_cast %216 : vector<1x1x1x50xf32> to vector<1x50xf32>
    %c14 = arith.constant 14 : index
    %c0_60 = arith.constant 0 : index
    %c0_61 = arith.constant 0 : index
    %218 = vector.load %arg6[%c14, %c0_60, %c0_61] : memref<16x50x500xf32, #tpu.memory_space<vmem>>, vector<1x50x500xf32>
    %219 = vector.shape_cast %218 : vector<1x50x500xf32> to vector<50x500xf32>
    %cst_62 = arith.constant dense<0.000000e+00> : vector<1x500xf32>
    %220 = tpu.matmul %217, %219, %cst_62 {dimension_numbers = #tpu.dot_dimension_numbers<[1], [0], [0], [1], [0, 0, 1, 1], [], []>} : vector<1x50xf32>, vector<50x500xf32>, vector<1x500xf32> -> vector<1x500xf32>
    %221 = arith.addf %215, %220 : vector<1x500xf32>
    %222 = vector.extract_strided_slice %130 {offsets = [0, 3, 3, 0], sizes = [1, 1, 1, 50], strides = [1, 1, 1, 1]} : vector<1x4x4x50xf32> to vector<1x1x1x50xf32>
    %223 = vector.shape_cast %222 : vector<1x1x1x50xf32> to vector<1x50xf32>
    %c15 = arith.constant 15 : index
    %c0_63 = arith.constant 0 : index
    %c0_64 = arith.constant 0 : index
    %224 = vector.load %arg6[%c15, %c0_63, %c0_64] : memref<16x50x500xf32, #tpu.memory_space<vmem>>, vector<1x50x500xf32>
    %225 = vector.shape_cast %224 : vector<1x50x500xf32> to vector<50x500xf32>
    %cst_65 = arith.constant dense<0.000000e+00> : vector<1x500xf32>
    %226 = tpu.matmul %223, %225, %cst_65 {dimension_numbers = #tpu.dot_dimension_numbers<[1], [0], [0], [1], [0, 0, 1, 1], [], []>} : vector<1x50xf32>, vector<50x500xf32>, vector<1x500xf32> -> vector<1x500xf32>
    %227 = arith.addf %221, %226 : vector<1x500xf32>
    %c0_66 = arith.constant 0 : index
    %c0_67 = arith.constant 0 : index
    %228 = vector.load %arg7[%c0_66, %c0_67] : memref<1x500xf32, #tpu.memory_space<vmem>>, vector<1x500xf32>
    %229 = arith.addf %227, %228 : vector<1x500xf32>
    %cst_68 = arith.constant 0.000000e+00 : f32
    %230 = vector.broadcast %cst_68 : f32 to vector<1x500xf32>
    %231 = arith.maximumf %229, %230 : vector<1x500xf32>
    %c0_69 = arith.constant 0 : index
    %c0_70 = arith.constant 0 : index
    %232 = vector.load %arg8[%c0_69, %c0_70] : memref<500x10xf32, #tpu.memory_space<vmem>>, vector<500x10xf32>
    %cst_71 = arith.constant dense<0.000000e+00> : vector<1x10xf32>
    %233 = tpu.matmul %231, %232, %cst_71 {dimension_numbers = #tpu.dot_dimension_numbers<[1], [0], [0], [1], [0, 0, 1, 1], [], []>} : vector<1x500xf32>, vector<500x10xf32>, vector<1x10xf32> -> vector<1x10xf32>
    %c0_72 = arith.constant 0 : index
    %c0_73 = arith.constant 0 : index
    %234 = vector.load %arg9[%c0_72, %c0_73] : memref<1x10xf32, #tpu.memory_space<vmem>>, vector<1x10xf32>
    %235 = arith.addf %233, %234 : vector<1x10xf32>
    %cst_74 = arith.constant dense<0xFF800000> : vector<1xf32>
    %236 = vector.multi_reduction <maximumf>, %235, %cst_74 [1] : vector<1x10xf32> to vector<1xf32>
    %237 = vector.shape_cast %236 : vector<1xf32> to vector<1x1xf32>
    %238 = vector.broadcast %237 : vector<1x1xf32> to vector<1x10xf32>
    %239 = arith.subf %235, %238 : vector<1x10xf32>
    %240 = math.exp %239 : vector<1x10xf32>
    %cst_75 = arith.constant dense<0.000000e+00> : vector<1xf32>
    %241 = vector.multi_reduction <add>, %240, %cst_75 [1] : vector<1x10xf32> to vector<1xf32>
    %242 = vector.shape_cast %241 : vector<1xf32> to vector<1x1xf32>
    %243 = math.log %242 : vector<1x1xf32>
    %244 = arith.addf %243, %237 : vector<1x1xf32>
    %245 = vector.broadcast %244 : vector<1x1xf32> to vector<1x10xf32>
    %246 = arith.subf %235, %245 : vector<1x10xf32>
    %247 = vector.shape_cast %246 : vector<1x10xf32> to vector<1x1x10xf32>
    %c0_76 = arith.constant 0 : index
    %c0_77 = arith.constant 0 : index
    %c0_78 = arith.constant 0 : index
    %248 = vector.load %arg10[%c0_76, %c0_77, %c0_78] : memref<1x1x10xf32, #tpu.memory_space<vmem>>, vector<1x1x10xf32>
    tpu.vector_store %arg10[%c0_76, %c0_77, %c0_78], %247 {strides = array<i32>} : memref<1x1x10xf32, #tpu.memory_space<vmem>>, vector<1x1x10xf32>,
    return
  }
  func.func @transform_0(%arg0: i32) -> (i32, i32, i32, i32) {
    %c0_i32 = arith.constant 0 : i32
    %c0_i32_0 = arith.constant 0 : i32
    %c0_i32_1 = arith.constant 0 : i32
    %c0_i32_2 = arith.constant 0 : i32
    return %arg0, %c0_i32, %c0_i32_0, %c0_i32_1 : i32, i32, i32, i32
  }
  func.func @transform_1(%arg0: i32) -> (i32, i32) {
    %c0_i32 = arith.constant 0 : i32
    %c0_i32_0 = arith.constant 0 : i32
    %c0_i32_1 = arith.constant 0 : i32
    return %c0_i32, %c0_i32_0 : i32, i32
  }
  func.func @transform_2(%arg0: i32) -> (i32, i32) {
    %c0_i32 = arith.constant 0 : i32
    %c0_i32_0 = arith.constant 0 : i32
    %c0_i32_1 = arith.constant 0 : i32
    return %c0_i32, %c0_i32_0 : i32, i32
  }
  func.func @transform_3(%arg0: i32) -> (i32, i32) {
    %c0_i32 = arith.constant 0 : i32
    %c0_i32_0 = arith.constant 0 : i32
    %c0_i32_1 = arith.constant 0 : i32
    return %c0_i32, %c0_i32_0 : i32, i32
  }
  func.func @transform_4(%arg0: i32) -> (i32, i32) {
    %c0_i32 = arith.constant 0 : i32
    %c0_i32_0 = arith.constant 0 : i32
    %c0_i32_1 = arith.constant 0 : i32
    return %c0_i32, %c0_i32_0 : i32, i32
  }
  func.func @transform_5(%arg0: i32) -> (i32, i32, i32) {
    %c0_i32 = arith.constant 0 : i32
    %c0_i32_0 = arith.constant 0 : i32
    %c0_i32_1 = arith.constant 0 : i32
    %c0_i32_2 = arith.constant 0 : i32
    return %c0_i32, %c0_i32_0, %c0_i32_1 : i32, i32, i32
  }
  func.func @transform_6(%arg0: i32) -> (i32, i32) {
    %c0_i32 = arith.constant 0 : i32
    %c0_i32_0 = arith.constant 0 : i32
    %c0_i32_1 = arith.constant 0 : i32
    return %c0_i32, %c0_i32_0 : i32, i32
  }
  func.func @transform_7(%arg0: i32) -> (i32, i32) {
    %c0_i32 = arith.constant 0 : i32
    %c0_i32_0 = arith.constant 0 : i32
    %c0_i32_1 = arith.constant 0 : i32
    return %c0_i32, %c0_i32_0 : i32, i32
  }
  func.func @transform_8(%arg0: i32) -> (i32, i32) {
    %c0_i32 = arith.constant 0 : i32
    %c0_i32_0 = arith.constant 0 : i32
    %c0_i32_1 = arith.constant 0 : i32
    return %c0_i32, %c0_i32_0 : i32, i32
  }
  func.func @transform_9(%arg0: i32) -> (i32, i32, i32) {
    %c0_i32 = arith.constant 0 : i32
    %c0_i32_0 = arith.constant 0 : i32
    %c0_i32_1 = arith.constant 0 : i32
    return %arg0, %c0_i32, %c0_i32_0 : i32, i32, i32
  }
}

</mosaic_0001>

<bundles_post_ra>
// kernel: lenet_forward.1
= control target key start
LH: loop header
LB: loop body
LE: loop exit
PB: predicated region body
PF: predicated region fallthrough
CT: control target
= control target key end

     0   :  { %s16243_s0 = inlined_call_operand.vmem [shape: f32[2,28,1,28], index: 0, kind: input, shape index: {}]   ;;  %s16244_s1 = inlined_call_operand.vmem [shape: f32[25,20], index: 1, kind: input, shape index: {}]   ;;  %s16245_s2 = inlined_call_operand.vmem [shape: f32[1,20], index: 2, kind: input, shape index: {}]   ;;  %s16246_s3 = inlined_call_operand.vmem [shape: f32[500,50], index: 3, kind: input, shape index: {}]   ;;  %s16247_s4 = inlined_call_operand.vmem [shape: f32[1,50], index: 4, kind: input, shape index: {}]   ;;  %s16248_s5 = inlined_call_operand.vmem [shape: f32[16,50,500], index: 5, kind: input, shape index: {}]   ;;  %s16249_s6 = inlined_call_operand.vmem [shape: f32[1,500], index: 6, kind: input, shape index: {}]   ;;  %s16250_s7 = inlined_call_operand.vmem [shape: f32[500,10], index: 7, kind: input, shape index: {}]   ;;  %s16251_s8 = inlined_call_operand.vmem [shape: f32[1,10], index: 8, kind: input, shape index: {}]   ;;  %s16252_s9 = inlined_call_operand.hbm [shape: f32[2,1,10], index: 9, kind: output, shape index: {}]  }
   0x1   :  { %16511 = sst [smem:[#allocation132_spill]] %s16243_s0 }
   0x2   :  { %16512 = sst [smem:[#allocation133_spill]] %s16244_s1 }
   0x3   :  { %16513 = sst [smem:[#allocation134_spill]] %s16245_s2 }
   0x4   :  { %16514 = sst [smem:[#allocation135_spill]] %s16246_s3 }
   0x5   :  { %14 = vsyncpa [#allocation3], 0 }
   0x6   :  { %16 = vsyncpa [#allocation3 + $0x1], 0  ;;  %s10484_s30 = smov 0   ;;  %s10486_s10 = smov 0  }
   0x7   :  { %s10488_s11 = smov 0   ;;  %s10490_s12 = smov 0  }
   0x8 LB: > { %16515 = sst [smem:[#allocation5_spill]] %s10395_s30  ;;  %s10505_s13 = sadd.s32 4294967295, %s10407_s12   ;;  %s10407_s12 = sphi %s10490_s12, %s16999_s12   ;;  %s10403_s11 = sphi %s10488_s11, %s17001_s11   ;;  %s10399_s10 = sphi %s10486_s10, %s17003_s10   ;;  %s10395_s30 = sphi %s10484_s30, %s17002_s30  }
   0x9   : > { %16516 = sst [smem:[#allocation6_spill]] %s10403_s11  ;;  %s8574_s14 = sadd.s32 4294967294, %s10407_s12  }
   0xa   : > { %16517 = sst [smem:[#allocation7_spill]] %s10407_s12  ;;  %s10509_s15 = sadd.s32 1, %s10407_s12  }
   0xb   : > { %16518 = sst [smem:[#allocation8_spill]] %s10509_s15  ;;  %s223_s16 = sadd.s32 1, %s10403_s11 }
   0xc   : > { %s220_s17 = ssub.s32 %s10407_s12, %s10509_s15  ;;  %p233_p0 = scmp.ne.s32.totalorder %s10403_s11, %s10399_s10 }
   0xd   : > { %p221_p1 = scmp.eq.s32.totalorder %s220_s17, 0  ;;  %p234_p2 = scmp.eq.s32.totalorder %s10505_s13, 1 }
   0xe   : > { %p239_p3 = scmp.ne.s32.totalorder %s10399_s10, %s10395_s30  ;;  %p240_p4 = scmp.eq.s32.totalorder %s8574_s14, 1 }
   0xf   : > { %s10520_s18 = scalar_select %p221_p1, %s10403_s11, %s223_s16  }
  0x10   : > { %p10522_p5 = por %p234_p2, %p233_p0  ;;  %p10526_p6 = por %p240_p4, %p239_p3 }
  0x11   : > { %16519 = sst [smem:[#allocation9_spill]] %s10520_s18  ;;  %p8577_p7 = scmp.ge.s32.totalorder %s10407_s12, 1 }
  0x12   : > { %s16521_s20 = scalar_select %p10526_p6, 1, 0 }
  0x13   : > { %p289_p8 = scmp.lt.s32.totalorder %s10407_s12, 3 }
  0x14   : > { %16522 = sst [smem:[#allocation10_spill]] %s16521_s20 }
  0x15   : > { %p290_p9 = pnand %p8577_p7, %p289_p8 }
  0x17   : > { %293 = sbr.rel (%p290_p9) target bundleno = 3208 (0xc88), region = 56 }
  0x1e   : > { %p323_p10 = scmp.lt.s32.totalorder %s10505_s13, 1  ;;  %v379_v0 = vlaneseq  ;;  %s16525_s0 = sld [smem:[#allocation132_spill]]  ;;  %vm16498_vm0 = vcmask 1040384   ;;  %vm853_vm1 = vcmask 1041408   ;;  %vm16486_vm2 = vcmask 1042432  }
  0x1f   : > { %s10409_s26 = smov 125   ;;  %s10410_s27 = smov 127   ;;  %vm16485_vm3 = vcmask 1043456   ;;  %vm928_vm4 = vcmask 1044480   ;;  %vm16484_vm5 = vcmask 1045504   ;;  %vm978_vm6 = vcmask 1046528  }
  0x20   : > { %s324_s21 = scalar_select %p323_p10, %s10505_s13, 1  ;;  %v10534_v1 = vshrl.u32 %v379_v0, 7  ;;  %vm10414_vm7 = vmmov 1   ;;  %vm2318_vm9 = vcmask 203776   ;;  %vm16500_vm10 = vcmask 162816  }
  0x21   : > { %s10411_s28 = smov 1   ;;  %s16397_s29 = smov 126   ;;  %vm9472_vm8 = vmpackc.low %vm16498_vm0, %vm10414_vm7  ;;  %vm16499_vm11 = vcmask 326656   ;;  %vm4238_vm12 = vcmask 97280   ;;  %vm16497_vm13 = vcmask 490496   ;;  %vm4247_vm14 = vcmask 261120  }
  0x22   : > { %16523 = vst [vmem:[#allocation11_spill] sm:$0xff] %v10534_v1  ;;  %s10075_s22 = smul.u32 28, %s324_s21  ;;  %v10537_v2 = vsub.s32 0, %v10534_v1  ;;  %s16395_s14 = smov 124   ;;  %vm4211_vm15 = vcmask 654336   ;;  %vm4220_vm7 = vcmask 818176  }
  0x23   : > { %s16648_s1 = sld [smem:[#allocation133_spill]]  ;;  %s16851_s2 = sld [smem:[#allocation134_spill]] }
  0x24   : > { %16524 = vst [vmem:[#allocation12_spill] sm:$0xff] %v10537_v2  ;;  %s10542_s25 = scalar_lea.vmem %s16525_s0, %s10075_s22  ;;  %s16443_s16 = smov 40  }
  0x25   : > { %v10545_v3 = vld [vmem:[%s10542_s25 + $0x3] sm:$0x1]  ;;  %v10548_v4 = vld [vmem:[%s10542_s25 + $0x4] sm:$0x1]  ;;  %v10567_v7 = vld [vmem:[%s10542_s25 + $0x5] sm:$0x1] }
  0x26   : > { %v10552_v5 = vrot.slane %v10545_v3, %v10537_v2  ;;  %v10560_v6 = vrot.slane %v10548_v4, %v10537_v2  ;;  %v10575_v8 = vrot.slane %v10567_v7, %v10537_v2  ;;  %v10582_v9 = vld [vmem:[%s10542_s25 + $0x6] sm:$0x1]  ;;  %v10597_v11 = vld [vmem:[%s10542_s25 + $0x7] sm:$0x1]  ;;  %v10612_v13 = vld [vmem:[%s10542_s25 + $0x8] sm:$0x1] }
  0x27   : > { %v10590_v10 = vrot.slane %v10582_v9, %v10537_v2  ;;  %v10605_v12 = vrot.slane %v10597_v11, %v10537_v2  ;;  %v10620_v14 = vrot.slane %v10612_v13, %v10537_v2  ;;  %v10627_v15 = vld [vmem:[%s10542_s25 + $0x9] sm:$0x1]  ;;  %v10642_v17 = vld [vmem:[%s10542_s25 + $0xa] sm:$0x1]  ;;  %v10657_v19 = vld [vmem:[%s10542_s25 + $0xb] sm:$0x1] }
  0x28   : > { %16526 = vst [vmem:[#allocation13_spill] sm:$0xff] %v10552_v5  ;;  %625 = vrot.lane.b32.xlu1 %v10552_v5, %s10409_s26  ;;  %481 = vrot.lane.b32.xlu0 %v10552_v5, %s10410_s27  ;;  %16527 = vst [vmem:[#allocation14_spill] sm:$0xff] %v10560_v6  ;;  %v10635_v16 = vrot.slane %v10627_v15, %v10537_v2  ;;  %v10650_v18 = vrot.slane %v10642_v17, %v10537_v2  ;;  %v10672_v21 = vld [vmem:[%s10542_s25 + $0xc] sm:$0x1]  ;;  %v10683_v23 = vld [vmem:[%s10542_s25] sm:$0x1] }
  0x29   : > { %16528 = vst [vmem:[#allocation15_spill] sm:$0xff] %v10590_v10  ;;  %16529 = vst [vmem:[#allocation16_spill] sm:$0xff] %v10620_v14  ;;  %v10665_v20 = vrot.slane %v10657_v19, %v10537_v2  ;;  %v10680_v22 = vrot.slane %v10672_v21, %v10537_v2  ;;  %v382_v24 = vrot.slane %v10683_v23, %v10537_v2  ;;  %v10695_v25 = vld [vmem:[%s10542_s25 + $0x1] ss:$0 sm:$0xff]  ;;  %v10704_v26 = vld [vmem:[%s10542_s25 + $0xd] sm:$0x1] }
  0x2a   : > { %16530 = vst [vmem:[#allocation17_spill] sm:$0xff] %v10635_v16  ;;  %16531 = vst [vmem:[#allocation18_spill] sm:$0xff] %v10650_v18  ;;  %v10712_v27 = vrot.slane %v10704_v26, %v10537_v2  ;;  %v10715_v28 = vld [vmem:[%s10542_s25 + $0x2] ss:$0 sm:$0xff]  ;;  %v10733_v29 = vld [vmem:[%s10542_s25 + $0xe] sm:$0x1] }
  0x2b   : > { %16532 = vst [vmem:[#allocation19_spill] sm:$0xff] %v10665_v20  ;;  %16533 = vst [vmem:[#allocation20_spill] sm:$0xff] %v10680_v22  ;;  %v10741_v30 = vrot.slane %v10733_v29, %v10537_v2  ;;  %v10752_v31 = vld [vmem:[%s10542_s25 + $0xf] sm:$0x1]  ;;  %s16445_s17 = smov 12   ;;  %s16439_s21 = smov 120  }
  0x2c   : > { %1185 = vrot.lane.b32.xlu1 %v10560_v6, %s10411_s28  ;;  %553 = vrot.lane.b32.xlu0 %v10552_v5, %s16397_s29  ;;  %16534 = vst [vmem:[#allocation21_spill] sm:$0xff] %v10695_v25  ;;  %16535 = vst [vmem:[#allocation22_spill] sm:$0xff] %v10712_v27  ;;  %v10764_v34 = vrot.slane %v10752_v31, %v10537_v2  ;;  %s16427_s22 = smov 80   ;;  %s16423_s23 = smov 92  }
  0x2d   : > { %s16433_s24 = smov 32   ;;  %s16862_s3 = sld [smem:[#allocation135_spill]] }
  0x2e   : > { %s16869_s0 = smov 40   ;;  %s9181_s11 = sshll.u32 %s10505_s13, 4 }
  0x2f   : > { %s10433_s13 = smov [#allocation2]  }
  0x30   : > { %555 = vrot.lane.b32.xlu1 %v10560_v6, %s16397_s29  ;;  %483 = vrot.lane.b32.xlu0 %v10560_v6, %s10410_s27 }
  0x34   : > { %1187 = vrot.lane.b32.xlu1 %v10575_v8, %s10411_s28  ;;  %627 = vrot.lane.b32.xlu0 %v10560_v6, %s10409_s26 }
  0x38   : > { %557 = vrot.lane.b32.xlu1 %v10575_v8, %s16397_s29  ;;  %485 = vrot.lane.b32.xlu0 %v10575_v8, %s10410_s27 }
  0x3c   : > { %1189 = vrot.lane.b32.xlu1 %v10590_v10, %s10411_s28  ;;  %629 = vrot.lane.b32.xlu0 %v10575_v8, %s10409_s26 }
  0x40   : > { %559 = vrot.lane.b32.xlu1 %v10590_v10, %s16397_s29  ;;  %487 = vrot.lane.b32.xlu0 %v10590_v10, %s10410_s27 }
  0x44   : > { %1191 = vrot.lane.b32.xlu1 %v10605_v12, %s10411_s28  ;;  %631 = vrot.lane.b32.xlu0 %v10590_v10, %s10409_s26 }
  0x48   : > { %561 = vrot.lane.b32.xlu1 %v10605_v12, %s16397_s29  ;;  %489 = vrot.lane.b32.xlu0 %v10605_v12, %s10410_s27 }
  0x4c   : > { %1193 = vrot.lane.b32.xlu1 %v10620_v14, %s10411_s28  ;;  %633 = vrot.lane.b32.xlu0 %v10605_v12, %s10409_s26 }
  0x50   : > { %563 = vrot.lane.b32.xlu1 %v10620_v14, %s16397_s29  ;;  %491 = vrot.lane.b32.xlu0 %v10620_v14, %s10410_s27 }
  0x54   : > { %1195 = vrot.lane.b32.xlu1 %v10635_v16, %s10411_s28  ;;  %635 = vrot.lane.b32.xlu0 %v10620_v14, %s10409_s26 }
  0x58   : > { %565 = vrot.lane.b32.xlu1 %v10635_v16, %s16397_s29  ;;  %493 = vrot.lane.b32.xlu0 %v10635_v16, %s10410_s27 }
  0x5c   : > { %1197 = vrot.lane.b32.xlu1 %v10650_v18, %s10411_s28  ;;  %637 = vrot.lane.b32.xlu0 %v10635_v16, %s10409_s26 }
  0x60   : > { %567 = vrot.lane.b32.xlu1 %v10650_v18, %s16397_s29  ;;  %495 = vrot.lane.b32.xlu0 %v10650_v18, %s10410_s27 }
  0x64   : > { %1199 = vrot.lane.b32.xlu1 %v10665_v20, %s10411_s28  ;;  %639 = vrot.lane.b32.xlu0 %v10650_v18, %s10409_s26 }
  0x68   : > { %569 = vrot.lane.b32.xlu1 %v10665_v20, %s16397_s29  ;;  %497 = vrot.lane.b32.xlu0 %v10665_v20, %s10410_s27 }
  0x6c   : > { %1201 = vrot.lane.b32.xlu1 %v10680_v22, %s10411_s28  ;;  %641 = vrot.lane.b32.xlu0 %v10665_v20, %s10409_s26 }
  0x70   : > { %499 = vrot.lane.b32.xlu0 %v10680_v22, %s10410_s27  ;;  %475 = vrot.lane.b32.xlu1 %v382_v24, %s10410_s27 }
  0x74   : > { %571 = vrot.lane.b32.xlu0 %v10680_v22, %s16397_s29  ;;  %547 = vrot.lane.b32.xlu1 %v382_v24, %s16397_s29 }
  0x78   : > { %619 = vrot.lane.b32.xlu0 %v382_v24, %s10409_s26  ;;  %621 = vrot.lane.b32.xlu1 %v10695_v25, %s10409_s26 }
  0x7c   : > { %643 = vrot.lane.b32.xlu0 %v10680_v22, %s10409_s26  ;;  %693 = vrot.lane.b32.xlu1 %v10695_v25, %s16395_s14 }
  0x80   : > { %691 = vrot.lane.b32.xlu0 %v382_v24, %s16395_s14  ;;  %1203 = vrot.lane.b32.xlu1 %v10712_v27, %s10411_s28 }
  0x84   : > { %479 = vrot.lane.b32.xlu0 %v10715_v28, %s10410_s27  ;;  %477 = vrot.lane.b32.xlu1 %v10695_v25, %s10410_s27 }
  0x88   : > { %501 = vrot.lane.b32.xlu0 %v10712_v27, %s10410_s27  ;;  %551 = vrot.lane.b32.xlu1 %v10715_v28, %s16397_s29 }
  0x8c   : > { %549 = vrot.lane.b32.xlu0 %v10695_v25, %s16397_s29  ;;  %573 = vrot.lane.b32.xlu1 %v10712_v27, %s16397_s29 }
  0x90   : > { %623 = vrot.lane.b32.xlu0 %v10715_v28, %s10409_s26  ;;  %695 = vrot.lane.b32.xlu1 %v10715_v28, %s16395_s14 }
  0x94   : > { %645 = vrot.lane.b32.xlu0 %v10712_v27, %s10409_s26  ;;  %1205 = vrot.lane.b32.xlu1 %v10741_v30, %s10411_s28 }
  0x98   : > { %503 = vrot.lane.b32.xlu0 %v10741_v30, %s10410_s27  ;;  %697 = vrot.lane.b32.xlu1 %v10552_v5, %s16395_s14 }
  0x9a   : > { %v10754_v32 = vpop.permute.xlu1 %625  ;;  %v10756_v33 = vpop.permute.xlu0 %481 }
  0x9b   : > { %16536 = vst [vmem:[#allocation23_spill] sm:$0xff] %v10754_v32  ;;  %16537 = vst [vmem:[#allocation24_spill] sm:$0xff] %v10756_v33  ;;  %v832_v37 = vsel %vm16498_vm0, %v10545_v3, %v10756_v33 }
  0x9c   : > { %575 = vrot.lane.b32.xlu0 %v10741_v30, %s16397_s29  ;;  %647 = vrot.lane.b32.xlu1 %v10741_v30, %s10409_s26 }
  0x9e   : > { %v1186_v35 = vpop.permute.xlu1 %1185  ;;  %v10766_v36 = vpop.permute.xlu0 %553 }
  0x9f   : > { %16538 = vst [vmem:[#allocation25_spill] sm:$0xff] %v10766_v36  ;;  %v857_v40 = vsel %vm853_vm1, %v832_v37, %v10766_v36 }
  0xa0   : > { %1207 = vrot.lane.b32.xlu0 %v10764_v34, %s10411_s28  ;;  %505 = vrot.lane.b32.xlu1 %v10764_v34, %s10410_s27  ;;  %v10788_v42 = vsel %vm16486_vm2, %v857_v40, %v10754_v32 }
  0xa1   : > { %16541 = vst [vmem:[#allocation28_spill] sm:$0xff] %v10788_v42  ;;  %v1275_v49 = vsel %vm16485_vm3, %v10788_v42, %v1186_v35  ;;  %v10855_v35 = vld [vmem:[%s10542_s25 + $0x10] sm:$0x1] }
  0xa2   : > { %v10775_v38 = vpop.permute.xlu1 %555  ;;  %v10777_v39 = vpop.permute.xlu0 %483  ;;  %v1299_v54 = vsel %vm928_vm4, %v1275_v49, %v10560_v6 }
  0xa3   : > { %16539 = vst [vmem:[#allocation26_spill] sm:$0xff] %v10775_v38  ;;  %16540 = vst [vmem:[#allocation27_spill] sm:$0xff] %v10777_v39  ;;  %v833_v41 = vsel %vm16498_vm0, %v10548_v4, %v10777_v39  ;;  %v1323_v60 = vsel %vm16484_vm5, %v1299_v54, %v10777_v39 }
  0xa4   : > { %577 = vrot.lane.b32.xlu1 %v10764_v34, %s16397_s29  ;;  %v858_v44 = vsel %vm853_vm1, %v833_v41, %v10775_v38  ;;  %v1347_v3 = vsel %vm978_vm6, %v1323_v60, %v10775_v38 }
  0xa6   : > { %v1188_v43 = vpop.permute.xlu1 %1187  ;;  %v10792_v45 = vpop.permute.xlu0 %627 }
  0xa7   : > { %16542 = vst [vmem:[#allocation29_spill] sm:$0xff] %v10792_v45  ;;  %v10796_v46 = vsel %vm16486_vm2, %v858_v44, %v10792_v45  ;;  %1397 = vrot.lane.b32.xlu0 %v10792_v45, %s10410_s27 }
  0xa8   : > { %16543 = vst [vmem:[#allocation30_spill] sm:$0xff] %v10796_v46  ;;  %v1276_v47 = vsel %vm16485_vm3, %v10796_v46, %v1188_v43  ;;  %v10870_v43 = vrot.slane %v10855_v35, %v10537_v2 }
  0xa9   : > { %v1300_v48 = vsel %vm928_vm4, %v1276_v47, %v10575_v8 }
  0xaa   : > { %v10806_v50 = vpop.permute.xlu1 %557  ;;  %v10808_v51 = vpop.permute.xlu0 %485  ;;  %16548 = vst [vmem:[#allocation35_spill] sm:$0xff] %v10870_v43 }
  0xab   : > { %v834_v52 = vsel %vm16498_vm0, %v10567_v7, %v10808_v51  ;;  %699 = vrot.lane.b32.xlu0 %v10560_v6, %s16395_s14  ;;  %v1324_v53 = vsel %vm16484_vm5, %v1300_v48, %v10808_v51 }
  0xac   : > { %v859_v56 = vsel %vm853_vm1, %v834_v52, %v10806_v50  ;;  %v1348_v58 = vsel %vm978_vm6, %v1324_v53, %v10806_v50 }
  0xae   : > { %v1190_v55 = vpop.permute.xlu1 %1189  ;;  %v10821_v57 = vpop.permute.xlu0 %629 }
  0xaf   : > { %v10827_v59 = vsel %vm16486_vm2, %v859_v56, %v10821_v57  ;;  %1399 = vrot.lane.b32.xlu0 %v1348_v58, %s10410_s27  ;;  %1401 = vrot.lane.b32.xlu1 %v10821_v57, %s10410_s27 }
  0xb0   : > { %16544 = vst [vmem:[#allocation31_spill] sm:$0xff] %v10827_v59  ;;  %v1277_v61 = vsel %vm16485_vm3, %v10827_v59, %v1190_v55 }
  0xb1   : > { %v1301_v62 = vsel %vm928_vm4, %v1277_v61, %v10590_v10 }
  0xb2   : > { %v10838_v63 = vpop.permute.xlu1 %559  ;;  %v10840_v0 = vpop.permute.xlu0 %487 }
  0xb3   : > { %16545 = vst [vmem:[#allocation32_spill] sm:$0xff] %v10838_v63  ;;  %16546 = vst [vmem:[#allocation33_spill] sm:$0xff] %v10840_v0  ;;  %v835_v4 = vsel %vm16498_vm0, %v10582_v9, %v10840_v0  ;;  %649 = vrot.lane.b32.xlu0 %v10764_v34, %s10409_s26  ;;  %1395 = vrot.lane.b32.xlu1 %v1347_v3, %s10410_s27  ;;  %v1325_v7 = vsel %vm16484_vm5, %v1301_v62, %v10840_v0  ;;  %v10911_v62 = vld [vmem:[%s10542_s25 + $0x11] sm:$0x1] }
  0xb4   : > { %v860_v24 = vsel %vm853_vm1, %v835_v4, %v10838_v63  ;;  %v1349_v41 = vsel %vm978_vm6, %v1325_v7, %v10838_v63 }
  0xb6   : > { %v1192_v37 = vpop.permute.xlu1 %1191  ;;  %v10857_v40 = vpop.permute.xlu0 %631 }
  0xb7   : > { %v10863_v9 = vsel %vm16486_vm2, %v860_v24, %v10857_v40  ;;  %701 = vrot.lane.b32.xlu0 %v10575_v8, %s16395_s14  ;;  %1403 = vrot.lane.b32.xlu1 %v1349_v41, %s10410_s27  ;;  %v10923_v24 = vrot.slane %v10911_v62, %v10537_v2 }
  0xb8   : > { %16547 = vst [vmem:[#allocation34_spill] sm:$0xff] %v10863_v9  ;;  %v1278_v44 = vsel %vm16485_vm3, %v10863_v9, %v1192_v37 }
  0xb9   : > { %v1302_v47 = vsel %vm928_vm4, %v1278_v44, %v10605_v12  ;;  %16553 = vst [vmem:[#allocation40_spill] sm:$0xff] %v10923_v24 }
  0xba   : > { %v10876_v48 = vpop.permute.xlu1 %561  ;;  %v10878_v49 = vpop.permute.xlu0 %489 }
  0xbb   : > { %1209 = vrot.lane.b32.xlu0 %v10870_v43, %s10411_s28  ;;  %1405 = vrot.lane.b32.xlu1 %v10857_v40, %s10410_s27  ;;  %v1326_v52 = vsel %vm16484_vm5, %v1302_v47, %v10878_v49  ;;  %v836_v53 = vsel %vm16498_vm0, %v10597_v11, %v10878_v49 }
  0xbc   : > { %v1350_v56 = vsel %vm978_vm6, %v1326_v52, %v10876_v48  ;;  %v861_v58 = vsel %vm853_vm1, %v836_v53, %v10876_v48 }
  0xbe   : > { %v1194_v54 = vpop.permute.xlu1 %1193  ;;  %v10889_v55 = vpop.permute.xlu0 %633 }
  0xbf   : > { %1407 = vrot.lane.b32.xlu0 %v1350_v56, %s10410_s27  ;;  %507 = vrot.lane.b32.xlu1 %v10870_v43, %s10410_s27  ;;  %v10900_v60 = vsel %vm16486_vm2, %v861_v58, %v10889_v55 }
  0xc0   : > { %16549 = vst [vmem:[#allocation36_spill] sm:$0xff] %v10900_v60  ;;  %v1279_v3 = vsel %vm16485_vm3, %v10900_v60, %v1194_v54 }
  0xc1   : > { %v1303_v41 = vsel %vm928_vm4, %v1279_v3, %v10620_v14  ;;  %v10954_v3 = vld [vmem:[%s10542_s25 + $0x12] sm:$0x1] }
  0xc2   : > { %v10902_v61 = vpop.permute.xlu1 %563  ;;  %v10904_v11 = vpop.permute.xlu0 %491 }
  0xc3   : > { %16550 = vst [vmem:[#allocation37_spill] sm:$0xff] %v10902_v61  ;;  %16551 = vst [vmem:[#allocation38_spill] sm:$0xff] %v10904_v11  ;;  %703 = vrot.lane.b32.xlu0 %v10590_v10, %s16395_s14  ;;  %579 = vrot.lane.b32.xlu1 %v10870_v43, %s16397_s29  ;;  %v837_v37 = vsel %vm16498_vm0, %v10612_v13, %v10904_v11  ;;  %v1327_v53 = vsel %vm16484_vm5, %v1303_v41, %v10904_v11 }
  0xc4   : > { %v862_v52 = vsel %vm853_vm1, %v837_v37, %v10902_v61  ;;  %v1351_v58 = vsel %vm978_vm6, %v1327_v53, %v10902_v61  ;;  %v10968_v53 = vrot.slane %v10954_v3, %v10537_v2 }
  0xc6   : > { %v1196_v4 = vpop.permute.xlu1 %1195  ;;  %v10915_v7 = vpop.permute.xlu0 %635  ;;  %16560 = vst [vmem:[#allocation47_spill] sm:$0xff] %v10968_v53 }
  0xc7   : > { %16552 = vst [vmem:[#allocation39_spill] sm:$0xff] %v10915_v7  ;;  %651 = vrot.lane.b32.xlu0 %v10870_v43, %s10409_s26  ;;  %1409 = vrot.lane.b32.xlu1 %v10889_v55, %s10410_s27  ;;  %v10944_v13 = vsel %vm16486_vm2, %v862_v52, %v10915_v7 }
  0xc8   : > { %16556 = vst [vmem:[#allocation43_spill] sm:$0xff] %v10944_v13  ;;  %v1280_v37 = vsel %vm16485_vm3, %v10944_v13, %v1196_v4 }
  0xca   : > { %v10930_v44 = vpop.permute.xlu1 %565  ;;  %v10932_v47 = vpop.permute.xlu0 %493 }
  0xcb   : > { %16554 = vst [vmem:[#allocation41_spill] sm:$0xff] %v10930_v44  ;;  %16555 = vst [vmem:[#allocation42_spill] sm:$0xff] %v10932_v47  ;;  %509 = vrot.lane.b32.xlu0 %v10923_v24, %s10410_s27  ;;  %1211 = vrot.lane.b32.xlu1 %v10923_v24, %s10411_s28  ;;  %v838_v59 = vsel %vm16498_vm0, %v10627_v15, %v10932_v47 }
  0xcc   : > { %v863_v39 = vsel %vm853_vm1, %v838_v59, %v10930_v44 }
  0xce   : > { %v1198_v54 = vpop.permute.xlu1 %1197  ;;  %v10946_v56 = vpop.permute.xlu0 %637 }
  0xcf   : > { %16557 = vst [vmem:[#allocation44_spill] sm:$0xff] %v10946_v56  ;;  %581 = vrot.lane.b32.xlu0 %v10923_v24, %s16397_s29  ;;  %1411 = vrot.lane.b32.xlu1 %v1351_v58, %s10410_s27  ;;  %v1304_v58 = vsel %vm928_vm4, %v1280_v37, %v10635_v16 }
  0xd0   : > { %v1328_v4 = vsel %vm16484_vm5, %v1304_v58, %v10932_v47  ;;  %v10996_v58 = vsel %vm16486_vm2, %v863_v39, %v10946_v56 }
  0xd1   : > { %v1352_v38 = vsel %vm978_vm6, %v1328_v4, %v10930_v44  ;;  %16564 = vst [vmem:[#allocation51_spill] sm:$0xff] %v10996_v58  ;;  %v11005_v4 = vld [vmem:[%s10542_s25 + $0x13] sm:$0x1] }
  0xd2   : > { %v10958_v41 = vpop.permute.xlu1 %567  ;;  %v10960_v52 = vpop.permute.xlu0 %495  ;;  %v11019_v39 = vrot.slane %v11005_v4, %v10537_v2 }
  0xd3   : > { %16558 = vst [vmem:[#allocation45_spill] sm:$0xff] %v10958_v41  ;;  %16559 = vst [vmem:[#allocation46_spill] sm:$0xff] %v10960_v52  ;;  %1413 = vrot.lane.b32.xlu0 %v10915_v7, %s10410_s27  ;;  %705 = vrot.lane.b32.xlu1 %v10605_v12, %s16395_s14  ;;  %v839_v36 = vsel %vm16498_vm0, %v10642_v17, %v10960_v52  ;;  %v11052_v7 = vld [vmem:[%s10542_s25 + $0x14] sm:$0x1] }
  0xd4   : > { %v864_v44 = vsel %vm853_vm1, %v839_v36, %v10958_v41 }
  0xd6   : > { %v1200_v1 = vpop.permute.xlu1 %1199  ;;  %v10972_v60 = vpop.permute.xlu0 %639 }
  0xd7   : > { %16561 = vst [vmem:[#allocation48_spill] sm:$0xff] %v10972_v60  ;;  %1213 = vrot.lane.b32.xlu0 %v10968_v53, %s10411_s28  ;;  %653 = vrot.lane.b32.xlu1 %v10923_v24, %s10409_s26  ;;  %v11040_v17 = vsel %vm16486_vm2, %v864_v44, %v10972_v60 }
  0xd8   : > { %16568 = vst [vmem:[#allocation55_spill] sm:$0xff] %v11040_v17 }
  0xda   : > { %v10983_v42 = vpop.permute.xlu1 %569  ;;  %v10985_v37 = vpop.permute.xlu0 %497 }
  0xdb   : > { %16562 = vst [vmem:[#allocation49_spill] sm:$0xff] %v10983_v42  ;;  %16563 = vst [vmem:[#allocation50_spill] sm:$0xff] %v10985_v37  ;;  %1415 = vrot.lane.b32.xlu0 %v1352_v38, %s10410_s27  ;;  %511 = vrot.lane.b32.xlu1 %v10968_v53, %s10410_s27  ;;  %v1281_v38 = vsel %vm16485_vm3, %v10996_v58, %v1198_v54 }
  0xdc   : > { %v1305_v54 = vsel %vm928_vm4, %v1281_v38, %v10650_v18 }
  0xdd   : > { %v1329_v47 = vsel %vm16484_vm5, %v1305_v54, %v10960_v52  ;;  %v1282_v54 = vsel %vm16485_vm3, %v11040_v17, %v1200_v1 }
  0xde   : > { %v1202_v15 = vpop.permute.xlu1 %1201  ;;  %v10998_v6 = vpop.permute.xlu0 %641  ;;  %v1353_v36 = vsel %vm978_vm6, %v1329_v47, %v10958_v41  ;;  %v11066_v47 = vrot.slane %v11052_v7, %v10537_v2 }
  0xdf   : > { %16565 = vst [vmem:[#allocation52_spill] sm:$0xff] %v10998_v6  ;;  %707 = vrot.lane.b32.xlu0 %v10620_v14, %s16395_s14  ;;  %583 = vrot.lane.b32.xlu1 %v10968_v53, %s16397_s29 }
  0xe0   : > { %16572 = vst [vmem:[#allocation59_spill] sm:$0xff] %v11066_v47 }
  0xe2   : > { %v11009_v59 = vpop.permute.xlu0 %499  ;;  %v11011_v32 = vpop.permute.xlu1 %475 }
  0xe3   : > { %16566 = vst [vmem:[#allocation53_spill] sm:$0xff] %v11009_v59  ;;  %655 = vrot.lane.b32.xlu0 %v10968_v53, %s10409_s26  ;;  %1417 = vrot.lane.b32.xlu1 %v10946_v56, %s10410_s27 }
  0xe6   : > { %v11026_v58 = vpop.permute.xlu0 %571  ;;  %v11028_v33 = vpop.permute.xlu1 %547 }
  0xe7   : > { %16567 = vst [vmem:[#allocation54_spill] sm:$0xff] %v11026_v58  ;;  %513 = vrot.lane.b32.xlu0 %v11019_v39, %s10410_s27  ;;  %1215 = vrot.lane.b32.xlu1 %v11019_v39, %s10411_s28 }
  0xea   : > { %v11042_v38 = vpop.permute.xlu0 %619  ;;  %v11044_v13 = vpop.permute.xlu1 %621 }
  0xeb   : > { %16569 = vst [vmem:[#allocation56_spill] sm:$0xff] %v11044_v13  ;;  %585 = vrot.lane.b32.xlu0 %v11019_v39, %s16397_s29  ;;  %1419 = vrot.lane.b32.xlu1 %v1353_v36, %s10410_s27  ;;  %v1306_v36 = vsel %vm928_vm4, %v1282_v54, %v10665_v20 }
  0xec   : > { %v1330_v17 = vsel %vm16484_vm5, %v1306_v36, %v10985_v37 }
  0xed   : > { %v1354_v9 = vsel %vm978_vm6, %v1330_v17, %v10983_v42 }
  0xee   : > { %v11056_v61 = vpop.permute.xlu0 %643  ;;  %v11058_v44 = vpop.permute.xlu1 %693 }
  0xef   : > { %16570 = vst [vmem:[#allocation57_spill] sm:$0xff] %v11056_v61  ;;  %16571 = vst [vmem:[#allocation58_spill] sm:$0xff] %v11058_v44  ;;  %1421 = vrot.lane.b32.xlu0 %v10972_v60, %s10410_s27  ;;  %709 = vrot.lane.b32.xlu1 %v10635_v16, %s16395_s14  ;;  %v840_v16 = vsel %vm16498_vm0, %v10657_v19, %v10985_v37 }
  0xf0   : > { %v865_v46 = vsel %vm853_vm1, %v840_v16, %v10983_v42 }
  0xf1   : > { %v11098_v19 = vsel %vm16486_vm2, %v865_v46, %v10998_v6 }
  0xf2   : > { %v11070_v11 = vpop.permute.xlu0 %691  ;;  %v1204_v1 = vpop.permute.xlu1 %1203  ;;  %16576 = vst [vmem:[#allocation63_spill] sm:$0xff] %v11098_v19  ;;  %v1283_v42 = vsel %vm16485_vm3, %v11098_v19, %v1202_v15  ;;  %v841_v19 = vsel %vm16498_vm0, %v10672_v21, %v11009_v59 }
  0xf3   : > { %1217 = vrot.lane.b32.xlu0 %v11066_v47, %s10411_s28  ;;  %657 = vrot.lane.b32.xlu1 %v11019_v39, %s10409_s26  ;;  %v1307_v37 = vsel %vm928_vm4, %v1283_v42, %v10680_v22 }
  0xf4   : > { %v1331_v15 = vsel %vm16484_vm5, %v1307_v37, %v11009_v59  ;;  %v866_v37 = vsel %vm853_vm1, %v841_v19, %v11026_v58 }
  0xf5   : > { %v11158_v59 = vsel %vm16486_vm2, %v866_v37, %v11056_v61 }
  0xf6   : > { %v11081_v14 = vpop.permute.xlu0 %479  ;;  %v11083_v54 = vpop.permute.xlu1 %477  ;;  %16584 = vst [vmem:[#allocation71_spill] sm:$0xff] %v11158_v59 }
  0xf7   : > { %16573 = vst [vmem:[#allocation60_spill] sm:$0xff] %v11081_v14  ;;  %16574 = vst [vmem:[#allocation61_spill] sm:$0xff] %v11083_v54  ;;  %1423 = vrot.lane.b32.xlu0 %v1354_v9, %s10410_s27  ;;  %515 = vrot.lane.b32.xlu1 %v11066_v47, %s10410_s27  ;;  %v11105_v9 = vld [vmem:[%s10542_s25 + $0x15] sm:$0x1] }
  0xf8   : > { %v11117_v46 = vrot.slane %v11105_v9, %v10537_v2 }
  0xfa   : > { %v11092_v36 = vpop.permute.xlu0 %501  ;;  %v11094_v5 = vpop.permute.xlu1 %551  ;;  %16579 = vst [vmem:[#allocation66_spill] sm:$0xff] %v11117_v46 }
  0xfb   : > { %16575 = vst [vmem:[#allocation62_spill] sm:$0xff] %v11092_v36  ;;  %711 = vrot.lane.b32.xlu0 %v10650_v18, %s16395_s14  ;;  %587 = vrot.lane.b32.xlu1 %v11066_v47, %s16397_s29 }
  0xfe   : > { %v11107_v16 = vpop.permute.xlu0 %549  ;;  %v11109_v17 = vpop.permute.xlu1 %573 }
  0xff   : > { %16577 = vst [vmem:[#allocation64_spill] sm:$0xff] %v11107_v16  ;;  %16578 = vst [vmem:[#allocation65_spill] sm:$0xff] %v11109_v17  ;;  %659 = vrot.lane.b32.xlu0 %v11066_v47, %s10409_s26  ;;  %1425 = vrot.lane.b32.xlu1 %v10998_v6, %s10410_s27 }
 0x102   : > { %v11123_v16 = vpop.permute.xlu0 %623  ;;  %v11125_v54 = vpop.permute.xlu1 %695 }
 0x103   : > { %16580 = vst [vmem:[#allocation67_spill] sm:$0xff] %v11123_v16  ;;  %16581 = vst [vmem:[#allocation68_spill] sm:$0xff] %v11125_v54  ;;  %517 = vrot.lane.b32.xlu0 %v11117_v46, %s10410_s27  ;;  %1219 = vrot.lane.b32.xlu1 %v11117_v46, %s10411_s28  ;;  %v1355_v54 = vsel %vm978_vm6, %v1331_v15, %v11026_v58  ;;  %v11144_v16 = vld [vmem:[%s10542_s25 + $0x16] sm:$0x1] }
 0x104   : > { %v11154_v21 = vrot.slane %v11144_v16, %v10537_v2 }
 0x106   : > { %v11136_v6 = vpop.permute.xlu0 %645  ;;  %v1206_v42 = vpop.permute.xlu1 %1205  ;;  %16583 = vst [vmem:[#allocation70_spill] sm:$0xff] %v11154_v21 }
 0x107   : > { %16582 = vst [vmem:[#allocation69_spill] sm:$0xff] %v11136_v6  ;;  %589 = vrot.lane.b32.xlu0 %v11117_v46, %s16397_s29  ;;  %1427 = vrot.lane.b32.xlu1 %v1355_v54, %s10410_s27  ;;  %v1284_v54 = vsel %vm16485_vm3, %v11158_v59, %v1204_v1 }
 0x108   : > { %v1308_v58 = vsel %vm928_vm4, %v1284_v54, %v10712_v27 }
 0x10a   : > { %v11148_v25 = vpop.permute.xlu0 %503  ;;  %v11164_v19 = vpop.permute.xlu1 %697 }
 0x10b   : > { %1429 = vrot.lane.b32.xlu0 %v11056_v61, %s10410_s27  ;;  %713 = vrot.lane.b32.xlu1 %v10665_v20, %s16395_s14  ;;  %16585 = vst [vmem:[#allocation72_spill] sm:$0xff] %v11164_v19  ;;  %v1332_v61 = vsel %vm16484_vm5, %v1308_v58, %v11092_v36  ;;  %v842_v19 = vsel %vm16498_vm0, %v10704_v26, %v11092_v36  ;;  %v11201_v58 = vld [vmem:[%s10542_s25 + $0x17] sm:$0x1] }
 0x10c   : > { %v1356_v1 = vsel %vm978_vm6, %v1332_v61, %v11109_v17  ;;  %v867_v54 = vsel %vm853_vm1, %v842_v19, %v11109_v17  ;;  %16587 = vst [vmem:[#allocation74_spill] sm:$0xff] %v11201_v58 }
 0x10d   : > { %v11196_v26 = vsel %vm16486_vm2, %v867_v54, %v11136_v6 }
 0x10e   : > { %v11166_v15 = vpop.permute.xlu0 %575  ;;  %v11174_v37 = vpop.permute.xlu1 %647  ;;  %16586 = vst [vmem:[#allocation73_spill] sm:$0xff] %v11196_v26  ;;  %v1285_v19 = vsel %vm16485_vm3, %v11196_v26, %v1206_v42 }
 0x10f   : > { %1221 = vrot.lane.b32.xlu0 %v11154_v21, %s10411_s28  ;;  %661 = vrot.lane.b32.xlu1 %v11117_v46, %s10409_s26 }
 0x112   : > { %v1208_v59 = vpop.permute.xlu0 %1207  ;;  %v11188_v20 = vpop.permute.xlu1 %505 }
 0x113   : > { %1431 = vrot.lane.b32.xlu0 %v1356_v1, %s10410_s27  ;;  %519 = vrot.lane.b32.xlu1 %v11154_v21, %s10410_s27  ;;  %v11211_v1 = vrot.slane %v11201_v58, %v10537_v2 }
 0x116   : > { %v11213_v17 = vpop.permute.xlu1 %577 }
 0x117   : > { %715 = vrot.lane.b32.xlu0 %v10680_v22, %s16395_s14  ;;  %591 = vrot.lane.b32.xlu1 %v11154_v21, %s16397_s29  ;;  %v1309_v22 = vsel %vm928_vm4, %v1285_v19, %v10741_v30 }
 0x119   : > { %v11198_v61 = vpop.permute.xlu0 %1397 }
 0x11b   : > { %663 = vrot.lane.b32.xlu0 %v11154_v21, %s10409_s26  ;;  %1433 = vrot.lane.b32.xlu1 %v11136_v6, %s10410_s27  ;;  %v1333_v6 = vsel %vm16484_vm5, %v1309_v22, %v11148_v25 }
 0x11c   : > { %v1357_v19 = vsel %vm978_vm6, %v1333_v6, %v11166_v15 }
 0x11d   : > { %v11215_v54 = vpop.permute.xlu0 %699 }
 0x11e   : > { %v1006_v36 = vsel %vm16498_vm0, %v10792_v45, %v11215_v54 }
 0x11f   : > { %521 = vrot.lane.b32.xlu0 %v11211_v1, %s10410_s27  ;;  %v1030_v42 = vsel %vm853_vm1, %v1006_v36, %v10575_v8  ;;  %1223 = vrot.lane.b32.xlu1 %v11211_v1, %s10411_s28  ;;  %v843_v36 = vsel %vm16498_vm0, %v10733_v29, %v11148_v25 }
 0x120   : > { %v1054_v45 = vsel %vm16486_vm2, %v1030_v42, %v10808_v51  ;;  %v868_v42 = vsel %vm853_vm1, %v843_v36, %v11166_v15 }
 0x121   : > { %v11228_v58 = vpop.permute.xlu0 %1399  ;;  %v11230_v26 = vpop.permute.xlu1 %1401  ;;  %v1078_v22 = vsel %vm16485_vm3, %v1054_v45, %v10806_v50  ;;  %v11271_v36 = vsel %vm16486_vm2, %v868_v42, %v11174_v37 }
 0x122   : > { %16588 = vst [vmem:[#allocation75_spill] sm:$0xff] %v11228_v58  ;;  %16589 = vst [vmem:[#allocation76_spill] sm:$0xff] %v11230_v26  ;;  %v1102_v6 = vsel %vm928_vm4, %v1078_v22, %v10821_v57 }
 0x123   : > { %1435 = vrot.lane.b32.xlu1 %v1357_v19, %s10410_s27 }
 0x125   : > { %v11242_v2 = vpop.permute.xlu0 %649  ;;  %v11244_v58 = vpop.permute.xlu1 %1395 }
 0x126   : > { %1441 = vrot.lane.b32.xlu0 %v11242_v2, %s10410_s27 }
 0x127   : > { %593 = vrot.lane.b32.xlu1 %v11211_v1, %s16397_s29  ;;  %s16712_s29 = smov 124  }
 0x129   : > { %v11256_v29 = vpop.permute.xlu0 %701  ;;  %v11258_v19 = vpop.permute.xlu1 %1403 }
 0x12a   : > { %16590 = vst [vmem:[#allocation77_spill] sm:$0xff] %v11256_v29  ;;  %16591 = vst [vmem:[#allocation78_spill] sm:$0xff] %v11258_v19  ;;  %v1007_v26 = vsel %vm16498_vm0, %v10821_v57, %v11256_v29  ;;  %v11265_v45 = vsel %vm16484_vm5, %v1102_v6, %v11256_v29  ;;  %719 = vrot.lane.b32.xlu0 %v10741_v30, %s16395_s14  ;;  %v844_v57 = vsel %vm16498_vm0, %v10752_v31, %v11188_v20 }
 0x12b   : > { %16592 = vst [vmem:[#allocation79_spill] sm:$0xff] %v11265_v45  ;;  %v1031_v22 = vsel %vm853_vm1, %v1007_v26, %v10590_v10  ;;  %717 = vrot.lane.b32.xlu1 %v10712_v27, %s16395_s14  ;;  %v1286_v29 = vsel %vm16485_vm3, %v11271_v36, %v1208_v59  ;;  %v869_v45 = vsel %vm853_vm1, %v844_v57, %v11213_v17 }
 0x12c   : > { %v1055_v42 = vsel %vm16486_vm2, %v1031_v22, %v10840_v0  ;;  %v11290_v26 = vsel %vm16486_vm2, %v869_v45, %v11242_v2  ;;  %v1310_v31 = vsel %vm928_vm4, %v1286_v29, %v10764_v34 }
 0x12d   : > { %v1210_v19 = vpop.permute.xlu0 %1209  ;;  %v11280_v6 = vpop.permute.xlu1 %1405  ;;  %16594 = vst [vmem:[#allocation81_spill] sm:$0xff] %v11290_v26  ;;  %v1079_v22 = vsel %vm16485_vm3, %v1055_v42, %v10838_v63  ;;  %v1334_v57 = vsel %vm16484_vm5, %v1310_v31, %v11188_v20 }
 0x12e   : > { %16593 = vst [vmem:[#allocation80_spill] sm:$0xff] %v11280_v6  ;;  %v1287_v10 = vsel %vm16485_vm3, %v11290_v26, %v1210_v19  ;;  %v1103_v29 = vsel %vm928_vm4, %v1079_v22, %v10857_v40  ;;  %v1358_v31 = vsel %vm978_vm6, %v1334_v57, %v11213_v17 }
 0x12f   : > { %1437 = vrot.lane.b32.xlu1 %v11174_v37, %s10410_s27  ;;  %v1311_v45 = vsel %vm928_vm4, %v1287_v10, %v10870_v43 }
 0x131   : > { %v11298_v59 = vpop.permute.xlu0 %1407  ;;  %v11300_v6 = vpop.permute.xlu1 %507 }
 0x132   : > { %16595 = vst [vmem:[#allocation82_spill] sm:$0xff] %v11298_v59  ;;  %16596 = vst [vmem:[#allocation83_spill] sm:$0xff] %v11300_v6  ;;  %v1335_v0 = vsel %vm16484_vm5, %v1311_v45, %v11300_v6 }
 0x133   : > { %665 = vrot.lane.b32.xlu1 %v11211_v1, %s10409_s26 }
 0x135   : > { %v11312_v19 = vpop.permute.xlu0 %703  ;;  %v11314_v26 = vpop.permute.xlu1 %579 }
 0x136   : > { %16597 = vst [vmem:[#allocation84_spill] sm:$0xff] %v11314_v26  ;;  %v11320_v42 = vsel %vm16484_vm5, %v1103_v29, %v11312_v19  ;;  %v1359_v10 = vsel %vm978_vm6, %v1335_v0, %v11314_v26  ;;  %v1008_v22 = vsel %vm16498_vm0, %v10857_v40, %v11312_v19  ;;  %v845_v0 = vsel %vm16498_vm0, %v10855_v35, %v11300_v6 }
 0x137   : > { %1443 = vrot.lane.b32.xlu0 %v1359_v10, %s10410_s27  ;;  %1439 = vrot.lane.b32.xlu1 %v1358_v31, %s10410_s27  ;;  %v1032_v57 = vsel %vm853_vm1, %v1008_v22, %v10605_v12  ;;  %v870_v40 = vsel %vm853_vm1, %v845_v0, %v11314_v26 }
 0x138   : > { %v1056_v35 = vsel %vm16486_vm2, %v1032_v57, %v10878_v49 }
 0x139   : > { %v11331_v63 = vpop.permute.xlu0 %651  ;;  %v11333_v45 = vpop.permute.xlu1 %1409 }
 0x13a   : > { %16598 = vst [vmem:[#allocation85_spill] sm:$0xff] %v11331_v63  ;;  %16599 = vst [vmem:[#allocation86_spill] sm:$0xff] %v11333_v45  ;;  %v11350_v10 = vsel %vm16486_vm2, %v870_v40, %v11331_v63 }
 0x13b   : > { %721 = vrot.lane.b32.xlu0 %v10764_v34, %s16395_s14  ;;  %723 = vrot.lane.b32.xlu1 %v10870_v43, %s16395_s14  ;;  %16601 = vst [vmem:[#allocation88_spill] sm:$0xff] %v11350_v10 }
 0x13d   : > { %v11346_v29 = vpop.permute.xlu0 %509  ;;  %v1212_v31 = vpop.permute.xlu1 %1211 }
 0x13e   : > { %16600 = vst [vmem:[#allocation87_spill] sm:$0xff] %v11346_v29  ;;  %v1288_v45 = vsel %vm16485_vm3, %v11350_v10, %v1212_v31  ;;  %v1080_v31 = vsel %vm16485_vm3, %v1056_v35, %v10876_v48 }
 0x13f   : > { %v1312_v22 = vsel %vm928_vm4, %v1288_v45, %v10923_v24  ;;  %1445 = vrot.lane.b32.xlu0 %v11331_v63, %s10410_s27  ;;  %v1104_v45 = vsel %vm928_vm4, %v1080_v31, %v10889_v55 }
 0x140   : > { %v1336_v0 = vsel %vm16484_vm5, %v1312_v22, %v11346_v29  ;;  %v846_v22 = vsel %vm16498_vm0, %v10911_v62, %v11346_v29 }
 0x141   : > { %v11362_v59 = vpop.permute.xlu0 %581  ;;  %v11364_v40 = vpop.permute.xlu1 %1411 }
 0x142   : > { %16602 = vst [vmem:[#allocation89_spill] sm:$0xff] %v11362_v59  ;;  %v1360_v26 = vsel %vm978_vm6, %v1336_v0, %v11362_v59 }
 0x143   : > { %1447 = vrot.lane.b32.xlu0 %v1360_v26, %s10410_s27  ;;  %v871_v26 = vsel %vm853_vm1, %v846_v22, %v11362_v59 }
 0x145   : > { %v11371_v57 = vpop.permute.xlu0 %1413  ;;  %v11375_v10 = vpop.permute.xlu1 %705 }
 0x146   : > { %v11382_v63 = vsel %vm16484_vm5, %v1104_v45, %v11375_v10 }
 0x147   : > { %16603 = vst [vmem:[#allocation90_spill] sm:$0xff] %v11382_v63  ;;  %725 = vrot.lane.b32.xlu0 %v10923_v24, %s16395_s14 }
 0x149   : > { %v1214_v35 = vpop.permute.xlu0 %1213  ;;  %v11388_v0 = vpop.permute.xlu1 %653 }
 0x14a   : > { %16604 = vst [vmem:[#allocation91_spill] sm:$0xff] %v11388_v0  ;;  %v11392_v31 = vsel %vm16486_vm2, %v871_v26, %v11388_v0  ;;  %1449 = vrot.lane.b32.xlu1 %v11388_v0, %s10410_s27 }
 0x14b   : > { %16605 = vst [vmem:[#allocation92_spill] sm:$0xff] %v11392_v31  ;;  %v1289_v62 = vsel %vm16485_vm3, %v11392_v31, %v1214_v35 }
 0x14c   : > { %v1313_v22 = vsel %vm928_vm4, %v1289_v62, %v10968_v53 }
 0x14d   : > { %v11398_v45 = vpop.permute.xlu0 %1415  ;;  %v11400_v63 = vpop.permute.xlu1 %511 }
 0x14e   : > { %16606 = vst [vmem:[#allocation93_spill] sm:$0xff] %v11398_v45  ;;  %16607 = vst [vmem:[#allocation94_spill] sm:$0xff] %v11400_v63  ;;  %v1337_v26 = vsel %vm16484_vm5, %v1313_v22, %v11400_v63  ;;  %v847_v62 = vsel %vm16498_vm0, %v10954_v3, %v11400_v63 }
 0x151   : > { %v11404_v59 = vpop.permute.xlu0 %707  ;;  %v11406_v29 = vpop.permute.xlu1 %583 }
 0x152   : > { %16608 = vst [vmem:[#allocation95_spill] sm:$0xff] %v11406_v29  ;;  %v1361_v24 = vsel %vm978_vm6, %v1337_v26, %v11406_v29  ;;  %v872_v22 = vsel %vm853_vm1, %v847_v62, %v11406_v29 }
 0x153   : > { %1451 = vrot.lane.b32.xlu1 %v1361_v24, %s10410_s27 }
 0x155   : > { %v11413_v35 = vpop.permute.xlu0 %655  ;;  %v11415_v31 = vpop.permute.xlu1 %1417 }
 0x156   : > { %16609 = vst [vmem:[#allocation96_spill] sm:$0xff] %v11413_v35  ;;  %16610 = vst [vmem:[#allocation97_spill] sm:$0xff] %v11415_v31  ;;  %1453 = vrot.lane.b32.xlu0 %v11413_v35, %s10410_s27  ;;  %v11430_v24 = vsel %vm16486_vm2, %v872_v22, %v11413_v35 }
 0x157   : > { %727 = vrot.lane.b32.xlu1 %v10968_v53, %s16395_s14  ;;  %16612 = vst [vmem:[#allocation99_spill] sm:$0xff] %v11430_v24 }
 0x159   : > { %v11426_v26 = vpop.permute.xlu0 %513  ;;  %v1216_v31 = vpop.permute.xlu1 %1215 }
 0x15a   : > { %16611 = vst [vmem:[#allocation98_spill] sm:$0xff] %v11426_v26  ;;  %v1290_v45 = vsel %vm16485_vm3, %v11430_v24, %v1216_v31  ;;  %v848_v31 = vsel %vm16498_vm0, %v11005_v4, %v11426_v26 }
 0x15b   : > { %v1314_v0 = vsel %vm928_vm4, %v1290_v45, %v11019_v39 }
 0x15c   : > { %v1338_v3 = vsel %vm16484_vm5, %v1314_v0, %v11426_v26 }
 0x15d   : > { %v11438_v63 = vpop.permute.xlu0 %585  ;;  %v11440_v53 = vpop.permute.xlu1 %1419 }
 0x15e   : > { %16613 = vst [vmem:[#allocation100_spill] sm:$0xff] %v11438_v63  ;;  %v1362_v62 = vsel %vm978_vm6, %v1338_v3, %v11438_v63  ;;  %v873_v3 = vsel %vm853_vm1, %v848_v31, %v11438_v63 }
 0x15f   : > { %1455 = vrot.lane.b32.xlu0 %v1362_v62, %s10410_s27 }
 0x161   : > { %v11445_v22 = vpop.permute.xlu0 %1421  ;;  %v11447_v35 = vpop.permute.xlu1 %709 }
 0x162   : > { %16614 = vst [vmem:[#allocation101_spill] sm:$0xff] %v11447_v35  ;;  %v1011_v0 = vsel %vm16498_vm0, %v10946_v56, %v11447_v35 }
 0x163   : > { %729 = vrot.lane.b32.xlu0 %v11019_v39, %s16395_s14  ;;  %v1035_v45 = vsel %vm853_vm1, %v1011_v0, %v10650_v18 }
 0x164   : > { %v1059_v4 = vsel %vm16486_vm2, %v1035_v45, %v10960_v52 }
 0x165   : > { %v1218_v62 = vpop.permute.xlu0 %1217  ;;  %v11461_v24 = vpop.permute.xlu1 %657  ;;  %v1083_v31 = vsel %vm16485_vm3, %v1059_v4, %v10958_v41 }
 0x166   : > { %16615 = vst [vmem:[#allocation102_spill] sm:$0xff] %v11461_v24  ;;  %v11465_v29 = vsel %vm16486_vm2, %v873_v3, %v11461_v24  ;;  %1457 = vrot.lane.b32.xlu1 %v11461_v24, %s10410_s27  ;;  %v1107_v63 = vsel %vm928_vm4, %v1083_v31, %v10972_v60 }
 0x167   : > { %16616 = vst [vmem:[#allocation103_spill] sm:$0xff] %v11465_v29  ;;  %v1291_v35 = vsel %vm16485_vm3, %v11465_v29, %v1218_v62 }
 0x168   : > { %v1315_v3 = vsel %vm928_vm4, %v1291_v35, %v11066_v47 }
 0x169   : > { %v11473_v0 = vpop.permute.xlu0 %1423  ;;  %v11475_v18 = vpop.permute.xlu1 %515 }
 0x16a   : > { %16617 = vst [vmem:[#allocation104_spill] sm:$0xff] %v11473_v0  ;;  %16618 = vst [vmem:[#allocation105_spill] sm:$0xff] %v11475_v18  ;;  %v1339_v29 = vsel %vm16484_vm5, %v1315_v3, %v11475_v18 }
 0x16d   : > { %v11481_v56 = vpop.permute.xlu0 %711  ;;  %v11489_v62 = vpop.permute.xlu1 %587 }
 0x16e   : > { %v11487_v45 = vsel %vm16484_vm5, %v1107_v63, %v11481_v56  ;;  %16619 = vst [vmem:[#allocation106_spill] sm:$0xff] %v11489_v62  ;;  %v1363_v4 = vsel %vm978_vm6, %v1339_v29, %v11489_v62  ;;  %v849_v63 = vsel %vm16498_vm0, %v11052_v7, %v11475_v18 }
 0x16f   : > { %1459 = vrot.lane.b32.xlu1 %v1363_v4, %s10410_s27  ;;  %v874_v31 = vsel %vm853_vm1, %v849_v63, %v11489_v62 }
 0x171   : > { %v11496_v35 = vpop.permute.xlu0 %659  ;;  %v11498_v41 = vpop.permute.xlu1 %1425 }
 0x172   : > { %16620 = vst [vmem:[#allocation107_spill] sm:$0xff] %v11496_v35  ;;  %16621 = vst [vmem:[#allocation108_spill] sm:$0xff] %v11498_v41  ;;  %1461 = vrot.lane.b32.xlu0 %v11496_v35, %s10410_s27  ;;  %v11513_v3 = vsel %vm16486_vm2, %v874_v31, %v11496_v35 }
 0x173   : > { %731 = vrot.lane.b32.xlu1 %v11066_v47, %s16395_s14  ;;  %16623 = vst [vmem:[#allocation110_spill] sm:$0xff] %v11513_v3 }
 0x175   : > { %v11509_v29 = vpop.permute.xlu0 %517  ;;  %v1220_v4 = vpop.permute.xlu1 %1219 }
 0x176   : > { %16622 = vst [vmem:[#allocation109_spill] sm:$0xff] %v11509_v29  ;;  %v1292_v52 = vsel %vm16485_vm3, %v11513_v3, %v1220_v4 }
 0x177   : > { %v1316_v41 = vsel %vm928_vm4, %v1292_v52, %v11117_v46  ;;  %v850_v52 = vsel %vm16498_vm0, %v11105_v9, %v11509_v29 }
 0x178   : > { %v1340_v0 = vsel %vm16484_vm5, %v1316_v41, %v11509_v29 }
 0x179   : > { %v11519_v7 = vpop.permute.xlu0 %589  ;;  %v11523_v60 = vpop.permute.xlu1 %1427 }
 0x17a   : > { %16624 = vst [vmem:[#allocation111_spill] sm:$0xff] %v11519_v7  ;;  %v1364_v63 = vsel %vm978_vm6, %v1340_v0, %v11519_v7  ;;  %v875_v41 = vsel %vm853_vm1, %v850_v52, %v11519_v7 }
 0x17b   : > { %1463 = vrot.lane.b32.xlu0 %v1364_v63, %s10410_s27 }
 0x17d   : > { %v11528_v31 = vpop.permute.xlu0 %1429  ;;  %v11530_v35 = vpop.permute.xlu1 %713 }
 0x17e   : > { %16625 = vst [vmem:[#allocation112_spill] sm:$0xff] %v11530_v35 }
 0x17f   : > { %733 = vrot.lane.b32.xlu0 %v11117_v46, %s16395_s14  ;;  %s16441_s14 = smov 20  }
 0x181   : > { %v1222_v4 = vpop.permute.xlu0 %1221  ;;  %v11539_v3 = vpop.permute.xlu1 %661 }
 0x182   : > { %16626 = vst [vmem:[#allocation113_spill] sm:$0xff] %v11539_v3  ;;  %v11543_v0 = vsel %vm16486_vm2, %v875_v41, %v11539_v3  ;;  %1465 = vrot.lane.b32.xlu1 %v11539_v3, %s10410_s27 }
 0x183   : > { %16627 = vst [vmem:[#allocation114_spill] sm:$0xff] %v11543_v0  ;;  %v1293_v63 = vsel %vm16485_vm3, %v11543_v0, %v1222_v4 }
 0x184   : > { %v1317_v46 = vsel %vm928_vm4, %v1293_v63, %v11154_v21 }
 0x185   : > { %v11549_v9 = vpop.permute.xlu0 %1431  ;;  %v11551_v29 = vpop.permute.xlu1 %519 }
 0x186   : > { %16628 = vst [vmem:[#allocation115_spill] sm:$0xff] %v11549_v9  ;;  %16629 = vst [vmem:[#allocation116_spill] sm:$0xff] %v11551_v29  ;;  %v1341_v41 = vsel %vm16484_vm5, %v1317_v46, %v11551_v29  ;;  %v851_v63 = vsel %vm16498_vm0, %v11144_v16, %v11551_v29 }
 0x189   : > { %v11555_v52 = vpop.permute.xlu0 %715  ;;  %v11557_v7 = vpop.permute.xlu1 %591 }
 0x18a   : > { %16630 = vst [vmem:[#allocation117_spill] sm:$0xff] %v11557_v7  ;;  %v1365_v3 = vsel %vm978_vm6, %v1341_v41, %v11557_v7  ;;  %v876_v9 = vsel %vm853_vm1, %v851_v63, %v11557_v7 }
 0x18b   : > { %1467 = vrot.lane.b32.xlu1 %v1365_v3, %s10410_s27 }
 0x18d   : > { %v11564_v4 = vpop.permute.xlu0 %663  ;;  %v11566_v0 = vpop.permute.xlu1 %1433 }
 0x18e   : > { %16631 = vst [vmem:[#allocation118_spill] sm:$0xff] %v11564_v4  ;;  %16632 = vst [vmem:[#allocation119_spill] sm:$0xff] %v11566_v0  ;;  %1469 = vrot.lane.b32.xlu0 %v11564_v4, %s10410_s27  ;;  %v11577_v41 = vsel %vm16486_vm2, %v876_v9, %v11564_v4 }
 0x18f   : > { %16633 = vst [vmem:[#allocation120_spill] sm:$0xff] %v11577_v41 }
 0x191   : > { %v1224_v46 = vpop.permute.xlu1 %1223  ;;  %v11585_v62 = vpop.permute.xlu0 %521 }
 0x192   : > { %v1294_v3 = vsel %vm16485_vm3, %v11577_v41, %v1224_v46  ;;  %16634 = vst [vmem:[#allocation121_spill] sm:$0xff] %v11585_v62 }
 0x193   : > { %v1318_v0 = vsel %vm928_vm4, %v1294_v3, %v11211_v1  ;;  %v829_v3 = vsel %vm16498_vm0, %v10683_v23, %v11011_v32  ;;  %v16637_v32 = vld [vmem:[#allocation21_spill] sm:$0xff] }
 0x194   : > { %v1342_v16 = vsel %vm16484_vm5, %v1318_v0, %v11585_v62  ;;  %v854_v0 = vsel %vm853_vm1, %v829_v3, %v11028_v33  ;;  %v16638_v3 = vld [vmem:[#allocation67_spill] sm:$0xff] }
 0x195   : > { %v11581_v21 = vpop.permute.xlu1 %1435 }
 0x199   : > { %v11587_v26 = vpop.permute.xlu1 %593 }
 0x19a   : > { %16635 = vst [vmem:[#allocation122_spill] sm:$0xff] %v11587_v26  ;;  %v1366_v63 = vsel %vm978_vm6, %v1342_v16, %v11587_v26  ;;  %v1003_v16 = vsel %vm16498_vm0, %v11044_v13, %v11058_v44  ;;  %v16639_v13 = vld [vmem:[#allocation61_spill] sm:$0xff] }
 0x19b   : > { %1471 = vrot.lane.b32.xlu0 %v1366_v63, %s10410_s27  ;;  %v879_v63 = vsel %vm16486_vm2, %v854_v0, %v11042_v38  ;;  %v1027_v4 = vsel %vm853_vm1, %v1003_v16, %v10715_v28  ;;  %v16640_v0 = vld [vmem:[#allocation64_spill] sm:$0xff] }
 0x19c   : > { %v904_v7 = vsel %vm16485_vm3, %v879_v63, %v11070_v11  ;;  %v1051_v29 = vsel %vm16486_vm2, %v1027_v4, %v11081_v14  ;;  %v16641_v11 = vld [vmem:[#allocation68_spill] sm:$0xff]  ;;  %v16642_v4 = vld [vmem:[#allocation13_spill] sm:$0xff] }
 0x19d   : > { %v11594_v9 = vpop.permute.xlu1 %717  ;;  %v1075_v23 = vsel %vm16485_vm3, %v1051_v29, %v11094_v5  ;;  %v929_v33 = vsel %vm928_vm4, %v904_v7, %v16637_v32  ;;  %v16643_v29 = vld [vmem:[#allocation30_spill] sm:$0xff] }
 0x19e   : > { %v1099_v44 = vsel %vm928_vm4, %v1075_v23, %v16638_v3  ;;  %v954_v38 = vsel %vm16484_vm5, %v929_v33, %v16639_v13  ;;  %v908_v7 = vsel %vm16485_vm3, %v16643_v29, %v11215_v54  ;;  %v16644_v33 = vld [vmem:[#allocation34_spill] sm:$0xff] }
 0x19f   : > { %v979_v16 = vsel %vm978_vm6, %v954_v38, %v16640_v0  ;;  %v1123_v63 = vsel %vm16484_vm5, %v1099_v44, %v16641_v11  ;;  %v933_v23 = vsel %vm928_vm4, %v908_v7, %v10575_v8  ;;  %v16645_v38 = vld [vmem:[#allocation16_spill] sm:$0xff] }
 0x1a0   : > { %v1147_v14 = vsel %vm978_vm6, %v1123_v63, %v16642_v4  ;;  %v958_v32 = vsel %vm16484_vm5, %v933_v23, %v10808_v51  ;;  %v16647_v63 = vld [vmem:[#allocation37_spill] sm:$0xff] }
 0x1a1   : > { %v11596_v46 = vpop.permute.xlu1 %1437  ;;  %v983_v44 = vsel %vm978_vm6, %v958_v32, %v10806_v50  ;;  %v16649_v32 = vld [vmem:[#allocation12_spill] sm:$0xff] }
 0x1a5   : > { %v11598_v41 = vpop.permute.xlu1 %665 }
 0x1a6   : > { %16636 = vst [vmem:[#allocation123_spill] sm:$0xff] %v11598_v41  ;;  %1473 = vrot.lane.b32.xlu1 %v11598_v41, %s10410_s27 }
 0x1b9   : > { %1539 = vxpose.xlu0.b32.start [1/4] (short) (narrow) %v979_v16, 24  ;;  %v16646_v16 = vld [vmem:[#allocation38_spill] sm:$0xff] }
 0x1bd   : > { %1540 = vxpose.xlu0.b32.cont [2/4] (short) (narrow) %v1147_v14, 24  ;;  %v1009_v14 = vsel %vm16498_vm0, %v10889_v55, %v11375_v10 }
 0x1be   : > { %v1033_v51 = vsel %vm853_vm1, %v1009_v14, %v16645_v38 }
 0x1bf   : > { %v1057_v55 = vsel %vm16486_vm2, %v1033_v51, %v16646_v16  ;;  %v16651_v51 = vld [vmem:[#allocation17_spill] sm:$0xff] }
 0x1c0   : > { %v1081_v29 = vsel %vm16485_vm3, %v1057_v55, %v16647_v63 }
 0x1c1   : > { %1541 = vxpose.xlu0.b32.cont [3/4] (short) (narrow) %v11244_v58, 24  ;;  %v1151_v58 = vsel %vm978_vm6, %v11320_v42, %v10605_v12 }
 0x1c5   : > { %1542 = vxpose.xlu0.b32.end [4/4] (short) (narrow) %v11198_v61, 24  ;;  %v910_v61 = vsel %vm16485_vm3, %v16644_v33, %v11312_v19  ;;  %v2307_v19 = vld [vmem:[%s16648_s1] sm:$0xff] }
 0x1c6   : > { %v935_v50 = vsel %vm928_vm4, %v910_v61, %v10605_v12  ;;  %v2309_v12 = vld [vmem:[%s16648_s1 + $0x10] sm:$0xff] }
 0x1c7   : > { %v960_v42 = vsel %vm16484_vm5, %v935_v50, %v10878_v49  ;;  %v2310_v49 = vld [vmem:[%s16648_s1 + $0x18] sm:$0x1] }
 0x1c8   : > { %v9471_v23 = vpack.c.bf16 %v2310_v49, %v2309_v12  ;;  %v985_v14 = vsel %vm978_vm6, %v960_v42, %v10876_v48  ;;  %v16652_v48 = vld [vmem:[#allocation43_spill] sm:$0xff]  ;;  %v16656_v49 = vld [vmem:[#allocation52_spill] sm:$0xff] }
 0x1c9   : > { %1667 = vxpose.xlu0.b32.start [1/4] (short) (narrow) %v983_v44, 24  ;;  %v912_v55 = vsel %vm16485_vm3, %v16652_v48, %v11404_v59 }
 0x1ca   : > { %v937_v42 = vsel %vm928_vm4, %v912_v55, %v16651_v51 }
 0x1cd   : > { %1668 = vxpose.xlu0.b32.cont [2/4] (short) (narrow) %v1151_v58, 24  ;;  %v16650_v58 = vld [vmem:[#allocation39_spill] sm:$0xff] }
 0x1ce   : > { %v1105_v33 = vsel %vm928_vm4, %v1081_v29, %v16650_v58  ;;  %v16653_v29 = vld [vmem:[#allocation42_spill] sm:$0xff] }
 0x1cf   : > { %v1129_v61 = vsel %vm16484_vm5, %v1105_v33, %v11404_v59 }
 0x1d0   : > { %v1153_v50 = vsel %vm978_vm6, %v1129_v61, %v16651_v51  ;;  %v16659_v61 = vld [vmem:[#allocation20_spill] sm:$0xff] }
 0x1d1   : > { %1669 = vxpose.xlu0.b32.cont [3/4] (short) (narrow) %v11364_v40, 24  ;;  %v2308_v40 = vld [vmem:[%s16648_s1 + $0x8] sm:$0xff]  ;;  %s16501_s1 = smov 4  }
 0x1d2   : > { %v9467_v7 = vpack.c.bf16 %v2308_v40, %v2307_v19  ;;  %v962_v19 = vsel %vm16484_vm5, %v937_v42, %v16653_v29  ;;  %v16654_v40 = vld [vmem:[#allocation41_spill] sm:$0xff] }
 0x1d3   : > { %v987_v12 = vsel %vm978_vm6, %v962_v19, %v16654_v40  ;;  %v16660_v42 = vld [vmem:[#allocation53_spill] sm:$0xff] }
 0x1d4   : > { %9468 = vmatprep.subr.bf16.mxu0 %v9467_v7 }
 0x1d5   : > { %1670 = vxpose.xlu0.b32.end [4/4] (short) (narrow) %v11371_v57, 24  ;;  %v11677_v57 = vld [vmem:[%s10542_s25 + $0x18] sm:$0x1]  ;;  %9470 = vmatpush3.bf16.msra.mxu0 %v9467_v7  ;;  %v11707_v7 = vpop.permute.xlu0 %1441 }
 0x1d6   : > { %v11682_v44 = vrot.slane %v11677_v57, %v16649_v32  ;;  %9473 = vmatprep.subr.msk.bf16.mxu0 %vm9472_vm8, %v9471_v23  ;;  %16655 = vst [vmem:[#allocation21_spill] sm:$0xff] %v11707_v7  ;;  %v16663_v7 = vld [vmem:[#allocation49_spill] sm:$0xff] }
 0x1d8   : > { %792 = vrot.lane.b32.xlu1 %v11682_v44, %s10410_s27 }
 0x1d9   : > { %1731 = vxpose.xlu0.b32.start [1/4] (short) (narrow) %v985_v14, 24  ;;  %9476 = vmatpush3.bf16.msk.msra.mxu0 %vm9472_vm8, %v9471_v23  ;;  %v1013_v23 = vsel %vm16498_vm0, %v16656_v49, %v11530_v35  ;;  %v16657_v14 = vld [vmem:[#allocation19_spill] sm:$0xff]  ;;  %v11720_v48 = vpop.permute.xlu0 %719  ;;  %vm4229_vm8 = vcmask 982016  }
 0x1dc   : > { %798 = vrot.lane.b32.xlu1 %v11682_v44, %s10409_s26 }
 0x1dd   : > { %1732 = vxpose.xlu0.b32.cont [2/4] (short) (narrow) %v1153_v50, 24  ;;  %v1037_v50 = vsel %vm853_vm1, %v1013_v23, %v16659_v61 }
 0x1de   : > { %v1061_v19 = vsel %vm16486_vm2, %v1037_v50, %v16660_v42  ;;  %v16665_v50 = vld [vmem:[#allocation69_spill] sm:$0xff] }
 0x1e1   : > { %1733 = vxpose.xlu0.b32.cont [3/4] (short) (narrow) %v11440_v53, 24  ;;  %v1155_v53 = vsel %vm978_vm6, %v11487_v45, %v16657_v14  ;;  %v16661_v45 = vld [vmem:[#allocation50_spill] sm:$0xff] }
 0x1e5   : > { %1734 = vxpose.xlu0.b32.end [4/4] (short) (narrow) %v11445_v22, 24  ;;  %v16658_v22 = vld [vmem:[#allocation55_spill] sm:$0xff] }
 0x1e6   : > { %v914_v33 = vsel %vm16485_vm3, %v16658_v22, %v11481_v56  ;;  %v16662_v22 = vld [vmem:[#allocation54_spill] sm:$0xff] }
 0x1e7   : > { %v939_v55 = vsel %vm928_vm4, %v914_v33, %v16657_v14  ;;  %v1085_v23 = vsel %vm16485_vm3, %v1061_v19, %v16662_v22 }
 0x1e9   : > { %1795 = vxpose.xlu0.b32.start [1/4] (short) (narrow) %v987_v12, 24  ;;  %v1444_v12 = vpop.permute.xlu0 %1443 }
 0x1ed   : > { %1796 = vxpose.xlu0.b32.cont [2/4] (short) (narrow) %v1155_v53, 24  ;;  %v964_v53 = vsel %vm16484_vm5, %v939_v55, %v16661_v45  ;;  %v11741_v42 = vpop.permute.xlu0 %721 }
 0x1ee   : > { %v989_v61 = vsel %vm978_vm6, %v964_v53, %v16663_v7  ;;  %16666 = vst [vmem:[#allocation67_spill] sm:$0xff] %v11741_v42  ;;  %v16667_v53 = vld [vmem:[#allocation71_spill] sm:$0xff] }
 0x1f1   : > { %1797 = vxpose.xlu0.b32.cont [3/4] (short) (narrow) %v11523_v60, 24  ;;  %v16664_v60 = vld [vmem:[#allocation57_spill] sm:$0xff] }
 0x1f2   : > { %v1109_v35 = vsel %vm928_vm4, %v1085_v23, %v16664_v60  ;;  %v1446_v23 = vpop.permute.xlu0 %1445 }
 0x1f3   : > { %v1133_v33 = vsel %vm16484_vm5, %v1109_v35, %v11555_v52 }
 0x1f4   : > { %v1157_v55 = vsel %vm978_vm6, %v1133_v33, %v10712_v27 }
 0x1f5   : > { %1798 = vxpose.xlu0.b32.end [4/4] (short) (narrow) %v11528_v31, 24  ;;  %v1015_v31 = vsel %vm16498_vm0, %v16665_v50, %v11594_v9  ;;  %v11756_v50 = vld [vmem:[%s10542_s25 + $0x19] sm:$0x1] }
 0x1f6   : > { %v1039_v19 = vsel %vm853_vm1, %v1015_v31, %v10741_v30  ;;  %v11762_v31 = vrot.slane %v11756_v50, %v16649_v32 }
 0x1f7   : > { %v1063_v35 = vsel %vm16486_vm2, %v1039_v19, %v11148_v25 }
 0x1f8   : > { %v1087_v33 = vsel %vm16485_vm3, %v1063_v35, %v11166_v15  ;;  %810 = vrot.lane.b32.xlu1 %v11762_v31, %s10410_s27 }
 0x1f9   : > { %1859 = vxpose.xlu0.b32.start [1/4] (short) (narrow) %v989_v61, 24  ;;  %v916_v61 = vsel %vm16485_vm3, %v16667_v53, %v11555_v52  ;;  %v1448_v53 = vpop.permute.xlu0 %1447 }
 0x1fa   : > { %v941_v22 = vsel %vm928_vm4, %v916_v61, %v10712_v27  ;;  %v16669_v61 = vld [vmem:[#allocation65_spill] sm:$0xff] }
 0x1fc   : > { %816 = vrot.lane.b32.xlu1 %v11762_v31, %s10409_s26 }
 0x1fd   : > { %1860 = vxpose.xlu0.b32.cont [2/4] (short) (narrow) %v1157_v55, 24  ;;  %v16668_v55 = vld [vmem:[#allocation62_spill] sm:$0xff] }
 0x1fe   : > { %v966_v19 = vsel %vm16484_vm5, %v941_v22, %v16668_v55 }
 0x1ff   : > { %v991_v27 = vsel %vm978_vm6, %v966_v19, %v16669_v61  ;;  %v11789_v19 = vpop.permute.xlu0 %725  ;;  %v16671_v61 = vld [vmem:[#allocation73_spill] sm:$0xff] }
 0x200   : > { %16670 = vst [vmem:[#allocation61_spill] sm:$0xff] %v11789_v19 }
 0x201   : > { %1861 = vxpose.xlu0.b32.cont [3/4] (short) (narrow) %v11581_v21, 24  ;;  %v1111_v21 = vsel %vm928_vm4, %v1087_v33, %v11174_v37  ;;  %v1016_v33 = vsel %vm16498_vm0, %v11174_v37, %v11720_v48 }
 0x202   : > { %v1135_v35 = vsel %vm16484_vm5, %v1111_v21, %v11720_v48  ;;  %v1040_v21 = vsel %vm853_vm1, %v1016_v33, %v10764_v34 }
 0x203   : > { %v1454_v55 = vpop.permute.xlu0 %1453  ;;  %v1064_v37 = vsel %vm16486_vm2, %v1040_v21, %v11188_v20 }
 0x205   : > { %1862 = vxpose.xlu0.b32.end [4/4] (short) (narrow) %v11596_v46, 24  ;;  %v11778_v46 = vld [vmem:[%s10542_s25 + $0x1a] sm:$0x1] }
 0x206   : > { %v11782_v22 = vrot.slane %v11778_v46, %v16649_v32  ;;  %v917_v32 = vsel %vm16485_vm3, %v16671_v61, %v11594_v9  ;;  %v1088_v61 = vsel %vm16485_vm3, %v1064_v37, %v11213_v17  ;;  %v1017_v37 = vsel %vm16498_vm0, %v11242_v2, %v11741_v42 }
 0x208   : > { %1171 = vrot.lane.b32.xlu1 %v11782_v22, %s10410_s27 }
 0x209   : > { %1923 = vxpose.xlu0.b32.start [1/4] (short) (narrow) %v991_v27, 24  ;;  %v1159_v27 = vsel %vm978_vm6, %v1135_v35, %v10764_v34  ;;  %v942_v35 = vsel %vm928_vm4, %v917_v32, %v10741_v30  ;;  %v1112_v32 = vsel %vm928_vm4, %v1088_v61, %v11242_v2  ;;  %v918_v61 = vsel %vm16485_vm3, %v11271_v36, %v11720_v48 }
 0x20a   : > { %v967_v33 = vsel %vm16484_vm5, %v942_v35, %v11148_v25  ;;  %v11823_v25 = vpop.permute.xlu1 %1439  ;;  %v943_v2 = vsel %vm928_vm4, %v918_v61, %v10764_v34 }
 0x20b   : > { %v992_v21 = vsel %vm978_vm6, %v967_v33, %v11166_v15  ;;  %16673 = vst [vmem:[#allocation68_spill] sm:$0xff] %v11823_v25  ;;  %v1041_v15 = vsel %vm853_vm1, %v1017_v37, %v10870_v43  ;;  %v16676_v25 = vld [vmem:[#allocation85_spill] sm:$0xff] }
 0x20c   : > { %1177 = vrot.lane.b32.xlu1 %v11782_v22, %s10409_s26 }
 0x20d   : > { %1924 = vxpose.xlu0.b32.cont [2/4] (short) (narrow) %v1159_v27, 24  ;;  %v11805_v27 = vld [vmem:[%s10542_s25 + $0x1b] ss:$0 sm:$0xff] }
 0x210   : > { %1258 = vrot.lane.b32.xlu1 %v11805_v27, %s10410_s27 }
 0x211   : > { %1925 = vxpose.xlu0.b32.cont [3/4] (short) (narrow) %v1444_v12, 24  ;;  %v11813_v12 = vpop.permute.xlu0 %1455 }
 0x212   : > { %16672 = vst [vmem:[#allocation64_spill] sm:$0xff] %v11813_v12 }
 0x214   : > { %1264 = vrot.lane.b32.xlu1 %v11805_v27, %s10409_s26  ;;  %s16706_s26 = smov 126  }
 0x215   : > { %1926 = vxpose.xlu0.b32.end [4/4] (short) (narrow) %v1446_v23, 24  ;;  %v1136_v23 = vsel %vm16484_vm5, %v1112_v32, %v11741_v42  ;;  %v11832_v33 = vpop.permute.xlu0 %729  ;;  %v11839_v32 = vpop.permute.xlu1 %723 }
 0x216   : > { %v1160_v35 = vsel %vm978_vm6, %v1136_v23, %v10870_v43  ;;  %16674 = vst [vmem:[#allocation13_spill] sm:$0xff] %v11832_v33  ;;  %v16675_v23 = vld [vmem:[#allocation84_spill] sm:$0xff] }
 0x219   : > { %1955 = vxpose.xlu0.b32.start [1/4] (short) (narrow) %v992_v21, 24  ;;  %v1065_v21 = vsel %vm16486_vm2, %v1041_v15, %v11300_v6  ;;  %v1462_v12 = vpop.permute.xlu0 %1461  ;;  %v1450_v43 = vpop.permute.xlu1 %1449  ;;  %v16686_v6 = vld [vmem:[#allocation95_spill] sm:$0xff] }
 0x21a   : > { %v1089_v37 = vsel %vm16485_vm3, %v1065_v21, %v16675_v23 }
 0x21b   : > { %v1113_v36 = vsel %vm928_vm4, %v1089_v37, %v16676_v25 }
 0x21c   : > { %v1137_v34 = vsel %vm16484_vm5, %v1113_v36, %v11839_v32  ;;  %v16683_v36 = vld [vmem:[#allocation94_spill] sm:$0xff] }
 0x21d   : > { %1956 = vxpose.xlu0.b32.cont [2/4] (short) (narrow) %v1160_v35, 24  ;;  %v968_v35 = vsel %vm16484_vm5, %v943_v2, %v11188_v20  ;;  %v11849_v48 = vpop.permute.xlu0 %1463  ;;  %v16681_v2 = vld [vmem:[#allocation88_spill] sm:$0xff] }
 0x21e   : > { %16677 = vst [vmem:[#allocation30_spill] sm:$0xff] %v11849_v48  ;;  %v993_v15 = vsel %vm978_vm6, %v968_v35, %v11213_v17  ;;  %v920_v37 = vsel %vm16485_vm3, %v16681_v2, %v11839_v32  ;;  %v16682_v48 = vld [vmem:[#allocation47_spill] sm:$0xff]  ;;  %v1452_v35 = vpop.permute.xlu1 %1451 }
 0x221   : > { %1957 = vxpose.xlu0.b32.cont [3/4] (short) (narrow) %v1448_v53, 24  ;;  %v16678_v53 = vld [vmem:[#allocation91_spill] sm:$0xff]  ;;  %v11860_v20 = vpop.permute.xlu0 %733 }
 0x222   : > { %v1019_v61 = vsel %vm16498_vm0, %v16678_v53, %v11789_v19  ;;  %16680 = vst [vmem:[#allocation34_spill] sm:$0xff] %v11860_v20  ;;  %v11877_v42 = vpop.permute.xlu1 %727 }
 0x223   : > { %v1043_v17 = vsel %vm853_vm1, %v1019_v61, %v16682_v48  ;;  %v16687_v61 = vld [vmem:[#allocation89_spill] sm:$0xff]  ;;  %v16688_v48 = vld [vmem:[#allocation96_spill] sm:$0xff] }
 0x224   : > { %v1067_v23 = vsel %vm16486_vm2, %v1043_v17, %v16683_v36 }
 0x225   : > { %1958 = vxpose.xlu0.b32.end [4/4] (short) (narrow) %v1450_v43, 24  ;;  %v16679_v43 = vld [vmem:[#allocation40_spill] sm:$0xff]  ;;  %v1091_v2 = vsel %vm16485_vm3, %v1067_v23, %v16686_v6 }
 0x226   : > { %v1161_v21 = vsel %vm978_vm6, %v1137_v34, %v16679_v43  ;;  %v945_v19 = vsel %vm928_vm4, %v920_v37, %v16679_v43  ;;  %v1115_v17 = vsel %vm928_vm4, %v1091_v2, %v16688_v48  ;;  %v11889_v23 = vpop.permute.xlu1 %1457  ;;  %v16690_v2 = vld [vmem:[#allocation99_spill] sm:$0xff] }
 0x227   : > { %v1139_v37 = vsel %vm16484_vm5, %v1115_v17, %v11877_v42  ;;  %16689 = vst [vmem:[#allocation38_spill] sm:$0xff] %v11889_v23 }
 0x229   : > { %1987 = vxpose.xlu0.b32.start [1/4] (short) (narrow) %v993_v15, 24  ;;  %v1470_v15 = vpop.permute.xlu0 %1469 }
 0x22d   : > { %1988 = vxpose.xlu0.b32.cont [2/4] (short) (narrow) %v1161_v21, 24  ;;  %v11871_v34 = vpop.permute.xlu0 %1471  ;;  %v16685_v21 = vld [vmem:[#allocation87_spill] sm:$0xff] }
 0x22e   : > { %16684 = vst [vmem:[#allocation16_spill] sm:$0xff] %v11871_v34  ;;  %v970_v53 = vsel %vm16484_vm5, %v945_v19, %v16685_v21  ;;  %v1021_v19 = vsel %vm16498_vm0, %v11461_v24, %v11832_v33  ;;  %v1163_v34 = vsel %vm978_vm6, %v1139_v37, %v11019_v39  ;;  %v16692_v24 = vld [vmem:[#allocation106_spill] sm:$0xff] }
 0x22f   : > { %v1045_v17 = vsel %vm853_vm1, %v1021_v19, %v11066_v47  ;;  %v16693_v19 = vld [vmem:[#allocation100_spill] sm:$0xff]  ;;  %v16694_v47 = vld [vmem:[#allocation107_spill] sm:$0xff] }
 0x230   : > { %v1069_v33 = vsel %vm16486_vm2, %v1045_v17, %v11475_v18 }
 0x231   : > { %1989 = vxpose.xlu0.b32.cont [3/4] (short) (narrow) %v1452_v35, 24  ;;  %v995_v35 = vsel %vm978_vm6, %v970_v53, %v16687_v61 }
 0x235   : > { %1990 = vxpose.xlu0.b32.end [4/4] (short) (narrow) %v1454_v55, 24 }
 0x239   : > { %2051 = vxpose.xlu0.b32.start [1/4] (short) (narrow) %v995_v35, 24  ;;  %v1555_v55 = vpop.trf.xlu0  ;;  %v922_v35 = vsel %vm16485_vm3, %v16690_v2, %v11877_v42  ;;  %v1093_v2 = vsel %vm16485_vm3, %v1069_v33, %v16692_v24 }
 0x23a   : > { %9359 = vmatprep.mubr.msk.f32.mxu0 %vm2318_vm9, %v1555_v55  ;;  %v1460_v55 = vpop.permute.xlu1 %1459  ;;  %v947_v37 = vsel %vm928_vm4, %v922_v35, %v11019_v39  ;;  %v1117_v17 = vsel %vm928_vm4, %v1093_v2, %v16694_v47 }
 0x23d   : > { %2052 = vxpose.xlu0.b32.cont [2/4] (short) (narrow) %v1163_v34, 24  ;;  %v1556_v53 = vpop.trf.xlu0  ;;  %v16691_v34 = vld [vmem:[#allocation98_spill] sm:$0xff] }
 0x23e   : > { %9360 = vmatmul.mubr.msk.f32.vlgmr.msra.gmra.mrb[0].mxu0 %vm2318_vm9, %v1556_v53  ;;  %v972_v53 = vsel %vm16484_vm5, %v947_v37, %v16691_v34  ;;  %v11908_v36 = vpop.permute.xlu1 %731 }
 0x23f   : > { %v1141_v35 = vsel %vm16484_vm5, %v1117_v17, %v11908_v36 }
 0x241   : > { %2053 = vxpose.xlu0.b32.cont [3/4] (short) (narrow) %v1460_v55, 24  ;;  %v1557_v6 = vpop.trf.xlu0  ;;  %v997_v55 = vsel %vm978_vm6, %v972_v53, %v16693_v19 }
 0x242   : > { %9362 = vmatprep.mubr.msk.f32.mxu0 %vm2318_vm9, %v1557_v6  ;;  %v11916_v6 = vpop.permute.xlu1 %1465 }
 0x243   : > { %16695 = vst [vmem:[#allocation37_spill] sm:$0xff] %v11916_v6 }
 0x245   : > { %2054 = vxpose.xlu0.b32.end [4/4] (short) (narrow) %v1462_v12, 24  ;;  %v16696_v12 = vld [vmem:[#allocation66_spill] sm:$0xff] }
 0x246   : > { %v1165_v37 = vsel %vm978_vm6, %v1141_v35, %v16696_v12  ;;  %v1468_v33 = vpop.permute.xlu1 %1467 }
 0x249   : > { %2115 = vxpose.xlu0.b32.start [1/4] (short) (narrow) %v997_v55, 24  ;;  %v11920_v18 = vpop.trf.xlu0 }
 0x24a   : > { %16697 = vst [vmem:[#allocation39_spill] sm:$0xff] %v11920_v18 }
 0x24d   : > { %2116 = vxpose.xlu0.b32.cont [2/4] (short) (narrow) %v1165_v37, 24  ;;  %v11922_v24 = vpop.trf.xlu0 }
 0x24e   : > { %16698 = vst [vmem:[#allocation17_spill] sm:$0xff] %v11922_v24 }
 0x251   : > { %2117 = vxpose.xlu0.b32.cont [3/4] (short) (narrow) %v1468_v33, 24  ;;  %v11924_v53 = vpop.trf.xlu0 }
 0x252   : > { %16699 = vst [vmem:[#allocation43_spill] sm:$0xff] %v11924_v53 }
 0x255   : > { %2118 = vxpose.xlu0.b32.end [4/4] (short) (narrow) %v1470_v15, 24 }
 0x259   : > { %v11926_v2 = vpop.trf.xlu0 }
 0x25a   : > { %16700 = vst [vmem:[#allocation42_spill] sm:$0xff] %v11926_v2 }
 0x25d   : > { %v11928_v55 = vpop.trf.xlu0 }
 0x25e   : > { %16701 = vst [vmem:[#allocation41_spill] sm:$0xff] %v11928_v55 }
 0x261   : > { %v11930_v17 = vpop.trf.xlu0 }
 0x262   : > { %16702 = vst [vmem:[#allocation52_spill] sm:$0xff] %v11930_v17 }
 0x269   : > { %v11932_v6 = vpop.trf.xlu0 }
 0x26a   : > { %16703 = vst [vmem:[#allocation19_spill] sm:$0xff] %v11932_v6 }
 0x26d   : > { %v11934_v47 = vpop.trf.xlu0 }
 0x26e   : > { %16704 = vst [vmem:[#allocation55_spill] sm:$0xff] %v11934_v47 }
 0x271   : > { %v11938_v35 = vpop.trf.xlu0 }
 0x272   : > { %16705 = vst [vmem:[#allocation50_spill] sm:$0xff] %v11938_v35 }
 0x279   : > { %v11942_v15 = vpop.trf.xlu0 }
 0x27a   : > { %16707 = vst [vmem:[#allocation49_spill] sm:$0xff] %v11942_v15 }
 0x27d   : > { %v11948_v37 = vpop.trf.xlu0 }
 0x27e   : > { %1225 = vrot.lane.b32.xlu0 %v11682_v44, %s10411_s28  ;;  %16708 = vst [vmem:[#allocation57_spill] sm:$0xff] %v11948_v37  ;;  %v16713_v37 = vld [vmem:[#allocation70_spill] sm:$0xff] }
 0x281   : > { %v11952_v33 = vpop.trf.xlu0 }
 0x282   : > { %795 = vrot.lane.b32.xlu0 %v11682_v44, %s16706_s26  ;;  %16709 = vst [vmem:[#allocation71_spill] sm:$0xff] %v11952_v33 }
 0x286   : > { %1227 = vrot.lane.b32.xlu0 %v11762_v31, %s10411_s28 }
 0x289   : > { %v11958_v15 = vpop.trf.xlu0 }
 0x28a   : > { %813 = vrot.lane.b32.xlu0 %v11762_v31, %s16706_s26  ;;  %16710 = vst [vmem:[#allocation73_spill] sm:$0xff] %v11958_v15 }
 0x28d   : > { %v11962_v35 = vpop.trf.xlu0 }
 0x28e   : > { %1229 = vrot.lane.b32.xlu0 %v11782_v22, %s10411_s28  ;;  %16711 = vst [vmem:[#allocation85_spill] sm:$0xff] %v11962_v35 }
 0x291   : > { %v11968_v33 = vpop.trf.xlu0 }
 0x292   : > { %1174 = vrot.lane.b32.xlu0 %v11782_v22, %s16706_s26  ;;  %16714 = vst [vmem:[#allocation40_spill] sm:$0xff] %v11968_v33  ;;  %v11990_v33 = vpop.permute.xlu1 %1473 }
 0x293   : > { %16725 = vst [vmem:[#allocation128_spill] sm:$0xff] %v11990_v33 }
 0x296   : > { %1231 = vrot.lane.b32.xlu0 %v11805_v27, %s10411_s28  ;;  %s16429_s28 = smov 52  }
 0x299   : > { %v11970_v47 = vpop.trf.xlu0 }
 0x29a   : > { %1261 = vrot.lane.b32.xlu0 %v11805_v27, %s16706_s26  ;;  %16715 = vst [vmem:[#allocation88_spill] sm:$0xff] %v11970_v47  ;;  %s16435_s26 = smov 60  }
 0x29d   : > { %v11972_v6 = vpop.trf.xlu0 }
 0x29e   : > { %735 = vrot.lane.b32.xlu0 %v16713_v37, %s16712_s29  ;;  %16716 = vst [vmem:[#allocation87_spill] sm:$0xff] %v11972_v6  ;;  %v11994_v6 = vpop.permute.xlu1 %792 }
 0x2a1   : > { %v11974_v17 = vpop.trf.xlu0 }
 0x2a2   : > { %737 = vrot.lane.b32.xlu0 %v11211_v1, %s16712_s29  ;;  %16717 = vst [vmem:[#allocation89_spill] sm:$0xff] %v11974_v17 }
 0x2a9   : > { %v11976_v15 = vpop.trf.xlu0 }
 0x2aa   : > { %16718 = vst [vmem:[#allocation96_spill] sm:$0xff] %v11976_v15  ;;  %v11998_v15 = vpop.permute.xlu1 %798 }
 0x2ad   : > { %v11978_v55 = vpop.trf.xlu0 }
 0x2ae   : > { %16719 = vst [vmem:[#allocation99_spill] sm:$0xff] %v11978_v55  ;;  %v12009_v55 = vpop.permute.xlu1 %810 }
 0x2b1   : > { %v11980_v2 = vpop.trf.xlu0 }
 0x2b2   : > { %16720 = vst [vmem:[#allocation66_spill] sm:$0xff] %v11980_v2  ;;  %v16728_v2 = vld [vmem:[#allocation74_spill] sm:$0xff] }
 0x2b9   : > { %v11982_v35 = vpop.trf.xlu0 }
 0x2ba   : > { %16721 = vst [vmem:[#allocation124_spill] sm:$0xff] %v11982_v35  ;;  %v852_v35 = vsel %vm16498_vm0, %v16728_v2, %v11585_v62  ;;  %v1266_v2 = vsel %vm16498_vm0, %v11677_v57, %v11994_v6 }
 0x2bd   : > { %v11984_v53 = vpop.trf.xlu0 }
 0x2be   : > { %16722 = vst [vmem:[#allocation125_spill] sm:$0xff] %v11984_v53  ;;  %v877_v53 = vsel %vm853_vm1, %v852_v35, %v11587_v26 }
 0x2c1   : > { %v11986_v24 = vpop.trf.xlu0 }
 0x2c2   : > { %16723 = vst [vmem:[#allocation126_spill] sm:$0xff] %v11986_v24 }
 0x2c9   : > { %v11988_v18 = vpop.trf.xlu0 }
 0x2ca   : > { %16724 = vst [vmem:[#allocation127_spill] sm:$0xff] %v11988_v18  ;;  %v12007_v18 = vsel %vm16486_vm2, %v877_v53, %v11598_v41 }
 0x2cd   : > { %v11992_v47 = vpop.trf.xlu0 }
 0x2ce   : > { %16726 = vst [vmem:[#allocation129_spill] sm:$0xff] %v11992_v47 }
 0x2d1   : > { %v11996_v17 = vpop.trf.xlu0 }
 0x2d2   : > { %16727 = vst [vmem:[#allocation130_spill] sm:$0xff] %v11996_v17 }
 0x2f0   : > { %v1226_v24 = vpop.permute.xlu0 %1225 }
 0x2f1   : > { %v1295_v47 = vsel %vm16485_vm3, %v12007_v18, %v1226_v24  ;;  %v12027_v24 = vpop.permute.xlu1 %816 }
 0x2f2   : > { %v1319_v17 = vsel %vm928_vm4, %v1295_v47, %v11682_v44 }
 0x2f3   : > { %v1343_v35 = vsel %vm16484_vm5, %v1319_v17, %v11994_v6 }
 0x2f4   : > { %v12020_v33 = vpop.permute.xlu0 %795 }
 0x2f5   : > { %v1367_v53 = vsel %vm978_vm6, %v1343_v35, %v12020_v33  ;;  %v1269_v41 = vsel %vm853_vm1, %v1266_v2, %v12020_v33  ;;  %v1267_v35 = vsel %vm16498_vm0, %v11756_v50, %v12009_v55  ;;  %v1172_v62 = vpop.permute.xlu1 %1171 }
 0x2f6   : > { %1475 = vrot.lane.b32.xlu1 %v1367_v53, %s10410_s27  ;;  %v1272_v26 = vsel %vm16486_vm2, %v1269_v41, %v11998_v15 }
 0x2f8   : > { %v1228_v47 = vpop.permute.xlu0 %1227 }
 0x2f9   : > { %v1296_v57 = vsel %vm16485_vm3, %v1272_v26, %v1228_v47 }
 0x2fa   : > { %v1320_v17 = vsel %vm928_vm4, %v1296_v57, %v11762_v31  ;;  %1477 = vrot.lane.b32.xlu1 %v11998_v15, %s10410_s27 }
 0x2fb   : > { %v1344_v2 = vsel %vm16484_vm5, %v1320_v17, %v12009_v55 }
 0x2fc   : > { %v12041_v53 = vpop.permute.xlu0 %813 }
 0x2fd   : > { %v1270_v41 = vsel %vm853_vm1, %v1267_v35, %v12041_v53  ;;  %v1368_v26 = vsel %vm978_vm6, %v1344_v2, %v12041_v53  ;;  %v1268_v35 = vsel %vm16498_vm0, %v11778_v46, %v1172_v62  ;;  %v1178_v2 = vpop.permute.xlu1 %1177 }
 0x2fe   : > { %801 = vrot.lane.b32.xlu1 %v11682_v44, %s16712_s29  ;;  %1479 = vrot.lane.b32.xlu0 %v1368_v26, %s10410_s27  ;;  %v1273_v47 = vsel %vm16486_vm2, %v1270_v41, %v12027_v24 }
 0x300   : > { %v1230_v50 = vpop.permute.xlu0 %1229 }
 0x301   : > { %v1297_v57 = vsel %vm16485_vm3, %v1273_v47, %v1230_v50  ;;  %v1259_v50 = vpop.permute.xlu1 %1258 }
 0x302   : > { %v1321_v17 = vsel %vm928_vm4, %v1297_v57, %v11782_v22  ;;  %1481 = vrot.lane.b32.xlu0 %v12027_v24, %s10410_s27 }
 0x303   : > { %v1345_v19 = vsel %vm16484_vm5, %v1321_v17, %v1172_v62 }
 0x304   : > { %v1175_v23 = vpop.permute.xlu0 %1174 }
 0x305   : > { %v1271_v26 = vsel %vm853_vm1, %v1268_v35, %v1175_v23  ;;  %v1369_v34 = vsel %vm978_vm6, %v1345_v19, %v1175_v23  ;;  %v16731_v35 = vld [vmem:[#allocation113_spill] sm:$0xff] }
 0x306   : > { %819 = vrot.lane.b32.xlu0 %v11762_v31, %s16712_s29  ;;  %1483 = vrot.lane.b32.xlu1 %v1369_v34, %s10410_s27  ;;  %v1274_v41 = vsel %vm16486_vm2, %v1271_v26, %v1178_v2  ;;  %v1023_v26 = vsel %vm16498_vm0, %v16731_v35, %v11860_v20  ;;  %v16740_v20 = vld [vmem:[#allocation24_spill] sm:$0xff]  ;;  %s16431_s29 = smov 100  }
 0x308   : > { %v1232_v46 = vpop.permute.xlu0 %1231 }
 0x309   : > { %v1298_v47 = vsel %vm16485_vm3, %v1274_v41, %v1232_v46  ;;  %v10338_v41 = vld [vmem:[%s10542_s25 + $0x1] sm:$0x1] }
 0x30a   : > { %1485 = vrot.lane.b32.xlu1 %v1178_v2, %s10410_s27  ;;  %v1322_v62 = vsel %vm928_vm4, %v1298_v47, %v11805_v27  ;;  %v830_v2 = vsel %vm16498_vm0, %v10338_v41, %v16639_v13  ;;  %v16732_v27 = vld [vmem:[#allocation110_spill] sm:$0xff]  ;;  %v1004_v13 = vsel %vm16498_vm0, %v16638_v3, %v16641_v11  ;;  %v16735_v41 = vld [vmem:[#allocation109_spill] sm:$0xff] }
 0x30b   : > { %v1346_v57 = vsel %vm16484_vm5, %v1322_v62, %v1259_v50  ;;  %v924_v46 = vsel %vm16485_vm3, %v16732_v27, %v11908_v36  ;;  %v1047_v50 = vsel %vm853_vm1, %v1023_v26, %v16713_v37  ;;  %v855_v47 = vsel %vm853_vm1, %v830_v2, %v16640_v0  ;;  %v16733_v62 = vld [vmem:[#allocation116_spill] sm:$0xff]  ;;  %v16736_v27 = vld [vmem:[#allocation117_spill] sm:$0xff]  ;;  %v16737_v2 = vld [vmem:[#allocation58_spill] sm:$0xff] }
 0x30c   : > { %v1262_v23 = vpop.permute.xlu0 %1261 }
 0x30d   : > { %v1370_v19 = vsel %vm978_vm6, %v1346_v57, %v1262_v23  ;;  %v1071_v57 = vsel %vm16486_vm2, %v1047_v50, %v16733_v62  ;;  %v949_v23 = vsel %vm928_vm4, %v924_v46, %v16696_v12  ;;  %v1028_v46 = vsel %vm853_vm1, %v1004_v13, %v16642_v4  ;;  %v16739_v62 = vld [vmem:[#allocation118_spill] sm:$0xff] }
 0x30e   : > { %1487 = vrot.lane.b32.xlu0 %v1370_v19, %s10410_s27  ;;  %v16734_v19 = vld [vmem:[#allocation56_spill] sm:$0xff]  ;;  %v974_v26 = vsel %vm16484_vm5, %v949_v23, %v16735_v41  ;;  %v1095_v0 = vsel %vm16485_vm3, %v1071_v57, %v16736_v27  ;;  %v1052_v23 = vsel %vm16486_vm2, %v1028_v46, %v16740_v20 }
 0x30f   : > { %v1119_v37 = vsel %vm928_vm4, %v1095_v0, %v16739_v62  ;;  %v10339_v0 = vld [vmem:[%s10542_s25 + $0x2] sm:$0x1]  ;;  %s16437_s25 = smov 112  }
 0x311   : > { %v12073_v17 = vpop.f32.mrb[0].mxu0 }
 0x312   : > { %16729 = vst [vmem:[#allocation74_spill] sm:$0xff] %v12073_v17  ;;  %v12075_v34 = vpop.f32.mrb[1].mxu0  ;;  %v880_v17 = vsel %vm16486_vm2, %v855_v47, %v16734_v19  ;;  %v16738_v47 = vld [vmem:[#allocation111_spill] sm:$0xff] }
 0x313   : > { %16730 = vst [vmem:[#allocation131_spill] sm:$0xff] %v12075_v34  ;;  %v905_v50 = vsel %vm16485_vm3, %v880_v17, %v16737_v2  ;;  %v12107_v34 = vpop.permute.xlu0 %735  ;;  %v999_v19 = vsel %vm978_vm6, %v974_v26, %v16738_v47  ;;  %v16741_v2 = vld [vmem:[#allocation60_spill] sm:$0xff]  ;;  %v16742_v26 = vld [vmem:[#allocation25_spill] sm:$0xff] }
 0x314   : > { %v1143_v57 = vsel %vm16484_vm5, %v1119_v37, %v12107_v34  ;;  %v930_v17 = vsel %vm928_vm4, %v905_v50, %v10715_v28  ;;  %v1076_v35 = vsel %vm16485_vm3, %v1052_v23, %v16742_v26  ;;  %v831_v46 = vsel %vm16498_vm0, %v10339_v0, %v16741_v2  ;;  %v16746_v0 = vld [vmem:[#allocation75_spill] sm:$0xff] }
 0x315   : > { %v1167_v13 = vsel %vm978_vm6, %v1143_v57, %v11211_v1  ;;  %v955_v27 = vsel %vm16484_vm5, %v930_v17, %v16741_v2  ;;  %v856_v50 = vsel %vm853_vm1, %v831_v46, %v11094_v5  ;;  %v16744_v57 = vld [vmem:[#allocation72_spill] sm:$0xff]  ;;  %v16745_v2 = vld [vmem:[#allocation14_spill] sm:$0xff]  ;;  %v16747_v46 = vld [vmem:[#allocation27_spill] sm:$0xff] }
 0x316   : > { %v980_v37 = vsel %vm978_vm6, %v955_v27, %v11094_v5  ;;  %v881_v23 = vsel %vm16486_vm2, %v856_v50, %v16638_v3  ;;  %v16749_v50 = vld [vmem:[#allocation76_spill] sm:$0xff] }
 0x32c   : > { %2179 = vxpose.xlu0.b32.start [1/4] (short) (narrow) %v999_v19, 24  ;;  %v16743_v19 = vld [vmem:[#allocation23_spill] sm:$0xff] }
 0x32d   : > { %v1100_v28 = vsel %vm928_vm4, %v1076_v35, %v16743_v19  ;;  %v906_v35 = vsel %vm16485_vm3, %v881_v23, %v16641_v11  ;;  %v16750_v11 = vld [vmem:[#allocation29_spill] sm:$0xff] }
 0x32e   : > { %v1124_v17 = vsel %vm16484_vm5, %v1100_v28, %v16744_v57  ;;  %v931_v3 = vsel %vm928_vm4, %v906_v35, %v16642_v4  ;;  %v16748_v28 = vld [vmem:[#allocation26_spill] sm:$0xff]  ;;  %v16751_v35 = vld [vmem:[#allocation28_spill] sm:$0xff] }
 0x32f   : > { %v1148_v27 = vsel %vm978_vm6, %v1124_v17, %v16745_v2  ;;  %v956_v17 = vsel %vm16484_vm5, %v931_v3, %v16740_v20  ;;  %v16755_v3 = vld [vmem:[#allocation79_spill] sm:$0xff] }
 0x330   : > { %2180 = vxpose.xlu0.b32.cont [2/4] (short) (narrow) %v1167_v13, 24  ;;  %v1005_v13 = vsel %vm16498_vm0, %v16743_v19, %v16744_v57 }
 0x331   : > { %v1029_v5 = vsel %vm853_vm1, %v1005_v13, %v16745_v2  ;;  %v981_v13 = vsel %vm978_vm6, %v956_v17, %v16742_v26 }
 0x333   : > { %1571 = vxpose.xlu1.b32.start [1/4] (short) (narrow) %v980_v37, 24  ;;  %v1053_v37 = vsel %vm16486_vm2, %v1029_v5, %v16747_v46  ;;  %v907_v5 = vsel %vm16485_vm3, %v16751_v35, %v16744_v57  ;;  %v16756_v57 = vld [vmem:[#allocation77_spill] sm:$0xff]  ;;  %v12192_v35 = vpop.permute.xlu0 %737 }
 0x334   : > { %v1077_v19 = vsel %vm16485_vm3, %v1053_v37, %v16748_v28  ;;  %v932_v20 = vsel %vm928_vm4, %v907_v5, %v16745_v2  ;;  %v16753_v37 = vld [vmem:[#allocation80_spill] sm:$0xff]  ;;  %v1010_v5 = vsel %vm16498_vm0, %v16650_v58, %v11404_v59  ;;  %v16764_v58 = vld [vmem:[#allocation93_spill] sm:$0xff] }
 0x335   : > { %v1101_v23 = vsel %vm928_vm4, %v1077_v19, %v16750_v11  ;;  %v957_v26 = vsel %vm16484_vm5, %v932_v20, %v16747_v46  ;;  %v16758_v11 = vld [vmem:[#allocation82_spill] sm:$0xff]  ;;  %v16760_v46 = vld [vmem:[#allocation33_spill] sm:$0xff] }
 0x337   : > { %1572 = vxpose.xlu1.b32.cont [2/4] (short) (narrow) %v1148_v27, 24  ;;  %v1125_v27 = vsel %vm16484_vm5, %v1101_v23, %v11215_v54  ;;  %v982_v54 = vsel %vm978_vm6, %v957_v26, %v16748_v28  ;;  %v16759_v23 = vld [vmem:[#allocation86_spill] sm:$0xff] }
 0x338   : > { %v1149_v4 = vsel %vm978_vm6, %v1125_v27, %v10575_v8  ;;  %v16754_v8 = vld [vmem:[#allocation15_spill] sm:$0xff] }
 0x339   : > { %v1150_v19 = vsel %vm978_vm6, %v16755_v3, %v16754_v8  ;;  %v1034_v3 = vsel %vm853_vm1, %v1010_v5, %v16651_v51 }
 0x33b   : > { %1573 = vxpose.xlu1.b32.cont [3/4] (short) (narrow) %v16746_v0, 24  ;;  %v16752_v0 = vld [vmem:[#allocation78_spill] sm:$0xff] }
 0x33f   : > { %1574 = vxpose.xlu1.b32.end [4/4] (short) (narrow) %v16749_v50, 24  ;;  %v16757_v50 = vld [vmem:[#allocation31_spill] sm:$0xff] }
 0x340   : > { %v909_v17 = vsel %vm16485_vm3, %v16757_v50, %v16756_v57  ;;  %v16765_v50 = vld [vmem:[#allocation97_spill] sm:$0xff] }
 0x341   : > { %v934_v2 = vsel %vm928_vm4, %v909_v17, %v16754_v8 }
 0x342   : > { %v959_v28 = vsel %vm16484_vm5, %v934_v2, %v16760_v46 }
 0x343   : > { %1603 = vxpose.xlu1.b32.start [1/4] (short) (narrow) %v981_v13, 24  ;;  %v16761_v13 = vld [vmem:[#allocation32_spill] sm:$0xff] }
 0x344   : > { %v984_v27 = vsel %vm978_vm6, %v959_v28, %v16761_v13  ;;  %v16767_v28 = vld [vmem:[#allocation101_spill] sm:$0xff] }
 0x347   : > { %1604 = vxpose.xlu1.b32.cont [2/4] (short) (narrow) %v1149_v4, 24  ;;  %v12190_v4 = vpop.permute.xlu1 %1264 }
 0x34b   : > { %1605 = vxpose.xlu1.b32.cont [3/4] (short) (narrow) %v16752_v0, 24  ;;  %v16762_v0 = vld [vmem:[#allocation90_spill] sm:$0xff] }
 0x34c   : > { %v1152_v20 = vsel %vm978_vm6, %v16762_v0, %v16645_v38 }
 0x34f   : > { %1606 = vxpose.xlu1.b32.end [4/4] (short) (narrow) %v16753_v37, 24  ;;  %v927_v37 = vsel %vm16485_vm3, %v12007_v18, %v12192_v35  ;;  %v1058_v18 = vsel %vm16486_vm2, %v1034_v3, %v16653_v29 }
 0x350   : > { %v952_v59 = vsel %vm928_vm4, %v927_v37, %v11682_v44  ;;  %v1082_v51 = vsel %vm16485_vm3, %v1058_v18, %v16654_v40  ;;  %v16772_v18 = vld [vmem:[#allocation108_spill] sm:$0xff] }
 0x353   : > { %1635 = vxpose.xlu1.b32.start [1/4] (short) (narrow) %v982_v54, 24  ;;  %v16763_v54 = vld [vmem:[#allocation36_spill] sm:$0xff] }
 0x354   : > { %v911_v8 = vsel %vm16485_vm3, %v16763_v54, %v11375_v10  ;;  %v977_v10 = vsel %vm16484_vm5, %v952_v59, %v11994_v6 }
 0x357   : > { %1636 = vxpose.xlu1.b32.cont [2/4] (short) (narrow) %v1150_v19, 24  ;;  %v936_v19 = vsel %vm928_vm4, %v911_v8, %v16645_v38  ;;  %v1002_v38 = vsel %vm978_vm6, %v977_v10, %v12020_v33 }
 0x358   : > { %v961_v17 = vsel %vm16484_vm5, %v936_v19, %v16646_v16 }
 0x359   : > { %v986_v16 = vsel %vm978_vm6, %v961_v17, %v16647_v63 }
 0x35b   : > { %1637 = vxpose.xlu1.b32.cont [3/4] (short) (narrow) %v16758_v11, 24 }
 0x35f   : > { %1638 = vxpose.xlu1.b32.end [4/4] (short) (narrow) %v16759_v23, 24  ;;  %v16766_v23 = vld [vmem:[#allocation44_spill] sm:$0xff] }
 0x360   : > { %v1106_v40 = vsel %vm928_vm4, %v1082_v51, %v16766_v23  ;;  %v16776_v23 = vld [vmem:[#allocation20_spill] sm:$0xff] }
 0x361   : > { %v1130_v13 = vsel %vm16484_vm5, %v1106_v40, %v16767_v28 }
 0x363   : > { %1699 = vxpose.xlu1.b32.start [1/4] (short) (narrow) %v984_v27, 24 }
 0x367   : > { %1700 = vxpose.xlu1.b32.cont [2/4] (short) (narrow) %v1152_v20, 24  ;;  %v16768_v20 = vld [vmem:[#allocation48_spill] sm:$0xff] }
 0x368   : > { %v1476_v26 = vpop.permute.xlu1 %1475  ;;  %v1012_v37 = vsel %vm16498_vm0, %v16768_v20, %v11481_v56  ;;  %v16782_v20 = vld [vmem:[#allocation119_spill] sm:$0xff] }
 0x369   : > { %2181 = vxpose.xlu0.b32.cont [3/4] (short) (narrow) %v1476_v26, 24  ;;  %v16769_v26 = vld [vmem:[#allocation18_spill] sm:$0xff]  ;;  %v1036_v59 = vsel %vm853_vm1, %v1012_v37, %v16657_v14  ;;  %v16783_v37 = vld [vmem:[#allocation53_spill] sm:$0xff] }
 0x36a   : > { %v1154_v54 = vsel %vm978_vm6, %v1130_v13, %v16769_v26  ;;  %v16780_v13 = vld [vmem:[#allocation62_spill] sm:$0xff] }
 0x36b   : > { %1701 = vxpose.xlu1.b32.cont [3/4] (short) (narrow) %v16764_v58, 24  ;;  %v16771_v58 = vld [vmem:[#allocation104_spill] sm:$0xff] }
 0x36c   : > { %v1478_v57 = vpop.permute.xlu1 %1477 }
 0x36d   : > { %2182 = vxpose.xlu0.b32.end [4/4] (short) (narrow) %v1478_v57, 24  ;;  %v16773_v57 = vld [vmem:[#allocation46_spill] sm:$0xff] }
 0x36f   : > { %1702 = vxpose.xlu1.b32.end [4/4] (short) (narrow) %v16765_v50, 24 }
 0x370   : > { %v12222_v11 = vpop.permute.xlu0 %1479  ;;  %v12224_v2 = vpop.permute.xlu1 %801 }
 0x371   : > { %v1026_v29 = vsel %vm16498_vm0, %v11998_v15, %v12224_v2  ;;  %2275 = vxpose.xlu0.b32.start [1/4] (short) (narrow) %v1002_v38, 24  ;;  %v16775_v38 = vld [vmem:[#allocation112_spill] sm:$0xff] }
 0x372   : > { %v1050_v46 = vsel %vm853_vm1, %v1026_v29, %v11762_v31  ;;  %v1014_v29 = vsel %vm16498_vm0, %v16664_v60, %v11555_v52  ;;  %v16781_v52 = vld [vmem:[#allocation65_spill] sm:$0xff] }
 0x373   : > { %v1074_v27 = vsel %vm16486_vm2, %v1050_v46, %v12009_v55  ;;  %1763 = vxpose.xlu1.b32.start [1/4] (short) (narrow) %v986_v16, 24  ;;  %v16770_v55 = vld [vmem:[#allocation51_spill] sm:$0xff]  ;;  %v16778_v16 = vld [vmem:[#allocation22_spill] sm:$0xff] }
 0x374   : > { %v12241_v5 = vpop.permute.xlu0 %1481  ;;  %v1098_v0 = vsel %vm16485_vm3, %v1074_v27, %v12041_v53  ;;  %v913_v3 = vsel %vm16485_vm3, %v16770_v55, %v16767_v28  ;;  %v1038_v28 = vsel %vm853_vm1, %v1014_v29, %v16778_v16  ;;  %v16798_v16 = vld [vmem:[#allocation98_spill] sm:$0xff] }
 0x375   : > { %v1122_v8 = vsel %vm928_vm4, %v1098_v0, %v12027_v24  ;;  %v938_v19 = vsel %vm928_vm4, %v913_v3, %v16769_v26  ;;  %v1060_v24 = vsel %vm16486_vm2, %v1036_v59, %v16661_v45  ;;  %v1062_v27 = vsel %vm16486_vm2, %v1038_v28, %v16780_v13  ;;  %v16800_v13 = vld [vmem:[#allocation94_spill] sm:$0xff] }
 0x376   : > { %v963_v10 = vsel %vm16484_vm5, %v938_v19, %v16773_v57  ;;  %v1084_v14 = vsel %vm16485_vm3, %v1060_v24, %v16663_v7  ;;  %v16777_v7 = vld [vmem:[#allocation63_spill] sm:$0xff]  ;;  %v1086_v60 = vsel %vm16485_vm3, %v1062_v27, %v16781_v52  ;;  %v1018_v59 = vsel %vm16498_vm0, %v16676_v25, %v11839_v32  ;;  %v16790_v25 = vld [vmem:[#allocation21_spill] sm:$0xff] }
 0x377   : > { %1764 = vxpose.xlu1.b32.cont [2/4] (short) (narrow) %v1154_v54, 24  ;;  %v1108_v17 = vsel %vm928_vm4, %v1084_v14, %v16656_v49  ;;  %v915_v46 = vsel %vm16485_vm3, %v16777_v7, %v16775_v38  ;;  %v16779_v49 = vld [vmem:[#allocation115_spill] sm:$0xff]  ;;  %v16784_v54 = vld [vmem:[#allocation69_spill] sm:$0xff]  ;;  %v1042_v24 = vsel %vm853_vm1, %v1018_v59, %v16679_v43 }
 0x378   : > { %v820_v63 = vpop.permute.xlu0 %819  ;;  %v1132_v45 = vsel %vm16484_vm5, %v1108_v17, %v16775_v38  ;;  %v940_v0 = vsel %vm928_vm4, %v915_v46, %v16776_v23  ;;  %v16789_v57 = vld [vmem:[#allocation35_spill] sm:$0xff]  ;;  %v16794_v17 = vld [vmem:[#allocation61_spill] sm:$0xff]  ;;  %v1020_v38 = vsel %vm16498_vm0, %v16688_v48, %v11877_v42  ;;  %v12338_v7 = vpop.permute.xlu1 %1483  ;;  %v16797_v46 = vld [vmem:[#allocation64_spill] sm:$0xff] }
 0x379   : > { %v1146_v53 = vsel %vm16484_vm5, %v1122_v8, %v820_v63  ;;  %v1156_v40 = vsel %vm978_vm6, %v1132_v45, %v16776_v23  ;;  %v965_v26 = vsel %vm16484_vm5, %v940_v0, %v16783_v37  ;;  %v1110_v63 = vsel %vm928_vm4, %v1086_v60, %v16784_v54  ;;  %v16785_v8 = vld [vmem:[#allocation54_spill] sm:$0xff]  ;;  %v16791_v32 = vld [vmem:[#allocation83_spill] sm:$0xff]  ;;  %v16801_v0 = vld [vmem:[#allocation100_spill] sm:$0xff] }
 0x37a   : > { %v1170_v56 = vsel %vm978_vm6, %v1146_v53, %v11782_v22  ;;  %v16774_v22 = vld [vmem:[#allocation45_spill] sm:$0xff]  ;;  %v990_v55 = vsel %vm978_vm6, %v965_v26, %v16785_v8  ;;  %v1134_v3 = vsel %vm16484_vm5, %v1110_v63, %v11594_v9  ;;  %v1066_v9 = vsel %vm16486_vm2, %v1042_v24, %v16685_v21  ;;  %v16793_v43 = vld [vmem:[#allocation91_spill] sm:$0xff]  ;;  %v16808_v24 = vld [vmem:[#allocation30_spill] sm:$0xff] }
 0x37b   : > { %1765 = vxpose.xlu1.b32.cont [3/4] (short) (narrow) %v16771_v58, 24  ;;  %2276 = vxpose.xlu0.b32.cont [2/4] (short) (narrow) %v1170_v56, 24  ;;  %v988_v50 = vsel %vm978_vm6, %v963_v10, %v16774_v22  ;;  %v1158_v53 = vsel %vm978_vm6, %v1134_v3, %v10741_v30  ;;  %v16786_v56 = vld [vmem:[#allocation67_spill] sm:$0xff]  ;;  %v16787_v58 = vld [vmem:[#allocation81_spill] sm:$0xff]  ;;  %v1090_v14 = vsel %vm16485_vm3, %v1066_v9, %v16687_v61  ;;  %v16796_v61 = vld [vmem:[#allocation92_spill] sm:$0xff] }
 0x37c   : > { %v919_v19 = vsel %vm16485_vm3, %v16787_v58, %v16786_v56  ;;  %v16795_v45 = vld [vmem:[#allocation47_spill] sm:$0xff]  ;;  %v921_v23 = vsel %vm16485_vm3, %v16796_v61, %v16794_v17  ;;  %v12345_v48 = vpop.permute.xlu1 %1485  ;;  %v16804_v54 = vld [vmem:[#allocation13_spill] sm:$0xff] }
 0x37d   : > { %v944_v10 = vsel %vm928_vm4, %v919_v19, %v16789_v57  ;;  %v946_v42 = vsel %vm928_vm4, %v921_v23, %v16795_v45  ;;  %v16802_v52 = vld [vmem:[#allocation95_spill] sm:$0xff]  ;;  %v16809_v57 = vld [vmem:[#allocation37_spill] sm:$0xff] }
 0x37e   : > { %v969_v30 = vsel %vm16484_vm5, %v944_v10, %v16791_v32  ;;  %v971_v27 = vsel %vm16484_vm5, %v946_v42, %v16800_v13  ;;  %v16805_v8 = vld [vmem:[#allocation107_spill] sm:$0xff]  ;;  %v16810_v10 = vld [vmem:[#allocation105_spill] sm:$0xff]  ;;  %v16819_v42 = vld [vmem:[#allocation128_spill] sm:$0xff] }
 0x37f   : > { %1766 = vxpose.xlu1.b32.end [4/4] (short) (narrow) %v16772_v18, 24  ;;  %v16788_v18 = vld [vmem:[#allocation68_spill] sm:$0xff]  ;;  %v996_v60 = vsel %vm978_vm6, %v971_v27, %v16802_v52  ;;  %v16806_v3 = vld [vmem:[#allocation59_spill] sm:$0xff]  ;;  %v16816_v61 = vld [vmem:[#allocation121_spill] sm:$0xff] }
 0x380   : > { %v1488_v51 = vpop.permute.xlu0 %1487  ;;  %v16807_v56 = vld [vmem:[#allocation103_spill] sm:$0xff] }
 0x381   : > { %2277 = vxpose.xlu0.b32.cont [3/4] (short) (narrow) %v1488_v51, 24  ;;  %v16792_v51 = vld [vmem:[#allocation84_spill] sm:$0xff]  ;;  %v923_v58 = vsel %vm16485_vm3, %v16807_v56, %v16804_v54  ;;  %v16821_v27 = vld [vmem:[#allocation123_spill] sm:$0xff] }
 0x382   : > { %v994_v22 = vsel %vm978_vm6, %v969_v30, %v16792_v51  ;;  %v948_v9 = vsel %vm928_vm4, %v923_v58, %v16806_v3 }
 0x383   : > { %1827 = vxpose.xlu1.b32.start [1/4] (short) (narrow) %v988_v50, 24  ;;  %v1114_v50 = vsel %vm928_vm4, %v1090_v14, %v16793_v43  ;;  %v16812_v14 = vld [vmem:[#allocation113_spill] sm:$0xff] }
 0x384   : > { %v1138_v21 = vsel %vm16484_vm5, %v1114_v50, %v16794_v17  ;;  %v1024_v50 = vsel %vm16498_vm0, %v16739_v62, %v12107_v34  ;;  %v16814_v17 = vld [vmem:[#allocation70_spill] sm:$0xff]  ;;  %v16817_v62 = vld [vmem:[#allocation16_spill] sm:$0xff] }
 0x385   : > { %v1162_v29 = vsel %vm978_vm6, %v1138_v21, %v16795_v45  ;;  %v1048_v21 = vsel %vm853_vm1, %v1024_v50, %v11211_v1  ;;  %v16815_v45 = vld [vmem:[#allocation114_spill] sm:$0xff]  ;;  %v16838_v50 = vld [vmem:[#allocation40_spill] sm:$0xff] }
 0x386   : > { %v1072_v23 = vsel %vm16486_vm2, %v1048_v21, %v16816_v61  ;;  %v16840_v21 = vld [vmem:[#allocation87_spill] sm:$0xff] }
 0x387   : > { %1828 = vxpose.xlu1.b32.cont [2/4] (short) (narrow) %v1156_v40, 24  ;;  %v1044_v40 = vsel %vm853_vm1, %v1020_v38, %v11019_v39 }
 0x388   : > { %v1068_v28 = vsel %vm16486_vm2, %v1044_v40, %v16798_v16  ;;  %v16818_v16 = vld [vmem:[#allocation122_spill] sm:$0xff] }
 0x389   : > { %v1092_v39 = vsel %vm16485_vm3, %v1068_v28, %v16801_v0  ;;  %v1096_v28 = vsel %vm16485_vm3, %v1072_v23, %v16818_v16  ;;  %v16844_v23 = vld [vmem:[#allocation66_spill] sm:$0xff] }
 0x38a   : > { %v1120_v0 = vsel %vm928_vm4, %v1096_v28, %v16821_v27  ;;  %v16846_v28 = vld [vmem:[#allocation125_spill] sm:$0xff] }
 0x38b   : > { %1829 = vxpose.xlu1.b32.cont [3/4] (short) (narrow) %v16779_v49, 24  ;;  %v16799_v49 = vld [vmem:[#allocation38_spill] sm:$0xff] }
 0x38f   : > { %1830 = vxpose.xlu1.b32.end [4/4] (short) (narrow) %v16782_v20, 24  ;;  %v16803_v20 = vld [vmem:[#allocation102_spill] sm:$0xff] }
 0x390   : > { %v1116_v37 = vsel %vm928_vm4, %v1092_v39, %v16803_v20  ;;  %v16822_v39 = vld [vmem:[#allocation117_spill] sm:$0xff]  ;;  %v1144_v20 = vsel %vm16484_vm5, %v1120_v0, %v12192_v35 }
 0x391   : > { %v1140_v63 = vsel %vm16484_vm5, %v1116_v37, %v16804_v54  ;;  %v1025_v37 = vsel %vm16498_vm0, %v16821_v27, %v12192_v35 }
 0x392   : > { %v1164_v59 = vsel %vm978_vm6, %v1140_v63, %v16806_v3  ;;  %v16823_v63 = vld [vmem:[#allocation120_spill] sm:$0xff] }
 0x393   : > { %1891 = vxpose.xlu1.b32.start [1/4] (short) (narrow) %v990_v55, 24  ;;  %v1022_v55 = vsel %vm16498_vm0, %v16805_v8, %v11908_v36  ;;  %v926_v8 = vsel %vm16485_vm3, %v16823_v63, %v12107_v34 }
 0x394   : > { %v1046_v19 = vsel %vm853_vm1, %v1022_v55, %v16696_v12  ;;  %v16811_v12 = vld [vmem:[#allocation106_spill] sm:$0xff]  ;;  %v1049_v55 = vsel %vm853_vm1, %v1025_v37, %v11682_v44 }
 0x395   : > { %v1070_v36 = vsel %vm16486_vm2, %v1046_v19, %v16735_v41  ;;  %v16813_v41 = vld [vmem:[#allocation34_spill] sm:$0xff]  ;;  %v1073_v35 = vsel %vm16486_vm2, %v1049_v55, %v11994_v6  ;;  %v16826_v6 = vld [vmem:[#allocation43_spill] sm:$0xff] }
 0x396   : > { %v1094_v32 = vsel %vm16485_vm3, %v1070_v36, %v16738_v47  ;;  %v1097_v34 = vsel %vm16485_vm3, %v1073_v35, %v12020_v33 }
 0x397   : > { %1892 = vxpose.xlu1.b32.cont [2/4] (short) (narrow) %v1158_v53, 24  ;;  %v1118_v51 = vsel %vm928_vm4, %v1094_v32, %v16812_v14  ;;  %v16835_v14 = vld [vmem:[#allocation71_spill] sm:$0xff] }
 0x39b   : > { %1893 = vxpose.xlu1.b32.cont [3/4] (short) (narrow) %v16788_v18, 24 }
 0x39f   : > { %1894 = vxpose.xlu1.b32.end [4/4] (short) (narrow) %v16790_v25, 24  ;;  %v973_v25 = vsel %vm16484_vm5, %v948_v9, %v16810_v10  ;;  %v16830_v9 = vld [vmem:[#allocation19_spill] sm:$0xff] }
 0x3a0   : > { %v998_v30 = vsel %vm978_vm6, %v973_v25, %v16811_v12  ;;  %v16833_v12 = vld [vmem:[#allocation49_spill] sm:$0xff] }
 0x3a3   : > { %2019 = vxpose.xlu1.b32.start [1/4] (short) (narrow) %v994_v22, 24  ;;  %v1142_v22 = vsel %vm16484_vm5, %v1118_v51, %v16813_v41 }
 0x3a4   : > { %v1166_v47 = vsel %vm978_vm6, %v1142_v22, %v16814_v17 }
 0x3a7   : > { %2020 = vxpose.xlu1.b32.cont [2/4] (short) (narrow) %v1162_v29, 24  ;;  %v925_v29 = vsel %vm16485_vm3, %v16815_v45, %v16813_v41  ;;  %v16841_v45 = vld [vmem:[#allocation89_spill] sm:$0xff] }
 0x3ab   : > { %2021 = vxpose.xlu1.b32.cont [3/4] (short) (narrow) %v16797_v46, 24  ;;  %v950_v46 = vsel %vm928_vm4, %v925_v29, %v16814_v17  ;;  %v16842_v29 = vld [vmem:[#allocation96_spill] sm:$0xff] }
 0x3af   : > { %2022 = vxpose.xlu1.b32.end [4/4] (short) (narrow) %v16799_v49, 24  ;;  %v16820_v49 = vld [vmem:[#allocation116_spill] sm:$0xff] }
 0x3b0   : > { %v975_v13 = vsel %vm16484_vm5, %v950_v46, %v16820_v49  ;;  %v16845_v46 = vld [vmem:[#allocation124_spill] sm:$0xff] }
 0x3b1   : > { %v1000_v52 = vsel %vm978_vm6, %v975_v13, %v16822_v39  ;;  %v16848_v13 = vld [vmem:[#allocation127_spill] sm:$0xff]  ;;  %v16849_v39 = vld [vmem:[#allocation129_spill] sm:$0xff] }
 0x3b3   : > { %2083 = vxpose.xlu1.b32.start [1/4] (short) (narrow) %v996_v60, 24  ;;  %v1587_v26 = vpop.trf.xlu1 }
 0x3b4   : > { %9363 = vmatmul.mubr.msk.f32.gmra.mrb[2].mxu0 %vm2318_vm9, %v1587_v26  ;;  %v1168_v26 = vsel %vm978_vm6, %v1144_v20, %v11682_v44 }
 0x3b7   : > { %2084 = vxpose.xlu1.b32.cont [2/4] (short) (narrow) %v1164_v59, 24  ;;  %v1588_v53 = vpop.trf.xlu1  ;;  %v951_v59 = vsel %vm928_vm4, %v926_v8, %v11211_v1  ;;  %v1121_v1 = vsel %vm928_vm4, %v1097_v34, %v11998_v15  ;;  %v16852_v34 = vld [vmem:[#allocation131_spill] sm:$0xff] }
 0x3b8   : > { %9365 = vmatprep.mubr.msk.f32.mxu0 %vm2318_vm9, %v1588_v53  ;;  %v16824_v53 = vld [vmem:[#allocation39_spill] sm:$0xff]  ;;  %v976_v44 = vsel %vm16484_vm5, %v951_v59, %v16816_v61  ;;  %v1145_v33 = vsel %vm16484_vm5, %v1121_v1, %v12224_v2  ;;  %v16828_v2 = vld [vmem:[#allocation41_spill] sm:$0xff] }
 0x3b9   : > { %v1001_v56 = vsel %vm978_vm6, %v976_v44, %v16818_v16  ;;  %v1169_v58 = vsel %vm978_vm6, %v1145_v33, %v11762_v31  ;;  %v16843_v61 = vld [vmem:[#allocation99_spill] sm:$0xff] }
 0x3bb   : > { %2085 = vxpose.xlu1.b32.cont [3/4] (short) (narrow) %v16808_v24, 24  ;;  %v1589_v18 = vpop.trf.xlu1  ;;  %v16827_v24 = vld [vmem:[#allocation42_spill] sm:$0xff] }
 0x3bc   : > { %9366 = vmatmul.mubr.msk.f32.gmra.mrb[4].mxu0 %vm2318_vm9, %v1589_v18  ;;  %v16829_v18 = vld [vmem:[#allocation52_spill] sm:$0xff] }
 0x3bf   : > { %2086 = vxpose.xlu1.b32.end [4/4] (short) (narrow) %v16809_v57, 24  ;;  %v16831_v57 = vld [vmem:[#allocation55_spill] sm:$0xff] }
 0x3c3   : > { %2147 = vxpose.xlu1.b32.start [1/4] (short) (narrow) %v998_v30, 24  ;;  %v1619_v43 = vpop.trf.xlu1  ;;  %v16834_v30 = vld [vmem:[#allocation57_spill] sm:$0xff] }
 0x3c4   : > { %9368 = vmatprep.mubr.msk.f32.mxu0 %vm2318_vm9, %v1619_v43  ;;  %v16836_v43 = vld [vmem:[#allocation73_spill] sm:$0xff] }
 0x3c7   : > { %2148 = vxpose.xlu1.b32.cont [2/4] (short) (narrow) %v1166_v47, 24  ;;  %v1620_v38 = vpop.trf.xlu1  ;;  %v16839_v47 = vld [vmem:[#allocation88_spill] sm:$0xff] }
 0x3c8   : > { %9369 = vmatmul.mubr.msk.f32.gmra.mrb[6].mxu0 %vm2318_vm9, %v1620_v38 }
 0x3cb   : > { %2149 = vxpose.xlu1.b32.cont [3/4] (short) (narrow) %v16817_v62, 24  ;;  %v1621_v40 = vpop.trf.xlu1 }
 0x3cc   : > { %9371 = vmatprep.mubr.msk.f32.mxu0 %vm2318_vm9, %v1621_v40 }
 0x3cf   : > { %2150 = vxpose.xlu1.b32.end [4/4] (short) (narrow) %v16819_v42, 24  ;;  %v16847_v42 = vld [vmem:[#allocation126_spill] sm:$0xff] }
 0x3d3   : > { %2211 = vxpose.xlu1.b32.start [1/4] (short) (narrow) %v1000_v52, 24  ;;  %v1651_v60 = vpop.trf.xlu1  ;;  %v16850_v52 = vld [vmem:[#allocation130_spill] sm:$0xff] }
 0x3d4   : > { %9372 = vmatmul.mubr.msk.f32.gmra.mrb[8].mxu0 %vm2318_vm9, %v1651_v60 }
 0x3d7   : > { %2212 = vxpose.xlu1.b32.cont [2/4] (short) (narrow) %v1168_v26, 24  ;;  %v1652_v54 = vpop.trf.xlu1 }
 0x3d8   : > { %9374 = vmatprep.mubr.msk.f32.mxu0 %vm2318_vm9, %v1652_v54 }
 0x3db   : > { %2213 = vxpose.xlu1.b32.cont [3/4] (short) (narrow) %v12222_v11, 24  ;;  %v1653_v3 = vpop.trf.xlu1  ;;  %v16825_v11 = vld [vmem:[#allocation17_spill] sm:$0xff] }
 0x3dc   : > { %9375 = vmatmul.mubr.msk.f32.gmra.mrb[10].mxu0 %vm2318_vm9, %v1653_v3 }
 0x3dd   : > { %9377 = vmatprep.mubr.msk.f32.mxu0 %vm2318_vm9, %v16824_v53  ;;  %v12538_v53 = vld [vmem:[%s16851_s2] ss:$0 sm:$0xff] }
 0x3de   : > { %v2605_v44 = vadd.f32 %v12538_v53, %v16852_v34 }
 0x3df   : > { %2214 = vxpose.xlu1.b32.end [4/4] (short) (narrow) %v12241_v5, 24 }
 0x3e0   : > { %9378 = vmatmul.mubr.msk.f32.gmra.mrb[12].mxu0 %vm2318_vm9, %v16825_v11 }
 0x3e1   : > { %9380 = vmatprep.mubr.msk.f32.mxu0 %vm2318_vm9, %v16826_v6  ;;  %v2195_v27 = vpop.trf.xlu0  ;;  %v2963_v6 = vmax.f32 %v2605_v44, 0.0 }
 0x3e3   : > { %2243 = vxpose.xlu1.b32.start [1/4] (short) (narrow) %v1001_v56, 24  ;;  %v1715_v5 = vpop.trf.xlu1 }
 0x3e4   : > { %9381 = vmatmul.mubr.msk.f32.gmra.mrb[14].mxu0 %vm2318_vm9, %v1715_v5 }
 0x3e5   : > { %v2196_v20 = vpop.trf.xlu0 }
 0x3e7   : > { %2244 = vxpose.xlu1.b32.cont [2/4] (short) (narrow) %v1169_v58, 24  ;;  %v1716_v19 = vpop.trf.xlu1  ;;  %v3036_v58 = vsel %vm16500_vm10, %v2963_v6, -inf }
 0x3e8   : > { %9383 = vmatprep.mubr.msk.f32.mxu0 %vm2318_vm9, %v1716_v19 }
 0x3e9   : > { %v2197_v26 = vpop.trf.xlu0 }
 0x3eb   : > { %2245 = vxpose.xlu1.b32.cont [3/4] (short) (narrow) %v12338_v7, 24  ;;  %v1717_v15 = vpop.trf.xlu1 }
 0x3ec   : > { %9384 = vmatmul.mubr.msk.f32.gmra.mrb[16].mxu0 %vm2318_vm9, %v1717_v15  ;;  %v16853_v15 = vld [vmem:[#allocation74_spill] sm:$0xff] }
 0x3ed   : > { %9386 = vmatprep.mubr.msk.f32.mxu0 %vm2318_vm9, %v16827_v24  ;;  %v2610_v24 = vadd.f32 %v16853_v15, %v12538_v53 }
 0x3ef   : > { %2246 = vxpose.xlu1.b32.end [4/4] (short) (narrow) %v12345_v48, 24  ;;  %v16832_v48 = vld [vmem:[#allocation50_spill] sm:$0xff] }
 0x3f0   : > { %9387 = vmatmul.mubr.msk.f32.gmra.mrb[18].mxu0 %vm2318_vm9, %v16828_v2 }
 0x3f1   : > { %9389 = vmatprep.mubr.msk.f32.mxu0 %vm2318_vm9, %v16829_v18 }
 0x3f3   : > { %v1779_v31 = vpop.trf.xlu1 }
 0x3f4   : > { %9390 = vmatmul.mubr.msk.f32.gmra.mrb[20].mxu0 %vm2318_vm9, %v1779_v31 }
 0x3f7   : > { %v1780_v36 = vpop.trf.xlu1 }
 0x3f8   : > { %9392 = vmatprep.mubr.msk.f32.mxu0 %vm2318_vm9, %v1780_v36 }
 0x3fb   : > { %v1781_v7 = vpop.trf.xlu1 }
 0x3fc   : > { %9393 = vmatmul.mubr.msk.f32.gmra.mrb[22].mxu0 %vm2318_vm9, %v1781_v7 }
 0x3fd   : > { %9395 = vmatprep.mubr.msk.f32.mxu0 %vm2318_vm9, %v16830_v9 }
 0x400   : > { %9396 = vmatmul.mubr.msk.f32.gmra.mrb[24].mxu0 %vm2318_vm9, %v16831_v57  ;;  %v2964_v57 = vmax.f32 %v2610_v24, 0.0 }
 0x401   : > { %9398 = vmatprep.mubr.msk.f32.mxu0 %vm2318_vm9, %v16832_v48 }
 0x403   : > { %v1843_v10 = vpop.trf.xlu1 }
 0x404   : > { %9399 = vmatmul.mubr.msk.f32.gmra.mrb[26].mxu0 %vm2318_vm9, %v1843_v10 }
 0x407   : > { %v1844_v25 = vpop.trf.xlu1 }
 0x408   : > { %9401 = vmatprep.mubr.msk.f32.mxu0 %vm2318_vm9, %v1844_v25 }
 0x40b   : > { %v1845_v32 = vpop.trf.xlu1 }
 0x40c   : > { %9402 = vmatmul.mubr.msk.f32.gmra.mrb[28].mxu0 %vm2318_vm9, %v1845_v32 }
 0x40d   : > { %1489 = vrot.lane.b32.xlu1 %v12190_v4, %s10410_s27  ;;  %9404 = vmatprep.mubr.msk.f32.mxu0 %vm2318_vm9, %v16833_v12  ;;  %v16837_v4 = vld [vmem:[#allocation85_spill] sm:$0xff]  ;;  %s16900_s27 = smov 44  }
 0x410   : > { %9405 = vmatmul.mubr.msk.f32.gmra.mrb[30].mxu0 %vm2318_vm9, %v16834_v30 }
 0x411   : > { %9407 = vmatprep.mubr.msk.f32.mxu0 %vm2318_vm9, %v16835_v14 }
 0x413   : > { %v1907_v51 = vpop.trf.xlu1 }
 0x414   : > { %9408 = vmatmul.mubr.msk.f32.gmra.mrb[32].mxu0 %vm2318_vm9, %v1907_v51  ;;  %v3039_v51 = vsel %vm16500_vm10, %v2964_v57, -inf }
 0x417   : > { %v1908_v41 = vpop.trf.xlu1 }
 0x418   : > { %9410 = vmatprep.mubr.msk.f32.mxu0 %vm2318_vm9, %v1908_v41 }
 0x41b   : > { %v1909_v22 = vpop.trf.xlu1 }
 0x41c   : > { %9411 = vmatmul.mubr.msk.f32.gmra.mrb[34].mxu0 %vm2318_vm9, %v1909_v22 }
 0x41d   : > { %9413 = vmatprep.mubr.msk.f32.mxu0 %vm2318_vm9, %v16836_v43 }
 0x420   : > { %9414 = vmatmul.mubr.msk.f32.gmra.mrb[36].mxu0 %vm2318_vm9, %v16837_v4 }
 0x421   : > { %9416 = vmatprep.mubr.msk.f32.mxu0 %vm2318_vm9, %v16838_v50 }
 0x423   : > { %v2035_v17 = vpop.trf.xlu1 }
 0x424   : > { %9417 = vmatmul.mubr.msk.f32.gmra.mrb[38].mxu0 %vm2318_vm9, %v16839_v47 }
 0x425   : > { %9419 = vmatprep.mubr.msk.f32.mxu0 %vm2318_vm9, %v16840_v21 }
 0x427   : > { %v2036_v38 = vpop.trf.xlu1 }
 0x428   : > { %9420 = vmatmul.mubr.msk.f32.gmra.mrb[40].mxu0 %vm2318_vm9, %v16841_v45 }
 0x429   : > { %9422 = vmatprep.mubr.msk.f32.mxu0 %vm2318_vm9, %v16842_v29 }
 0x42b   : > { %v2037_v62 = vpop.trf.xlu1 }
 0x42c   : > { %9423 = vmatmul.mubr.msk.f32.gmra.mrb[42].mxu0 %vm2318_vm9, %v16843_v61 }
 0x42d   : > { %9425 = vmatprep.mubr.msk.f32.mxu0 %vm2318_vm9, %v16844_v23 }
 0x430   : > { %9426 = vmatmul.mubr.msk.f32.gmra.mrb[44].mxu0 %vm2318_vm9, %v2035_v17 }
 0x431   : > { %9428 = vmatprep.mubr.msk.f32.mxu0 %vm2318_vm9, %v2036_v38 }
 0x433   : > { %v2099_v40 = vpop.trf.xlu1 }
 0x434   : > { %9429 = vmatmul.mubr.msk.f32.gmra.mrb[46].mxu0 %vm2318_vm9, %v2037_v62 }
 0x435   : > { %9431 = vmatprep.mubr.msk.f32.mxu0 %vm2318_vm9, %v16845_v46 }
 0x437   : > { %v2100_v16 = vpop.trf.xlu1 }
 0x438   : > { %9432 = vmatmul.mubr.msk.f32.gmra.mrb[48].mxu0 %vm2318_vm9, %v16846_v28 }
 0x439   : > { %9434 = vmatprep.mubr.msk.f32.mxu0 %vm2318_vm9, %v16847_v42 }
 0x43b   : > { %v2101_v49 = vpop.trf.xlu1 }
 0x43c   : > { %9435 = vmatmul.mubr.msk.f32.gmra.mrb[50].mxu0 %vm2318_vm9, %v2099_v40 }
 0x43d   : > { %9437 = vmatprep.mubr.msk.f32.mxu0 %vm2318_vm9, %v2100_v16 }
 0x440   : > { %9438 = vmatmul.mubr.msk.f32.gmra.mrb[52].mxu0 %vm2318_vm9, %v2101_v49 }
 0x441   : > { %9440 = vmatprep.mubr.msk.f32.mxu0 %vm2318_vm9, %v16848_v13 }
 0x443   : > { %v2163_v0 = vpop.trf.xlu1 }
 0x444   : > { %9441 = vmatmul.mubr.msk.f32.gmra.mrb[54].mxu0 %vm2318_vm9, %v16849_v39 }
 0x445   : > { %9443 = vmatprep.mubr.msk.f32.mxu0 %vm2318_vm9, %v16850_v52 }
 0x447   : > { %v2164_v60 = vpop.trf.xlu1 }
 0x448   : > { %9444 = vmatmul.mubr.msk.f32.gmra.mrb[56].mxu0 %vm2318_vm9, %v2163_v0 }
 0x449   : > { %9446 = vmatprep.mubr.msk.f32.mxu0 %vm2318_vm9, %v2164_v60 }
 0x44b   : > { %v2165_v37 = vpop.trf.xlu1 }
 0x44c   : > { %9447 = vmatmul.mubr.msk.f32.gmra.mrb[58].mxu0 %vm2318_vm9, %v2165_v37 }
 0x44d   : > { %9449 = vmatprep.mubr.msk.f32.mxu0 %vm2318_vm9, %v2195_v27 }
 0x450   : > { %9450 = vmatmul.mubr.msk.f32.gmra.mrb[60].mxu0 %vm2318_vm9, %v2196_v20 }
 0x451   : > { %9452 = vmatprep.mubr.msk.f32.mxu0 %vm2318_vm9, %v2197_v26 }
 0x453   : > { %v2227_v54 = vpop.trf.xlu1 }
 0x454   : > { %9453 = vmatmul.mubr.msk.f32.gmra.mrb[62].mxu0 %vm2318_vm9, %v2227_v54 }
 0x457   : > { %v2228_v63 = vpop.trf.xlu1 }
 0x458   : > { %9455 = vmatprep.mubr.msk.f32.mxu0 %vm2318_vm9, %v2228_v63 }
 0x45b   : > { %v2229_v8 = vpop.trf.xlu1 }
 0x45c   : > { %9456 = vmatmul.mubr.msk.f32.gmra.mrb[64].mxu0 %vm2318_vm9, %v2229_v8 }
 0x463   : > { %v2259_v55 = vpop.trf.xlu1 }
 0x464   : > { %9458 = vmatprep.mubr.msk.f32.mxu0 %vm2318_vm9, %v2259_v55 }
 0x467   : > { %v2260_v3 = vpop.trf.xlu1 }
 0x468   : > { %9459 = vmatmul.mubr.msk.f32.gmra.mrb[66].mxu0 %vm2318_vm9, %v2260_v3 }
 0x46b   : > { %v2261_v35 = vpop.trf.xlu1 }
 0x46c   : > { %9461 = vmatprep.mubr.msk.f32.mxu0 %vm2318_vm9, %v2261_v35 }
 0x47f   : > { %v1490_v59 = vpop.permute.xlu1 %1489 }
 0x480   : > { %2278 = vxpose.xlu0.b32.end [4/4] (short) (narrow) %v1490_v59, 24 }
 0x487   : > { %v9364_v11 = vpop.f32.mrb[2].mxu0 }
 0x488   : > { %v2620_v1 = vadd.f32 %v9364_v11, %v12538_v53  ;;  %v2614_v56 = vpop.f32.mrb[3].mxu0 }
 0x489   : > { %v2615_v5 = vadd.f32 %v12538_v53, %v2614_v56 }
 0x48a   : > { %v2966_v33 = vmax.f32 %v2620_v1, 0.0 }
 0x48b   : > { %v2965_v18 = vmax.f32 %v2615_v5, 0.0 }
 0x48c   : > { %v3037_v19 = vsel %vm16500_vm10, %v2966_v33, -inf }
 0x48d   : > { %v3038_v2 = vmax.f32 %v3036_v58, %v3037_v19  ;;  %v3042_v25 = vsel %vm16500_vm10, %v2965_v18, -inf }
 0x48f   : > { %v3156_v31 = vrot.slane %v3038_v2, 1  ;;  %v9367_v36 = vpop.f32.mrb[4].mxu0 }
 0x490   : > { %v2630_v7 = vadd.f32 %v9367_v36, %v12538_v53  ;;  %v2624_v9 = vpop.f32.mrb[5].mxu0 }
 0x491   : > { %v3180_v48 = vmax.f32 %v3038_v2, %v3156_v31  ;;  %v2625_v10 = vadd.f32 %v12538_v53, %v2624_v9 }
 0x492   : > { %v2968_v32 = vmax.f32 %v2630_v7, 0.0 }
 0x493   : > { %v3300_v12 = vrot.slane %v3180_v48, 1  ;;  %v2967_v30 = vmax.f32 %v2625_v10, 0.0  ;;  %v3324_v43 = vrot.slane %v3180_v48, 2  ;;  %v3348_v38 = vrot.slane %v3180_v48, 3 }
 0x494   : > { %v3043_v14 = vsel %vm16500_vm10, %v2968_v32, -inf }
 0x495   : > { %v3044_v41 = vmax.f32 %v3042_v25, %v3043_v14  ;;  %v3040_v22 = vsel %vm16500_vm10, %v2967_v30, -inf  ;;  %v3564_v50 = vsel %vm16498_vm0, %v3180_v48, %v3300_v12 }
 0x496   : > { %v3041_v4 = vmax.f32 %v3039_v51, %v3040_v22  ;;  %v3576_v47 = vsel %vm853_vm1, %v3564_v50, %v3324_v43 }
 0x497   : > { %v3588_v62 = vsel %vm16486_vm2, %v3576_v47, %v3348_v38  ;;  %v3252_v49 = vrot.slane %v3044_v41, 1 }
 0x498   : > { %v3204_v17 = vrot.slane %v3041_v4, 1 }
 0x499   : > { %v3276_v0 = vmax.f32 %v3044_v41, %v3252_v49 }
 0x49a   : > { %v3228_v21 = vmax.f32 %v3041_v4, %v3204_v17 }
 0x49b   : > { %v9370_v45 = vpop.f32.mrb[6].mxu0  ;;  %v3492_v37 = vrot.slane %v3276_v0, 1  ;;  %v3516_v8 = vrot.slane %v3276_v0, 2  ;;  %v3540_v44 = vrot.slane %v3276_v0, 3 }
 0x49c   : > { %v3384_v29 = vrot.slane %v3228_v21, 4  ;;  %v3408_v61 = vrot.slane %v3228_v21, 5  ;;  %v2634_v23 = vpop.f32.mrb[7].mxu0  ;;  %v3432_v40 = vrot.slane %v3228_v21, 6  ;;  %v3456_v16 = vrot.slane %v3228_v21, 7 }
 0x49d   : > { %v2635_v27 = vadd.f32 %v12538_v53, %v2634_v23  ;;  %v2640_v55 = vadd.f32 %v9370_v45, %v12538_v53  ;;  %v3648_v35 = vsel %vm16498_vm0, %v3276_v0, %v3492_v37 }
 0x49e   : > { %v3600_v46 = vsel %vm16485_vm3, %v3588_v62, %v3384_v29  ;;  %v3660_v1 = vsel %vm853_vm1, %v3648_v35, %v3516_v8 }
 0x49f   : > { %v3612_v28 = vsel %vm928_vm4, %v3600_v46, %v3408_v61  ;;  %v2969_v39 = vmax.f32 %v2635_v27, 0.0  ;;  %v2970_v56 = vmax.f32 %v2640_v55, 0.0  ;;  %v3672_v36 = vsel %vm16486_vm2, %v3660_v1, %v3540_v44 }
 0x4a0   : > { %v3624_v42 = vsel %vm16484_vm5, %v3612_v28, %v3432_v40  ;;  %v3845_v14 = vrot.slane %v3672_v36, 4  ;;  %v3701_v51 = vrot.slane %v3672_v36, 1  ;;  %v3749_v4 = vrot.slane %v3672_v36, 2 }
 0x4a1   : > { %v12561_v13 = vsel %vm978_vm6, %v3624_v42, %v3456_v16  ;;  %v3045_v26 = vsel %vm16500_vm10, %v2969_v39, -inf  ;;  %v3048_v7 = vsel %vm16500_vm10, %v2970_v56, -inf  ;;  %v3797_v50 = vrot.slane %v3672_v36, 3 }
 0x4a2   : > { %v3844_v45 = vrot.slane %v12561_v13, 4  ;;  %v3700_v62 = vrot.slane %v12561_v13, 1  ;;  %v3748_v28 = vrot.slane %v12561_v13, 2  ;;  %v3796_v0 = vrot.slane %v12561_v13, 3 }
 0x4a7   : > { %v9373_v52 = vpop.f32.mrb[8].mxu0 }
 0x4a8   : > { %v2650_v60 = vadd.f32 %v9373_v52, %v12538_v53  ;;  %v2644_v20 = vpop.f32.mrb[9].mxu0 }
 0x4a9   : > { %v2645_v63 = vadd.f32 %v12538_v53, %v2644_v20 }
 0x4aa   : > { %v2972_v54 = vmax.f32 %v2650_v60, 0.0 }
 0x4ab   : > { %v2971_v34 = vmax.f32 %v2645_v63, 0.0 }
 0x4ac   : > { %v3046_v3 = vsel %vm16500_vm10, %v2972_v54, -inf }
 0x4ad   : > { %v3047_v59 = vmax.f32 %v3045_v26, %v3046_v3  ;;  %v3051_v15 = vsel %vm16500_vm10, %v2971_v34, -inf }
 0x4af   : > { %v3157_v11 = vrot.slane %v3047_v59, 1  ;;  %v9376_v6 = vpop.f32.mrb[10].mxu0 }
 0x4b0   : > { %v2660_v33 = vadd.f32 %v9376_v6, %v12538_v53  ;;  %v2654_v5 = vpop.f32.mrb[11].mxu0  ;;  %v12599_v6 = vsel %vm978_vm6, %v3700_v62, %v3701_v51 }
 0x4b1   : > { %v3181_v58 = vmax.f32 %v3047_v59, %v3157_v11  ;;  %v2655_v19 = vadd.f32 %v12538_v53, %v2654_v5  ;;  %v12596_v11 = vsel %vm16485_vm3, %v3844_v45, %v3845_v14 }
 0x4b2   : > { %v2974_v24 = vmax.f32 %v2660_v33, 0.0 }
 0x4b3   : > { %v3301_v2 = vrot.slane %v3181_v58, 1  ;;  %v2973_v18 = vmax.f32 %v2655_v19, 0.0  ;;  %v9379_v31 = vpop.f32.mrb[12].mxu0  ;;  %v3325_v48 = vrot.slane %v3181_v58, 2  ;;  %v3349_v40 = vrot.slane %v3181_v58, 3 }
 0x4b4   : > { %v3052_v9 = vsel %vm16500_vm10, %v2974_v24, -inf  ;;  %v2664_v57 = vpop.f32.mrb[13].mxu0  ;;  %v2670_v22 = vadd.f32 %v9379_v31, %v12538_v53  ;;  %v12609_v24 = vsel %vm16484_vm5, %v3748_v28, %v3749_v4 }
 0x4b5   : > { %v3053_v10 = vmax.f32 %v3051_v15, %v3052_v9  ;;  %v3049_v25 = vsel %vm16500_vm10, %v2973_v18, -inf  ;;  %v2665_v32 = vadd.f32 %v12538_v53, %v2664_v57  ;;  %v3565_v12 = vsel %vm16498_vm0, %v3181_v58, %v3301_v2 }
 0x4b6   : > { %v3050_v30 = vmax.f32 %v3048_v7, %v3049_v25  ;;  %v3577_v29 = vsel %vm853_vm1, %v3565_v12, %v3325_v48  ;;  %v2976_v27 = vmax.f32 %v2670_v22, 0.0  ;;  %v12612_v2 = vsel %vm928_vm4, %v3796_v0, %v3797_v50 }
 0x4b7   : > { %v3253_v41 = vrot.slane %v3053_v10, 1  ;;  %v9382_v43 = vpop.f32.mrb[14].mxu0  ;;  %v2975_v47 = vmax.f32 %v2665_v32, 0.0  ;;  %v3589_v39 = vsel %vm16486_vm2, %v3577_v29, %v3349_v40 }
 0x4b8   : > { %v3205_v17 = vrot.slane %v3050_v30, 1  ;;  %v2680_v21 = vadd.f32 %v9382_v43, %v12538_v53  ;;  %v2674_v38 = vpop.f32.mrb[15].mxu0  ;;  %v3057_v18 = vsel %vm16500_vm10, %v2976_v27, -inf }
 0x4b9   : > { %v3277_v61 = vmax.f32 %v3053_v10, %v3253_v41  ;;  %v2675_v23 = vadd.f32 %v12538_v53, %v2674_v38  ;;  %v3054_v20 = vsel %vm16500_vm10, %v2975_v47, -inf }
 0x4ba   : > { %v3229_v46 = vmax.f32 %v3050_v30, %v3205_v17  ;;  %v2978_v16 = vmax.f32 %v2680_v21, 0.0 }
 0x4bb   : > { %v3493_v42 = vrot.slane %v3277_v61, 1  ;;  %v3517_v49 = vrot.slane %v3277_v61, 2  ;;  %v3541_v37 = vrot.slane %v3277_v61, 3  ;;  %v2977_v63 = vmax.f32 %v2675_v23, 0.0 }
 0x4bc   : > { %v3385_v52 = vrot.slane %v3229_v46, 4  ;;  %v3409_v60 = vrot.slane %v3229_v46, 5  ;;  %v3055_v54 = vsel %vm16500_vm10, %v2978_v16, -inf  ;;  %v3433_v55 = vrot.slane %v3229_v46, 6 }
 0x4bd   : > { %v3649_v26 = vsel %vm16498_vm0, %v3277_v61, %v3493_v42  ;;  %v3056_v35 = vmax.f32 %v3054_v20, %v3055_v54  ;;  %v3457_v59 = vrot.slane %v3229_v46, 7  ;;  %v3060_v36 = vsel %vm16500_vm10, %v2977_v63, -inf }
 0x4be   : > { %v3661_v8 = vsel %vm853_vm1, %v3649_v26, %v3517_v49  ;;  %v3601_v3 = vsel %vm16485_vm3, %v3589_v39, %v3385_v52 }
 0x4bf   : > { %v3613_v34 = vsel %vm928_vm4, %v3601_v3, %v3409_v60  ;;  %v9385_v44 = vpop.f32.mrb[16].mxu0  ;;  %v3158_v56 = vrot.slane %v3056_v35, 1  ;;  %v3673_v58 = vsel %vm16486_vm2, %v3661_v8, %v3541_v37 }
 0x4c0   : > { %v3625_v1 = vsel %vm16484_vm5, %v3613_v34, %v3433_v55  ;;  %v2690_v33 = vadd.f32 %v9385_v44, %v12538_v53  ;;  %v2684_v5 = vpop.f32.mrb[17].mxu0  ;;  %v3848_v10 = vrot.slane %v3673_v58, 4  ;;  %v3704_v51 = vrot.slane %v3673_v58, 1 }
 0x4c1   : > { %v12605_v19 = vsel %vm978_vm6, %v3625_v1, %v3457_v59  ;;  %v2685_v15 = vadd.f32 %v12538_v53, %v2684_v5  ;;  %v3182_v31 = vmax.f32 %v3056_v35, %v3158_v56  ;;  %v3752_v21 = vrot.slane %v3673_v58, 2 }
 0x4c2   : > { %v2980_v7 = vmax.f32 %v2690_v33, 0.0  ;;  %v3847_v48 = vrot.slane %v12605_v19, 4  ;;  %v3703_v25 = vrot.slane %v12605_v19, 1  ;;  %v3751_v47 = vrot.slane %v12605_v19, 2 }
 0x4c3   : > { %v2979_v9 = vmax.f32 %v2685_v15, 0.0  ;;  %v9388_v57 = vpop.f32.mrb[18].mxu0  ;;  %v3302_v32 = vrot.slane %v3182_v31, 1  ;;  %v3326_v12 = vrot.slane %v3182_v31, 2  ;;  %v3799_v23 = vrot.slane %v12605_v19, 3 }
 0x4c4   : > { %v3061_v30 = vsel %vm16500_vm10, %v2980_v7, -inf  ;;  %v2694_v14 = vpop.f32.mrb[19].mxu0  ;;  %v2700_v43 = vadd.f32 %v9388_v57, %v12538_v53  ;;  %v12625_v29 = vsel %vm16485_vm3, %v3847_v48, %v3848_v10  ;;  %v12628_v61 = vsel %vm978_vm6, %v3703_v25, %v3704_v51 }
 0x4c5   : > { %v3062_v41 = vmax.f32 %v3060_v36, %v3061_v30  ;;  %v3058_v22 = vsel %vm16500_vm10, %v2979_v9, -inf  ;;  %v2695_v4 = vadd.f32 %v12538_v53, %v2694_v14  ;;  %v3566_v50 = vsel %vm16498_vm0, %v3182_v31, %v3302_v32 }
 0x4c6   : > { %v3059_v17 = vmax.f32 %v3057_v18, %v3058_v22  ;;  %v3578_v62 = vsel %vm853_vm1, %v3566_v50, %v3326_v12  ;;  %v3350_v42 = vrot.slane %v3182_v31, 3  ;;  %v2982_v27 = vmax.f32 %v2700_v43, 0.0 }
 0x4c7   : > { %v3254_v38 = vrot.slane %v3062_v41, 1  ;;  %v9391_v45 = vpop.f32.mrb[20].mxu0  ;;  %v2981_v46 = vmax.f32 %v2695_v4, 0.0  ;;  %v3800_v0 = vrot.slane %v3673_v58, 3  ;;  %v10179_v60 = vpack.i.bf16 %v12625_v29, %v12596_v11 }
 0x4c8   : > { %v3206_v40 = vrot.slane %v3059_v17, 1  ;;  %v2710_v16 = vadd.f32 %v9391_v45, %v12538_v53  ;;  %v2704_v28 = vpop.f32.mrb[21].mxu0  ;;  %v10149_v20 = vpack.i.bf16 %v12628_v61, %v12599_v6  ;;  %v3590_v37 = vsel %vm16486_vm2, %v3578_v62, %v3350_v42 }
 0x4c9   : > { %v3278_v49 = vmax.f32 %v3062_v41, %v3254_v38  ;;  %v12639_v63 = vsel %vm16484_vm5, %v3751_v47, %v3752_v21  ;;  %v3063_v3 = vsel %vm16500_vm10, %v2981_v46, -inf  ;;  %v2705_v35 = vadd.f32 %v12538_v53, %v2704_v28 }
 0x4ca   : > { %v3230_v39 = vmax.f32 %v3059_v17, %v3206_v40  ;;  %v2984_v52 = vmax.f32 %v2710_v16, 0.0  ;;  %v12646_v1 = vsel %vm928_vm4, %v3799_v23, %v3800_v0  ;;  %v10159_v58 = vpack.i.bf16 %v12639_v63, %v12609_v24 }
 0x4cb   : > { %v3494_v26 = vrot.slane %v3278_v49, 1  ;;  %v3518_v54 = vrot.slane %v3278_v49, 2  ;;  %v3542_v15 = vrot.slane %v3278_v49, 3  ;;  %v10164_v7 = vpack.i.bf16 %v12646_v1, %v12612_v2 }
 0x4cc   : > { %v3386_v8 = vrot.slane %v3230_v39, 4  ;;  %v3410_v55 = vrot.slane %v3230_v39, 5  ;;  %v3434_v34 = vrot.slane %v3230_v39, 6  ;;  %v3064_v44 = vsel %vm16500_vm10, %v2984_v52, -inf }
 0x4cd   : > { %v3650_v59 = vsel %vm16498_vm0, %v3278_v49, %v3494_v26  ;;  %v3065_v5 = vmax.f32 %v3063_v3, %v3064_v44  ;;  %v3458_v18 = vrot.slane %v3230_v39, 7  ;;  %v2983_v48 = vmax.f32 %v2705_v35, 0.0 }
 0x4ce   : > { %v3662_v56 = vsel %vm853_vm1, %v3650_v59, %v3518_v54  ;;  %v3602_v33 = vsel %vm16485_vm3, %v3590_v37, %v3386_v8  ;;  %v3066_v22 = vsel %vm16500_vm10, %v2982_v27, -inf }
 0x4cf   : > { %v3614_v31 = vsel %vm928_vm4, %v3602_v33, %v3410_v55  ;;  %v9394_v36 = vpop.f32.mrb[22].mxu0  ;;  %v3159_v57 = vrot.slane %v3065_v5, 1  ;;  %v12662_v30 = vsel %vm16486_vm2, %v3662_v56, %v3542_v15  ;;  %v3069_v17 = vsel %vm16500_vm10, %v2983_v48, -inf }
 0x4d0   : > { %v3626_v9 = vsel %vm16484_vm5, %v3614_v31, %v3434_v34  ;;  %v2720_v10 = vadd.f32 %v9394_v36, %v12538_v53  ;;  %v2714_v25 = vpop.f32.mrb[23].mxu0  ;;  %v3851_v38 = vrot.slane %v12662_v30, 4 }
 0x4d1   : > { %v12658_v32 = vsel %vm978_vm6, %v3626_v9, %v3458_v18  ;;  %v2715_v12 = vadd.f32 %v12538_v53, %v2714_v25  ;;  %v3183_v14 = vmax.f32 %v3065_v5, %v3159_v57 }
 0x4d2   : > { %16854 = vst [vmem:[#allocation110_spill] sm:$0xff] %v12658_v32  ;;  %v2986_v51 = vmax.f32 %v2720_v10, 0.0  ;;  %v3850_v41 = vrot.slane %v12658_v32, 4 }
 0x4d3   : > { %v2985_v43 = vmax.f32 %v2715_v12, 0.0  ;;  %v9397_v4 = vpop.f32.mrb[24].mxu0  ;;  %v3303_v50 = vrot.slane %v3183_v14, 1  ;;  %v3327_v45 = vrot.slane %v3183_v14, 2  ;;  %v3351_v55 = vrot.slane %v3183_v14, 3 }
 0x4d4   : > { %v3070_v47 = vsel %vm16500_vm10, %v2986_v51, -inf  ;;  %v2724_v21 = vpop.f32.mrb[25].mxu0  ;;  %v12673_v28 = vsel %vm16485_vm3, %v3850_v41, %v3851_v38  ;;  %v2730_v5 = vadd.f32 %v9397_v4, %v12538_v53 }
 0x4d5   : > { %v3071_v23 = vmax.f32 %v3069_v17, %v3070_v47  ;;  %v3067_v62 = vsel %vm16500_vm10, %v2985_v43, -inf  ;;  %v2725_v40 = vadd.f32 %v12538_v53, %v2724_v21  ;;  %v3567_v46 = vsel %vm16498_vm0, %v3183_v14, %v3303_v50 }
 0x4d6   : > { %v3068_v16 = vmax.f32 %v3066_v22, %v3067_v62  ;;  %v10174_v39 = vpack.i.bf16 %v12673_v28, %v12625_v29  ;;  %v3579_v37 = vsel %vm853_vm1, %v3567_v46, %v3327_v45  ;;  %v2988_v22 = vmax.f32 %v2730_v5, 0.0 }
 0x4d7   : > { %v3255_v42 = vrot.slane %v3071_v23, 1  ;;  %v9400_v49 = vpop.f32.mrb[26].mxu0  ;;  %v2987_v54 = vmax.f32 %v2725_v40, 0.0  ;;  %v3591_v44 = vsel %vm16486_vm2, %v3579_v37, %v3351_v55  ;;  %v3802_v5 = vrot.slane %v12658_v32, 3 }
 0x4d8   : > { %v3207_v27 = vrot.slane %v3068_v16, 1  ;;  %v2740_v0 = vadd.f32 %v9400_v49, %v12538_v53  ;;  %v2734_v52 = vpop.f32.mrb[27].mxu0  ;;  %10175 = vrot.lane.b32.xlu0 %v10174_v39, %s16429_s28  ;;  %v3754_v49 = vrot.slane %v12658_v32, 2 }
 0x4d9   : > { %v3279_v26 = vmax.f32 %v3071_v23, %v3255_v42  ;;  %v2735_v8 = vadd.f32 %v12538_v53, %v2734_v52  ;;  %v3072_v18 = vsel %vm16500_vm10, %v2987_v54, -inf  ;;  %v3707_v42 = vrot.slane %v12662_v30, 1 }
 0x4da   : > { %v3231_v3 = vmax.f32 %v3068_v16, %v3207_v27  ;;  %v2990_v35 = vmax.f32 %v2740_v0, 0.0  ;;  %v3706_v16 = vrot.slane %v12658_v32, 1  ;;  %v3075_v27 = vsel %vm16500_vm10, %v2988_v22, -inf }
 0x4db   : > { %v3495_v59 = vrot.slane %v3279_v26, 1  ;;  %v3519_v34 = vrot.slane %v3279_v26, 2  ;;  %v2989_v36 = vmax.f32 %v2735_v8, 0.0  ;;  %v3543_v25 = vrot.slane %v3279_v26, 3 }
 0x4dc   : > { %v3387_v56 = vrot.slane %v3231_v3, 4  ;;  %v3411_v33 = vrot.slane %v3231_v3, 5  ;;  %v3073_v31 = vsel %vm16500_vm10, %v2990_v35, -inf  ;;  %v3435_v57 = vrot.slane %v3231_v3, 6 }
 0x4dd   : > { %v3651_v15 = vsel %vm16498_vm0, %v3279_v26, %v3495_v59  ;;  %v3074_v10 = vmax.f32 %v3072_v18, %v3073_v31  ;;  %v3459_v12 = vrot.slane %v3231_v3, 7  ;;  %v3078_v45 = vsel %vm16500_vm10, %v2989_v36, -inf }
 0x4de   : > { %v3663_v9 = vsel %vm853_vm1, %v3651_v15, %v3519_v34  ;;  %v3603_v48 = vsel %vm16485_vm3, %v3591_v44, %v3387_v56  ;;  %v3755_v34 = vrot.slane %v12662_v30, 2  ;;  %v12714_v56 = vsel %vm978_vm6, %v3706_v16, %v3707_v42 }
 0x4df   : > { %v3615_v14 = vsel %vm928_vm4, %v3603_v48, %v3411_v33  ;;  %v9403_v51 = vpop.f32.mrb[28].mxu0  ;;  %v3160_v43 = vrot.slane %v3074_v10, 1  ;;  %v12696_v21 = vsel %vm16486_vm2, %v3663_v9, %v3543_v25 }
 0x4e0   : > { %v3627_v41 = vsel %vm16484_vm5, %v3615_v14, %v3435_v57  ;;  %v2750_v4 = vadd.f32 %v9403_v51, %v12538_v53  ;;  %v2744_v50 = vpop.f32.mrb[29].mxu0  ;;  %v3710_v37 = vrot.slane %v12696_v21, 1  ;;  %v12721_v31 = vsel %vm16484_vm5, %v3754_v49, %v3755_v34 }
 0x4e1   : > { %v12692_v17 = vsel %vm978_vm6, %v3627_v41, %v3459_v12  ;;  %v2745_v47 = vadd.f32 %v12538_v53, %v2744_v50  ;;  %v3184_v38 = vmax.f32 %v3074_v10, %v3160_v43  ;;  %v3758_v25 = vrot.slane %v12696_v21, 2 }
 0x4e2   : > { %v2992_v23 = vmax.f32 %v2750_v4, 0.0  ;;  %v3709_v62 = vrot.slane %v12692_v17, 1  ;;  %v3757_v36 = vrot.slane %v12692_v17, 2 }
 0x4e3   : > { %v2991_v40 = vmax.f32 %v2745_v47, 0.0  ;;  %v9406_v46 = vpop.f32.mrb[30].mxu0  ;;  %v3304_v0 = vrot.slane %v3184_v38, 1  ;;  %v3328_v26 = vrot.slane %v3184_v38, 2  ;;  %v3352_v12 = vrot.slane %v3184_v38, 3 }
 0x4e4   : > { %v3079_v39 = vsel %vm16500_vm10, %v2992_v23, -inf  ;;  %v2754_v52 = vpop.f32.mrb[31].mxu0  ;;  %v12710_v59 = vsel %vm978_vm6, %v3709_v62, %v3710_v37  ;;  %v2760_v50 = vadd.f32 %v9406_v46, %v12538_v53  ;;  %v12733_v62 = vsel %vm16484_vm5, %v3757_v36, %v3758_v25 }
 0x4e5   : > { %v3080_v54 = vmax.f32 %v3078_v45, %v3079_v39  ;;  %v3076_v8 = vsel %vm16500_vm10, %v2991_v40, -inf  ;;  %v2755_v55 = vadd.f32 %v12538_v53, %v2754_v52  ;;  %v3568_v3 = vsel %vm16498_vm0, %v3184_v38, %v3304_v0  ;;  %3730 = vrot.lane.b32.xlu1 %v12710_v59, %s16441_s14 }
 0x4e6   : > { %v3077_v35 = vmax.f32 %v3075_v27, %v3076_v8  ;;  %v3580_v57 = vsel %vm853_vm1, %v3568_v3, %v3328_v26 }
 0x4e7   : > { %v3256_v44 = vrot.slane %v3080_v54, 1  ;;  %v9409_v33 = vpop.f32.mrb[32].mxu0  ;;  %v2993_v10 = vmax.f32 %v2755_v55, 0.0  ;;  %v3592_v47 = vsel %vm16486_vm2, %v3580_v57, %v3352_v12 }
 0x4e8   : > { %v3208_v15 = vrot.slane %v3077_v35, 1  ;;  %v2770_v18 = vadd.f32 %v9409_v33, %v12538_v53  ;;  %v2764_v9 = vpop.f32.mrb[33].mxu0 }
 0x4e9   : > { %v3280_v48 = vmax.f32 %v3080_v54, %v3256_v44  ;;  %v2765_v41 = vadd.f32 %v12538_v53, %v2764_v9  ;;  %4323 = vrot.lane.b32.xlu1 %v3710_v37, %s16441_s14  ;;  %v3081_v16 = vsel %vm16500_vm10, %v2993_v10, -inf  ;;  %v2994_v37 = vmax.f32 %v2760_v50, 0.0 }
 0x4ea   : > { %v3232_v14 = vmax.f32 %v3077_v35, %v3208_v15  ;;  %v2996_v51 = vmax.f32 %v2770_v18, 0.0  ;;  %v10139_v15 = vpack.i.bf16 %v12714_v56, %v12628_v61  ;;  %v3803_v18 = vrot.slane %v12662_v30, 3 }
 0x4eb   : > { %v3496_v22 = vrot.slane %v3280_v48, 1  ;;  %v3520_v43 = vrot.slane %v3280_v48, 2  ;;  %v3544_v4 = vrot.slane %v3280_v48, 3  ;;  %v2995_v0 = vmax.f32 %v2765_v41, 0.0 }
 0x4ec   : > { %v3388_v45 = vrot.slane %v3232_v14, 4  ;;  %v3412_v23 = vrot.slane %v3232_v14, 5  ;;  %v3436_v40 = vrot.slane %v3232_v14, 6  ;;  %v3082_v42 = vsel %vm16500_vm10, %v2996_v51, -inf }
 0x4ed   : > { %v3652_v38 = vsel %vm16498_vm0, %v3280_v48, %v3496_v22  ;;  %v3083_v27 = vmax.f32 %v3081_v16, %v3082_v42  ;;  %v3460_v39 = vrot.slane %v3232_v14, 7  ;;  %3778 = vrot.lane.b32.xlu1 %v12733_v62, %s16443_s16  ;;  %v3087_v9 = vsel %vm16500_vm10, %v2995_v0, -inf }
 0x4ee   : > { %v3664_v46 = vsel %vm853_vm1, %v3652_v38, %v3520_v43  ;;  %v3604_v49 = vsel %vm16485_vm3, %v3592_v47, %v3388_v45  ;;  %v10144_v48 = vpack.i.bf16 %v12721_v31, %v12639_v63  ;;  %v12765_v14 = vsel %vm928_vm4, %v3802_v5, %v3803_v18  ;;  %v12909_v63 = vld [vmem:[%s16851_s2] ss:$0 sm:$0xff] }
 0x4ef   : > { %v3616_v52 = vsel %vm928_vm4, %v3604_v49, %v3412_v23  ;;  %v9412_v26 = vpop.f32.mrb[34].mxu0  ;;  %v12744_v54 = vsel %vm16486_vm2, %v3664_v46, %v3544_v4  ;;  %v3161_v55 = vrot.slane %v3083_v27, 1  ;;  %v3805_v30 = vrot.slane %v12692_v17, 3 }
 0x4f0   : > { %v3628_v8 = vsel %vm16484_vm5, %v3616_v52, %v3436_v40  ;;  %v2780_v3 = vadd.f32 %v9412_v26, %v12538_v53  ;;  %v2774_v35 = vpop.f32.mrb[35].mxu0  ;;  %v12749_v34 = vrot.slane %v12744_v54, 2  ;;  %v3806_v51 = vrot.slane %v12696_v21, 3 }
 0x4f1   : > { %v12752_v44 = vsel %vm978_vm6, %v3628_v8, %v3460_v39  ;;  %v2775_v33 = vadd.f32 %v12538_v53, %v2774_v35  ;;  %v3185_v36 = vmax.f32 %v3083_v27, %v3161_v55  ;;  %10140 = vrot.lane.b32.xlu1 %v10139_v15, %s16439_s21  ;;  %v3084_v41 = vsel %vm16500_vm10, %v2994_v37, -inf }
 0x4f2   : > { %v2998_v57 = vmax.f32 %v2780_v3, 0.0  ;;  %4534 = vrot.lane.b32.xlu0 %v12749_v34, %s16445_s17  ;;  %v12775_v5 = vrot.slane %v12744_v54, 3  ;;  %v3808_v46 = vrot.slane %v12752_v44, 3  ;;  %v10184_v49 = vpack.i.bf16 %v12710_v59, %v12714_v56 }
 0x4f3   : > { %v2997_v10 = vmax.f32 %v2775_v33, 0.0  ;;  %v9415_v12 = vpop.f32.mrb[36].mxu0  ;;  %v3305_v22 = vrot.slane %v3185_v36, 1  ;;  %v3329_v43 = vrot.slane %v3185_v36, 2  ;;  %v12790_v39 = vsel %vm928_vm4, %v3805_v30, %v3806_v51 }
 0x4f4   : > { %v3088_v4 = vsel %vm16500_vm10, %v2998_v57, -inf  ;;  %v2784_v50 = vpop.f32.mrb[37].mxu0  ;;  %v2291_v47 = vpop.trf.xlu0  ;;  %v2790_v42 = vadd.f32 %v9415_v12, %v12538_v53  ;;  %v12793_v52 = vrot.slane %v12744_v54, 1  ;;  %v3353_v55 = vrot.slane %v3185_v36, 3 }
 0x4f5   : > { %v3089_v45 = vmax.f32 %v3087_v9, %v3088_v4  ;;  %v3085_v23 = vsel %vm16500_vm10, %v2997_v10, -inf  ;;  %v2785_v38 = vadd.f32 %v12538_v53, %v2784_v50  ;;  %9462 = vmatmul.mubr.msk.f32.gmra.mrb[68].mxu0 %vm2318_vm9, %v2291_v47  ;;  %v3569_v40 = vsel %vm16498_vm0, %v3185_v36, %v3305_v22  ;;  %10145 = vrot.lane.b32.xlu1 %v10144_v48, %s16445_s17 }
 0x4f6   : > { %v3086_v16 = vmax.f32 %v3084_v41, %v3085_v23  ;;  %10180 = vrot.lane.b32.xlu0 %v10179_v60, %s16427_s22  ;;  %v3581_v11 = vsel %vm853_vm1, %v3569_v40, %v3329_v43  ;;  %v3712_v33 = vrot.slane %v12752_v44, 1  ;;  %v3000_v18 = vmax.f32 %v2790_v42, 0.0 }
 0x4f7   : > { %v3257_v27 = vrot.slane %v3089_v45, 1  ;;  %v9418_v0 = vpop.f32.mrb[38].mxu0  ;;  %v2999_v60 = vmax.f32 %v2785_v38, 0.0  ;;  %v12803_v57 = vsel %vm928_vm4, %v3808_v46, %v12775_v5  ;;  %v3593_v48 = vsel %vm16486_vm2, %v3581_v11, %v3353_v55 }
 0x4f8   : > { %v3209_v29 = vrot.slane %v3086_v16, 1  ;;  %v2800_v37 = vadd.f32 %v9418_v0, %v12538_v53  ;;  %v2794_v26 = vpop.f32.mrb[39].mxu0  ;;  %v2292_v8 = vpop.trf.xlu0 }
 0x4f9   : > { %v3281_v3 = vmax.f32 %v3089_v45, %v3257_v27  ;;  %v2795_v35 = vadd.f32 %v12538_v53, %v2794_v26  ;;  %9464 = vmatprep.mubr.msk.f32.mxu0 %vm2318_vm9, %v2292_v8  ;;  %4359 = vrot.lane.b32.xlu1 %v3758_v25, %s16443_s16  ;;  %v3090_v43 = vsel %vm16500_vm10, %v2999_v60, -inf }
 0x4fa   : > { %v3233_v15 = vmax.f32 %v3086_v16, %v3209_v29  ;;  %v3002_v9 = vmax.f32 %v2800_v37, 0.0  ;;  %10185 = vrot.lane.b32.xlu0 %v10184_v49, %s16423_s23  ;;  %v3093_v37 = vsel %vm16500_vm10, %v3000_v18, -inf  ;;  %s16425_s23 = smov 72  }
 0x4fb   : > { %v3497_v36 = vrot.slane %v3281_v3, 1  ;;  %v3521_v10 = vrot.slane %v3281_v3, 2  ;;  %v3545_v12 = vrot.slane %v3281_v3, 3  ;;  %v9421_v30 = vpop.f32.mrb[40].mxu0  ;;  %v3001_v4 = vmax.f32 %v2795_v35, 0.0 }
 0x4fc   : > { %v3389_v41 = vrot.slane %v3233_v15, 4  ;;  %v3413_v22 = vrot.slane %v3233_v15, 5  ;;  %v2804_v50 = vpop.f32.mrb[41].mxu0  ;;  %v2293_v47 = vpop.trf.xlu0  ;;  %v3437_v23 = vrot.slane %v3233_v15, 6  ;;  %v3091_v38 = vsel %vm16500_vm10, %v3002_v9, -inf }
 0x4fd   : > { %v3653_v45 = vsel %vm16498_vm0, %v3281_v3, %v3497_v36  ;;  %v2810_v40 = vadd.f32 %v9421_v30, %v12538_v53  ;;  %9465 = vmatmul.mubr.msk.f32.gmra.mrb[70].mxu0 %vm2318_vm9, %v2293_v47  ;;  %v3092_v42 = vmax.f32 %v3090_v43, %v3091_v38  ;;  %v2805_v46 = vadd.f32 %v12538_v53, %v2804_v50 }
 0x4fe   : > { %v3665_v16 = vsel %vm853_vm1, %v3653_v45, %v3521_v10  ;;  %v3605_v25 = vsel %vm16485_vm3, %v3593_v48, %v3389_v41  ;;  %4570 = vrot.lane.b32.xlu0 %v12775_v5, %s16433_s24  ;;  %v3461_v49 = vrot.slane %v3233_v15, 7  ;;  %10150 = vrot.lane.b32.xlu1 %v10149_v20, %s16441_s14  ;;  %v3096_v35 = vsel %vm16500_vm10, %v3001_v4, -inf }
 0x4ff   : > { %v3617_v27 = vsel %vm928_vm4, %v3605_v25, %v3413_v22  ;;  %v3004_v0 = vmax.f32 %v2810_v40, 0.0  ;;  %v9424_v11 = vpop.f32.mrb[42].mxu0  ;;  %v12825_v29 = vsel %vm16486_vm2, %v3665_v16, %v3545_v12  ;;  %v3162_v26 = vrot.slane %v3092_v42, 1 }
 0x500   : > { %16855 = vst [vmem:[#allocation56_spill] sm:$0xff] %v12825_v29  ;;  %v3629_v60 = vsel %vm16484_vm5, %v3617_v27, %v3437_v23  ;;  %v3003_v8 = vmax.f32 %v2805_v46, 0.0  ;;  %v2814_v55 = vpop.f32.mrb[43].mxu0  ;;  %v12841_v18 = vrot.slane %v12825_v29, 1  ;;  %v10154_v41 = vpack.i.bf16 %v12765_v14, %v12646_v1 }
 0x501   : > { %v12830_v3 = vsel %vm978_vm6, %v3629_v60, %v3461_v49  ;;  %v3097_v15 = vsel %vm16500_vm10, %v3004_v0, -inf  ;;  %v2815_v6 = vadd.f32 %v12538_v53, %v2814_v55  ;;  %v3186_v61 = vmax.f32 %v3092_v42, %v3162_v26 }
 0x502   : > { %v12835_v20 = vmax.f32 %v3096_v35, %v3097_v15  ;;  %v3094_v9 = vsel %vm16500_vm10, %v3003_v8, -inf  ;;  %3828 = vrot.lane.b32.xlu0 %v12803_v57, %s16435_s26  ;;  %3826 = vrot.lane.b32.xlu1 %v12790_v39, %s16435_s26  ;;  %v3715_v10 = vrot.slane %v12830_v3, 1  ;;  %v10189_v43 = vpack.i.bf16 %v12658_v32, %v12605_v19 }
 0x503   : > { %v3095_v48 = vmax.f32 %v3093_v37, %v3094_v9  ;;  %v9427_v36 = vpop.f32.mrb[44].mxu0  ;;  %v3306_v12 = vrot.slane %v3186_v61, 1  ;;  %v3330_v30 = vrot.slane %v3186_v61, 2  ;;  %v2820_v50 = vadd.f32 %v9424_v11, %v12538_v53 }
 0x504   : > { %v2824_v22 = vpop.f32.mrb[45].mxu0  ;;  %v3005_v47 = vmax.f32 %v2815_v6, 0.0  ;;  %v2830_v45 = vadd.f32 %v9427_v36, %v12538_v53  ;;  %v12859_v40 = vsel %vm978_vm6, %v3712_v33, %v12793_v52  ;;  %v12863_v16 = vsel %vm978_vm6, %v3715_v10, %v12841_v18 }
 0x505   : > { %v3210_v4 = vrot.slane %v3095_v48, 1  ;;  %v3570_v23 = vsel %vm16498_vm0, %v3186_v61, %v3306_v12  ;;  %v2825_v38 = vadd.f32 %v12538_v53, %v2824_v22  ;;  %v10214_v27 = vpack.i.bf16 %v12863_v16, %v12859_v40 }
 0x506   : > { %10190 = vrot.lane.b32.xlu0 %v10189_v43, %s16431_s29  ;;  %v3582_v25 = vsel %vm853_vm1, %v3570_v23, %v3330_v30  ;;  %v3008_v46 = vmax.f32 %v2830_v45, 0.0  ;;  %10155 = vrot.lane.b32.xlu1 %v10154_v41, %s16433_s24  ;;  %v10194_v0 = vpack.i.bf16 %v12733_v62, %v12721_v31  ;;  %v3354_v11 = vrot.slane %v3186_v61, 3 }
 0x507   : > { %v3234_v42 = vmax.f32 %v3095_v48, %v3210_v4  ;;  %v9430_v49 = vpop.f32.mrb[46].mxu0  ;;  %v3006_v26 = vmax.f32 %v2820_v50, 0.0  ;;  %v3099_v8 = vsel %vm16500_vm10, %v3005_v47, -inf  ;;  %v3007_v15 = vmax.f32 %v2825_v38, 0.0 }
 0x508   : > { %v2834_v33 = vpop.f32.mrb[47].mxu0  ;;  %v3594_v55 = vsel %vm16486_vm2, %v3582_v25, %v3354_v11  ;;  %v3100_v35 = vsel %vm16500_vm10, %v3008_v46, -inf  ;;  %v2840_v6 = vadd.f32 %v9430_v49, %v12538_v53  ;;  %vm4256_vm9 = vcmask 424960  }
 0x509   : > { %v3390_v60 = vrot.slane %v3234_v42, 4  ;;  %v3414_v37 = vrot.slane %v3234_v42, 5  ;;  %v3438_v9 = vrot.slane %v3234_v42, 6  ;;  %v3101_v61 = vmax.f32 %v3099_v8, %v3100_v35 }
 0x50a   : > { %10195 = vrot.lane.b32.xlu0 %v10194_v0, %s16437_s25  ;;  %v2835_v36 = vadd.f32 %v12538_v53, %v2834_v33  ;;  %4395 = vrot.lane.b32.xlu1 %v3806_v51, %s16435_s26  ;;  %v3462_v12 = vrot.slane %v3234_v42, 7  ;;  %v3105_v41 = vsel %vm16500_vm10, %v3007_v15, -inf  ;;  %v3010_v22 = vmax.f32 %v2840_v6, 0.0  ;;  %s16876_s25 = smov 80  }
 0x50b   : > { %v3606_v48 = vsel %vm16485_vm3, %v3594_v55, %v3390_v60  ;;  %v9433_v10 = vpop.f32.mrb[48].mxu0  ;;  %v3163_v50 = vrot.slane %v3101_v61, 1  ;;  %v3102_v51 = vsel %vm16500_vm10, %v3006_v26, -inf  ;;  %v4430_v60 = vrot.slane %v12830_v3, 7 }
 0x50c   : > { %v3618_v30 = vsel %vm928_vm4, %v3606_v48, %v3414_v37  ;;  %v2844_v43 = vpop.f32.mrb[49].mxu0  ;;  %v3009_v47 = vmax.f32 %v2835_v36, 0.0  ;;  %v3106_v23 = vsel %vm16500_vm10, %v3010_v22, -inf  ;;  %v4429_v26 = vrot.slane %v12752_v44, 7 }
 0x50d   : > { %v3630_v4 = vsel %vm16484_vm5, %v3618_v30, %v3438_v9  ;;  %v2845_v38 = vadd.f32 %v12538_v53, %v2844_v43  ;;  %v3187_v25 = vmax.f32 %v3101_v61, %v3163_v50  ;;  %v12892_v42 = vmax.f32 %v3105_v41, %v3106_v23 }
 0x50e   : > { %v12885_v45 = vsel %vm978_vm6, %v3630_v4, %v3462_v12  ;;  %4397 = vrot.lane.b32.xlu0 %v12775_v5, %s16435_s26  ;;  %v3103_v46 = vsel %vm16500_vm10, %v3009_v47, -inf  ;;  %10160 = vrot.lane.b32.xlu1 %v10159_v58, %s16443_s16  ;;  %v2850_v55 = vadd.f32 %v9433_v10, %v12538_v53  ;;  %v3258_v10 = vrot.slane %v12835_v20, 1 }
 0x50f   : > { %v9436_v49 = vpop.f32.mrb[50].mxu0  ;;  %v3104_v0 = vmax.f32 %v3102_v51, %v3103_v46  ;;  %v3307_v5 = vrot.slane %v3187_v25, 1  ;;  %v3331_v37 = vrot.slane %v3187_v25, 2  ;;  %v3011_v35 = vmax.f32 %v2845_v38, 0.0 }
 0x510   : > { %v2860_v11 = vadd.f32 %v9436_v49, %v12538_v53  ;;  %v2854_v33 = vpop.f32.mrb[51].mxu0  ;;  %v3355_v12 = vrot.slane %v3187_v25, 3  ;;  %v3763_v30 = vrot.slane %v12830_v3, 2  ;;  %v3012_v43 = vmax.f32 %v2850_v55, 0.0 }
 0x511   : > { %v3211_v8 = vrot.slane %v3104_v0, 1  ;;  %v3571_v24 = vsel %vm16498_vm0, %v3187_v25, %v3307_v5  ;;  %v2855_v58 = vadd.f32 %v12909_v63, %v2854_v33  ;;  %v3108_v4 = vsel %vm16500_vm10, %v3011_v35, -inf }
 0x512   : > { %v3014_v15 = vmax.f32 %v2860_v11, 0.0  ;;  %4439 = vrot.lane.b32.xlu0 %v4430_v60, %s16427_s22  ;;  %4437 = vrot.lane.b32.xlu1 %v4429_v26, %s16427_s22  ;;  %v3583_v9 = vsel %vm853_vm1, %v3571_v24, %v3331_v37  ;;  %v12926_v11 = vrot.slane %v12825_v29, 2  ;;  %v12931_v26 = vmax.f32 %v12835_v20, %v3258_v10 }
 0x513   : > { %v9439_v6 = vpop.f32.mrb[52].mxu0  ;;  %v3235_v48 = vmax.f32 %v3104_v0, %v3211_v8  ;;  %v3595_v50 = vsel %vm16486_vm2, %v3583_v9, %v3355_v12  ;;  %v3013_v23 = vmax.f32 %v2855_v58, 0.0 }
 0x514   : > { %v3109_v53 = vsel %vm16500_vm10, %v3014_v15, -inf  ;;  %v2870_v61 = vadd.f32 %v12909_v63, %v9439_v6  ;;  %v2864_v36 = vpop.f32.mrb[53].mxu0 }
 0x515   : > { %v3391_v41 = vrot.slane %v3235_v48, 4  ;;  %v3415_v22 = vrot.slane %v3235_v48, 5  ;;  %v3110_v47 = vmax.f32 %v3108_v4, %v3109_v53  ;;  %v3439_v25 = vrot.slane %v3235_v48, 6 }
 0x516   : > { %3901 = vrot.lane.b32.xlu0 %v12830_v3, %s16431_s29  ;;  %v3016_v38 = vmax.f32 %v2870_v61, 0.0  ;;  %3732 = vrot.lane.b32.xlu1 %v12859_v40, %s16441_s14  ;;  %v2865_v49 = vadd.f32 %v12909_v63, %v2864_v36  ;;  %v3463_v33 = vrot.slane %v3235_v48, 7  ;;  %v3114_v37 = vsel %vm16500_vm10, %v3013_v23, -inf }
 0x517   : > { %v9442_v51 = vpop.f32.mrb[54].mxu0  ;;  %v3607_v46 = vsel %vm16485_vm3, %v3595_v50, %v3391_v41  ;;  %v3164_v5 = vrot.slane %v3110_v47, 1  ;;  %v3760_v61 = vrot.slane %v12752_v44, 2  ;;  %v3111_v36 = vsel %vm16500_vm10, %v3012_v43, -inf }
 0x518   : > { %v2874_v0 = vpop.f32.mrb[55].mxu0  ;;  %v3619_v60 = vsel %vm928_vm4, %v3607_v46, %v3415_v22  ;;  %v3115_v55 = vsel %vm16500_vm10, %v3016_v38, -inf  ;;  %v3015_v35 = vmax.f32 %v2865_v49, 0.0  ;;  %v12953_v41 = vsel %vm16484_vm5, %v3763_v30, %v12926_v11 }
 0x519   : > { %v3631_v8 = vsel %vm16484_vm5, %v3619_v60, %v3439_v25  ;;  %v3188_v24 = vmax.f32 %v3110_v47, %v3164_v5  ;;  %v12940_v58 = vmax.f32 %v3114_v37, %v3115_v55  ;;  %v2875_v6 = vadd.f32 %v12909_v63, %v2874_v0 }
 0x51a   : > { %3929 = vrot.lane.b32.xlu0 %v12863_v16, %s16439_s21  ;;  %v12938_v15 = vsel %vm978_vm6, %v3631_v8, %v3463_v33  ;;  %10165 = vrot.lane.b32.xlu1 %v10164_v7, %s16435_s26  ;;  %v3112_v9 = vsel %vm16500_vm10, %v3015_v35, -inf  ;;  %v3498_v7 = vrot.slane %v12931_v26, 1  ;;  %v2880_v43 = vadd.f32 %v12909_v63, %v9442_v51  ;;  %s16874_s26 = smov 72  }
 0x51b   : > { %16856 = vst [vmem:[#allocation109_spill] sm:$0xff] %v12938_v15  ;;  %v9445_v20 = vpop.f32.mrb[56].mxu0  ;;  %v3308_v10 = vrot.slane %v3188_v24, 1  ;;  %v3332_v12 = vrot.slane %v3188_v24, 2  ;;  %v3113_v22 = vmax.f32 %v3111_v36, %v3112_v9  ;;  %v3017_v4 = vmax.f32 %v2875_v6, 0.0 }
 0x51c   : > { %v2890_v48 = vadd.f32 %v12909_v63, %v9445_v20  ;;  %v2884_v53 = vpop.f32.mrb[57].mxu0  ;;  %v3811_v25 = vrot.slane %v12830_v3, 3  ;;  %v12966_v46 = vrot.slane %v12825_v29, 3  ;;  %v3356_v49 = vrot.slane %v3188_v24, 3 }
 0x51d   : > { %v2885_v1 = vadd.f32 %v12909_v63, %v2884_v53  ;;  %v3572_v50 = vsel %vm16498_vm0, %v3188_v24, %v3308_v10  ;;  %v3212_v30 = vrot.slane %v3113_v22, 1  ;;  %v3117_v33 = vsel %vm16500_vm10, %v3017_v4, -inf }
 0x51e   : > { %v3020_v2 = vmax.f32 %v2890_v48, 0.0  ;;  %3956 = vrot.lane.b32.xlu0 %v12953_v41, %s16445_s17  ;;  %3899 = vrot.lane.b32.xlu1 %v12752_v44, %s16431_s29  ;;  %v3584_v0 = vsel %vm853_vm1, %v3572_v50, %v3332_v12  ;;  %v12972_v51 = vsel %vm16484_vm5, %v3760_v61, %v12749_v34  ;;  %v3522_v55 = vrot.slane %v12931_v26, 2 }
 0x51f   : > { %v9448_v47 = vpop.f32.mrb[58].mxu0  ;;  %v3236_v60 = vmax.f32 %v3113_v22, %v3212_v30  ;;  %v3019_v37 = vmax.f32 %v2885_v1, 0.0  ;;  %v3654_v35 = vsel %vm16498_vm0, %v12931_v26, %v3498_v7  ;;  %v3018_v24 = vmax.f32 %v2880_v43, 0.0 }
 0x520   : > { %v3118_v23 = vsel %vm16500_vm10, %v3020_v2, -inf  ;;  %v2894_v38 = vpop.f32.mrb[59].mxu0  ;;  %v2900_v8 = vadd.f32 %v12909_v63, %v9448_v47  ;;  %v3596_v9 = vsel %vm16486_vm2, %v3584_v0, %v3356_v49  ;;  %v12986_v36 = vsel %vm928_vm4, %v3811_v25, %v12966_v46 }
 0x521   : > { %v3119_v5 = vmax.f32 %v3117_v33, %v3118_v23  ;;  %v2895_v6 = vadd.f32 %v12909_v63, %v2894_v38  ;;  %v3392_v48 = vrot.slane %v3236_v60, 4  ;;  %v3416_v53 = vrot.slane %v3236_v60, 5 }
 0x522   : > { %4464 = vrot.lane.b32.xlu0 %v12825_v29, %s16431_s29  ;;  %3927 = vrot.lane.b32.xlu1 %v12859_v40, %s16439_s21  ;;  %v3440_v10 = vrot.slane %v3236_v60, 6  ;;  %v3123_v22 = vsel %vm16500_vm10, %v3019_v37, -inf  ;;  %v3022_v4 = vmax.f32 %v2900_v8, 0.0  ;;  %v3464_v2 = vrot.slane %v3236_v60, 7 }
 0x523   : > { %v9451_v20 = vpop.f32.mrb[60].mxu0  ;;  %v3165_v12 = vrot.slane %v3119_v5, 1  ;;  %v3608_v1 = vsel %vm16485_vm3, %v3596_v9, %v3392_v48  ;;  %v3021_v7 = vmax.f32 %v2895_v6, 0.0  ;;  %v10169_v33 = vpack.i.bf16 %v12692_v17, %v12658_v32 }
 0x524   : > { %v2904_v61 = vpop.f32.mrb[61].mxu0  ;;  %v3620_v43 = vsel %vm928_vm4, %v3608_v1, %v3416_v53  ;;  %v3124_v30 = vsel %vm16500_vm10, %v3022_v4, -inf  ;;  %v3120_v37 = vsel %vm16500_vm10, %v3018_v24, -inf  ;;  %v3666_v9 = vsel %vm853_vm1, %v3654_v35, %v3522_v55 }
 0x525   : > { %v2905_v50 = vadd.f32 %v12909_v63, %v2904_v61  ;;  %v3189_v47 = vmax.f32 %v3119_v5, %v3165_v12  ;;  %v3632_v25 = vsel %vm16484_vm5, %v3620_v43, %v3440_v10  ;;  %v13000_v49 = vmax.f32 %v3123_v22, %v3124_v30 }
 0x526   : > { %4500 = vrot.lane.b32.xlu0 %v12841_v18, %s16439_s21  ;;  %3954 = vrot.lane.b32.xlu1 %v12972_v51, %s16445_s17  ;;  %v3121_v0 = vsel %vm16500_vm10, %v3021_v7, -inf  ;;  %v13006_v5 = vsel %vm978_vm6, %v3632_v25, %v3464_v2  ;;  %v3259_v48 = vrot.slane %v12892_v42, 1  ;;  %v2910_v12 = vadd.f32 %v12909_v63, %v9451_v20 }
 0x527   : > { %v9454_v23 = vpop.f32.mrb[62].mxu0  ;;  %16857 = vst [vmem:[#allocation58_spill] sm:$0xff] %v13006_v5  ;;  %v3309_v8 = vrot.slane %v3189_v47, 1  ;;  %v3333_v6 = vrot.slane %v3189_v47, 2  ;;  %v3122_v53 = vmax.f32 %v3120_v37, %v3121_v0  ;;  %v3023_v61 = vmax.f32 %v2905_v50, 0.0 }
 0x528   : > { %v2914_v60 = vpop.f32.mrb[63].mxu0  ;;  %v2920_v24 = vadd.f32 %v12909_v63, %v9454_v23  ;;  %v3546_v55 = vrot.slane %v12931_v26, 3  ;;  %v3856_v7 = vrot.slane %v12752_v44, 4  ;;  %v3357_v43 = vrot.slane %v3189_v47, 3 }
 0x529   : > { %v3573_v10 = vsel %vm16498_vm0, %v3189_v47, %v3309_v8  ;;  %v2915_v22 = vadd.f32 %v12909_v63, %v2914_v60  ;;  %v3213_v35 = vrot.slane %v3122_v53, 1  ;;  %v3126_v20 = vsel %vm16500_vm10, %v3023_v61, -inf }
 0x52a   : > { %4536 = vrot.lane.b32.xlu0 %v12926_v11, %s16445_s17  ;;  %10170 = vrot.lane.b32.xlu1 %v10169_v33, %s16425_s23  ;;  %v3585_v4 = vsel %vm853_vm1, %v3573_v10, %v3333_v6  ;;  %v3026_v2 = vmax.f32 %v2920_v24, 0.0  ;;  %v13022_v50 = vsel %vm16486_vm2, %v3666_v9, %v3546_v55  ;;  %v13028_v23 = vmax.f32 %v12892_v42, %v3259_v48  ;;  %s16489_s23 = smov 24  }
 0x52b   : > { %v3025_v1 = vmax.f32 %v2915_v22, 0.0  ;;  %v3237_v30 = vmax.f32 %v3122_v53, %v3213_v35  ;;  %v3024_v26 = vmax.f32 %v2910_v12, 0.0  ;;  %v3859_v33 = vrot.slane %v12830_v3, 4 }
 0x52c   : > { %v3127_v25 = vsel %vm16500_vm10, %v3026_v2, -inf  ;;  %v3597_v47 = vsel %vm16486_vm2, %v3585_v4, %v3357_v43  ;;  %v3860_v6 = vrot.slane %v12825_v29, 4  ;;  %v3862_v53 = vrot.slane %v12885_v45, 4 }
 0x52d   : > { %v3393_v60 = vrot.slane %v3237_v30, 4  ;;  %v3417_v37 = vrot.slane %v3237_v30, 5  ;;  %v3128_v9 = vmax.f32 %v3126_v20, %v3127_v25  ;;  %v3132_v42 = vsel %vm16500_vm10, %v3025_v1, -inf }
 0x52e   : > { %3983 = vrot.lane.b32.xlu0 %v12986_v36, %s16433_s24  ;;  %4325 = vrot.lane.b32.xlu1 %v12793_v52, %s16441_s14  ;;  %v3441_v61 = vrot.slane %v3237_v30, 6  ;;  %v3863_v24 = vrot.slane %v13022_v50, 4  ;;  %v3465_v22 = vrot.slane %v3237_v30, 7  ;;  %v3499_v2 = vrot.slane %v13028_v23, 1 }
 0x52f   : > { %v9457_v0 = vpop.f32.mrb[64].mxu0  ;;  %v3609_v10 = vsel %vm16485_vm3, %v3597_v47, %v3393_v60  ;;  %v3166_v35 = vrot.slane %v3128_v9, 1  ;;  %v3129_v43 = vsel %vm16500_vm10, %v3024_v26, -inf  ;;  %v3523_v47 = vrot.slane %v13028_v23, 2 }
 0x530   : > { %v2924_v8 = vpop.f32.mrb[65].mxu0  ;;  %v2930_v48 = vadd.f32 %v12909_v63, %v9457_v0  ;;  %v3621_v55 = vsel %vm928_vm4, %v3609_v10, %v3417_v37  ;;  %v13055_v0 = vsel %vm16485_vm3, %v3862_v53, %v3863_v24  ;;  %v3857_v26 = vrot.slane %v12744_v54, 4 }
 0x531   : > { %v2925_v12 = vadd.f32 %v12909_v63, %v2924_v8  ;;  %v3633_v1 = vsel %vm16484_vm5, %v3621_v55, %v3441_v61  ;;  %v3190_v25 = vmax.f32 %v3128_v9, %v3166_v35  ;;  %v3861_v9 = vsel %vm16485_vm3, %v3859_v33, %v3860_v6 }
 0x532   : > { %4572 = vrot.lane.b32.xlu0 %v12966_v46, %s16433_s24  ;;  %v3028_v4 = vmax.f32 %v2930_v48, 0.0  ;;  %4462 = vrot.lane.b32.xlu1 %v12744_v54, %s16431_s29  ;;  %v13051_v20 = vsel %vm978_vm6, %v3633_v1, %v3465_v22  ;;  %v3655_v53 = vsel %vm16498_vm0, %v13028_v23, %v3499_v2  ;;  %v10224_v10 = vpack.i.bf16 %v13055_v0, %v3861_v9  ;;  %s16883_s29 = smov 20  }
 0x533   : > { %v3027_v63 = vmax.f32 %v2925_v12, 0.0  ;;  %16858 = vst [vmem:[#allocation111_spill] sm:$0xff] %v13051_v20  ;;  %v3310_v8 = vrot.slane %v3190_v25, 1  ;;  %v3334_v48 = vrot.slane %v3190_v25, 2  ;;  %v3667_v55 = vsel %vm853_vm1, %v3655_v53, %v3523_v47  ;;  %v4859_v47 = vld [vmem:[%s16862_s3 + $0x80] sm:$0xff]  ;;  %v4844_v53 = vld [vmem:[%s16862_s3 + $0x8] sm:$0xff] }
 0x534   : > { %v3133_v30 = vsel %vm16500_vm10, %v3028_v4, -inf  ;;  %v13078_v33 = vsel %vm16485_vm3, %v3856_v7, %v3857_v26  ;;  %v3766_v1 = vrot.slane %v12885_v45, 2  ;;  %v10219_v40 = vpack.i.bf16 %v12953_v41, %v12972_v51 }
 0x535   : > { %v13058_v60 = vmax.f32 %v3132_v42, %v3133_v30  ;;  %v3130_v37 = vsel %vm16500_vm10, %v3027_v63, -inf  ;;  %v3358_v42 = vrot.slane %v3190_v25, 3  ;;  %v3574_v12 = vsel %vm16498_vm0, %v3190_v25, %v3310_v8 }
 0x536   : > { %3952 = vrot.lane.b32.xlu0 %v12733_v62, %s16445_s17  ;;  %v3131_v61 = vmax.f32 %v3129_v43, %v3130_v37  ;;  %4498 = vrot.lane.b32.xlu1 %v12793_v52, %s16439_s21  ;;  %v3547_v62 = vrot.slane %v13028_v23, 3  ;;  %v3586_v22 = vsel %vm853_vm1, %v3574_v12, %v3334_v48  ;;  %v13082_v35 = vpack.i.bf16 %v3861_v9, %v13078_v33  ;;  %v4843_v9 = vld [vmem:[%s16862_s3] sm:$0xff]  ;;  %v4862_v12 = vld [vmem:[%s16862_s3 + $0x98] sm:$0xff] }
 0x537   : > { %16859 = vst [vmem:[#allocation118_spill] sm:$0xff] %v13058_v60  ;;  %v3598_v6 = vsel %vm16486_vm2, %v3586_v22, %v3358_v42  ;;  %v13094_v25 = vrot.slane %v13022_v50, 2  ;;  %v3769_v8 = vrot.slane %v12938_v15, 2  ;;  %v4845_v22 = vld [vmem:[%s16862_s3 + $0x10] sm:$0xff]  ;;  %v16463_v32 = vmov 0.0|0.0  }
 0x538   : > { %v3214_v24 = vrot.slane %v3131_v61, 1  ;;  %16860 = vst [vmem:[#allocation24_spill] sm:$0xff] %v13082_v35  ;;  %v13086_v43 = vsel %vm16486_vm2, %v3667_v55, %v3547_v62  ;;  %v9479_v62 = vpack.c.bf16 %v4844_v53, %v4843_v9  ;;  %v4846_v55 = vld [vmem:[%s16862_s3 + $0x18] sm:$0xff]  ;;  %v3865_v9 = vrot.slane %v12938_v15, 4 }
 0x539   : > { %16861 = vst [vmem:[#allocation60_spill] sm:$0xff] %v13086_v43  ;;  %v13103_v26 = vsel %vm16484_vm5, %v3766_v1, %v13094_v25  ;;  %v13107_v48 = vrot.slane %v13086_v43, 2  ;;  %v3866_v53 = vrot.slane %v13086_v43, 4 }
 0x53a   : > { %10225 = vrot.lane.b32.xlu0 %v10224_v10, %s16429_s28  ;;  %v3238_v52 = vmax.f32 %v3131_v61, %v3214_v24  ;;  %3780 = vrot.lane.b32.xlu1 %v12972_v51, %s16443_s16  ;;  %v4860_v61 = vld [vmem:[%s16862_s3 + $0x88] sm:$0xff]  ;;  %v4861_v10 = vld [vmem:[%s16862_s3 + $0x90] sm:$0xff]  ;;  %s16880_s28 = smov 12   ;;  %v10229_v51 = vpack.i.bf16 %v12938_v15, %v12885_v45 }
 0x53b   : > { %16863 = vst [vmem:[#allocation25_spill] sm:$0xff] %v13107_v48  ;;  %v9477_v24 = vpack.c.bf16 %v4860_v61, %v4859_v47  ;;  %v3260_v61 = vrot.slane %v12940_v58, 1 }
 0x53c   : > { %v3394_v4 = vrot.slane %v3238_v52, 4  ;;  %v3418_v23 = vrot.slane %v3238_v52, 5  ;;  %v3442_v2 = vrot.slane %v3238_v52, 6  ;;  %v3466_v63 = vrot.slane %v3238_v52, 7 }
 0x53d   : > { %v13139_v52 = vsel %vm16484_vm5, %v3769_v8, %v13107_v48  ;;  %9478 = vmatprep.subr.bf16.mxu0 %v9477_v24  ;;  %v4850_v24 = vld [vmem:[%s16862_s3 + $0x38] sm:$0xff] }
 0x53e   : > { %10235 = vrot.lane.b32.xlu0 %v13082_v35, %s16427_s22  ;;  %v3610_v7 = vsel %vm16485_vm3, %v3598_v6, %v3394_v4  ;;  %3981 = vrot.lane.b32.xlu1 %v12803_v57, %s16433_s24  ;;  %v9481_v6 = vpack.c.bf16 %v4862_v12, %v4861_v10  ;;  %v4863_v4 = vld [vmem:[%s16862_s3 + $0xa0] sm:$0xff]  ;;  %v10244_v1 = vpack.i.bf16 %v13139_v52, %v13103_v26  ;;  %v4849_v12 = vld [vmem:[%s16862_s3 + $0x30] sm:$0xff]  ;;  %s16872_s24 = smov 52   ;;  %s16881_s22 = smov 92  }
 0x53f   : > { %v3622_v30 = vsel %vm928_vm4, %v3610_v7, %v3418_v23  ;;  %9480 = vmatpush3.bf16.msra.mxu0 %v9479_v62  ;;  %v9483_v23 = vpack.c.bf16 %v4846_v55, %v4845_v22  ;;  %v4847_v7 = vld [vmem:[%s16862_s3 + $0x20] sm:$0xff]  ;;  %v4868_v62 = vld [vmem:[%s16862_s3 + $0xc8] sm:$0xff]  ;;  %v9491_v22 = vpack.c.bf16 %v4850_v24, %v4849_v12  ;;  %v3284_v55 = vmax.f32 %v12940_v58, %v3260_v61  ;;  %v4870_v58 = vld [vmem:[%s16862_s3 + $0xd8] sm:$0xff] }
 0x540   : > { %v3634_v37 = vsel %vm16484_vm5, %v3622_v30, %v3442_v2  ;;  %v13151_v2 = vpop.f32.mrb[66].mxu0  ;;  %9482 = vmatprep.subr.bf16.mxu0 %v9481_v6  ;;  %v4848_v30 = vld [vmem:[%s16862_s3 + $0x28] sm:$0xff]  ;;  %v3853_v6 = vrot.slane %v12692_v17, 4 }
 0x541   : > { %v13119_v42 = vsel %vm978_vm6, %v3634_v37, %v3466_v63  ;;  %16865 = vst [vmem:[#allocation72_spill] sm:$0xff] %v13151_v2  ;;  %v13161_v47 = vpop.f32.mrb[67].mxu0  ;;  %v4866_v37 = vld [vmem:[%s16862_s3 + $0xb8] sm:$0xff]  ;;  %v9487_v8 = vpack.c.bf16 %v4848_v30, %v4847_v7  ;;  %v3854_v7 = vrot.slane %v12696_v21, 4  ;;  %v4872_v12 = vld [vmem:[%s16862_s3 + $0xe8] sm:$0xff]  ;;  %v3524_v24 = vrot.slane %v3284_v55, 2 }
 0x542   : > { %16864 = vst [vmem:[#allocation23_spill] sm:$0xff] %v13119_v42  ;;  %3958 = vrot.lane.b32.xlu0 %v13103_v26, %s16445_s17  ;;  %4361 = vrot.lane.b32.xlu1 %v12749_v34, %s16443_s16  ;;  %v4864_v34 = vld [vmem:[%s16862_s3 + $0xa8] sm:$0xff]  ;;  %s16868_s16 = smov 32  }
 0x543   : > { %v9485_v63 = vpack.c.bf16 %v4864_v34, %v4863_v4  ;;  %9484 = vmatpush3.bf16.msra.mxu0 %v9483_v23  ;;  %v13194_v4 = vsel %vm16485_vm3, %v3865_v9, %v3866_v53  ;;  %v4851_v23 = vld [vmem:[%s16862_s3 + $0x40] sm:$0xff]  ;;  %v3855_v61 = vsel %vm16485_vm3, %v3853_v6, %v3854_v7  ;;  %v4853_v53 = vld [vmem:[%s16862_s3 + $0x50] sm:$0xff] }
 0x544   : > { %v4855_v6 = vld [vmem:[%s16862_s3 + $0x60] sm:$0xff] }
 0x545   : > { %9486 = vmatprep.subr.bf16.mxu0 %v9485_v63  ;;  %v4869_v63 = vld [vmem:[%s16862_s3 + $0xd0] sm:$0xff] }
 0x546   : > { %3734 = vrot.lane.b32.xlu0 %v12863_v16, %s16441_s14  ;;  %3925 = vrot.lane.b32.xlu1 %v12710_v59, %s16439_s21  ;;  %v4865_v59 = vld [vmem:[%s16862_s3 + $0xb0] sm:$0xff]  ;;  %s16866_s21 = smov 112   ;;  %v9497_v9 = vpack.c.bf16 %v4870_v58, %v4869_v63  ;;  %v3548_v58 = vrot.slane %v3284_v55, 3 }
 0x547   : > { %v9489_v10 = vpack.c.bf16 %v4866_v37, %v4865_v59  ;;  %9488 = vmatpush3.bf16.msra.mxu0 %v9487_v8  ;;  %v13215_v59 = vpack.i.bf16 %v13194_v4, %v13055_v0  ;;  %v3500_v37 = vrot.slane %v3284_v55, 1  ;;  %v3261_v8 = vrot.slane %v13000_v49, 1  ;;  %v4871_v0 = vld [vmem:[%s16862_s3 + $0xe0] sm:$0xff]  ;;  %v4873_v63 = vld [vmem:[%s16862_s3 + $0xf0] sm:$0xff] }
 0x549   : > { %9490 = vmatprep.subr.bf16.mxu0 %v9489_v10  ;;  %16870 = vst [vmem:[#allocation14_spill] sm:$0xff] %v13215_v59  ;;  %v10199_v10 = vpack.i.bf16 %v13078_v33, %v3855_v61  ;;  %v3285_v33 = vmax.f32 %v13000_v49, %v3261_v8  ;;  %v4874_v49 = vld [vmem:[%s16862_s3 + $0xf8] sm:$0xff] }
 0x54a   : > { %10245 = vrot.lane.b32.xlu0 %v10244_v1, %s16866_s21  ;;  %3728 = vrot.lane.b32.xlu1 %v12714_v56, %s16441_s14  ;;  %v4867_v56 = vld [vmem:[%s16862_s3 + $0xc0] sm:$0xff]  ;;  %s16867_s14 = smov 60   ;;  %v4852_v1 = vld [vmem:[%s16862_s3 + $0x48] sm:$0xff] }
 0x54b   : > { %v9493_v34 = vpack.c.bf16 %v4868_v62, %v4867_v56  ;;  %9492 = vmatpush3.bf16.msra.mxu0 %v9491_v22  ;;  %v9495_v30 = vpack.c.bf16 %v4852_v1, %v4851_v23  ;;  %v3656_v62 = vsel %vm16498_vm0, %v3284_v55, %v3500_v37  ;;  %v9501_v22 = vpack.c.bf16 %v4872_v12, %v4871_v0  ;;  %v4857_v55 = vld [vmem:[%s16862_s3 + $0x70] sm:$0xff] }
 0x54c   : > { %v3814_v1 = vrot.slane %v12885_v45, 3  ;;  %v3668_v7 = vsel %vm853_vm1, %v3656_v62, %v3524_v24  ;;  %v3501_v8 = vrot.slane %v3285_v33, 1  ;;  %v3525_v12 = vrot.slane %v3285_v33, 2  ;;  %v13281_v62 = vpop.permute.xlu0 %10175 }
 0x54d   : > { %9494 = vmatprep.subr.bf16.mxu0 %v9493_v34  ;;  %v4856_v34 = vld [vmem:[%s16862_s3 + $0x68] sm:$0xff]  ;;  %v13277_v0 = vsel %vm16486_vm2, %v3668_v7, %v3548_v58  ;;  %v10177_v48 = vunpack.i.l.bf16 %v13281_v62 }
 0x54e   : > { %3830 = vrot.lane.b32.xlu0 %v12986_v36, %s16867_s14  ;;  %3979 = vrot.lane.b32.xlu1 %v12790_v39, %s16868_s16  ;;  %v9503_v37 = vpack.c.bf16 %v4856_v34, %v4855_v6  ;;  %v13286_v6 = vpack.i.bf16 %v3855_v61, %v12673_v28  ;;  %v3945_v34 = vrot.slane %v13006_v5, 2 }
 0x54f   : > { %9496 = vmatpush3.bf16.msra.mxu0 %v9495_v30  ;;  %v13258_v30 = vrot.slane %v13022_v50, 3 }
 0x550   : > { %9498 = vmatprep.subr.bf16.mxu0 %v9497_v9  ;;  %v9505_v9 = vpack.c.bf16 %v4874_v49, %v4873_v63  ;;  %v3549_v63 = vrot.slane %v3285_v33, 3 }
 0x552   : > { %3960 = vrot.lane.b32.xlu0 %v13139_v52, %s16445_s17  ;;  %3776 = vrot.lane.b32.xlu1 %v12721_v31, %s16869_s0  ;;  %v4854_v31 = vld [vmem:[%s16862_s3 + $0x58] sm:$0xff]  ;;  %s16871_s17 = smov 100  }
 0x553   : > { %v9499_v56 = vpack.c.bf16 %v4854_v31, %v4853_v53  ;;  %v10204_v31 = vpack.i.bf16 %v12830_v3, %v12752_v44 }
 0x555   : > { %9500 = vmatpush3.bf16.msra.mxu0 %v9499_v56  ;;  %v3657_v56 = vsel %vm16498_vm0, %v3285_v33, %v3501_v8 }
 0x556   : > { %3903 = vrot.lane.b32.xlu0 %v12885_v45, %s16871_s17  ;;  %10200 = vrot.lane.b32.xlu1 %v10199_v10, %s16872_s24  ;;  %v13272_v10 = vsel %vm928_vm4, %v3814_v1, %v13258_v30  ;;  %v13290_v1 = vrot.slane %v13277_v0, 2  ;;  %v3669_v49 = vsel %vm853_vm1, %v3657_v56, %v3525_v12  ;;  %v3718_v12 = vrot.slane %v12885_v45, 1 }
 0x557   : > { %v13243_v23 = vpop.permute.xlu1 %3730  ;;  %9502 = vmatprep.subr.bf16.mxu0 %v9501_v22  ;;  %16873 = vst [vmem:[#allocation75_spill] sm:$0xff] %v13272_v10  ;;  %v13306_v61 = vsel %vm16486_vm2, %v3669_v49, %v3549_v63  ;;  %v13351_v56 = vrot.slane %v13086_v43, 1  ;;  %v3719_v63 = vrot.slane %v13022_v50, 1  ;;  %vm4283_vm2 = vcmask 916480  }
 0x558   : > { %16875 = vst [vmem:[#allocation27_spill] sm:$0xff] %v13290_v1  ;;  %v13303_v28 = vsel %vm16484_vm5, %v3945_v34, %v13290_v1  ;;  %16879 = vst [vmem:[#allocation29_spill] sm:$0xff] %v13306_v61  ;;  %v13318_v8 = vrot.slane %v13306_v61, 2 }
 0x559   : > { %9504 = vmatpush3.bf16.msra.mxu0 %v9503_v37  ;;  %16878 = vst [vmem:[#allocation76_spill] sm:$0xff] %v13303_v28  ;;  %v4079_v37 = vrot.slane %v13051_v20, 2  ;;  %16886 = vst [vmem:[#allocation15_spill] sm:$0xff] %v13351_v56 }
 0x55a   : > { %3784 = vrot.lane.b32.xlu0 %v13103_v26, %s16869_s0  ;;  %3824 = vrot.lane.b32.xlu1 %v12765_v14, %s16867_s14  ;;  %v4858_v26 = vld [vmem:[%s16862_s3 + $0x78] sm:$0xff]  ;;  %16882 = vst [vmem:[#allocation28_spill] sm:$0xff] %v13318_v8 }
 0x55b   : > { %v13266_v53 = vpop.permute.xlu1 %4323  ;;  %v9507_v24 = vpack.c.bf16 %v4858_v26, %v4857_v55  ;;  %9506 = vmatprep.subr.bf16.mxu0 %v9505_v9  ;;  %v13332_v16 = vsel %vm16484_vm5, %v4079_v37, %v13318_v8  ;;  %v3817_v37 = vrot.slane %v12938_v15, 3  ;;  %vm4265_vm5 = vcmask 588800  }
 0x55c   : > { %16884 = vst [vmem:[#allocation78_spill] sm:$0xff] %v13332_v16 }
 0x55d   : > { %9508 = vmatpush3.bf16.msra.mxu0 %v9507_v24  ;;  %v3721_v24 = vrot.slane %v12938_v15, 1 }
 0x55e   : > { %3832 = vrot.lane.b32.xlu0 %v13272_v10, %s16867_s14  ;;  %10205 = vrot.lane.b32.xlu1 %v10204_v31, %s16874_s26 }
 0x55f   : > { %v13283_v22 = vpop.permute.xlu1 %3778  ;;  %v13366_v38 = vsel %vm978_vm6, %v3721_v24, %v13351_v56  ;;  %9509 = vmatprep.subr.bf16.mxu0 %v16463_v32 }
 0x562   : > { %10260 = vrot.lane.b32.xlu0 %v13215_v59, %s16876_s25  ;;  %10210 = vrot.lane.b32.xlu1 %v13286_v6, %s16876_s25 }
 0x563   : > { %v13299_v7 = vpop.permute.xlu1 %10140 }
 0x564   : > { %v13297_v58 = vpop.permute.xlu0 %4534 }
 0x565   : > { %16877 = vst [vmem:[#allocation26_spill] sm:$0xff] %v13297_v58 }
 0x566   : > { %3962 = vrot.lane.b32.xlu0 %v13303_v28, %s16880_s28  ;;  %10215 = vrot.lane.b32.xlu1 %v10214_v27, %s16881_s22 }
 0x567   : > { %v13320_v9 = vpop.permute.xlu1 %10145 }
 0x568   : > { %v13314_v33 = vpop.permute.xlu0 %10180 }
 0x56a   : > { %4327 = vrot.lane.b32.xlu0 %v12841_v18, %s16883_s29  ;;  %3897 = vrot.lane.b32.xlu1 %v12692_v17, %s16871_s17  ;;  %v10269_v18 = vpack.i.bf16 %v13332_v16, %v13303_v28  ;;  %v10274_v28 = vpack.i.bf16 %v12790_v39, %v12765_v14  ;;  %v4052_v14 = vrot.slane %v13051_v20, 1  ;;  %v13431_v39 = vrot.slane %v13306_v61, 1 }
 0x56b   : > { %v13334_v27 = vpop.permute.xlu1 %4359  ;;  %v10254_v61 = vpack.i.bf16 %v13051_v20, %v13006_v5  ;;  %v10147_v20 = vunpack.i.l.bf16 %v13320_v9 }
 0x56c   : > { %v13326_v55 = vpop.permute.xlu0 %10185  ;;  %16892 = vst [vmem:[#allocation86_spill] sm:$0xff] %v13431_v39 }
 0x56e   : > { %3905 = vrot.lane.b32.xlu0 %v12938_v15, %s16871_s17  ;;  %10220 = vrot.lane.b32.xlu1 %v10219_v40, %s16866_s21  ;;  %v13361_v40 = vrot.slane %v13086_v43, 3  ;;  %v16487_v43 = vunpack.i.h.bf16 %v13299_v7 }
 0x570   : > { %v13341_v26 = vpop.permute.xlu0 %4570  ;;  %v13343_v31 = vpop.permute.xlu1 %10150  ;;  %16887 = vst [vmem:[#allocation79_spill] sm:$0xff] %v13361_v40  ;;  %v13378_v59 = vsel %vm928_vm4, %v3817_v37, %v13361_v40 }
 0x571   : > { %16885 = vst [vmem:[#allocation80_spill] sm:$0xff] %v13341_v26  ;;  %16889 = vst [vmem:[#allocation77_spill] sm:$0xff] %v13378_v59  ;;  %v10152_v32 = vunpack.i.l.bf16 %v13343_v31 }
 0x572   : > { %10270 = vrot.lane.b32.xlu0 %v10269_v18, %s16866_s21  ;;  %10230 = vrot.lane.b32.xlu1 %v10229_v51, %s16874_s26  ;;  %v3720_v18 = vsel %vm978_vm6, %v3718_v12, %v3719_v63  ;;  %s16888_s21 = smov 120  }
 0x573   : > { %v10239_v42 = vpack.i.bf16 %v13366_v38, %v3720_v18 }
 0x574   : > { %v13354_v34 = vpop.permute.xlu0 %3828  ;;  %v13357_v49 = vpop.permute.xlu1 %3826 }
 0x576   : > { %3786 = vrot.lane.b32.xlu0 %v13139_v52, %s16869_s0  ;;  %3931 = vrot.lane.b32.xlu1 %v3720_v18, %s16888_s21 }
 0x578   : > { %v13371_v51 = vpop.permute.xlu0 %10190  ;;  %v13374_v60 = vpop.permute.xlu1 %10155 }
 0x579   : > { %v10157_v2 = vunpack.i.l.bf16 %v13374_v60 }
 0x57a   : > { %3834 = vrot.lane.b32.xlu0 %v13378_v59, %s16867_s14  ;;  %10240 = vrot.lane.b32.xlu1 %v10239_v42, %s16881_s22 }
 0x57c   : > { %v13383_v12 = vpop.permute.xlu0 %10195  ;;  %v13385_v52 = vpop.permute.xlu1 %4395 }
 0x57e   : > { %4329 = vrot.lane.b32.xlu0 %v3719_v63, %s16883_s29  ;;  %3985 = vrot.lane.b32.xlu1 %v13272_v10, %s16868_s16 }
 0x580   : > { %v13390_v24 = vpop.permute.xlu0 %4397  ;;  %v13392_v16 = vpop.permute.xlu1 %10160 }
 0x582   : > { %4502 = vrot.lane.b32.xlu0 %v3719_v63, %s16888_s21  ;;  %3782 = vrot.lane.b32.xlu1 %v12953_v41, %s16869_s0  ;;  %v3999_v63 = vrot.slane %v13006_v5, 4  ;;  %v4000_v41 = vrot.slane %v13277_v0, 4 }
 0x584   : > { %v13397_v37 = vpop.permute.xlu0 %4439  ;;  %v13399_v42 = vpop.permute.xlu1 %4437  ;;  %v13422_v35 = vsel %vm16485_vm3, %v3999_v63, %v4000_v41  ;;  %v3918_v63 = vrot.slane %v13006_v5, 1  ;;  %v13441_v41 = vrot.slane %v13277_v0, 1  ;;  %vm4274_vm3 = vcmask 752640  }
 0x585   : > { %16890 = vst [vmem:[#allocation31_spill] sm:$0xff] %v13422_v35 }
 0x586   : > { %3907 = vrot.lane.b32.xlu0 %v13006_v5, %s16871_s17  ;;  %3933 = vrot.lane.b32.xlu1 %v13366_v38, %s16888_s21  ;;  %16893 = vst [vmem:[#allocation33_spill] sm:$0xff] %v13441_v41 }
 0x588   : > { %v13405_v10 = vpop.permute.xlu0 %3901  ;;  %v13407_v8 = vpop.permute.xlu1 %3732 }
 0x58a   : > { %4574 = vrot.lane.b32.xlu0 %v13258_v30, %s16868_s16  ;;  %3736 = vrot.lane.b32.xlu1 %v3720_v18, %s16883_s29 }
 0x58c   : > { %v13416_v1 = vpop.permute.xlu0 %3929  ;;  %v13418_v29 = vpop.permute.xlu1 %10165 }
 0x58d   : > { %v10167_v26 = vunpack.i.l.bf16 %v13418_v29 }
 0x58e   : > { %10275 = vrot.lane.b32.xlu0 %v10274_v28, %s16501_s1  ;;  %3987 = vrot.lane.b32.xlu1 %v13378_v59, %s16868_s16  ;;  %v10249_v28 = vpack.i.bf16 %v13422_v35, %v13194_v4  ;;  %v13449_v4 = vsel %vm978_vm6, %v4052_v14, %v13431_v39  ;;  %v13462_v14 = vsel %vm978_vm6, %v3918_v63, %v13441_v41  ;;  %v10158_v41 = vunpack.i.h.bf16 %v13374_v60 }
 0x58f   : > { %16894 = vst [vmem:[#allocation32_spill] sm:$0xff] %v13449_v4  ;;  %16895 = vst [vmem:[#allocation90_spill] sm:$0xff] %v13462_v14  ;;  %v10284_v39 = vpack.i.bf16 %v12752_v44, %v12692_v17  ;;  %v10264_v58 = vpack.i.bf16 %v13449_v4, %v13462_v14  ;;  %v4185_v63 = vsel %vm16500_vm10, %v12561_v13, %v10152_v32 }
 0x590   : > { %v13427_v18 = vpop.permute.xlu0 %3956  ;;  %v13433_v40 = vpop.permute.xlu1 %3899 }
 0x591   : > { %16891 = vst [vmem:[#allocation82_spill] sm:$0xff] %v13427_v18  ;;  %v10148_v18 = vunpack.i.h.bf16 %v13320_v9  ;;  %v10142_v9 = vunpack.i.l.bf16 %v13299_v7 }
 0x592   : > { %10280 = vrot.lane.b32.xlu0 %v13286_v6, %s16489_s23  ;;  %10250 = vrot.lane.b32.xlu1 %v10249_v28, %s16872_s24  ;;  %v10162_v6 = vunpack.i.l.bf16 %v13392_v16  ;;  %v10178_v28 = vunpack.i.h.bf16 %v13281_v62  ;;  %s16491_s24 = smov 44  }
 0x593   : > { %v4239_v32 = vsel %vm4238_vm12, %v10142_v9, %v10147_v20  ;;  %v4240_v60 = vsel %vm4238_vm12, %v16487_v43, %v10148_v18  ;;  %v10183_v20 = vunpack.i.h.bf16 %v13314_v33  ;;  %v3972_v43 = vrot.slane %v13006_v5, 3 }
 0x594   : > { %v13445_v59 = vpop.permute.xlu0 %4464  ;;  %v13452_v35 = vpop.permute.xlu1 %3927  ;;  %v4194_v4 = vsel %vm16499_vm11, %v4185_v63, %v10162_v6 }
 0x595   : > { %v4203_v13 = vsel %vm16497_vm13, %v4194_v4, %v10167_v26  ;;  %v4248_v26 = vsel %vm4247_vm14, %v4239_v32, %v10157_v2 }
 0x596   : > { %4504 = vrot.lane.b32.xlu0 %v13351_v56, %s16888_s21  ;;  %10255 = vrot.lane.b32.xlu1 %v10254_v61, %s16874_s26  ;;  %v10153_v56 = vunpack.i.h.bf16 %v13343_v31  ;;  %v10163_v61 = vunpack.i.h.bf16 %v13392_v16  ;;  %v10168_v31 = vunpack.i.h.bf16 %v13418_v29  ;;  %v10182_v16 = vunpack.i.l.bf16 %v13314_v33  ;;  %v4876_v33 = vld [vmem:[%s16862_s3 + $0x108] sm:$0xff]  ;;  %s16908_s26 = smov 64  }
 0x597   : > { %v4257_v32 = vsel %vm4256_vm9, %v4248_v26, %v10177_v48 }
 0x598   : > { %v13477_v62 = vpop.permute.xlu0 %4500  ;;  %v13483_v15 = vpop.permute.xlu1 %3954  ;;  %v4186_v29 = vsel %vm16500_vm10, %v12605_v19, %v10153_v56  ;;  %v4212_v63 = vsel %vm4211_vm15, %v4203_v13, %v10182_v16  ;;  %v10187_v13 = vunpack.i.l.bf16 %v13326_v55 }
 0x599   : > { %v4195_v18 = vsel %vm16499_vm11, %v4186_v29, %v10163_v61  ;;  %v10188_v61 = vunpack.i.h.bf16 %v13326_v55 }
 0x59a   : > { %10285 = vrot.lane.b32.xlu0 %v10284_v39, %s16491_s24  ;;  %3935 = vrot.lane.b32.xlu1 %v13462_v14, %s16888_s21  ;;  %v4249_v39 = vsel %vm4247_vm14, %v4240_v60, %v10158_v41  ;;  %v10192_v14 = vunpack.i.l.bf16 %v13371_v51  ;;  %v4204_v19 = vsel %vm16497_vm13, %v4195_v18, %v10168_v31  ;;  %v4875_v41 = vld [vmem:[%s16862_s3 + $0x100] sm:$0xff]  ;;  %v10197_v60 = vunpack.i.l.bf16 %v13383_v12  ;;  %s16495_s24 = smov 64  }
 0x59b   : > { %v4258_v31 = vsel %vm4256_vm9, %v4249_v39, %v10178_v28  ;;  %v4213_v48 = vsel %vm4211_vm15, %v4204_v19, %v10183_v20  ;;  %v9510_v26 = vpack.c.bf16 %v4876_v33, %v4875_v41  ;;  %v10193_v28 = vunpack.i.h.bf16 %v13371_v51  ;;  %v4878_v20 = vld [vmem:[%s16862_s3 + $0x118] sm:$0xff] }
 0x59c   : > { %v13499_v4 = vpop.permute.xlu0 %4536  ;;  %v10171_v6 = vpop.permute.xlu1 %10170  ;;  %v4221_v18 = vsel %vm4220_vm7, %v4212_v63, %v10192_v14  ;;  %v10198_v39 = vunpack.i.h.bf16 %v13383_v12  ;;  %v13535_v14 = vrot.slane %v13277_v0, 3  ;;  %v4877_v63 = vld [vmem:[%s16862_s3 + $0x110] sm:$0xff]  ;;  %v4188_v51 = vsel %vm16500_vm10, %v12692_v17, %v13243_v23 }
 0x59d   : > { %v10173_v56 = vunpack.i.h.bf16 %v10171_v6  ;;  %v10172_v2 = vunpack.i.l.bf16 %v10171_v6  ;;  %v4230_v19 = vsel %vm4229_vm8, %v4221_v18, %v10142_v9  ;;  %v4603_v17 = vsel %vm16500_vm10, %v12696_v21, %v13266_v53  ;;  %v4879_v53 = vld [vmem:[%s16862_s3 + $0x120] sm:$0xff] }
 0x59e   : > { %10265 = vrot.lane.b32.xlu1 %v10264_v58, %s16881_s22  ;;  %v4614_v9 = vsel %vm16499_vm11, %v4603_v17, %v13334_v27  ;;  %v16896_v21 = vmov 0.0|0.0  }
 0x59f   : > { %v4266_v29 = vsel %vm4265_vm5, %v4257_v32, %v10172_v2  ;;  %v4267_v6 = vsel %vm4265_vm5, %v4258_v31, %v10173_v56  ;;  %v4197_v56 = vsel %vm16499_vm11, %v4188_v51, %v13283_v22  ;;  %v9513_v22 = vpack.c.bf16 %v4878_v20, %v4877_v63 }
 0x5a0   : > { %v13519_v16 = vpop.permute.xlu0 %3983  ;;  %v13524_v5 = vpop.permute.xlu1 %4325  ;;  %v4275_v55 = vsel %vm4274_vm3, %v4266_v29, %v10187_v13  ;;  %v4276_v58 = vsel %vm4274_vm3, %v4267_v6, %v10188_v61  ;;  %v4222_v61 = vsel %vm4220_vm7, %v4213_v48, %v10193_v28  ;;  %v13571_v32 = vsel %vm928_vm4, %v3972_v43, %v13535_v14 }
 0x5a1   : > { %v4284_v2 = vsel %vm4283_vm2, %v4275_v55, %v10197_v60  ;;  %v4285_v41 = vsel %vm4283_vm2, %v4276_v58, %v10198_v39  ;;  %v4625_v27 = vsel %vm16497_vm13, %v4614_v9, %v13385_v52  ;;  %v16897_v43 = vunpack.i.h.bf16 %v13299_v7 }
 0x5a2   : > { %3738 = vrot.lane.b32.xlu1 %v13366_v38, %s16883_s29  ;;  %4997 = vmatprep.mubr.f32.mxu0 %v4284_v2  ;;  %v13562_v38 = vsel %vm16497_vm13, %v4197_v56, %v13357_v49  ;;  %v4880_v49 = vld [vmem:[%s16862_s3 + $0x128] sm:$0xff]  ;;  %v4637_v18 = vsel %vm4211_vm15, %v4625_v27, %v13399_v42  ;;  %v4189_v20 = vsel %vm16500_vm10, %v12752_v44, %v13407_v8 }
 0x5a3   : > { %4998 = vmatmul.mubr.f32.vlgmr.msra.gmra.mrb[72].mxu0 %v4230_v19  ;;  %v4636_v13 = vsel %vm4211_vm15, %v13562_v38, %v13399_v42  ;;  %v4231_v29 = vsel %vm4229_vm8, %v4222_v61, %v16897_v43  ;;  %v9516_v48 = vpack.c.bf16 %v4880_v49, %v4879_v53  ;;  %v4881_v42 = vld [vmem:[%s16862_s3 + $0x130] sm:$0xff]  ;;  %v4884_v44 = vld [vmem:[%s16862_s3 + $0x148] sm:$0xff] }
 0x5a4   : > { %v13554_v33 = vpop.permute.xlu0 %4572  ;;  %v4463_v23 = vpop.permute.xlu1 %4462  ;;  %5002 = vmatprep.mubr.f32.mxu0 %v4285_v41  ;;  %9511 = vmatpush1.bf16.msra.mxu0 %v9510_v26  ;;  %v4652_v31 = vsel %vm4220_vm7, %v4636_v13, %v13433_v40  ;;  %v4882_v26 = vld [vmem:[%s16862_s3 + $0x138] sm:$0xff]  ;;  %v4604_v13 = vsel %vm16500_vm10, %v12744_v54, %v13524_v5  ;;  %v4888_v54 = vld [vmem:[%s16862_s3 + $0x168] sm:$0xff] }
 0x5a5   : > { %9512 = vmatprep.subr.bf16.mxu0 %v16896_v21  ;;  %v4668_v6 = vsel %vm4229_vm8, %v4652_v31, %v13452_v35  ;;  %v4653_v52 = vsel %vm4220_vm7, %v4637_v18, %v4463_v23  ;;  %v9519_v56 = vpack.c.bf16 %v4882_v26, %v4881_v42  ;;  %v4431_v23 = vrot.slane %v12885_v45, 7 }
 0x5a6   : > { %3989 = vrot.lane.b32.xlu1 %v13571_v32, %s16868_s16  ;;  %v4738_v28 = vrot.slane %v4668_v6, 1 }
 0x5a7   : > { %5003 = vmatmul.mubr.f32.gmra.mrb[74].mxu0 %v4231_v29  ;;  %v4887_v29 = vld [vmem:[%s16862_s3 + $0x160] sm:$0xff] }
 0x5a8   : > { %v13593_v55 = vpop.permute.xlu0 %3952  ;;  %v13596_v58 = vpop.permute.xlu1 %4498  ;;  %9514 = vmatpush1.bf16.msra.mxu0 %v9513_v22 }
 0x5a9   : > { %v4669_v7 = vsel %vm4229_vm8, %v4653_v52, %v13596_v58  ;;  %9515 = vmatprep.subr.bf16.mxu0 %v16896_v21 }
 0x5aa   : > { %v4739_v2 = vrot.slane %v4669_v7, 1  ;;  %4363 = vrot.lane.b32.xlu1 %v12926_v11, %s16869_s0  ;;  %v4883_v11 = vld [vmem:[%s16862_s3 + $0x140] sm:$0xff]  ;;  %v9528_v7 = vpack.c.bf16 %v4888_v54, %v4887_v29 }
 0x5ab   : > { %v9522_v22 = vpack.c.bf16 %v4884_v44, %v4883_v11 }
 0x5ac   : > { %v13609_v63 = vpop.permute.xlu0 %10225  ;;  %v3781_v51 = vpop.permute.xlu1 %3780  ;;  %v4740_v19 = vsel %vm978_vm6, %v4738_v28, %v4739_v2  ;;  %9517 = vmatpush1.bf16.msra.mxu0 %v9516_v48 }
 0x5ad   : > { %v4198_v41 = vsel %vm16499_vm11, %v4189_v20, %v3781_v51  ;;  %4786 = vrot.lane.b32.xlu0 %v4740_v19, %s16495_s24  ;;  %9518 = vmatprep.subr.bf16.mxu0 %v16896_v21  ;;  %v4891_v19 = vld [vmem:[%s16862_s3 + $0x180] sm:$0xff] }
 0x5ae   : > { %v13626_v8 = vsel %vm16497_vm13, %v4198_v41, %v13354_v34  ;;  %4399 = vrot.lane.b32.xlu1 %v12966_v46, %s16867_s14  ;;  %v4885_v34 = vld [vmem:[%s16862_s3 + $0x150] sm:$0xff]  ;;  %v4886_v46 = vld [vmem:[%s16862_s3 + $0x158] sm:$0xff] }
 0x5af   : > { %v4638_v9 = vsel %vm4211_vm15, %v13626_v8, %v13397_v37  ;;  %v9525_v31 = vpack.c.bf16 %v4886_v46, %v4885_v34  ;;  %v16899_v46 = vld [vmem:[#allocation109_spill] sm:$0xff] }
 0x5b0   : > { %v13630_v61 = vpop.permute.xlu0 %10235  ;;  %v13632_v17 = vpop.permute.xlu1 %3981  ;;  %9520 = vmatpush1.bf16.msra.mxu0 %v9519_v56  ;;  %v4654_v53 = vsel %vm4220_vm7, %v4638_v9, %v13405_v10  ;;  %v4892_v56 = vld [vmem:[%s16862_s3 + $0x188] sm:$0xff]  ;;  %v10341_v9 = vld [vmem:[%s16851_s2] ss:$0 sm:$0xff] }
 0x5b1   : > { %9521 = vmatprep.subr.bf16.mxu0 %v16896_v21  ;;  %v4670_v6 = vsel %vm4229_vm8, %v4654_v53, %v13416_v1  ;;  %v9534_v44 = vpack.c.bf16 %v4892_v56, %v4891_v19 }
 0x5b2   : > { %4441 = vrot.lane.b32.xlu1 %v4431_v23, %s16876_s25  ;;  %v16898_v23 = vpack.i.bf16 %v12986_v36, %v12803_v57  ;;  %v2935_v57 = vadd.f32 %v10341_v9, %v13161_v47  ;;  %v10299_v36 = vpack.i.bf16 %v12885_v45, %v12830_v3  ;;  %v4896_v47 = vld [vmem:[%s16862_s3 + $0x1a8] sm:$0xff] }
 0x5b4   : > { %v4362_v49 = vpop.permute.xlu1 %4361  ;;  %v13651_v27 = vpop.permute.xlu0 %3958  ;;  %9523 = vmatpush1.bf16.msra.mxu0 %v9522_v22  ;;  %v4893_v22 = vld [vmem:[%s16862_s3 + $0x190] sm:$0xff] }
 0x5b5   : > { %v4615_v43 = vsel %vm16499_vm11, %v4604_v13, %v4362_v49  ;;  %9524 = vmatprep.subr.bf16.mxu0 %v16896_v21  ;;  %v4432_v13 = vrot.slane %v16899_v46, 7 }
 0x5b6   : > { %v4626_v5 = vsel %vm16497_vm13, %v4615_v43, %v13390_v24  ;;  %4466 = vrot.lane.b32.xlu1 %v13022_v50, %s16871_s17  ;;  %v4889_v24 = vld [vmem:[%s16862_s3 + $0x170] sm:$0xff] }
 0x5b7   : > { %v4639_v18 = vsel %vm4211_vm15, %v4626_v5, %v13397_v37  ;;  %v4890_v37 = vld [vmem:[%s16862_s3 + $0x178] sm:$0xff] }
 0x5b8   : > { %v4655_v52 = vsel %vm4220_vm7, %v4639_v18, %v13445_v59  ;;  %v13671_v48 = vpop.permute.xlu1 %3925  ;;  %9526 = vmatpush1.bf16.msra.mxu0 %v9525_v31  ;;  %v13682_v26 = vpop.permute.xlu0 %3734  ;;  %v4744_v59 = vrot.slane %v4670_v6, 1  ;;  %v9531_v51 = vpack.c.bf16 %v4890_v37, %v4889_v24  ;;  %v3029_v31 = vmax.f32 %v2935_v57, 0.0  ;;  %v4897_v6 = vld [vmem:[%s16862_s3 + $0x1b0] sm:$0xff] }
 0x5b9   : > { %v4671_v42 = vsel %vm4229_vm8, %v4655_v52, %v13477_v62  ;;  %9527 = vmatprep.subr.bf16.mxu0 %v16896_v21  ;;  %v4898_v52 = vld [vmem:[%s16862_s3 + $0x1b8] sm:$0xff]  ;;  %v16901_v37 = vld [vmem:[#allocation60_spill] sm:$0xff] }
 0x5ba   : > { %4538 = vrot.lane.b32.xlu1 %v13094_v25, %s16880_s28  ;;  %v4745_v28 = vrot.slane %v4671_v42, 1  ;;  %v3135_v42 = vsel %vm16500_vm10, %v3029_v31, -inf }
 0x5bc   : > { %v13686_v2 = vpop.permute.xlu1 %3728  ;;  %v4746_v20 = vsel %vm978_vm6, %v4744_v59, %v4745_v28  ;;  %9529 = vmatpush1.bf16.msra.mxu0 %v9528_v7  ;;  %v13699_v41 = vpop.permute.xlu0 %10245  ;;  %v4685_v7 = vsel %vm4238_vm12, %v13477_v62, %v13499_v4  ;;  %v10432_v28 = vmov 0.0   ;;  %v9543_v62 = vpack.c.bf16 %v4898_v52, %v4897_v6 }
 0x5bd   : > { %4790 = vrot.lane.b32.xlu0 %v4746_v20, %s16495_s24  ;;  %9530 = vmatprep.subr.bf16.mxu0 %v16896_v21  ;;  %v16902_v20 = vld [vmem:[#allocation72_spill] sm:$0xff]  ;;  %v4242_v4 = vsel %vm4238_vm12, %v13452_v35, %v13483_v15  ;;  %s16911_s24 = smov 24  }
 0x5be   : > { %4365 = vrot.lane.b32.xlu1 %v13094_v25, %s16869_s0  ;;  %v4894_v25 = vld [vmem:[%s16862_s3 + $0x198] sm:$0xff]  ;;  %5699 = vmatprep.mubr.f32.mxu1 %v10432_v28 }
 0x5bf   : > { %v9537_v53 = vpack.c.bf16 %v4894_v25, %v4893_v22  ;;  %v16903_v22 = vld [vmem:[#allocation26_spill] sm:$0xff] }
 0x5c0   : > { %v13701_v11 = vpop.permute.xlu1 %3979  ;;  %9532 = vmatpush1.bf16.msra.mxu0 %v9531_v51  ;;  %v13733_v49 = vpop.permute.xlu0 %3830  ;;  %v2940_v51 = vadd.f32 %v10341_v9, %v16902_v20  ;;  %v4684_v25 = vsel %vm4238_vm12, %v13596_v58, %v16903_v22  ;;  %v16905_v58 = vld [vmem:[#allocation25_spill] sm:$0xff]  ;;  %v16907_v22 = vld [vmem:[#allocation79_spill] sm:$0xff] }
 0x5c1   : > { %10290 = vrot.lane.b32.xlu0 %v16898_v23, %s16501_s1  ;;  %9533 = vmatprep.subr.bf16.mxu0 %v16896_v21  ;;  %v4696_v23 = vsel %vm4247_vm14, %v4685_v7, %v13554_v33  ;;  %v4251_v33 = vsel %vm4247_vm14, %v4242_v4, %v13632_v17 }
 0x5c2   : > { %4401 = vrot.lane.b32.xlu1 %v13258_v30, %s16867_s14  ;;  %v4895_v30 = vld [vmem:[%s16862_s3 + $0x1a0] sm:$0xff]  ;;  %v3030_v31 = vmax.f32 %v2940_v51, 0.0  ;;  %v4902_v51 = vld [vmem:[%s16862_s3 + $0x1d8] sm:$0xff] }
 0x5c3   : > { %v9540_v18 = vpack.c.bf16 %v4896_v47, %v4895_v30 }
 0x5c4   : > { %v13722_v34 = vpop.permute.xlu1 %3776  ;;  %9535 = vmatpush1.bf16.msra.mxu0 %v9534_v44  ;;  %v13753_v19 = vpop.permute.xlu0 %3960 }
 0x5c5   : > { %10300 = vrot.lane.b32.xlu0 %v10299_v36, %s16900_s27  ;;  %9536 = vmatprep.subr.bf16.mxu0 %v16896_v21  ;;  %v4899_v36 = vld [vmem:[%s16862_s3 + $0x1c0] sm:$0xff] }
 0x5c6   : > { %4443 = vrot.lane.b32.xlu1 %v4432_v13, %s16876_s25  ;;  %v4900_v13 = vld [vmem:[%s16862_s3 + $0x1c8] sm:$0xff] }
 0x5c7   : > { %v9546_v17 = vpack.c.bf16 %v4900_v13, %v4899_v36  ;;  %v3138_v36 = vsel %vm16500_vm10, %v3030_v31, -inf  ;;  %v4903_v31 = vld [vmem:[%s16862_s3 + $0x1e0] sm:$0xff] }
 0x5c8   : > { %v9463_v43 = vpop.f32.mrb[68].mxu0  ;;  %v13736_v29 = vpop.permute.xlu1 %10200  ;;  %9538 = vmatpush1.bf16.msra.mxu0 %v9537_v53  ;;  %v16904_v53 = vld [vmem:[#allocation82_spill] sm:$0xff] }
 0x5c9   : > { %v2950_v54 = vadd.f32 %v10341_v9, %v9463_v43  ;;  %v2944_v5 = vpop.f32.mrb[69].mxu0  ;;  %9539 = vmatprep.subr.bf16.mxu0 %v16896_v21  ;;  %v4243_v15 = vsel %vm4238_vm12, %v13416_v1, %v16904_v53  ;;  %v13798_v4 = vpop.permute.xlu0 %3903 }
 0x5ca   : > { %4468 = vrot.lane.b32.xlu1 %v16901_v37, %s16871_s17  ;;  %v2945_v59 = vadd.f32 %v10341_v9, %v2944_v5  ;;  %v13782_v47 = vsel %vm4247_vm14, %v4243_v15, %v13519_v16  ;;  %v4748_v5 = vrot.slane %v4696_v23, 1  ;;  %v4901_v16 = vld [vmem:[%s16862_s3 + $0x1d0] sm:$0xff] }
 0x5cb   : > { %v3032_v24 = vmax.f32 %v2950_v54, 0.0 }
 0x5cc   : > { %v13756_v44 = vpop.permute.xlu1 %3824  ;;  %9541 = vmatpush1.bf16.msra.mxu0 %v9540_v18  ;;  %v3031_v30 = vmax.f32 %v2945_v59, 0.0  ;;  %v16906_v18 = vld [vmem:[#allocation80_spill] sm:$0xff] }
 0x5cd   : > { %v3136_v56 = vsel %vm16500_vm10, %v3032_v24, -inf  ;;  %9542 = vmatprep.subr.bf16.mxu0 %v16896_v21  ;;  %v4695_v6 = vsel %vm4247_vm14, %v4684_v25, %v16906_v18  ;;  %v4741_v24 = vrot.slane %v4251_v33, 1 }
 0x5ce   : > { %v3137_v57 = vmax.f32 %v3135_v42, %v3136_v56  ;;  %4540 = vrot.lane.b32.xlu1 %v16905_v58, %s16880_s28  ;;  %v4747_v56 = vrot.slane %v13782_v47, 1 }
 0x5d0   : > { %v3167_v43 = vrot.slane %v3137_v57, 1  ;;  %v9466_v54 = vpop.f32.mrb[70].mxu0  ;;  %v13786_v52 = vpop.permute.xlu1 %10205  ;;  %9544 = vmatpush1.bf16.msra.mxu0 %v9543_v62  ;;  %v3141_v62 = vsel %vm16500_vm10, %v3031_v30, -inf  ;;  %v4749_v15 = vsel %vm978_vm6, %v4747_v56, %v4748_v5  ;;  %v4241_v5 = vsel %vm4238_vm12, %v13671_v48, %v13593_v55 }
 0x5d1   : > { %v2960_v7 = vadd.f32 %v10341_v9, %v9466_v54  ;;  %v2954_v42 = vpop.f32.mrb[71].mxu0  ;;  %9545 = vmatprep.subr.bf16.mxu0 %v16896_v21  ;;  %v10203_v54 = vunpack.i.h.bf16 %v13736_v29 }
 0x5d2   : > { %v13788_v20 = vmax.f32 %v3137_v57, %v3167_v43  ;;  %v2955_v59 = vadd.f32 %v10341_v9, %v2954_v42  ;;  %4576 = vrot.lane.b32.xlu1 %v16907_v22, %s16868_s16  ;;  %v4742_v9 = vrot.slane %v4695_v6, 1  ;;  %v9549_v43 = vpack.c.bf16 %v4902_v51, %v4901_v16  ;;  %v4904_v6 = vld [vmem:[%s16862_s3 + $0x1e8] sm:$0xff] }
 0x5d3   : > { %v3034_v23 = vmax.f32 %v2960_v7, 0.0  ;;  %v10202_v42 = vunpack.i.l.bf16 %v13736_v29  ;;  %v4250_v51 = vsel %vm4247_vm14, %v4241_v5, %v13701_v11  ;;  %v13832_v29 = vpop.permute.xlu0 %3784 }
 0x5d4   : > { %v3311_v25 = vrot.slane %v13788_v20, 1  ;;  %v3033_v57 = vmax.f32 %v2955_v59, 0.0  ;;  %v10211_v53 = vpop.permute.xlu1 %10210  ;;  %9547 = vmatpush1.bf16.msra.mxu0 %v9546_v17  ;;  %v4743_v7 = vsel %vm978_vm6, %v4741_v24, %v4742_v9  ;;  %v3335_v17 = vrot.slane %v13788_v20, 2  ;;  %v16909_v24 = vld [vmem:[#allocation110_spill] sm:$0xff] }
 0x5d5   : > { %v3142_v13 = vsel %vm16500_vm10, %v3034_v23, -inf  ;;  %9548 = vmatprep.subr.bf16.mxu0 %v16896_v21  ;;  %v4187_v16 = vsel %vm16500_vm10, %v16909_v24, %v13686_v2  ;;  %v10207_v23 = vunpack.i.l.bf16 %v13786_v52  ;;  %v4260_v2 = vsel %vm4256_vm9, %v4251_v33, %v10203_v54 }
 0x5d6   : > { %v3143_v30 = vmax.f32 %v3141_v62, %v3142_v13  ;;  %v3139_v18 = vsel %vm16500_vm10, %v3033_v57, -inf  ;;  %4788 = vrot.lane.b32.xlu1 %v4743_v7, %s16908_s26  ;;  %v3575_v56 = vsel %vm16498_vm0, %v13788_v20, %v3311_v25  ;;  %v4196_v55 = vsel %vm16499_vm11, %v4187_v16, %v13722_v34 }
 0x5d7   : > { %v3140_v59 = vmax.f32 %v3138_v36, %v3139_v18  ;;  %v9552_v36 = vpack.c.bf16 %v4904_v6, %v4903_v31  ;;  %v10213_v18 = vunpack.i.h.bf16 %v10211_v53  ;;  %v10212_v11 = vunpack.i.l.bf16 %v10211_v53 }
 0x5d8   : > { %v3263_v62 = vrot.slane %v3143_v30, 1  ;;  %v10216_v57 = vpop.permute.xlu1 %10215  ;;  %9550 = vmatpush1.bf16.msra.mxu0 %v9549_v43  ;;  %v4259_v25 = vsel %vm4256_vm9, %v4250_v51, %v10202_v42  ;;  %v3587_v7 = vsel %vm853_vm1, %v3575_v56, %v3335_v17  ;;  %v4205_v34 = vsel %vm16497_vm13, %v4196_v55, %v13756_v44  ;;  %v16912_v51 = vld [vmem:[#allocation24_spill] sm:$0xff] }
 0x5d9   : > { %v3215_v9 = vrot.slane %v3140_v59, 1  ;;  %9551 = vmatprep.subr.bf16.mxu0 %v16896_v21  ;;  %v3359_v43 = vrot.slane %v13788_v20, 3  ;;  %v10208_v54 = vunpack.i.h.bf16 %v13786_v52  ;;  %v4268_v42 = vsel %vm4265_vm5, %v4259_v25, %v10207_v23  ;;  %v4905_v20 = vld [vmem:[%s16862_s3 + $0x1f0] sm:$0xf]  ;;  %s321_s3 = sand.u32 1, %s10399_s10  }
 0x5da   : > { %v3287_v13 = vmax.f32 %v3143_v30, %v3263_v62  ;;  %4792 = vrot.lane.b32.xlu1 %v4749_v15, %s16908_s26  ;;  %v4214_v44 = vsel %vm4211_vm15, %v4205_v34, %v10212_v11  ;;  %v4215_v15 = vsel %vm4211_vm15, %v13562_v38, %v10213_v18  ;;  %vm16910_vm13 = vcmask 1042432   ;;  %s322_s15 = scalar_lea.vmem [#allocation2], %s321_s3 }
 0x5db   : > { %v3239_v5 = vmax.f32 %v3140_v59, %v3215_v9  ;;  %v3599_v52 = vsel %vm16910_vm13, %v3587_v7, %v3359_v43  ;;  %v13854_v59 = vpop.permute.xlu0 %3832  ;;  %v10217_v16 = vunpack.i.l.bf16 %v10216_v57  ;;  %v10218_v38 = vunpack.i.h.bf16 %v10216_v57  ;;  %vm16914_vm11 = vmmov %vm16910_vm13  ;;  %s8519_s30 = sshll.u32 %s322_s15, 4  ;;  %s16202_s30 = int_to_ptr.vmem [resolvable:$true] %s8519_s30 }
 0x5dc   : > { %v3503_v31 = vrot.slane %v3287_v13, 1  ;;  %v3527_v6 = vrot.slane %v3287_v13, 2  ;;  %v3551_v33 = vrot.slane %v3287_v13, 3  ;;  %v3898_v24 = vpop.permute.xlu1 %3897  ;;  %9553 = vmatpush1.bf16.msra.mxu0 %v9552_v36  ;;  %vm16916_vm10 = vcmask 1045504  }
 0x5dd   : > { %v3395_v53 = vrot.slane %v3239_v5, 4  ;;  %v3419_v30 = vrot.slane %v3239_v5, 5  ;;  %5098 = vmatprep.subr.mxu0 %v10432_v28  ;;  %v3443_v56 = vrot.slane %v3239_v5, 6  ;;  %v3467_v23 = vrot.slane %v3239_v5, 7 }
 0x5de   : > { %v3659_v17 = vsel %vm16498_vm0, %v3287_v13, %v3503_v31  ;;  %10295 = vrot.lane.b32.xlu1 %v16912_v51, %s16911_s24  ;;  %vm16913_vm0 = vcmask 1043456   ;;  %v4223_v13 = vsel %vm4220_vm7, %v4214_v44, %v3898_v24  ;;  %v4277_v31 = vsel %vm4274_vm3, %v4268_v42, %v10217_v16 }
 0x5df   : > { %v3611_v62 = vsel %vm16913_vm0, %v3599_v52, %v3395_v53  ;;  %v3671_v55 = vsel %vm853_vm1, %v3659_v17, %v3527_v6  ;;  %vm16915_vm13 = vmmov %vm16913_vm0  ;;  %v4269_v24 = vsel %vm4265_vm5, %v4260_v2, %v10208_v54  ;;  %v13885_v17 = vpop.permute.xlu0 %10260  ;;  %v10237_v51 = vunpack.i.l.bf16 %v13630_v61 }
 0x5e0   : > { %v3623_v9 = vsel %vm928_vm4, %v3611_v62, %v3419_v30  ;;  %v13862_v36 = vsel %vm16914_vm11, %v3671_v55, %v3551_v33  ;;  %v13865_v18 = vpop.permute.xlu1 %10220  ;;  %8654 = vmatpush1.msk.msra.mxu0 %vm16915_vm13, %v4905_v20  ;;  %v4232_v20 = vsel %vm4229_vm8, %v4223_v13, %v13671_v48  ;;  %v4278_v42 = vsel %vm4274_vm3, %v4269_v24, %v10218_v38  ;;  %vm16917_vm0 = vmmov %vm16916_vm10 }
 0x5e1   : > { %v3635_v11 = vsel %vm16916_vm10, %v3623_v9, %v3443_v56  ;;  %v4496_v25 = vrot.slane %v13862_v36, 1  ;;  %v4532_v7 = vrot.slane %v13862_v36, 2  ;;  %v10223_v57 = vunpack.i.h.bf16 %v13865_v18 }
 0x5e2   : > { %v10222_v34 = vunpack.i.l.bf16 %v13865_v18  ;;  %v13874_v5 = vsel %vm978_vm6, %v3635_v11, %v3467_v23  ;;  %v4568_v43 = vrot.slane %v13862_v36, 3  ;;  %v4224_v48 = vsel %vm4220_vm7, %v4215_v15, %v13433_v40  ;;  %v8706_v18 = vld [vmem:[%s16248_s5 + $0x1d8] sm:$0xff] }
 0x5e3   : > { %v4495_v6 = vrot.slane %v13874_v5, 1  ;;  %v4531_v33 = vrot.slane %v13874_v5, 2  ;;  %v4567_v53 = vrot.slane %v13874_v5, 3  ;;  %v4287_v2 = vsel %vm4283_vm2, %v4278_v42, %v10223_v57  ;;  %v13916_v38 = vpop.permute.xlu0 %3962 }
 0x5e4   : > { %v4286_v30 = vsel %vm4283_vm2, %v4277_v31, %v10222_v34  ;;  %v10231_v44 = vpop.permute.xlu1 %10230  ;;  %v4233_v62 = vsel %vm4229_vm8, %v4224_v48, %v13452_v35  ;;  %v10227_v55 = vunpack.i.l.bf16 %v13609_v63  ;;  %v4216_v40 = vsel %vm4211_vm15, %v13626_v8, %v10237_v51 }
 0x5e5   : > { %5007 = vmatprep.mubr.f32.mxu0 %v4286_v30  ;;  %v13893_v52 = vsel %vm978_vm6, %v4495_v6, %v4496_v25  ;;  %v13898_v16 = vsel %vm16917_vm0, %v4531_v33, %v4532_v7  ;;  %v13908_v54 = vsel %vm928_vm4, %v4567_v53, %v4568_v43  ;;  %v10232_v23 = vunpack.i.l.bf16 %v10231_v44 }
 0x5e6   : > { %5008 = vmatmul.mubr.f32.gmra.mrb[76].mxu0 %v4232_v20  ;;  %v4261_v9 = vsel %vm4256_vm9, %v13782_v47, %v10227_v55  ;;  %v10247_v11 = vunpack.i.l.bf16 %v13699_v41  ;;  %v4225_v35 = vsel %vm4220_vm7, %v4216_v40, %v13405_v10  ;;  %v10228_v33 = vunpack.i.h.bf16 %v13609_v63 }
 0x5e7   : > { %5012 = vmatprep.mubr.f32.mxu0 %v4287_v2  ;;  %v4270_v31 = vsel %vm4265_vm5, %v4261_v9, %v10232_v23  ;;  %v13928_v53 = vpop.permute.xlu0 %4327  ;;  %v10233_v24 = vunpack.i.h.bf16 %v10231_v44  ;;  %v4234_v10 = vsel %vm4229_vm8, %v4225_v35, %v13416_v1  ;;  %vm16918_vm10 = vcmask 162816  }
 0x5e8   : > { %v13911_v56 = vpop.permute.xlu1 %3931  ;;  %v4190_v44 = vsel %vm16918_vm10, %v12830_v3, %v13682_v26  ;;  %vm16919_vm11 = vcmask 326656   ;;  %vm16920_vm13 = vcmask 490496   ;;  %vm16921_vm0 = vmmov %vm16918_vm10 }
 0x5e9   : > { %v4244_v8 = vsel %vm4238_vm12, %v13911_v56, %v13651_v27  ;;  %v10248_v27 = vunpack.i.h.bf16 %v13699_v41  ;;  %vm16922_vm10 = vmmov %vm16919_vm11  ;;  %v8783_v41 = vld [vmem:[%s16248_s5 + $0x3e0] sm:$0xff] }
 0x5ea   : > { %5013 = vmatmul.mubr.f32.gmra.mrb[78].mxu0 %v4233_v62  ;;  %v10238_v62 = vunpack.i.h.bf16 %v13630_v61 }
 0x5eb   : > { %v13954_v23 = vpop.permute.xlu0 %3905 }
 0x5ec   : > { %v10241_v15 = vpop.permute.xlu1 %10240 }
 0x5ed   : > { %v10242_v13 = vunpack.i.l.bf16 %v10241_v15  ;;  %v10243_v63 = vunpack.i.h.bf16 %v10241_v15 }
 0x5ef   : > { %v4279_v6 = vsel %vm4274_vm3, %v4270_v31, %v10242_v13  ;;  %v13968_v9 = vpop.permute.xlu0 %10270 }
 0x5f0   : > { %v3986_v30 = vpop.permute.xlu1 %3985  ;;  %v4288_v47 = vsel %vm4283_vm2, %v4279_v6, %v10247_v11 }
 0x5f1   : > { %v13937_v20 = vsel %vm4247_vm14, %v4244_v8, %v3986_v30  ;;  %5017 = vmatprep.mubr.f32.mxu0 %v4288_v47 }
 0x5f2   : > { %v4262_v42 = vsel %vm4256_vm9, %v13937_v20, %v10228_v33  ;;  %5018 = vmatmul.mubr.f32.gmra.mrb[80].mxu0 %v4234_v10  ;;  %v10262_v10 = vunpack.i.l.bf16 %v13885_v17 }
 0x5f3   : > { %v4271_v2 = vsel %vm4265_vm5, %v4262_v42, %v10233_v24  ;;  %v3787_v35 = vpop.permute.xlu0 %3786 }
 0x5f4   : > { %v3783_v48 = vpop.permute.xlu1 %3782  ;;  %v4280_v51 = vsel %vm4274_vm3, %v4271_v2, %v10243_v63 }
 0x5f5   : > { %v4199_v1 = vsel %vm16919_vm11, %v4190_v44, %v3783_v48  ;;  %v4289_v55 = vsel %vm4283_vm2, %v4280_v51, %v10248_v27  ;;  %vm16923_vm11 = vmmov %vm16920_vm13 }
 0x5f6   : > { %v13958_v40 = vsel %vm16920_vm13, %v4199_v1, %v13733_v49  ;;  %5022 = vmatprep.mubr.f32.mxu0 %v4289_v55  ;;  %vm16924_vm13 = vmmov %vm16921_vm0 }
 0x5f7   : > { %v4217_v3 = vsel %vm4211_vm15, %v13958_v40, %v10238_v62  ;;  %v3835_v33 = vpop.permute.xlu0 %3834  ;;  %v10272_v62 = vunpack.i.l.bf16 %v13968_v9 }
 0x5f8   : > { %v13962_v26 = vpop.permute.xlu1 %3933  ;;  %v4226_v61 = vsel %vm4220_vm7, %v4217_v3, %v13798_v4 }
 0x5f9   : > { %v4235_v15 = vsel %vm4229_vm8, %v4226_v61, %v13911_v56 }
 0x5fa   : > { %5023 = vmatmul.mubr.f32.gmra.mrb[82].mxu0 %v4235_v15 }
 0x5fb   : > { %v13981_v42 = vpop.permute.xlu0 %4329 }
 0x5fc   : > { %v3737_v13 = vpop.permute.xlu1 %3736 }
 0x5fd   : > { %v4191_v6 = vsel %vm16921_vm0, %v12885_v45, %v3737_v13  ;;  %v4245_v45 = vsel %vm4238_vm12, %v13962_v26, %v13753_v19  ;;  %vm16925_vm0 = vmmov %vm16922_vm10 }
 0x5fe   : > { %v4200_v30 = vsel %vm16922_vm10, %v4191_v6, %v13832_v29  ;;  %v10263_v6 = vunpack.i.h.bf16 %v13885_v17  ;;  %vm16926_vm10 = vmmov %vm16923_vm11 }
 0x5ff   : > { %v13976_v47 = vsel %vm16923_vm11, %v4200_v30, %v13854_v59  ;;  %v4503_v3 = vpop.permute.xlu0 %4502  ;;  %vm16932_vm11 = vmmov %vm16925_vm0 }
 0x600   : > { %v3988_v31 = vpop.permute.xlu1 %3987  ;;  %v4218_v44 = vsel %vm4211_vm15, %v13976_v47, %v10262_v10 }
 0x601   : > { %v13989_v29 = vsel %vm4247_vm14, %v4245_v45, %v3988_v31  ;;  %v4227_v55 = vsel %vm4220_vm7, %v4218_v44, %v13954_v23 }
 0x602   : > { %v4236_v31 = vsel %vm4229_vm8, %v4227_v55, %v13962_v26 }
 0x603   : > { %v14018_v17 = vpop.permute.xlu0 %3907 }
 0x604   : > { %v10251_v49 = vpop.permute.xlu1 %10250 }
 0x605   : > { %v10252_v63 = vunpack.i.l.bf16 %v10251_v49 }
 0x607   : > { %v4263_v48 = vsel %vm4256_vm9, %v13989_v29, %v10252_v63  ;;  %v10253_v63 = vunpack.i.h.bf16 %v10251_v49  ;;  %v10273_v49 = vunpack.i.h.bf16 %v13968_v9 }
 0x608   : > { %v10256_v8 = vpop.permute.xlu1 %10255 }
 0x609   : > { %v10257_v2 = vunpack.i.l.bf16 %v10256_v8 }
 0x60b   : > { %v4272_v1 = vsel %vm4265_vm5, %v4263_v48, %v10257_v2  ;;  %v10258_v48 = vunpack.i.h.bf16 %v10256_v8 }
 0x60c   : > { %v13978_v24 = vpop.permute.xlu1 %3935 }
 0x60d   : > { %v4246_v2 = vsel %vm4238_vm12, %v13978_v24, %v13916_v38 }
 0x610   : > { %v10266_v59 = vpop.permute.xlu1 %10265 }
 0x611   : > { %v10267_v51 = vunpack.i.l.bf16 %v10266_v59 }
 0x613   : > { %v4281_v19 = vsel %vm4274_vm3, %v4272_v1, %v10267_v51 }
 0x614   : > { %v3739_v61 = vpop.permute.xlu1 %3738  ;;  %v4290_v15 = vsel %vm4283_vm2, %v4281_v19, %v10272_v62 }
 0x615   : > { %v4192_v13 = vsel %vm16924_vm13, %v16899_v46, %v3739_v61  ;;  %5027 = vmatprep.mubr.f32.mxu0 %v4290_v15 }
 0x616   : > { %v4201_v30 = vsel %vm16925_vm0, %v4192_v13, %v3787_v35  ;;  %5028 = vmatmul.mubr.f32.gmra.mrb[84].mxu0 %v4236_v31  ;;  %v10268_v35 = vunpack.i.h.bf16 %v10266_v59  ;;  %v16927_v13 = vld [vmem:[#allocation56_spill] sm:$0xff] }
 0x617   : > { %v14008_v10 = vsel %vm16926_vm10, %v4201_v30, %v3835_v33 }
 0x618   : > { %v3990_v45 = vpop.permute.xlu1 %3989  ;;  %v4219_v44 = vsel %vm4211_vm15, %v14008_v10, %v10263_v6 }
 0x619   : > { %v14016_v51 = vsel %vm4247_vm14, %v4246_v2, %v3990_v45  ;;  %v4228_v38 = vsel %vm4220_vm7, %v4219_v44, %v14018_v17 }
 0x61a   : > { %v4264_v33 = vsel %vm4256_vm9, %v14016_v51, %v10253_v63  ;;  %v4237_v59 = vsel %vm4229_vm8, %v4228_v38, %v13978_v24  ;;  %vm16929_vm9 = vmmov %vm16925_vm0  ;;  %vm4292_vm0 = vcmask 31744  }
 0x61b   : > { %v4273_v1 = vsel %vm4265_vm5, %v4264_v33, %v10258_v48  ;;  %vm16928_vm5 = vmmov %vm16924_vm13  ;;  %v4575_v33 = vpop.permute.xlu0 %4574 }
 0x61c   : > { %v4364_v55 = vpop.permute.xlu1 %4363  ;;  %v4282_v19 = vsel %vm4274_vm3, %v4273_v1, %v10268_v35  ;;  %v4605_v31 = vsel %vm16928_vm5, %v16927_v13, %v13928_v53  ;;  %vm16931_vm3 = vmmov %vm16928_vm5  ;;  %vm16509_vm5 = vcmask 359424  }
 0x61d   : > { %v4291_v8 = vsel %vm4283_vm2, %v4282_v19, %v10273_v49  ;;  %v4616_v30 = vsel %vm16929_vm9, %v4605_v31, %v4364_v55  ;;  %vm16930_vm2 = vmmov %vm16926_vm10  ;;  %vm4301_vm10 = vcmask 195584   ;;  %vm16510_vm9 = vcmask 523264  }
 0x61e   : > { %5032 = vmatprep.mubr.f32.mxu0 %v4291_v8  ;;  %v4753_v8 = vrot.slane %v13937_v20, 1  ;;  %vm16933_vm13 = vmmov %vm16930_vm2 }
 0x61f   : > { %5033 = vmatmul.mubr.f32.gmra.mrb[86].mxu0 %v4237_v59  ;;  %v10276_v59 = vpop.permute.xlu0 %10275 }
 0x620   : > { %v4400_v61 = vpop.permute.xlu1 %4399 }
 0x621   : > { %v4627_v2 = vsel %vm16930_vm2, %v4616_v30, %v4400_v61  ;;  %vm16508_vm2 = vcmask 949248  }
 0x623   : > { %v10281_v31 = vpop.permute.xlu0 %10280 }
 0x624   : > { %v4442_v15 = vpop.permute.xlu1 %4441 }
 0x625   : > { %v4640_v6 = vsel %vm4211_vm15, %v13958_v40, %v4442_v15  ;;  %v4641_v45 = vsel %vm4211_vm15, %v4627_v2, %v4442_v15 }
 0x626   : > { %v4656_v63 = vsel %vm4220_vm7, %v4640_v6, %v13798_v4 }
 0x627   : > { %v4672_v44 = vsel %vm4229_vm8, %v4656_v63, %v13911_v56 }
 0x628   : > { %v4467_v48 = vpop.permute.xlu1 %4466  ;;  %v4750_v1 = vrot.slane %v4672_v44, 1 }
 0x629   : > { %v4657_v35 = vsel %vm4220_vm7, %v4641_v45, %v4467_v48  ;;  %v4505_v45 = vpop.permute.xlu0 %4504 }
 0x62a   : > { %v4673_v53 = vsel %vm4229_vm8, %v4657_v35, %v4503_v3 }
 0x62b   : > { %v4751_v40 = vrot.slane %v4673_v53, 1 }
 0x62c   : > { %v4539_v38 = vpop.permute.xlu1 %4538 }
 0x62d   : > { %v4686_v55 = vsel %vm4238_vm12, %v4503_v3, %v4539_v38  ;;  %v4752_v4 = vsel %vm978_vm6, %v4750_v1, %v4751_v40  ;;  %v4606_v3 = vsel %vm16931_vm3, %v13022_v50, %v13981_v42  ;;  %v10286_v40 = vpop.permute.xlu0 %10285  ;;  %v10282_v38 = vunpack.i.l.bf16 %v10281_v31 }
 0x62e   : > { %v4697_v19 = vsel %vm4247_vm14, %v4686_v55, %v4575_v33  ;;  %4794 = vrot.lane.b32.xlu1 %v4752_v4, %s16908_s26 }
 0x62f   : > { %v4754_v56 = vrot.slane %v4697_v19, 1 }
 0x630   : > { %v4366_v61 = vpop.permute.xlu1 %4365 }
 0x631   : > { %v4755_v15 = vsel %vm978_vm6, %v4753_v8, %v4754_v56  ;;  %v4617_v63 = vsel %vm16932_vm11, %v4606_v3, %v4366_v61  ;;  %v4759_v8 = vrot.slane %v13989_v29, 1  ;;  %v16934_v61 = vld [vmem:[#allocation15_spill] sm:$0xff]  ;;  %v10283_v3 = vunpack.i.h.bf16 %v10281_v31 }
 0x632   : > { %4796 = vrot.lane.b32.xlu0 %v4755_v15, %s16908_s26  ;;  %v10278_v15 = vunpack.i.h.bf16 %v10276_v59  ;;  %v10288_v29 = vunpack.i.h.bf16 %v10286_v40 }
 0x634   : > { %v4402_v13 = vpop.permute.xlu1 %4401 }
 0x635   : > { %v4628_v2 = vsel %vm16933_vm13, %v4617_v63, %v4402_v13 }
 0x638   : > { %v4444_v6 = vpop.permute.xlu1 %4443 }
 0x639   : > { %v4642_v30 = vsel %vm4211_vm15, %v13976_v47, %v4444_v6  ;;  %v4643_v44 = vsel %vm4211_vm15, %v4628_v2, %v4444_v6  ;;  %v4787_v6 = vpop.permute.xlu0 %4786 }
 0x63a   : > { %v4658_v20 = vsel %vm4220_vm7, %v4642_v30, %v13954_v23  ;;  %v10277_v23 = vunpack.i.l.bf16 %v10276_v59 }
 0x63b   : > { %v4674_v48 = vsel %vm4229_vm8, %v4658_v20, %v13962_v26  ;;  %v10287_v26 = vunpack.i.l.bf16 %v10286_v40  ;;  %v16941_v40 = vld [vmem:[#allocation29_spill] sm:$0xff] }
 0x63c   : > { %v4469_v35 = vpop.permute.xlu1 %4468  ;;  %v4756_v42 = vrot.slane %v4674_v48, 1  ;;  %v4293_v13 = vsel %vm4292_vm0, %v10197_v60, %v10277_v23  ;;  %v4294_v60 = vsel %vm4292_vm0, %v10198_v39, %v10278_v15  ;;  %v16936_v39 = vld [vmem:[#allocation58_spill] sm:$0xff]  ;;  %v16948_v15 = vld [vmem:[#allocation77_spill] sm:$0xff] }
 0x63d   : > { %v4659_v33 = vsel %vm4220_vm7, %v4643_v44, %v4469_v35  ;;  %v4302_v30 = vsel %vm4301_vm10, %v4293_v13, %v10282_v38  ;;  %v4791_v31 = vpop.permute.xlu0 %4790  ;;  %v4303_v48 = vsel %vm4301_vm10, %v4294_v60, %v10283_v3  ;;  %v16942_v23 = vld [vmem:[#allocation86_spill] sm:$0xff]  ;;  %v16943_v38 = vld [vmem:[#allocation32_spill] sm:$0xff] }
 0x63e   : > { %v4675_v50 = vsel %vm4229_vm8, %v4659_v33, %v4505_v45  ;;  %v4311_v2 = vsel %vm16509_vm5, %v4302_v30, %v10287_v26  ;;  %v4312_v33 = vsel %vm16509_vm5, %v4303_v48, %v10288_v29  ;;  %v16945_v26 = vld [vmem:[#allocation78_spill] sm:$0xff] }
 0x63f   : > { %v4757_v47 = vrot.slane %v4675_v50, 1  ;;  %v4835_v59 = vsel %vm16510_vm9, %v4311_v2, %v4787_v6  ;;  %v4836_v12 = vsel %vm16510_vm9, %v4312_v33, %v4791_v31  ;;  %v4433_v50 = vrot.slane %v16936_v39, 7 }
 0x640   : > { %v4541_v53 = vpop.permute.xlu1 %4540 }
 0x641   : > { %v4758_v1 = vsel %vm978_vm6, %v4756_v42, %v4757_v47  ;;  %v4687_v55 = vsel %vm4238_vm12, %v4505_v45, %v4541_v53  ;;  %v16937_v42 = vld [vmem:[#allocation33_spill] sm:$0xff]  ;;  %v16939_v47 = vld [vmem:[#allocation76_spill] sm:$0xff]  ;;  %v16940_v53 = vld [vmem:[#allocation111_spill] sm:$0xff]  ;;  %v10291_v2 = vpop.permute.xlu0 %10290 }
 0x642   : > { %4798 = vrot.lane.b32.xlu1 %v4758_v1, %s16908_s26  ;;  %v4434_v1 = vrot.slane %v16940_v53, 7 }
 0x644   : > { %v4577_v4 = vpop.permute.xlu1 %4576 }
 0x645   : > { %v4698_v19 = vsel %vm4247_vm14, %v4687_v55, %v4577_v4  ;;  %v16944_v55 = vld [vmem:[#allocation28_spill] sm:$0xff]  ;;  %v14131_v4 = vrot.slane %v16941_v40, 3 }
 0x646   : > { %v4760_v56 = vrot.slane %v4698_v19, 1  ;;  %4331 = vrot.lane.b32.xlu1 %v16934_v61, %s16883_s29  ;;  %v16947_v61 = vld [vmem:[#allocation75_spill] sm:$0xff] }
 0x647   : > { %v10304_v13 = vpack.i.bf16 %v16948_v15, %v16947_v61  ;;  %v8711_v15 = vld [vmem:[%s16248_s5 + $0x200] sm:$0xff] }
 0x648   : > { %v4789_v63 = vpop.permute.xlu1 %4788  ;;  %v4761_v20 = vsel %vm978_vm6, %v4759_v8, %v4760_v56  ;;  %v16946_v8 = vld [vmem:[#allocation14_spill] sm:$0xff] }
 0x649   : > { %v4819_v45 = vsel %vm16510_vm9, %v4787_v6, %v4789_v63  ;;  %4800 = vrot.lane.b32.xlu0 %v4761_v20, %s16908_s26  ;;  %v10314_v20 = vpack.i.bf16 %v16936_v39, %v16899_v46 }
 0x64a   : > { %4403 = vrot.lane.b32.xlu1 %v16907_v22, %s16867_s14  ;;  %8655 = vmatprep.mubr.msk.f32.mxu0 %vm16508_vm2, %v4819_v45  ;;  %v16935_v22 = vld [vmem:[#allocation90_spill] sm:$0xff] }
 0x64b   : > { %5103 = vmatmul.mubr.f32.vlgmr.msra.gmra.mrb[88].mxu0 %v4835_v59  ;;  %v10292_v59 = vunpack.i.l.bf16 %v10291_v2 }
 0x64c   : > { %v4793_v44 = vpop.permute.xlu1 %4792 }
 0x64d   : > { %v4820_v35 = vsel %vm16510_vm9, %v4791_v31, %v4793_v44  ;;  %4367 = vrot.lane.b32.xlu0 %v16905_v58, %s16869_s0  ;;  %v16938_v58 = vld [vmem:[#allocation27_spill] sm:$0xff]  ;;  %v10301_v31 = vpop.permute.xlu0 %10300  ;;  %v4295_v44 = vsel %vm4292_vm0, %v10222_v34, %v10292_v59 }
 0x64e   : > { %4333 = vrot.lane.b32.xlu1 %v16935_v22, %s16883_s29  ;;  %8656 = vmatprep.mubr.msk.f32.mxu0 %vm16508_vm2, %v4820_v35  ;;  %v10302_v35 = vunpack.i.l.bf16 %v10301_v31  ;;  %v8708_v34 = vld [vmem:[%s16248_s5 + $0x1e8] sm:$0xff] }
 0x64f   : > { %5108 = vmatmul.mubr.f32.gmra.mrb[90].mxu0 %v4836_v12 }
 0x650   : > { %v10296_v45 = vpop.permute.xlu1 %10295 }
 0x651   : > { %4445 = vrot.lane.b32.xlu0 %v4433_v50, %s16876_s25  ;;  %v10297_v60 = vunpack.i.l.bf16 %v10296_v45 }
 0x652   : > { %4470 = vrot.lane.b32.xlu1 %v13277_v0, %s16871_s17 }
 0x653   : > { %v4304_v48 = vsel %vm4301_vm10, %v4295_v44, %v10297_v60  ;;  %v10298_v60 = vunpack.i.h.bf16 %v10296_v45 }
 0x654   : > { %v4313_v12 = vsel %vm16509_vm5, %v4304_v48, %v10302_v35  ;;  %v8719_v48 = vld [vmem:[%s16248_s5 + $0x240] sm:$0xff] }
 0x655   : > { %4335 = vrot.lane.b32.xlu0 %v16937_v42, %s16883_s29  ;;  %v8723_v35 = vld [vmem:[%s16248_s5 + $0x260] sm:$0xff] }
 0x656   : > { %4542 = vrot.lane.b32.xlu1 %v16938_v58, %s16880_s28 }
 0x659   : > { %4506 = vrot.lane.b32.xlu0 %v16937_v42, %s16888_s21  ;;  %v8704_v42 = vld [vmem:[%s16248_s5 + $0x1c8] sm:$0xff] }
 0x65a   : > { %4371 = vrot.lane.b32.xlu1 %v16938_v58, %s16869_s0  ;;  %v8703_v58 = vld [vmem:[%s16248_s5 + $0x1c0] sm:$0xff] }
 0x65d   : > { %4369 = vrot.lane.b32.xlu0 %v16939_v47, %s16869_s0  ;;  %v9602_v47 = vpack.c.bf16 %v8708_v34, %v8704_v42  ;;  %v8728_v34 = vld [vmem:[%s16248_s5 + $0x288] sm:$0x3] }
 0x65e   : > { %4405 = vrot.lane.b32.xlu1 %v13571_v32, %s16867_s14 }
 0x65f   : > { %9603 = vmatprep.subr.bf16.mxu1 %v9602_v47 }
 0x661   : > { %4578 = vrot.lane.b32.xlu0 %v13535_v14, %s16868_s16 }
 0x662   : > { %4447 = vrot.lane.b32.xlu1 %v4434_v1, %s16876_s25  ;;  %v8707_v1 = vld [vmem:[%s16248_s5 + $0x1e0] sm:$0xff] }
 0x665   : > { %4407 = vrot.lane.b32.xlu0 %v13535_v14, %s16867_s14  ;;  %v4106_v14 = vrot.slane %v16940_v53, 3 }
 0x666   : > { %4474 = vrot.lane.b32.xlu1 %v16941_v40, %s16871_s17 }
 0x667   : > { %v14140_v19 = vsel %vm928_vm4, %v4106_v14, %v14131_v4  ;;  %v8712_v14 = vld [vmem:[%s16248_s5 + $0x208] sm:$0xff] }
 0x669   : > { %4472 = vrot.lane.b32.xlu0 %v16940_v53, %s16871_s17 }
 0x66a   : > { %4510 = vrot.lane.b32.xlu1 %v16942_v23, %s16888_s21 }
 0x66d   : > { %4508 = vrot.lane.b32.xlu0 %v16943_v38, %s16888_s21 }
 0x66e   : > { %4546 = vrot.lane.b32.xlu1 %v16944_v55, %s16880_s28 }
 0x671   : > { %4544 = vrot.lane.b32.xlu0 %v16945_v26, %s16880_s28 }
 0x672   : > { %4582 = vrot.lane.b32.xlu1 %v14131_v4, %s16868_s16 }
 0x675   : > { %4580 = vrot.lane.b32.xlu0 %v14140_v19, %s16868_s16 }
 0x676   : > { %10310 = vrot.lane.b32.xlu1 %v16946_v8, %s16911_s24  ;;  %v9292_v56 = vpop.f32.mrb[72].mxu0  ;;  %v8716_v8 = vld [vmem:[%s16248_s5 + $0x228] sm:$0xff] }
 0x677   : > { %v9293_v6 = vpop.f32.mrb[73].mxu0  ;;  %v9606_v61 = vpack.c.bf16 %v8716_v8, %v8712_v14 }
 0x678   : > { %v14148_v3 = vadd.f32 %v9293_v6, %v9292_v56  ;;  %v9604_v56 = vpack.c.bf16 %v8707_v1, %v8703_v58  ;;  %v8720_v6 = vld [vmem:[%s16248_s5 + $0x248] sm:$0xff] }
 0x679   : > { %10305 = vrot.lane.b32.xlu0 %v10304_v13, %s16501_s1  ;;  %v8715_v13 = vld [vmem:[%s16248_s5 + $0x220] sm:$0xff] }
 0x67a   : > { %v9295_v30 = vpop.f32.mrb[74].mxu0  ;;  %9605 = vmatpush1.bf16.msra.mxu1 %v9604_v56  ;;  %v9608_v59 = vpack.c.bf16 %v8715_v13, %v8711_v15 }
 0x67b   : > { %v9296_v63 = vpop.f32.mrb[75].mxu0  ;;  %9607 = vmatprep.subr.bf16.mxu1 %v9606_v61  ;;  %v8727_v61 = vld [vmem:[%s16248_s5 + $0x280] sm:$0x3] }
 0x67c   : > { %v14153_v29 = vadd.f32 %v9296_v63, %v9295_v30  ;;  %v8724_v30 = vld [vmem:[%s16248_s5 + $0x268] sm:$0xff]  ;;  %v10293_v63 = vunpack.i.h.bf16 %v10291_v2 }
 0x67d   : > { %10315 = vrot.lane.b32.xlu0 %v10314_v20, %s16900_s27  ;;  %v9610_v44 = vpack.c.bf16 %v8724_v30, %v8720_v6 }
 0x67e   : > { %9609 = vmatpush1.bf16.msra.mxu1 %v9608_v59 }
 0x67f   : > { %9611 = vmatprep.subr.bf16.mxu1 %v9610_v44 }
 0x6a0   : > { %v4795_v33 = vpop.permute.xlu1 %4794 }
 0x6a1   : > { %v4837_v50 = vsel %vm16510_vm9, %v4313_v12, %v4795_v33 }
 0x6a4   : > { %v4797_v22 = vpop.permute.xlu0 %4796 }
 0x6a5   : > { %v4821_v46 = vsel %vm16510_vm9, %v4795_v33, %v4797_v22  ;;  %v4296_v33 = vsel %vm4292_vm0, %v10223_v57, %v10293_v63  ;;  %v8710_v57 = vld [vmem:[%s16248_s5 + $0x1f8] sm:$0xff] }
 0x6a6   : > { %8657 = vmatprep.mubr.msk.f32.mxu0 %vm16508_vm2, %v4821_v46  ;;  %v9612_v46 = vpack.c.bf16 %v8723_v35, %v8719_v48  ;;  %v4305_v45 = vsel %vm4301_vm10, %v4296_v33, %v10298_v60  ;;  %v9614_v15 = vpack.c.bf16 %v8710_v57, %v8706_v18 }
 0x6a7   : > { %5113 = vmatmul.mubr.f32.gmra.mrb[92].mxu0 %v4837_v50  ;;  %v10303_v50 = vunpack.i.h.bf16 %v10301_v31 }
 0x6a8   : > { %9613 = vmatpush1.bf16.msra.mxu1 %v9612_v46 }
 0x6a9   : > { %v4314_v31 = vsel %vm16509_vm5, %v4305_v45, %v10303_v50  ;;  %8731 = vmatprep.subr.msk.mxu1 %vm853_vm1, %v8728_v34  ;;  %vm16950_vm5 = vmmov %vm16932_vm11 }
 0x6ac   : > { %8732 = vmatpush1.msk.msra.mxu1 %vm853_vm1, %v8727_v61 }
 0x6ad   : > { %9615 = vmatprep.subr.bf16.mxu1 %v9614_v15 }
 0x6b4   : > { %v4799_v20 = vpop.permute.xlu1 %4798 }
 0x6b5   : > { %v4838_v56 = vsel %vm16510_vm9, %v4314_v31, %v4799_v20 }
 0x6b8   : > { %v4332_v22 = vpop.permute.xlu1 %4331 }
 0x6b9   : > { %v9298_v2 = vpop.f32.mrb[76].mxu0  ;;  %v4607_v63 = vsel %vm16931_vm3, %v16901_v37, %v4332_v22 }
 0x6ba   : > { %v9299_v12 = vpop.f32.mrb[77].mxu0 }
 0x6bb   : > { %v14204_v42 = vadd.f32 %v9299_v12, %v9298_v2  ;;  %v4801_v58 = vpop.permute.xlu0 %4800 }
 0x6bc   : > { %v4822_v47 = vsel %vm16510_vm9, %v4799_v20, %v4801_v58  ;;  %v4404_v1 = vpop.permute.xlu1 %4403 }
 0x6bd   : > { %v9301_v14 = vpop.f32.mrb[78].mxu0  ;;  %8658 = vmatprep.mubr.msk.f32.mxu0 %vm16508_vm2, %v4822_v47  ;;  %vm16949_vm2 = vmmov %vm16931_vm3 }
 0x6be   : > { %v9302_v8 = vpop.f32.mrb[79].mxu0  ;;  %5118 = vmatmul.mubr.f32.gmra.mrb[94].mxu0 %v4838_v56 }
 0x6bf   : > { %v14223_v13 = vadd.f32 %v9302_v8, %v9301_v14  ;;  %v4368_v6 = vpop.permute.xlu0 %4367 }
 0x6c0   : > { %v4334_v30 = vpop.permute.xlu1 %4333  ;;  %v4618_v20 = vsel %vm16932_vm11, %v4607_v63, %v4368_v6  ;;  %v4765_v6 = vrot.slane %v14016_v51, 1 }
 0x6c1   : > { %v4629_v33 = vsel %vm16933_vm13, %v4618_v20, %v4404_v1 }
 0x6c3   : > { %v4446_v59 = vpop.permute.xlu0 %4445 }
 0x6c4   : > { %v4644_v60 = vsel %vm4211_vm15, %v14008_v10, %v4446_v59  ;;  %v4471_v44 = vpop.permute.xlu1 %4470  ;;  %v4645_v45 = vsel %vm4211_vm15, %v4629_v33, %v4446_v59  ;;  %v4608_v33 = vsel %vm16949_vm2, %v16936_v39, %v4334_v30  ;;  %v16952_v30 = vld [vmem:[#allocation118_spill] sm:$0xff]  ;;  %vm16955_vm2 = vcmask 1042432  }
 0x6c5   : > { %v9304_v48 = vpop.f32.mrb[80].mxu0  ;;  %v4660_v2 = vsel %vm4220_vm7, %v4644_v60, %v14018_v17  ;;  %v4661_v50 = vsel %vm4220_vm7, %v4645_v45, %v4471_v44 }
 0x6c6   : > { %v9305_v35 = vpop.f32.mrb[81].mxu0  ;;  %v4676_v22 = vsel %vm4229_vm8, %v4660_v2, %v13978_v24 }
 0x6c7   : > { %v14234_v46 = vadd.f32 %v9305_v35, %v9304_v48  ;;  %v4336_v12 = vpop.permute.xlu0 %4335  ;;  %v4762_v57 = vrot.slane %v4676_v22, 1 }
 0x6c8   : > { %v4543_v37 = vpop.permute.xlu1 %4542  ;;  %v4609_v59 = vsel %vm16931_vm3, %v13277_v0, %v4336_v12  ;;  %vm16951_vm3 = vmmov %vm16933_vm13 }
 0x6cb   : > { %v4507_v10 = vpop.permute.xlu0 %4506 }
 0x6cc   : > { %v4677_v34 = vsel %vm4229_vm8, %v4661_v50, %v4507_v10  ;;  %v4372_v18 = vpop.permute.xlu1 %4371  ;;  %v4688_v24 = vsel %vm4238_vm12, %v4507_v10, %v4543_v37 }
 0x6cd   : > { %v4763_v58 = vrot.slane %v4677_v34, 1  ;;  %v9307_v47 = vpop.f32.mrb[82].mxu0  ;;  %v4620_v20 = vsel %vm16932_vm11, %v4609_v59, %v4372_v18  ;;  %vm16956_vm11 = vcmask 1045504  }
 0x6ce   : > { %v9308_v1 = vpop.f32.mrb[83].mxu0 }
 0x6cf   : > { %v14241_v17 = vadd.f32 %v9308_v1, %v9307_v47  ;;  %v4370_v14 = vpop.permute.xlu0 %4369  ;;  %v4764_v31 = vsel %vm978_vm6, %v4762_v57, %v4763_v58  ;;  %v3262_v57 = vrot.slane %v16952_v30, 1 }
 0x6d0   : > { %4802 = vrot.lane.b32.xlu1 %v4764_v31, %s16908_s26  ;;  %v4406_v8 = vpop.permute.xlu1 %4405  ;;  %v4619_v2 = vsel %vm16950_vm5, %v4608_v33, %v4370_v14  ;;  %vm16953_vm5 = vcmask 1040384  }
 0x6d1   : > { %v4630_v0 = vsel %vm16951_vm3, %v4619_v2, %v4406_v8  ;;  %v3286_v8 = vmax.f32 %v16952_v30, %v3262_v57  ;;  %v4436_v57 = vrot.slane %v13874_v5, 7  ;;  %vm16960_vm3 = vmmov %vm16953_vm5 }
 0x6d3   : > { %v4579_v56 = vpop.permute.xlu0 %4578  ;;  %v3526_v33 = vrot.slane %v3286_v8, 2 }
 0x6d4   : > { %v4699_v61 = vsel %vm4247_vm14, %v4688_v24, %v4579_v56  ;;  %v4448_v15 = vpop.permute.xlu1 %4447 }
 0x6d5   : > { %v4766_v63 = vrot.slane %v4699_v61, 1  ;;  %v4646_v22 = vsel %vm4211_vm15, %v4630_v0, %v4448_v15 }
 0x6d7   : > { %v4408_v60 = vpop.permute.xlu0 %4407  ;;  %v4767_v44 = vsel %vm978_vm6, %v4765_v6, %v4766_v63  ;;  %v3502_v63 = vrot.slane %v3286_v8, 1 }
 0x6d8   : > { %v4631_v48 = vsel %vm16933_vm13, %v4620_v20, %v4408_v60  ;;  %4804 = vrot.lane.b32.xlu0 %v4767_v44, %s16908_s26  ;;  %v4475_v35 = vpop.permute.xlu1 %4474  ;;  %vm16958_vm13 = vcmask 1043456  }
 0x6d9   : > { %v4647_v51 = vsel %vm4211_vm15, %v4631_v48, %v4448_v15  ;;  %v3658_v2 = vsel %vm16953_vm5, %v3286_v8, %v3502_v63  ;;  %v16959_v63 = vld [vmem:[#allocation31_spill] sm:$0xff]  ;;  %vm16961_vm5 = vmmov %vm16955_vm2 }
 0x6da   : > { %v4663_v12 = vsel %vm4220_vm7, %v4647_v51, %v4475_v35  ;;  %v3550_v51 = vrot.slane %v3286_v8, 3 }
 0x6db   : > { %v4473_v45 = vpop.permute.xlu0 %4472 }
 0x6dc   : > { %v4511_v37 = vpop.permute.xlu1 %4510  ;;  %v4662_v10 = vsel %vm4220_vm7, %v4646_v22, %v4473_v45 }
 0x6dd   : > { %v4679_v50 = vsel %vm4229_vm8, %v4663_v12, %v4511_v37 }
 0x6de   : > { %v4769_v58 = vrot.slane %v4679_v50, 1 }
 0x6df   : > { %v4509_v34 = vpop.permute.xlu0 %4508 }
 0x6e0   : > { %v4678_v18 = vsel %vm4229_vm8, %v4662_v10, %v4509_v34  ;;  %v4547_v39 = vpop.permute.xlu1 %4546 }
 0x6e1   : > { %v4768_v47 = vrot.slane %v4678_v18, 1  ;;  %v4690_v24 = vsel %vm4238_vm12, %v4511_v37, %v4547_v39  ;;  %v16954_v37 = vld [vmem:[#allocation23_spill] sm:$0xff] }
 0x6e2   : > { %v4435_v0 = vrot.slane %v16954_v37, 7  ;;  %v4392_v39 = vrot.slane %v16954_v37, 3 }
 0x6e3   : > { %v4545_v1 = vpop.permute.xlu0 %4544  ;;  %v4770_v14 = vsel %vm978_vm6, %v4768_v47, %v4769_v58  ;;  %v14331_v58 = vld [vmem:[%s16247_s4] ss:$0 sm:$0xff] }
 0x6e4   : > { %4806 = vrot.lane.b32.xlu1 %v4770_v14, %s16908_s26  ;;  %v4583_v31 = vpop.permute.xlu1 %4582  ;;  %v4689_v61 = vsel %vm4238_vm12, %v4509_v34, %v4545_v1  ;;  %v4356_v34 = vrot.slane %v16954_v37, 2  ;;  %v5000_v47 = vadd.f32 %v14148_v3, %v14331_v58 }
 0x6e5   : > { %v4701_v56 = vsel %vm4247_vm14, %v4690_v24, %v4583_v31 }
 0x6e6   : > { %v4772_v59 = vrot.slane %v4701_v56, 1  ;;  %v4133_v56 = vrot.slane %v16940_v53, 4 }
 0x6e7   : > { %v4581_v15 = vpop.permute.xlu0 %4580 }
 0x6e8   : > { %v4700_v6 = vsel %vm4247_vm14, %v4689_v61, %v4581_v15  ;;  %4337 = vrot.lane.b32.xlu1 %v16943_v38, %s16883_s29  ;;  %v3670_v38 = vsel %vm853_vm1, %v3658_v2, %v3526_v33  ;;  %v4134_v61 = vrot.slane %v16941_v40, 4  ;;  %v8718_v2 = vld [vmem:[%s16248_s5 + $0x238] sm:$0xff] }
 0x6e9   : > { %v4771_v20 = vrot.slane %v4700_v6, 1  ;;  %v9310_v60 = vpop.f32.mrb[84].mxu0  ;;  %v14288_v22 = vsel %vm16955_vm2, %v3670_v38, %v3550_v51  ;;  %vm16962_vm2 = vcmask 359424  }
 0x6ea   : > { %v9311_v44 = vpop.f32.mrb[85].mxu0  ;;  %v4321_v50 = vrot.slane %v14288_v22, 1  ;;  %v4393_v18 = vrot.slane %v14288_v22, 3 }
 0x6eb   : > { %v14274_v48 = vadd.f32 %v9311_v44, %v9310_v60  ;;  %v4773_v35 = vsel %vm978_vm6, %v4771_v20, %v4772_v59  ;;  %v8705_v44 = vld [vmem:[%s16248_s5 + $0x1d0] sm:$0xff] }
 0x6ec   : > { %4373 = vrot.lane.b32.xlu1 %v16945_v26, %s16869_s0  ;;  %4808 = vrot.lane.b32.xlu0 %v4773_v35, %s16908_s26  ;;  %v4394_v30 = vsel %vm928_vm4, %v4392_v39, %v4393_v18  ;;  %vm5151_vm4 = vcmask 408576   ;;  %v8709_v35 = vld [vmem:[%s16248_s5 + $0x1f0] sm:$0xff] }
 0x6ed   : > { %v8725_v39 = vld [vmem:[%s16248_s5 + $0x270] sm:$0xff] }
 0x6f0   : > { %4409 = vrot.lane.b32.xlu1 %v14140_v19, %s16867_s14  ;;  %4339 = vrot.lane.b32.xlu0 %v16942_v23, %s16883_s29  ;;  %v4320_v23 = vrot.slane %v16954_v37, 1 }
 0x6f2   : > { %v9313_v45 = vpop.f32.mrb[86].mxu0  ;;  %v4322_v10 = vsel %vm978_vm6, %v4320_v23, %v4321_v50  ;;  %v8717_v23 = vld [vmem:[%s16248_s5 + $0x230] sm:$0xff] }
 0x6f3   : > { %v9314_v12 = vpop.f32.mrb[87].mxu0 }
 0x6f4   : > { %v14290_v26 = vadd.f32 %v9314_v12, %v9313_v45  ;;  %4449 = vrot.lane.b32.xlu1 %v4435_v0, %s16876_s25  ;;  %4375 = vrot.lane.b32.xlu0 %v16944_v55, %s16869_s0  ;;  %v4357_v55 = vrot.slane %v14288_v22, 2  ;;  %v9616_v45 = vpack.c.bf16 %v8709_v35, %v8705_v44 }
 0x6f8   : > { %4343 = vrot.lane.b32.xlu1 %v4321_v50, %s16883_s29  ;;  %4411 = vrot.lane.b32.xlu0 %v14131_v4, %s16867_s14  ;;  %v4358_v4 = vsel %vm16956_vm11, %v4356_v34, %v4357_v55  ;;  %vm16963_vm11 = vcmask 949248  }
 0x6fc   : > { %4478 = vrot.lane.b32.xlu1 %v14288_v22, %s16871_s17  ;;  %4341 = vrot.lane.b32.xlu0 %v4322_v10, %s16883_s29  ;;  %s16200_s29 = scalar_lea.hbm %s16252_s9, %s9181_s11 }
 0x700   : > { %4514 = vrot.lane.b32.xlu1 %v4321_v50, %s16888_s21  ;;  %4476 = vrot.lane.b32.xlu0 %v16954_v37, %s16871_s17  ;;  %v8713_v50 = vld [vmem:[%s16248_s5 + $0x210] sm:$0xff] }
 0x701   : > { %v9620_v34 = vpack.c.bf16 %v8717_v23, %v8713_v50  ;;  %v8743_v50 = vld [vmem:[%s16248_s5 + $0x2d0] sm:$0xff] }
 0x704   : > { %4550 = vrot.lane.b32.xlu1 %v4357_v55, %s16880_s28  ;;  %4512 = vrot.lane.b32.xlu0 %v4322_v10, %s16888_s21  ;;  %v8722_v10 = vld [vmem:[%s16248_s5 + $0x258] sm:$0xff] }
 0x708   : > { %4379 = vrot.lane.b32.xlu1 %v4357_v55, %s16869_s0  ;;  %4548 = vrot.lane.b32.xlu0 %v4358_v4, %s16880_s28  ;;  %v8726_v55 = vld [vmem:[%s16248_s5 + $0x278] sm:$0xff] }
 0x70c   : > { %4586 = vrot.lane.b32.xlu1 %v4393_v18, %s16868_s16  ;;  %4377 = vrot.lane.b32.xlu0 %v4358_v4, %s16869_s0  ;;  %v9622_v4 = vpack.c.bf16 %v8726_v55, %v8722_v10  ;;  %v8748_v10 = vld [vmem:[%s16248_s5 + $0x2f8] sm:$0xff]  ;;  %s8507_s0 = scalar_lea.sflag [#allocation3], %s321_s3 }
 0x70d   : > { %v8752_v55 = vld [vmem:[%s16248_s5 + $0x318] sm:$0xff] }
 0x710   : > { %4415 = vrot.lane.b32.xlu1 %v4393_v18, %s16867_s14  ;;  %4584 = vrot.lane.b32.xlu0 %v4394_v30, %s16868_s16  ;;  %v8721_v18 = vld [vmem:[%s16248_s5 + $0x250] sm:$0xff] }
 0x714   : > { %4480 = vrot.lane.b32.xlu1 %v13874_v5, %s16871_s17  ;;  %4413 = vrot.lane.b32.xlu0 %v4394_v30, %s16867_s14  ;;  %s16957_s14 = smov 4   ;;  %v9624_v30 = vpack.c.bf16 %v8725_v39, %v8721_v18 }
 0x718   : > { %4516 = vrot.lane.b32.xlu1 %v13893_v52, %s16888_s21  ;;  %4451 = vrot.lane.b32.xlu0 %v4436_v57, %s16876_s25  ;;  %v5005_v52 = vadd.f32 %v14153_v29, %v14331_v58  ;;  %v4135_v29 = vsel %vm16958_vm13, %v4133_v56, %v4134_v61  ;;  %v8730_v57 = vld [vmem:[%s16248_s5 + $0x298] sm:$0x3]  ;;  %v8745_v61 = vld [vmem:[%s16248_s5 + $0x2e0] sm:$0xff]  ;;  %vm16964_vm13 = vmmov %vm16962_vm2 }
 0x71c   : > { %4552 = vrot.lane.b32.xlu1 %v13898_v16, %s16880_s28  ;;  %4482 = vrot.lane.b32.xlu0 %v13862_v36, %s16871_s17  ;;  %v10319_v16 = vpack.i.bf16 %v14140_v19, %v13571_v32  ;;  %s10349_s17 = sshll.u32 %s10433_s13, 4  ;;  %s10350_s17 = int_to_ptr.vmem [resolvable:$false] %s10349_s17 }
 0x71d   : > { %s10351_s25 = scalar_lea.vmem %s10350_s17, 32  ;;  %p10352_p0 = scmp.lt.s32.totalorder %s16202_s30, %s10350_s17 }
 0x71e   : > { %v5104_v5 = vpop.f32.mrb[88].mxu0 }
 0x71f   : > { %v5105_v1 = vadd.f32 %v5104_v5, %v5000_v47  ;;  %v5106_v14 = vpop.f32.mrb[89].mxu0  ;;  %v8738_v47 = vld [vmem:[%s16248_s5 + $0x2a8] sm:$0xff] }
 0x720   : > { %4588 = vrot.lane.b32.xlu1 %v13908_v54, %s16868_s16  ;;  %4518 = vrot.lane.b32.xlu0 %v4496_v25, %s16888_s21  ;;  %v10329_v54 = vpack.i.bf16 %v16954_v37, %v16940_v53  ;;  %v8742_v5 = vld [vmem:[%s16248_s5 + $0x2c8] sm:$0xff]  ;;  %v8741_v14 = vld [vmem:[%s16248_s5 + $0x2c0] sm:$0xff] }
 0x721   : > { %v5143_v8 = vmax.f32 %v5105_v1, 0.0  ;;  %v8737_v1 = vld [vmem:[%s16248_s5 + $0x2a0] sm:$0xff] }
 0x722   : > { %v5109_v31 = vpop.f32.mrb[90].mxu0 }
 0x723   : > { %v5110_v24 = vadd.f32 %v5109_v31, %v5005_v52  ;;  %v5111_v3 = vpop.f32.mrb[91].mxu0  ;;  %v5152_v32 = vsel %vm5151_vm4, %v5143_v8, -inf  ;;  %v14418_v52 = vpop.permute.xlu0 %10305  ;;  %v8750_v31 = vld [vmem:[%s16248_s5 + $0x308] sm:$0xff]  ;;  %v8729_v8 = vld [vmem:[%s16248_s5 + $0x290] sm:$0x3] }
 0x724   : > { %10320 = vrot.lane.b32.xlu1 %v10319_v16, %s16957_s14  ;;  %4554 = vrot.lane.b32.xlu0 %v4532_v7, %s16880_s28  ;;  %v10324_v7 = vpack.i.bf16 %v4135_v29, %v16959_v63  ;;  %v8746_v16 = vld [vmem:[%s16248_s5 + $0x2e8] sm:$0xff]  ;;  %v9628_v3 = vpack.c.bf16 %v8741_v14, %v8737_v1  ;;  %v8760_v1 = vld [vmem:[%s16248_s5 + $0x358] sm:$0xff]  ;;  %s10345_s14 = scalar_lea.vmem %s16202_s30, 16 }
 0x725   : > { %v5144_v25 = vmax.f32 %v5110_v24, 0.0  ;;  %v9626_v24 = vpack.c.bf16 %v8742_v5, %v8738_v47  ;;  %v9630_v56 = vpack.c.bf16 %v8750_v31, %v8746_v16  ;;  %v8751_v47 = vld [vmem:[%s16248_s5 + $0x310] sm:$0xff]  ;;  %v8756_v5 = vld [vmem:[%s16248_s5 + $0x338] sm:$0xff]  ;;  %p10346_p11 = scmp.ne.s32.totalorder %s16202_s30, %s10345_s14  ;;  %p10353_p1 = scmp.lt.s32.totalorder %s10351_s25, %s10345_s14 }
 0x726   : > { %v9646_v16 = vpack.c.bf16 %v8760_v1, %v8756_v5  ;;  %v8755_v31 = vld [vmem:[%s16248_s5 + $0x330] sm:$0xff] }
 0x727   : > { %v5153_v19 = vsel %vm5151_vm4, %v5144_v25, -inf  ;;  %v8749_v25 = vld [vmem:[%s16248_s5 + $0x300] sm:$0xff]  ;;  %v14445_v29 = vpop.permute.xlu0 %10315  ;;  %p10347_p12 = pnand %p10346_p11, %p10522_p5  ;;  %p10354_p2 = por %p10353_p1, %p10352_p0 }
 0x728   : > { %v5154_v15 = vmax.f32 %v5152_v32, %v5153_v19  ;;  %10330 = vrot.lane.b32.xlu1 %v10329_v54, %s16900_s27  ;;  %4590 = vrot.lane.b32.xlu0 %v4568_v43, %s16868_s16  ;;  %v8714_v43 = vld [vmem:[%s16248_s5 + $0x218] sm:$0xff]  ;;  %v8754_v54 = vld [vmem:[%s16248_s5 + $0x328] sm:$0xff]  ;;  %v10307_v19 = vunpack.i.l.bf16 %v14418_v52 }
 0x729   : > { %v9618_v12 = vpack.c.bf16 %v8718_v2, %v8714_v43  ;;  %v8758_v32 = vld [vmem:[%s16248_s5 + $0x348] sm:$0xff]  ;;  %p10348_p13 = pneg %p10347_p12 }
 0x72a   : > { %v5168_v6 = vrot.slane %v5154_v15, 1  ;;  %v9634_v63 = vpack.c.bf16 %v8758_v32, %v8754_v54  ;;  %v8762_v2 = vld [vmem:[%s16248_s5 + $0x368] sm:$0x3]  ;;  %v8771_v32 = vld [vmem:[%s16248_s5 + $0x380] sm:$0xff] }
 0x72b   : > { %v8776_v54 = vld [vmem:[%s16248_s5 + $0x3a8] sm:$0xff]  ;;  %p10355_p3 = pnand %p10354_p2, %p10348_p13 }
 0x72c   : > { %v5176_v59 = vmax.f32 %v5154_v15, %v5168_v6  ;;  %10325 = vrot.lane.b32.xlu0 %v10324_v7, %s16911_s24  ;;  %v9632_v15 = vpack.c.bf16 %v8749_v25, %v8745_v61  ;;  %v14448_v6 = vpop.permute.xlu1 %10310  ;;  %v8753_v7 = vld [vmem:[%s16248_s5 + $0x320] sm:$0xff]  ;;  %v8764_v61 = vld [vmem:[%s16248_s5 + $0x378] sm:$0x3]  ;;  %v8772_v25 = vld [vmem:[%s16248_s5 + $0x388] sm:$0xff] }
 0x72d   : > { %v10312_v44 = vunpack.i.l.bf16 %v14448_v6 }
 0x72e   : > { %v5184_v20 = vrot.slane %v5176_v59, 1  ;;  %v5192_v60 = vrot.slane %v5176_v59, 2  ;;  %v5200_v33 = vrot.slane %v5176_v59, 3 }
 0x730   : > { %v5208_v36 = vsel %vm16960_vm3, %v5176_v59, %v5184_v20  ;;  %v8757_v59 = vld [vmem:[%s16248_s5 + $0x340] sm:$0xff]  ;;  %v4297_v20 = vsel %vm4292_vm0, %v10247_v11, %v10307_v19  ;;  %v8744_v11 = vld [vmem:[%s16248_s5 + $0x2d8] sm:$0xff]  ;;  %vm16965_vm3 = vmmov %vm16963_vm11 }
 0x731   : > { %v5212_v51 = vsel %vm853_vm1, %v5208_v36, %v5192_v60  ;;  %v10317_v60 = vunpack.i.l.bf16 %v14445_v29  ;;  %v9636_v35 = vpack.c.bf16 %v8757_v59, %v8753_v7  ;;  %v4306_v43 = vsel %vm4301_vm10, %v4297_v20, %v10312_v44  ;;  %v8763_v20 = vld [vmem:[%s16248_s5 + $0x370] sm:$0x3] }
 0x732   : > { %v14380_v38 = vsel %vm16961_vm5, %v5212_v51, %v5200_v33  ;;  %v8740_v51 = vld [vmem:[%s16248_s5 + $0x2b8] sm:$0xff]  ;;  %v10318_v59 = vunpack.i.h.bf16 %v14445_v29  ;;  %v10313_v44 = vunpack.i.h.bf16 %v14448_v6  ;;  %v8788_v6 = vld [vmem:[%s16248_s5 + $0x408] sm:$0xff]  ;;  %vm16966_vm5 = vcmask 162816  }
 0x733   : > { %v5620_v0 = vrot.slane %v14380_v38, 2  ;;  %v5810_v39 = vrot.slane %v14380_v38, 3 }
 0x735   : > { %8733 = vmatmul.mubr.msk.f32.vlgmr.msra.gmra.mrb[0].mxu1 %vm5151_vm4, %v5620_v0 }
 0x736   : > { %9617 = vmatpush1.bf16.msra.mxu1 %v9616_v45  ;;  %5770 = vmatprep.mubr.f32.mxu1 %v10432_v28 }
 0x737   : > { %9619 = vmatprep.subr.bf16.mxu1 %v9618_v12  ;;  %v8739_v12 = vld [vmem:[%s16248_s5 + $0x2b0] sm:$0xff] }
 0x738   : > { %v9640_v18 = vpack.c.bf16 %v8743_v50, %v8739_v12  ;;  %v8787_v50 = vld [vmem:[%s16248_s5 + $0x400] sm:$0xff] }
 0x73a   : > { %9621 = vmatpush1.bf16.msra.mxu1 %v9620_v34  ;;  %v8761_v34 = vld [vmem:[%s16248_s5 + $0x360] sm:$0x3] }
 0x73b   : > { %9623 = vmatprep.subr.bf16.mxu1 %v9622_v4  ;;  %v9638_v4 = vpack.c.bf16 %v8744_v11, %v8740_v51 }
 0x73e   : > { %9625 = vmatpush1.bf16.msra.mxu1 %v9624_v30  ;;  %v9642_v30 = vpack.c.bf16 %v8752_v55, %v8748_v10 }
 0x73f   : > { %8734 = vmatprep.subr.msk.mxu1 %vm853_vm1, %v8730_v57  ;;  %v8747_v57 = vld [vmem:[%s16248_s5 + $0x2f0] sm:$0xff] }
 0x740   : > { %v9644_v14 = vpack.c.bf16 %v8751_v47, %v8747_v57  ;;  %v8778_v57 = vld [vmem:[%s16248_s5 + $0x3b8] sm:$0xff]  ;;  %v8795_v47 = vld [vmem:[%s16248_s5 + $0x440] sm:$0x3] }
 0x742   : > { %8735 = vmatpush1.msk.msra.mxu1 %vm853_vm1, %v8729_v8  ;;  %v4803_v33 = vpop.permute.xlu1 %4802  ;;  %v8759_v8 = vld [vmem:[%s16248_s5 + $0x350] sm:$0xff] }
 0x743   : > { %8736 = vmatmul.mubr.msk.f32.vlgmr.msra.gmra.mrb[2].mxu1 %vm5151_vm4, %v5620_v0  ;;  %9627 = vmatprep.subr.bf16.mxu1 %v9626_v24  ;;  %v4315_v0 = vsel %vm16962_vm2, %v4306_v43, %v10317_v60  ;;  %v9650_v60 = vpack.c.bf16 %v8776_v54, %v8772_v25  ;;  %vm16967_vm2 = vcmask 326656  }
 0x744   : > { %9629 = vmatpush1.bf16.msra.mxu1 %v9628_v3  ;;  %5889 = vmatprep.mubr.f32.mxu1 %v10432_v28  ;;  %v4839_v23 = vsel %vm16510_vm9, %v4315_v0, %v4803_v33  ;;  %v9648_v3 = vpack.c.bf16 %v8759_v8, %v8755_v31 }
 0x745   : > { %9631 = vmatprep.subr.bf16.mxu1 %v9630_v56  ;;  %v10308_v56 = vunpack.i.h.bf16 %v14418_v52  ;;  %v8775_v52 = vld [vmem:[%s16248_s5 + $0x3a0] sm:$0xff] }
 0x747   : > { %v4298_v7 = vsel %vm4292_vm0, %v10248_v27, %v10308_v56 }
 0x748   : > { %9633 = vmatpush1.bf16.msra.mxu1 %v9632_v15  ;;  %v8780_v15 = vld [vmem:[%s16248_s5 + $0x3c8] sm:$0xff]  ;;  %v4307_v43 = vsel %vm4301_vm10, %v4298_v7, %v10313_v44 }
 0x749   : > { %9635 = vmatprep.subr.bf16.mxu1 %v9634_v63  ;;  %v8784_v63 = vld [vmem:[%s16248_s5 + $0x3e8] sm:$0xff]  ;;  %v4316_v11 = vsel %vm16964_vm13, %v4307_v43, %v10318_v59  ;;  %vm16969_vm13 = vmmov %vm16966_vm5 }
 0x74a   : > { %v4805_v36 = vpop.permute.xlu0 %4804 }
 0x74b   : > { %v4823_v45 = vsel %vm16510_vm9, %v4803_v33, %v4805_v36  ;;  %v9654_v33 = vpack.c.bf16 %v8784_v63, %v8780_v15  ;;  %v8779_v36 = vld [vmem:[%s16248_s5 + $0x3c0] sm:$0xff] }
 0x74c   : > { %9637 = vmatpush1.bf16.msra.mxu1 %v9636_v35  ;;  %8659 = vmatprep.mubr.msk.f32.mxu0 %vm16963_vm11, %v4823_v45  ;;  %v9652_v35 = vpack.c.bf16 %v8775_v52, %v8771_v32  ;;  %v9656_v0 = vpack.c.bf16 %v8783_v41, %v8779_v36  ;;  %vm16968_vm11 = vcmask 490496  }
 0x74d   : > { %5123 = vmatmul.mubr.f32.gmra.mrb[96].mxu0 %v4839_v23  ;;  %8765 = vmatprep.subr.msk.mxu1 %vm853_vm1, %v8762_v2  ;;  %v8792_v2 = vld [vmem:[%s16248_s5 + $0x428] sm:$0xff]  ;;  %v8791_v23 = vld [vmem:[%s16248_s5 + $0x420] sm:$0xff] }
 0x74e   : > { %v9658_v12 = vpack.c.bf16 %v8792_v2, %v8788_v6 }
 0x750   : > { %8766 = vmatpush1.msk.msra.mxu1 %vm853_vm1, %v8761_v34  ;;  %v9660_v34 = vpack.c.bf16 %v8791_v23, %v8787_v50 }
 0x751   : > { %8767 = vmatmul.mubr.msk.f32.vlgmr.msra.gmra.mrb[0].mxu1 %vm5151_vm4, %v5810_v39  ;;  %9639 = vmatprep.subr.bf16.mxu1 %v9638_v4 }
 0x752   : > { %9641 = vmatpush1.bf16.msra.mxu1 %v9640_v18  ;;  %5960 = vmatprep.mubr.f32.mxu1 %v10432_v28 }
 0x753   : > { %9643 = vmatprep.subr.bf16.mxu1 %v9642_v30  ;;  %v8774_v30 = vld [vmem:[%s16248_s5 + $0x398] sm:$0xff] }
 0x754   : > { %v9662_v5 = vpack.c.bf16 %v8778_v57, %v8774_v30  ;;  %v8663_v30 = vld [vmem:[%s16248_s5 + $0xe0] sm:$0xff] }
 0x756   : > { %9645 = vmatpush1.bf16.msra.mxu1 %v9644_v14  ;;  %v4807_v24 = vpop.permute.xlu1 %4806 }
 0x757   : > { %9647 = vmatprep.subr.bf16.mxu1 %v9646_v16  ;;  %v4840_v45 = vsel %vm16510_vm9, %v4316_v11, %v4807_v24 }
 0x75a   : > { %9649 = vmatpush1.bf16.msra.mxu1 %v9648_v3  ;;  %v4338_v19 = vpop.permute.xlu1 %4337 }
 0x75b   : > { %8768 = vmatprep.subr.msk.mxu1 %vm853_vm1, %v8764_v61  ;;  %v4610_v56 = vsel %vm16969_vm13, %v16940_v53, %v4338_v19 }
 0x75e   : > { %8769 = vmatpush1.msk.msra.mxu1 %vm853_vm1, %v8763_v20  ;;  %v4809_v27 = vpop.permute.xlu0 %4808  ;;  %v4374_v29 = vpop.permute.xlu1 %4373 }
 0x75f   : > { %v4824_v51 = vsel %vm16510_vm9, %v4807_v24, %v4809_v27  ;;  %8770 = vmatmul.mubr.msk.f32.vlgmr.msra.gmra.mrb[2].mxu1 %vm5151_vm4, %v5810_v39  ;;  %9651 = vmatprep.subr.bf16.mxu1 %v9650_v60  ;;  %v8796_v39 = vld [vmem:[%s16248_s5 + $0x448] sm:$0x3]  ;;  %vm16971_vm9 = vmmov %vm16968_vm11 }
 0x760   : > { %8660 = vmatprep.mubr.msk.f32.mxu0 %vm16965_vm3, %v4824_v51  ;;  %9653 = vmatpush1.bf16.msra.mxu1 %v9652_v35  ;;  %vm16970_vm3 = vmmov %vm16967_vm2 }
 0x761   : > { %5128 = vmatmul.mubr.f32.gmra.mrb[98].mxu0 %v4840_v45  ;;  %9655 = vmatprep.subr.bf16.mxu1 %v9654_v33  ;;  %v4621_v54 = vsel %vm16970_vm3, %v4610_v56, %v4374_v29  ;;  %v5010_v33 = vadd.f32 %v14204_v42, %v14331_v58  ;;  %v8671_v56 = vld [vmem:[%s16248_s5 + $0x120] sm:$0xff]  ;;  %vm16976_vm13 = vmmov %vm16970_vm3 }
 0x762   : > { %v4340_v10 = vpop.permute.xlu0 %4339  ;;  %v4410_v55 = vpop.permute.xlu1 %4409  ;;  %6079 = vmatprep.mubr.f32.mxu1 %v10432_v28 }
 0x763   : > { %v4611_v16 = vsel %vm16966_vm5, %v16941_v40, %v4340_v10  ;;  %v4632_v52 = vsel %vm16971_vm9, %v4621_v54, %v4410_v55  ;;  %vm16972_vm9 = vmmov %vm16966_vm5 }
 0x764   : > { %9657 = vmatpush1.bf16.msra.mxu1 %v9656_v0  ;;  %vm16973_vm5 = vmmov %vm16967_vm2 }
 0x765   : > { %9659 = vmatprep.subr.bf16.mxu1 %v9658_v12 }
 0x766   : > { %v4376_v4 = vpop.permute.xlu0 %4375  ;;  %v4450_v18 = vpop.permute.xlu1 %4449 }
 0x767   : > { %v4622_v24 = vsel %vm16967_vm2, %v4611_v16, %v4376_v4  ;;  %v4648_v40 = vsel %vm4211_vm15, %v4632_v52, %v4450_v18  ;;  %vm16974_vm2 = vmmov %vm16968_vm11  ;;  %v8672_v16 = vld [vmem:[%s16248_s5 + $0x128] sm:$0xff] }
 0x768   : > { %9661 = vmatpush1.bf16.msra.mxu1 %v9660_v34  ;;  %vm16977_vm3 = vmmov %vm16974_vm2 }
 0x769   : > { %8799 = vmatprep.subr.msk.mxu1 %vm853_vm1, %v8796_v39  ;;  %v8668_v39 = vld [vmem:[%s16248_s5 + $0x108] sm:$0xff] }
 0x76a   : > { %v4412_v1 = vpop.permute.xlu0 %4411  ;;  %v14583_v14 = vpop.permute.xlu1 %4343 }
 0x76b   : > { %v4633_v3 = vsel %vm16968_vm11, %v4622_v24, %v4412_v1  ;;  %vm16975_vm11 = vmmov %vm16972_vm9 }
 0x76c   : > { %8800 = vmatpush1.msk.msra.mxu1 %vm853_vm1, %v8795_v47  ;;  %v4649_v32 = vsel %vm4211_vm15, %v4633_v3, %v4450_v18  ;;  %v8664_v18 = vld [vmem:[%s16248_s5 + $0xe8] sm:$0xff]  ;;  %v4613_v54 = vsel %vm16975_vm11, %v14288_v22, %v14583_v14 }
 0x76d   : > { %9663 = vmatprep.subr.bf16.mxu1 %v9662_v5  ;;  %v9554_v1 = vpack.c.bf16 %v8668_v39, %v8664_v18 }
 0x76e   : > { %v4342_v31 = vpop.permute.xlu0 %4341  ;;  %v4479_v8 = vpop.permute.xlu1 %4478 }
 0x76f   : > { %v4665_v15 = vsel %vm4220_vm7, %v4649_v32, %v4479_v8  ;;  %v4612_v34 = vsel %vm16972_vm9, %v16954_v37, %v4342_v31  ;;  %v8667_v37 = vld [vmem:[%s16248_s5 + $0x100] sm:$0xff]  ;;  %v8676_v31 = vld [vmem:[%s16248_s5 + $0x148] sm:$0xff]  ;;  %9555 = vmatprep.subr.bf16.mxu0 %v9554_v1 }
 0x770   : > { %v9556_v24 = vpack.c.bf16 %v8667_v37, %v8663_v30  ;;  %v9558_v3 = vpack.c.bf16 %v8676_v31, %v8672_v16  ;;  %v8773_v16 = vld [vmem:[%s16248_s5 + $0x390] sm:$0xff] }
 0x772   : > { %v4477_v61 = vpop.permute.xlu0 %4476  ;;  %v4515_v25 = vpop.permute.xlu1 %4514  ;;  %9557 = vmatpush1.bf16.msra.mxu0 %v9556_v24  ;;  %v8782_v24 = vld [vmem:[%s16248_s5 + $0x3d8] sm:$0xff] }
 0x773   : > { %v4681_v63 = vsel %vm4229_vm8, %v4665_v15, %v4515_v25  ;;  %v4664_v7 = vsel %vm4220_vm7, %v4648_v40, %v4477_v61  ;;  %v8675_v61 = vld [vmem:[%s16248_s5 + $0x140] sm:$0xff]  ;;  %9559 = vmatprep.subr.bf16.mxu0 %v9558_v3  ;;  %v8786_v3 = vld [vmem:[%s16248_s5 + $0x3f8] sm:$0xff] }
 0x774   : > { %v4775_v19 = vrot.slane %v4681_v63, 1 }
 0x776   : > { %v4513_v59 = vpop.permute.xlu0 %4512  ;;  %v4551_v20 = vpop.permute.xlu1 %4550 }
 0x777   : > { %v4680_v53 = vsel %vm4229_vm8, %v4664_v7, %v4513_v59  ;;  %v4692_v2 = vsel %vm4238_vm12, %v4515_v25, %v4551_v20  ;;  %v9560_v25 = vpack.c.bf16 %v8675_v61, %v8671_v56  ;;  %v5015_v7 = vadd.f32 %v14223_v13, %v14331_v58  ;;  %v8684_v13 = vld [vmem:[%s16248_s5 + $0x188] sm:$0xff]  ;;  %v8679_v58 = vld [vmem:[%s16248_s5 + $0x160] sm:$0xff] }
 0x778   : > { %v4774_v60 = vrot.slane %v4680_v53, 1 }
 0x779   : > { %9561 = vmatpush1.bf16.msra.mxu0 %v9560_v25 }
 0x77a   : > { %v4549_v44 = vpop.permute.xlu0 %4548  ;;  %v4380_v35 = vpop.permute.xlu1 %4379  ;;  %v4776_v36 = vsel %vm978_vm6, %v4774_v60, %v4775_v19 }
 0x77b   : > { %v5114_v41 = vpop.f32.mrb[92].mxu0  ;;  %4810 = vrot.lane.b32.xlu0 %v4776_v36, %s16908_s26  ;;  %v4691_v11 = vsel %vm4238_vm12, %v4513_v59, %v4549_v44  ;;  %v4624_v15 = vsel %vm16976_vm13, %v4613_v54, %v4380_v35  ;;  %v8680_v44 = vld [vmem:[%s16248_s5 + $0x168] sm:$0xff] }
 0x77c   : > { %v14604_v27 = vadd.f32 %v5114_v41, %v5010_v33  ;;  %v5116_v29 = vpop.f32.mrb[93].mxu0  ;;  %v9562_v36 = vpack.c.bf16 %v8684_v13, %v8680_v44  ;;  %v8683_v41 = vld [vmem:[%s16248_s5 + $0x180] sm:$0xff]  ;;  %v8806_v44 = vld [vmem:[%s16248_s5 + $0x468] sm:$0xff] }
 0x77d   : > { %v8810_v13 = vld [vmem:[%s16248_s5 + $0x488] sm:$0xff] }
 0x77e   : > { %v4378_v43 = vpop.permute.xlu0 %4377  ;;  %v4587_v6 = vpop.permute.xlu1 %4586  ;;  %v5145_v22 = vmax.f32 %v14604_v27, 0.0  ;;  %9563 = vmatprep.subr.bf16.mxu0 %v9562_v36  ;;  %v8818_v36 = vld [vmem:[%s16248_s5 + $0x4c8] sm:$0xff] }
 0x77f   : > { %v4703_v51 = vsel %vm4247_vm14, %v4692_v2, %v4587_v6  ;;  %v4623_v4 = vsel %vm16973_vm5, %v4612_v34, %v4378_v43  ;;  %v9564_v6 = vpack.c.bf16 %v8683_v41, %v8679_v58  ;;  %v8688_v2 = vld [vmem:[%s16248_s5 + $0x1a8] sm:$0x3]  ;;  %v8805_v58 = vld [vmem:[%s16248_s5 + $0x460] sm:$0xff]  ;;  %v8797_v41 = vld [vmem:[%s16248_s5 + $0x450] sm:$0x3] }
 0x780   : > { %v4778_v12 = vrot.slane %v4703_v51, 1  ;;  %v8666_v51 = vld [vmem:[%s16248_s5 + $0xf8] sm:$0xff] }
 0x781   : > { %9565 = vmatpush1.bf16.msra.mxu0 %v9564_v6  ;;  %v8813_v6 = vld [vmem:[%s16248_s5 + $0x4a0] sm:$0xff] }
 0x782   : > { %v4585_v45 = vpop.permute.xlu0 %4584  ;;  %v4416_v0 = vpop.permute.xlu1 %4415  ;;  %8691 = vmatprep.subr.msk.mxu0 %vm853_vm1, %v8688_v2  ;;  %v8817_v2 = vld [vmem:[%s16248_s5 + $0x4c0] sm:$0xff] }
 0x783   : > { %v4702_v42 = vsel %vm4247_vm14, %v4691_v11, %v4585_v45  ;;  %v4635_v40 = vsel %vm16977_vm3, %v4624_v15, %v4416_v0  ;;  %v8670_v11 = vld [vmem:[%s16248_s5 + $0x118] sm:$0xff]  ;;  %v5155_v45 = vsel %vm5151_vm4, %v5145_v22, -inf  ;;  %v8781_v15 = vld [vmem:[%s16248_s5 + $0x3d0] sm:$0xff] }
 0x784   : > { %v4777_v50 = vrot.slane %v4702_v42, 1  ;;  %v8789_v22 = vld [vmem:[%s16248_s5 + $0x410] sm:$0xff] }
 0x786   : > { %v4414_v23 = vpop.permute.xlu0 %4413  ;;  %v4481_v10 = vpop.permute.xlu1 %4480  ;;  %v4779_v55 = vsel %vm978_vm6, %v4777_v50, %v4778_v12 }
 0x787   : > { %4812 = vrot.lane.b32.xlu1 %v4779_v55, %s16908_s26  ;;  %v4634_v57 = vsel %vm16974_vm2, %v4623_v4, %v4414_v23  ;;  %v9566_v55 = vpack.c.bf16 %v8670_v11, %v8666_v51  ;;  %v8822_v51 = vld [vmem:[%s16248_s5 + $0x4e8] sm:$0xff] }
 0x788   : > { %v8826_v11 = vld [vmem:[%s16248_s5 + $0x508] sm:$0xff] }
 0x78a   : > { %v4452_v47 = vpop.permute.xlu0 %4451  ;;  %v4517_v5 = vpop.permute.xlu1 %4516 }
 0x78b   : > { %v4650_v8 = vsel %vm4211_vm15, %v4634_v57, %v4452_v47  ;;  %v4651_v59 = vsel %vm4211_vm15, %v4635_v40, %v4452_v47  ;;  %v8785_v40 = vld [vmem:[%s16248_s5 + $0x3f0] sm:$0xff]  ;;  %vm16981_vm15 = vcmask 359424  }
 0x78c   : > { %v4666_v32 = vsel %vm4220_vm7, %v4650_v8, %v4481_v10  ;;  %v8687_v10 = vld [vmem:[%s16248_s5 + $0x1a0] sm:$0x3]  ;;  %vm16985_vm5 = vmmov %vm16981_vm15 }
 0x78d   : > { %v4682_v20 = vsel %vm4229_vm8, %v4666_v32, %v4517_v5  ;;  %8692 = vmatpush1.msk.msra.mxu0 %vm853_vm1, %v8687_v10  ;;  %v8808_v10 = vld [vmem:[%s16248_s5 + $0x478] sm:$0xff] }
 0x78e   : > { %v4483_v52 = vpop.permute.xlu0 %4482  ;;  %v4553_v63 = vpop.permute.xlu1 %4552  ;;  %v4780_v27 = vrot.slane %v4682_v20, 1  ;;  %9567 = vmatprep.subr.bf16.mxu0 %v9566_v55  ;;  %v9668_v20 = vpack.c.bf16 %v8785_v40, %v8781_v15  ;;  %v8812_v55 = vld [vmem:[%s16248_s5 + $0x498] sm:$0xff]  ;;  %v8839_v15 = vld [vmem:[%s16248_s5 + $0x540] sm:$0xff] }
 0x78f   : > { %v4667_v14 = vsel %vm4220_vm7, %v4651_v59, %v4483_v52  ;;  %v4693_v34 = vsel %vm4238_vm12, %v4517_v5, %v4553_v63  ;;  %v8777_v5 = vld [vmem:[%s16248_s5 + $0x3b0] sm:$0xff]  ;;  %v9666_v52 = vpack.c.bf16 %v8786_v3, %v8782_v24  ;;  %v8794_v59 = vld [vmem:[%s16248_s5 + $0x438] sm:$0xff]  ;;  %v8843_v40 = vld [vmem:[%s16248_s5 + $0x560] sm:$0xff]  ;;  %vm16982_vm7 = vcmask 949248  }
 0x790   : > { %v9664_v54 = vpack.c.bf16 %v8777_v5, %v8773_v16  ;;  %v8815_v16 = vld [vmem:[%s16248_s5 + $0x4b0] sm:$0xff] }
 0x791   : > { %v5119_v53 = vpop.f32.mrb[94].mxu0  ;;  %v8819_v5 = vld [vmem:[%s16248_s5 + $0x4d0] sm:$0xff] }
 0x792   : > { %v5120_v19 = vadd.f32 %v5119_v53, %v5015_v7  ;;  %v4519_v60 = vpop.permute.xlu0 %4518  ;;  %v5121_v33 = vpop.f32.mrb[95].mxu0  ;;  %v8790_v7 = vld [vmem:[%s16248_s5 + $0x418] sm:$0xff]  ;;  %v9692_v24 = vpack.c.bf16 %v8819_v5, %v8815_v16  ;;  %v8873_v16 = vld [vmem:[%s16248_s5 + $0x620] sm:$0xff] }
 0x793   : > { %v4683_v35 = vsel %vm4229_vm8, %v4667_v14, %v4519_v60  ;;  %v4589_v42 = vpop.permute.xlu1 %4588  ;;  %v9670_v53 = vpack.c.bf16 %v8794_v59, %v8790_v7  ;;  %v8793_v14 = vld [vmem:[%s16248_s5 + $0x430] sm:$0xff]  ;;  %v8814_v33 = vld [vmem:[%s16248_s5 + $0x4a8] sm:$0xff]  ;;  %v8877_v5 = vld [vmem:[%s16248_s5 + $0x640] sm:$0xff] }
 0x794   : > { %v5146_v29 = vmax.f32 %v5120_v19, 0.0  ;;  %v4781_v43 = vrot.slane %v4683_v35, 1  ;;  %v4704_v18 = vsel %vm4247_vm14, %v4693_v34, %v4589_v42  ;;  %v9672_v19 = vpack.c.bf16 %v8793_v14, %v8789_v22  ;;  %v8809_v35 = vld [vmem:[%s16248_s5 + $0x480] sm:$0xff]  ;;  %v8807_v34 = vld [vmem:[%s16248_s5 + $0x470] sm:$0xff]  ;;  %v8848_v7 = vld [vmem:[%s16248_s5 + $0x588] sm:$0xff] }
 0x795   : > { %v4783_v1 = vrot.slane %v4704_v18, 1  ;;  %v8821_v42 = vld [vmem:[%s16248_s5 + $0x4e0] sm:$0xff]  ;;  %v8816_v18 = vld [vmem:[%s16248_s5 + $0x4b8] sm:$0xff]  ;;  %v8852_v59 = vld [vmem:[%s16248_s5 + $0x5a8] sm:$0xff]  ;;  %v9700_v22 = vpack.c.bf16 %v8843_v40, %v8839_v15 }
 0x796   : > { %v5156_v0 = vsel %vm5151_vm4, %v5146_v29, -inf  ;;  %v4555_v12 = vpop.permute.xlu0 %4554  ;;  %v4782_v50 = vsel %vm978_vm6, %v4780_v27, %v4781_v43  ;;  %v9674_v27 = vpack.c.bf16 %v8810_v13, %v8806_v44  ;;  %v9676_v29 = vpack.c.bf16 %v8809_v35, %v8805_v58  ;;  %v8856_v44 = vld [vmem:[%s16248_s5 + $0x5c8] sm:$0xff] }
 0x797   : > { %v5157_v23 = vmax.f32 %v5155_v45, %v5156_v0  ;;  %4814 = vrot.lane.b32.xlu0 %v4782_v50, %s16908_s26  ;;  %v4694_v39 = vsel %vm4238_vm12, %v4519_v60, %v4555_v12  ;;  %vm16978_vm12 = vcmask 1040384   ;;  %v8798_v60 = vld [vmem:[%s16248_s5 + $0x458] sm:$0x3]  ;;  %v9678_v43 = vpack.c.bf16 %v8818_v36, %v8814_v33  ;;  %v8825_v12 = vld [vmem:[%s16248_s5 + $0x500] sm:$0xff]  ;;  %v8860_v13 = vld [vmem:[%s16248_s5 + $0x5e8] sm:$0xff] }
 0x798   : > { %v9680_v45 = vpack.c.bf16 %v8817_v2, %v8813_v6  ;;  %v9682_v0 = vpack.c.bf16 %v8826_v11, %v8822_v51  ;;  %v9684_v50 = vpack.c.bf16 %v8825_v12, %v8821_v42  ;;  %v9702_v14 = vpack.c.bf16 %v8852_v59, %v8848_v7  ;;  %v8855_v33 = vld [vmem:[%s16248_s5 + $0x5c0] sm:$0xff]  ;;  %v8841_v6 = vld [vmem:[%s16248_s5 + $0x550] sm:$0xff]  ;;  %v8850_v51 = vld [vmem:[%s16248_s5 + $0x598] sm:$0xff] }
 0x799   : > { %v5169_v4 = vrot.slane %v5157_v23, 1  ;;  %v9706_v35 = vpack.c.bf16 %v8860_v13, %v8856_v44  ;;  %v8859_v36 = vld [vmem:[%s16248_s5 + $0x5e0] sm:$0xff]  ;;  %v8845_v2 = vld [vmem:[%s16248_s5 + $0x570] sm:$0xff]  ;;  %v8854_v11 = vld [vmem:[%s16248_s5 + $0x5b8] sm:$0xff] }
 0x79a   : > { %v4591_v30 = vpop.permute.xlu0 %4590  ;;  %v9712_v42 = vpack.c.bf16 %v8845_v2, %v8841_v6  ;;  %v8889_v7 = vld [vmem:[%s16248_s5 + $0x6a0] sm:$0xff]  ;;  %v8875_v44 = vld [vmem:[%s16248_s5 + $0x630] sm:$0xff]  ;;  %vm16988_vm2 = vmmov %vm16978_vm12 }
 0x79b   : > { %v5177_v57 = vmax.f32 %v5157_v23, %v5169_v4  ;;  %v4705_v47 = vsel %vm4247_vm14, %v4694_v39, %v4591_v30  ;;  %vm16979_vm14 = vcmask 1042432   ;;  %v8830_v23 = vld [vmem:[%s16248_s5 + $0x528] sm:$0x3]  ;;  %v8811_v4 = vld [vmem:[%s16248_s5 + $0x490] sm:$0xff]  ;;  %v8820_v39 = vld [vmem:[%s16248_s5 + $0x4d8] sm:$0xff] }
 0x79c   : > { %v4784_v37 = vrot.slane %v4705_v47, 1  ;;  %v8829_v30 = vld [vmem:[%s16248_s5 + $0x520] sm:$0x3]  ;;  %v9688_v47 = vpack.c.bf16 %v8811_v4, %v8807_v34  ;;  %v8862_v34 = vld [vmem:[%s16248_s5 + $0x5f8] sm:$0xff]  ;;  %v8879_v13 = vld [vmem:[%s16248_s5 + $0x650] sm:$0xff] }
 0x79d   : > { %v5185_v31 = vrot.slane %v5177_v57, 1  ;;  %v5193_v8 = vrot.slane %v5177_v57, 2  ;;  %v5201_v61 = vrot.slane %v5177_v57, 3  ;;  %v8893_v59 = vld [vmem:[%s16248_s5 + $0x6c0] sm:$0xff]  ;;  %v8883_v2 = vld [vmem:[%s16248_s5 + $0x670] sm:$0xff]  ;;  %vm16989_vm11 = vmmov %vm16979_vm14 }
 0x79e   : > { %v4785_v56 = vsel %vm978_vm6, %v4783_v1, %v4784_v37  ;;  %v9690_v37 = vpack.c.bf16 %v8820_v39, %v8816_v18  ;;  %v8857_v39 = vld [vmem:[%s16248_s5 + $0x5d0] sm:$0xff]  ;;  %vm16980_vm6 = vcmask 523264   ;;  %vm16990_vm13 = vmmov %vm16988_vm2 }
 0x79f   : > { %4816 = vrot.lane.b32.xlu1 %v4785_v56, %s16908_s26  ;;  %v5209_v25 = vsel %vm16978_vm12, %v5177_v57, %v5185_v31  ;;  %v9686_v57 = vpack.c.bf16 %v8812_v55, %v8808_v10  ;;  %v8824_v31 = vld [vmem:[%s16248_s5 + $0x4f8] sm:$0xff]  ;;  %v8823_v56 = vld [vmem:[%s16248_s5 + $0x4f0] sm:$0xff]  ;;  %vm16983_vm8 = vmmov %vm16980_vm6  ;;  %vm8491_vm12 = vcmask 73728  }
 0x7a0   : > { %v5213_v32 = vsel %vm853_vm1, %v5209_v25, %v5193_v8  ;;  %v8828_v8 = vld [vmem:[%s16248_s5 + $0x518] sm:$0xff]  ;;  %v8853_v10 = vld [vmem:[%s16248_s5 + $0x5b0] sm:$0xff]  ;;  %vm16984_vm9 = vmmov %vm16980_vm6 }
 0x7a1   : > { %v14711_v63 = vsel %vm16979_vm14, %v5213_v32, %v5201_v61  ;;  %v9694_v3 = vpack.c.bf16 %v8828_v8, %v8824_v31  ;;  %v8827_v61 = vld [vmem:[%s16248_s5 + $0x510] sm:$0xff]  ;;  %v8840_v32 = vld [vmem:[%s16248_s5 + $0x548] sm:$0xff]  ;;  %v8858_v55 = vld [vmem:[%s16248_s5 + $0x5d8] sm:$0xff] }
 0x7a2   : > { %8801 = vmatmul.mubr.msk.f32.vlgmr.msra.gmra.mrb[0].mxu1 %vm5151_vm4, %v14711_v63  ;;  %v6190_v1 = vrot.slane %v14711_v63, 1  ;;  %v9696_v25 = vpack.c.bf16 %v8827_v61, %v8823_v56  ;;  %v6380_v12 = vrot.slane %v14711_v63, 2  ;;  %v9718_v18 = vpack.c.bf16 %v8862_v34, %v8858_v55  ;;  %v8882_v31 = vld [vmem:[%s16248_s5 + $0x668] sm:$0xff]  ;;  %v8891_v55 = vld [vmem:[%s16248_s5 + $0x6b0] sm:$0xff]  ;;  %vm16991_vm3 = vmmov %vm16989_vm11 }
 0x7a3   : > { %9665 = vmatpush1.bf16.msra.mxu1 %v9664_v54  ;;  %6150 = vmatprep.mubr.f32.mxu1 %v10432_v28  ;;  %v8832_v54 = vld [vmem:[%s16248_s5 + $0x538] sm:$0x3]  ;;  %v8886_v8 = vld [vmem:[%s16248_s5 + $0x688] sm:$0xff]  ;;  %v9724_v56 = vpack.c.bf16 %v8877_v5, %v8873_v16  ;;  %v8911_v16 = vld [vmem:[%s16248_s5 + $0x720] sm:$0xff] }
 0x7a4   : > { %9667 = vmatprep.subr.bf16.mxu1 %v9666_v52  ;;  %v8844_v52 = vld [vmem:[%s16248_s5 + $0x568] sm:$0xff]  ;;  %v9726_v61 = vpack.c.bf16 %v8886_v8, %v8882_v31  ;;  %v8899_v8 = vld [vmem:[%s16248_s5 + $0x6f0] sm:$0x3] }
 0x7a5   : > { %v8916_v5 = vld [vmem:[%s16248_s5 + $0x748] sm:$0xff] }
 0x7a6   : > { %v8920_v31 = vld [vmem:[%s16248_s5 + $0x768] sm:$0xff] }
 0x7a7   : > { %9669 = vmatpush1.bf16.msra.mxu1 %v9668_v20  ;;  %v8831_v20 = vld [vmem:[%s16248_s5 + $0x530] sm:$0x3] }
 0x7a8   : > { %9671 = vmatprep.subr.bf16.mxu1 %v9670_v53  ;;  %v9698_v53 = vpack.c.bf16 %v8844_v52, %v8840_v32  ;;  %v8890_v32 = vld [vmem:[%s16248_s5 + $0x6a8] sm:$0xff] }
 0x7a9   : > { %v8894_v52 = vld [vmem:[%s16248_s5 + $0x6c8] sm:$0xff] }
 0x7aa   : > { %v9730_v40 = vpack.c.bf16 %v8894_v52, %v8890_v32  ;;  %v8928_v32 = vld [vmem:[%s16248_s5 + $0x7a8] sm:$0xff] }
 0x7ab   : > { %9673 = vmatpush1.bf16.msra.mxu1 %v9672_v19  ;;  %v8847_v19 = vld [vmem:[%s16248_s5 + $0x580] sm:$0xff] }
 0x7ac   : > { %8802 = vmatprep.subr.msk.mxu1 %vm853_vm1, %v8798_v60  ;;  %v8851_v60 = vld [vmem:[%s16248_s5 + $0x5a0] sm:$0xff] }
 0x7ad   : > { %v9704_v58 = vpack.c.bf16 %v8851_v60, %v8847_v19  ;;  %v8880_v19 = vld [vmem:[%s16248_s5 + $0x658] sm:$0xff]  ;;  %v14972_v60 = vpop.permute.xlu0 %10325 }
 0x7af   : > { %8803 = vmatpush1.msk.msra.mxu1 %vm853_vm1, %v8797_v41  ;;  %v9708_v41 = vpack.c.bf16 %v8859_v36, %v8855_v33  ;;  %v8897_v36 = vld [vmem:[%s16248_s5 + $0x6e0] sm:$0x3] }
 0x7b0   : > { %8804 = vmatmul.mubr.msk.f32.vlgmr.msra.gmra.mrb[2].mxu1 %vm5151_vm4, %v14711_v63  ;;  %9675 = vmatprep.subr.bf16.mxu1 %v9674_v27  ;;  %v8864_v27 = vld [vmem:[%s16248_s5 + $0x608] sm:$0x3] }
 0x7b1   : > { %9677 = vmatpush1.bf16.msra.mxu1 %v9676_v29  ;;  %6269 = vmatprep.mubr.f32.mxu1 %v10432_v28  ;;  %v8842_v29 = vld [vmem:[%s16248_s5 + $0x558] sm:$0xff] }
 0x7b2   : > { %9679 = vmatprep.subr.bf16.mxu1 %v9678_v43  ;;  %v8846_v43 = vld [vmem:[%s16248_s5 + $0x578] sm:$0xff] }
 0x7b5   : > { %9681 = vmatpush1.bf16.msra.mxu1 %v9680_v45  ;;  %v8863_v45 = vld [vmem:[%s16248_s5 + $0x600] sm:$0x3] }
 0x7b6   : > { %9683 = vmatprep.subr.bf16.mxu1 %v9682_v0  ;;  %v9710_v0 = vpack.c.bf16 %v8846_v43, %v8842_v29  ;;  %v9736_v29 = vpack.c.bf16 %v8879_v13, %v8875_v44  ;;  %v6570_v43 = vrot.slane %v14711_v63, 3  ;;  %v8896_v63 = vld [vmem:[%s16248_s5 + $0x6d8] sm:$0xff] }
 0x7b7   : > { %v8914_v44 = vld [vmem:[%s16248_s5 + $0x738] sm:$0xff] }
 0x7b9   : > { %9685 = vmatpush1.bf16.msra.mxu1 %v9684_v50  ;;  %v9714_v50 = vpack.c.bf16 %v8854_v11, %v8850_v51  ;;  %v8887_v51 = vld [vmem:[%s16248_s5 + $0x690] sm:$0xff] }
 0x7ba   : > { %8833 = vmatprep.subr.msk.mxu1 %vm853_vm1, %v8830_v23  ;;  %v8849_v23 = vld [vmem:[%s16248_s5 + $0x590] sm:$0xff] }
 0x7bb   : > { %v9716_v4 = vpack.c.bf16 %v8853_v10, %v8849_v23 }
 0x7bd   : > { %8834 = vmatpush1.msk.msra.mxu1 %vm853_vm1, %v8829_v30  ;;  %v8861_v30 = vld [vmem:[%s16248_s5 + $0x5f0] sm:$0xff] }
 0x7be   : > { %8835 = vmatmul.mubr.msk.f32.vlgmr.msra.gmra.mrb[0].mxu1 %vm5151_vm4, %v6190_v1  ;;  %9687 = vmatprep.subr.bf16.mxu1 %v9686_v57  ;;  %v9720_v57 = vpack.c.bf16 %v8861_v30, %v8857_v39 }
 0x7bf   : > { %9689 = vmatpush1.bf16.msra.mxu1 %v9688_v47  ;;  %6340 = vmatprep.mubr.f32.mxu1 %v10432_v28  ;;  %v8866_v47 = vld [vmem:[%s16248_s5 + $0x618] sm:$0x3] }
 0x7c0   : > { %9691 = vmatprep.subr.bf16.mxu1 %v9690_v37  ;;  %v8878_v37 = vld [vmem:[%s16248_s5 + $0x648] sm:$0xff] }
 0x7c3   : > { %9693 = vmatpush1.bf16.msra.mxu1 %v9692_v24  ;;  %v8865_v24 = vld [vmem:[%s16248_s5 + $0x610] sm:$0x3] }
 0x7c4   : > { %9695 = vmatprep.subr.bf16.mxu1 %v9694_v3 }
 0x7c7   : > { %9697 = vmatpush1.bf16.msra.mxu1 %v9696_v25  ;;  %v8881_v25 = vld [vmem:[%s16248_s5 + $0x660] sm:$0xff] }
 0x7c8   : > { %8836 = vmatprep.subr.msk.mxu1 %vm853_vm1, %v8832_v54  ;;  %v8885_v54 = vld [vmem:[%s16248_s5 + $0x680] sm:$0xff] }
 0x7c9   : > { %v9728_v15 = vpack.c.bf16 %v8885_v54, %v8881_v25  ;;  %v8919_v25 = vld [vmem:[%s16248_s5 + $0x760] sm:$0xff]  ;;  %v8924_v54 = vld [vmem:[%s16248_s5 + $0x788] sm:$0xff] }
 0x7cb   : > { %8837 = vmatpush1.msk.msra.mxu1 %vm853_vm1, %v8831_v20  ;;  %v9732_v20 = vpack.c.bf16 %v8893_v59, %v8889_v7  ;;  %v8927_v7 = vld [vmem:[%s16248_s5 + $0x7a0] sm:$0xff] }
 0x7cc   : > { %8838 = vmatmul.mubr.msk.f32.vlgmr.msra.gmra.mrb[2].mxu1 %vm5151_vm4, %v6190_v1  ;;  %9699 = vmatprep.subr.bf16.mxu1 %v9698_v53  ;;  %v8874_v1 = vld [vmem:[%s16248_s5 + $0x628] sm:$0xff]  ;;  %v14961_v53 = vpop.permute.xlu1 %10320 }
 0x7cd   : > { %9701 = vmatpush1.bf16.msra.mxu1 %v9700_v22  ;;  %6459 = vmatprep.mubr.f32.mxu1 %v10432_v28  ;;  %v9722_v3 = vpack.c.bf16 %v8878_v37, %v8874_v1  ;;  %v8898_v22 = vld [vmem:[%s16248_s5 + $0x6e8] sm:$0x3]  ;;  %v10322_v33 = vunpack.i.l.bf16 %v14961_v53  ;;  %v8907_v37 = vld [vmem:[%s16248_s5 + $0x700] sm:$0xff] }
 0x7ce   : > { %9703 = vmatprep.subr.bf16.mxu1 %v9702_v14  ;;  %v8876_v14 = vld [vmem:[%s16248_s5 + $0x638] sm:$0xff]  ;;  %v8912_v1 = vld [vmem:[%s16248_s5 + $0x728] sm:$0xff] }
 0x7d0   : > { %v14999_v11 = vpop.permute.xlu1 %10330 }
 0x7d1   : > { %9705 = vmatpush1.bf16.msra.mxu1 %v9704_v58  ;;  %v8884_v58 = vld [vmem:[%s16248_s5 + $0x678] sm:$0xff] }
 0x7d2   : > { %9707 = vmatprep.subr.bf16.mxu1 %v9706_v35  ;;  %v8888_v35 = vld [vmem:[%s16248_s5 + $0x698] sm:$0xff] }
 0x7d3   : > { %v9738_v6 = vpack.c.bf16 %v8888_v35, %v8884_v58  ;;  %v10333_v35 = vunpack.i.h.bf16 %v14999_v11 }
 0x7d5   : > { %9709 = vmatpush1.bf16.msra.mxu1 %v9708_v41  ;;  %v9734_v41 = vpack.c.bf16 %v8880_v19, %v8876_v14  ;;  %v8932_v14 = vld [vmem:[%s16248_s5 + $0x7c8] sm:$0x3]  ;;  %v8910_v19 = vld [vmem:[%s16248_s5 + $0x718] sm:$0xff] }
 0x7d6   : > { %8867 = vmatprep.subr.msk.mxu1 %vm853_vm1, %v8864_v27  ;;  %v10327_v27 = vunpack.i.l.bf16 %v14972_v60  ;;  %v9758_v13 = vpack.c.bf16 %v8914_v44, %v8910_v19  ;;  %v5231_v19 = vld [vmem:[%s16248_s5 + $0x58] sm:$0xff] }
 0x7d7   : > { %v5235_v44 = vld [vmem:[%s16248_s5 + $0x78] sm:$0xff] }
 0x7d9   : > { %8868 = vmatpush1.msk.msra.mxu1 %vm853_vm1, %v8863_v45  ;;  %v8892_v45 = vld [vmem:[%s16248_s5 + $0x6b8] sm:$0xff] }
 0x7da   : > { %8869 = vmatmul.mubr.msk.f32.vlgmr.msra.gmra.mrb[0].mxu1 %vm5151_vm4, %v6380_v12  ;;  %9711 = vmatprep.subr.bf16.mxu1 %v9710_v0  ;;  %v4299_v0 = vsel %vm4292_vm0, %v10272_v62, %v10322_v33  ;;  %v9742_v10 = vpack.c.bf16 %v8896_v63, %v8892_v45  ;;  %v8895_v62 = vld [vmem:[%s16248_s5 + $0x6d0] sm:$0xff] }
 0x7db   : > { %9713 = vmatpush1.bf16.msra.mxu1 %v9712_v42  ;;  %6530 = vmatprep.mubr.f32.mxu1 %v10432_v28  ;;  %v9740_v42 = vpack.c.bf16 %v8887_v51, %v8883_v2  ;;  %v9744_v30 = vpack.c.bf16 %v8895_v62, %v8891_v55  ;;  %v5278_v51 = vrot.slane %v14380_v38, 1  ;;  %v8673_v45 = vld [vmem:[%s16248_s5 + $0x130] sm:$0xff]  ;;  %v15133_v62 = vld [vmem:[%s16247_s4] ss:$0 sm:$0xff] }
 0x7dc   : > { %9715 = vmatprep.subr.bf16.mxu1 %v9714_v50  ;;  %v10332_v50 = vunpack.i.l.bf16 %v14999_v11  ;;  %v8677_v63 = vld [vmem:[%s16248_s5 + $0x150] sm:$0xff] }
 0x7df   : > { %9717 = vmatpush1.bf16.msra.mxu1 %v9716_v4 }
 0x7e0   : > { %9719 = vmatprep.subr.bf16.mxu1 %v9718_v18 }
 0x7e3   : > { %9721 = vmatpush1.bf16.msra.mxu1 %v9720_v57  ;;  %v8900_v57 = vld [vmem:[%s16248_s5 + $0x6f8] sm:$0x3] }
 0x7e4   : > { %8870 = vmatprep.subr.msk.mxu1 %vm853_vm1, %v8866_v47  ;;  %v8908_v47 = vld [vmem:[%s16248_s5 + $0x708] sm:$0xff] }
 0x7e7   : > { %8871 = vmatpush1.msk.msra.mxu1 %vm853_vm1, %v8865_v24  ;;  %v9746_v24 = vpack.c.bf16 %v8912_v1, %v8908_v47 }
 0x7e8   : > { %8872 = vmatmul.mubr.msk.f32.vlgmr.msra.gmra.mrb[2].mxu1 %vm5151_vm4, %v6380_v12  ;;  %9723 = vmatprep.subr.bf16.mxu1 %v9722_v3  ;;  %v4308_v12 = vsel %vm4301_vm10, %v4299_v0, %v10327_v27  ;;  %v9748_v3 = vpack.c.bf16 %v8911_v16, %v8907_v37  ;;  %v8669_v27 = vld [vmem:[%s16248_s5 + $0x110] sm:$0xff]  ;;  %v8682_v0 = vld [vmem:[%s16248_s5 + $0x178] sm:$0xff]  ;;  %v5229_v37 = vld [vmem:[%s16248_s5 + $0x48] sm:$0xff] }
 0x7e9   : > { %9725 = vmatpush1.bf16.msra.mxu1 %v9724_v56  ;;  %6649 = vmatprep.mubr.f32.mxu1 %v10432_v28  ;;  %v4317_v18 = vsel %vm16981_vm15, %v4308_v12, %v10332_v50  ;;  %v9750_v56 = vpack.c.bf16 %v8920_v31, %v8916_v5  ;;  %v9572_v12 = vpack.c.bf16 %v8677_v63, %v8673_v45  ;;  %v5233_v16 = vld [vmem:[%s16248_s5 + $0x68] sm:$0xff]  ;;  %v8689_v5 = vld [vmem:[%s16248_s5 + $0x1b0] sm:$0x3] }
 0x7ea   : > { %9727 = vmatprep.subr.bf16.mxu1 %v9726_v61  ;;  %v8915_v61 = vld [vmem:[%s16248_s5 + $0x740] sm:$0xff] }
 0x7eb   : > { %v9752_v52 = vpack.c.bf16 %v8919_v25, %v8915_v61  ;;  %v5237_v61 = vld [vmem:[%s16248_s5 + $0x88] sm:$0xff] }
 0x7ec   : > { %v5241_v25 = vld [vmem:[%s16248_s5 + $0xa8] sm:$0xff] }
 0x7ed   : > { %9729 = vmatpush1.bf16.msra.mxu1 %v9728_v15  ;;  %v4811_v23 = vpop.permute.xlu0 %4810  ;;  %v9754_v15 = vpack.c.bf16 %v8928_v32, %v8924_v54  ;;  %v9586_v32 = vpack.c.bf16 %v5241_v25, %v5237_v61  ;;  %v8929_v61 = vld [vmem:[%s16248_s5 + $0x7b0] sm:$0xff] }
 0x7ee   : > { %9731 = vmatprep.subr.bf16.mxu1 %v9730_v40  ;;  %v4841_v39 = vsel %vm16983_vm8, %v4317_v18, %v4811_v23  ;;  %v8923_v40 = vld [vmem:[%s16248_s5 + $0x780] sm:$0xff]  ;;  %v5221_v18 = vld [vmem:[%s16248_s5 + $0x8] sm:$0xff] }
 0x7ef   : > { %v9756_v59 = vpack.c.bf16 %v8927_v7, %v8923_v40  ;;  %v5245_v7 = vld [vmem:[%s16248_s5 + $0xc8] sm:$0x3] }
 0x7f1   : > { %9733 = vmatpush1.bf16.msra.mxu1 %v9732_v20  ;;  %v10323_v20 = vunpack.i.h.bf16 %v14961_v53 }
 0x7f2   : > { %8901 = vmatprep.subr.msk.mxu1 %vm853_vm1, %v8898_v22  ;;  %v10328_v22 = vunpack.i.h.bf16 %v14972_v60  ;;  %v8931_v60 = vld [vmem:[%s16248_s5 + $0x7c0] sm:$0x3] }
 0x7f3   : > { %v4300_v53 = vsel %vm4292_vm0, %v10273_v49, %v10323_v20  ;;  %v8665_v49 = vld [vmem:[%s16248_s5 + $0xf0] sm:$0xff]  ;;  %vm16986_vm0 = vmmov %vm16982_vm7  ;;  %v5227_v20 = vld [vmem:[%s16248_s5 + $0x38] sm:$0xff] }
 0x7f4   : > { %v4309_v58 = vsel %vm4301_vm10, %v4300_v53, %v10328_v22  ;;  %vm16987_vm10 = vmmov %vm16980_vm6  ;;  %v9568_v2 = vpack.c.bf16 %v8669_v27, %v8665_v49  ;;  %v5222_v22 = vld [vmem:[%s16248_s5 + $0x10] sm:$0xff]  ;;  %v5244_v53 = vld [vmem:[%s16248_s5 + $0xc0] sm:$0x3] }
 0x7f5   : > { %8902 = vmatpush1.msk.msra.mxu1 %vm853_vm1, %v8897_v36  ;;  %v4318_v9 = vsel %vm16985_vm5, %v4309_v58, %v10333_v35  ;;  %v9594_v58 = vpack.c.bf16 %v5235_v44, %v5231_v19  ;;  %v5230_v35 = vld [vmem:[%s16248_s5 + $0x50] sm:$0xff]  ;;  %v8949_v44 = vld [vmem:[%s16248_s5 + $0x820] sm:$0xff] }
 0x7f6   : > { %8903 = vmatmul.mubr.msk.f32.vlgmr.msra.gmra.mrb[0].mxu1 %vm5151_vm4, %v6570_v43  ;;  %9735 = vmatprep.subr.bf16.mxu1 %v9734_v41 }
 0x7f7   : > { %9737 = vmatpush1.bf16.msra.mxu1 %v9736_v29  ;;  %6720 = vmatprep.mubr.f32.mxu1 %v10432_v28 }
 0x7f8   : > { %9739 = vmatprep.subr.bf16.mxu1 %v9738_v6  ;;  %v8678_v6 = vld [vmem:[%s16248_s5 + $0x158] sm:$0xff] }
 0x7f9   : > { %v4813_v34 = vpop.permute.xlu1 %4812 }
 0x7fa   : > { %v4825_v4 = vsel %vm16980_vm6, %v4811_v23, %v4813_v34  ;;  %v8681_v23 = vld [vmem:[%s16248_s5 + $0x170] sm:$0xff]  ;;  %v5020_v34 = vadd.f32 %v15133_v62, %v14234_v46  ;;  %v5224_v46 = vld [vmem:[%s16248_s5 + $0x20] sm:$0xff] }
 0x7fb   : > { %9741 = vmatpush1.bf16.msra.mxu1 %v9740_v42  ;;  %8661 = vmatprep.mubr.msk.f32.mxu0 %vm16982_vm7, %v4825_v4  ;;  %v8686_v42 = vld [vmem:[%s16248_s5 + $0x198] sm:$0xff] }
 0x7fc   : > { %5133 = vmatmul.mubr.f32.gmra.mrb[100].mxu0 %v4841_v39  ;;  %9743 = vmatprep.subr.bf16.mxu1 %v9742_v10  ;;  %v9574_v50 = vpack.c.bf16 %v8686_v42, %v8682_v0  ;;  %v8685_v10 = vld [vmem:[%s16248_s5 + $0x190] sm:$0xff]  ;;  %v8690_v4 = vld [vmem:[%s16248_s5 + $0x1b8] sm:$0x3]  ;;  %v5225_v39 = vld [vmem:[%s16248_s5 + $0x28] sm:$0xff] }
 0x7fd   : > { %v9576_v55 = vpack.c.bf16 %v8685_v10, %v8681_v23  ;;  %v9578_v31 = vpack.c.bf16 %v5225_v39, %v5221_v18  ;;  %v5246_v10 = vld [vmem:[%s16248_s5 + $0xd0] sm:$0x3]  ;;  %v8918_v39 = vld [vmem:[%s16248_s5 + $0x758] sm:$0xff] }
 0x7ff   : > { %9745 = vmatpush1.bf16.msra.mxu1 %v9744_v30 }
 0x800   : > { %8904 = vmatprep.subr.msk.mxu1 %vm853_vm1, %v8900_v57  ;;  %v5220_v57 = vld [vmem:[%s16248_s5] sm:$0xff] }
 0x803   : > { %8905 = vmatpush1.msk.msra.mxu1 %vm853_vm1, %v8899_v8  ;;  %v9580_v8 = vpack.c.bf16 %v5224_v46, %v5220_v57 }
 0x804   : > { %8906 = vmatmul.mubr.msk.f32.vlgmr.msra.gmra.mrb[2].mxu1 %vm5151_vm4, %v6570_v43  ;;  %9747 = vmatprep.subr.bf16.mxu1 %v9746_v24  ;;  %v8674_v43 = vld [vmem:[%s16248_s5 + $0x138] sm:$0xff]  ;;  %v9582_v24 = vpack.c.bf16 %v5233_v16, %v5229_v37  ;;  %v8917_v16 = vld [vmem:[%s16248_s5 + $0x750] sm:$0xff] }
 0x805   : > { %9749 = vmatpush1.bf16.msra.mxu1 %v9748_v3  ;;  %6839 = vmatprep.mubr.f32.mxu1 %v10432_v28  ;;  %v9570_v11 = vpack.c.bf16 %v8678_v6, %v8674_v43  ;;  %v5228_v3 = vld [vmem:[%s16248_s5 + $0x40] sm:$0xff] }
 0x806   : > { %9751 = vmatprep.subr.bf16.mxu1 %v9750_v56  ;;  %v5232_v56 = vld [vmem:[%s16248_s5 + $0x60] sm:$0xff] }
 0x807   : > { %v9584_v54 = vpack.c.bf16 %v5232_v56, %v5228_v3  ;;  %v8925_v56 = vld [vmem:[%s16248_s5 + $0x790] sm:$0xff] }
 0x808   : > { %v9768_v25 = vpack.c.bf16 %v8929_v61, %v8925_v56  ;;  %v8996_v56 = vld [vmem:[%s16248_s5 + $0x968] sm:$0xff] }
 0x809   : > { %9753 = vmatpush1.bf16.msra.mxu1 %v9752_v52  ;;  %v4815_v33 = vpop.permute.xlu0 %4814  ;;  %v5236_v52 = vld [vmem:[%s16248_s5 + $0x80] sm:$0xff] }
 0x80a   : > { %9755 = vmatprep.subr.bf16.mxu1 %v9754_v15  ;;  %v4842_v29 = vsel %vm16987_vm10, %v4318_v9, %v4815_v33  ;;  %v5240_v15 = vld [vmem:[%s16248_s5 + $0xa0] sm:$0xff]  ;;  %v5243_v9 = vld [vmem:[%s16248_s5 + $0xb8] sm:$0xff] }
 0x80b   : > { %v9588_v40 = vpack.c.bf16 %v5240_v15, %v5236_v52  ;;  %v8946_v52 = vld [vmem:[%s16248_s5 + $0x808] sm:$0xff]  ;;  %v8941_v15 = vld [vmem:[%s16248_s5 + $0x7e0] sm:$0xff] }
 0x80d   : > { %9757 = vmatpush1.bf16.msra.mxu1 %v9756_v59  ;;  %v5223_v59 = vld [vmem:[%s16248_s5 + $0x18] sm:$0xff] }
 0x80e   : > { %8935 = vmatprep.subr.msk.mxu1 %vm853_vm1, %v8932_v14  ;;  %v5226_v14 = vld [vmem:[%s16248_s5 + $0x30] sm:$0xff] }
 0x811   : > { %v4817_v36 = vpop.permute.xlu1 %4816  ;;  %8936 = vmatpush1.msk.msra.mxu1 %vm853_vm1, %v8931_v60  ;;  %v9590_v60 = vpack.c.bf16 %v5227_v20, %v5223_v59  ;;  %v8954_v59 = vld [vmem:[%s16248_s5 + $0x848] sm:$0xff]  ;;  %v8933_v20 = vld [vmem:[%s16248_s5 + $0x7d0] sm:$0x3] }
 0x812   : > { %v4826_v41 = vsel %vm16984_vm9, %v4815_v33, %v4817_v36  ;;  %9759 = vmatprep.subr.bf16.mxu1 %v9758_v13  ;;  %v9592_v13 = vpack.c.bf16 %v5226_v14, %v5222_v22  ;;  %v5234_v33 = vld [vmem:[%s16248_s5 + $0x70] sm:$0xff]  ;;  %v5025_v36 = vadd.f32 %v15133_v62, %v14241_v17 }
 0x813   : > { %8662 = vmatprep.mubr.msk.f32.mxu0 %vm16986_vm0, %v4826_v41  ;;  %v5239_v41 = vld [vmem:[%s16248_s5 + $0x98] sm:$0xff]  ;;  %v9596_v6 = vpack.c.bf16 %v5234_v33, %v5230_v35  ;;  %v8957_v33 = vld [vmem:[%s16248_s5 + $0x860] sm:$0xff] }
 0x814   : > { %5138 = vmatmul.mubr.f32.gmra.mrb[102].mxu0 %v4842_v29  ;;  %v9598_v17 = vpack.c.bf16 %v5243_v9, %v5239_v41  ;;  %v8966_v9 = vld [vmem:[%s16248_s5 + $0x8a8] sm:$0x3] }
 0x815   : > { %5357 = vmatprep.mubr.f32.mxu0 %v10432_v28 }
 0x818   : > { %8693 = vmatmul.mubr.msk.f32.vlgmr.msra.gmra.mrb[104].mxu0 %vm5151_vm4, %v5278_v51 }
 0x819   : > { %9569 = vmatpush1.bf16.msra.mxu0 %v9568_v2  ;;  %5428 = vmatprep.mubr.f32.mxu0 %v10432_v28  ;;  %v5238_v2 = vld [vmem:[%s16248_s5 + $0x90] sm:$0xff] }
 0x81a   : > { %9571 = vmatprep.subr.bf16.mxu0 %v9570_v11 }
 0x81d   : > { %9573 = vmatpush1.bf16.msra.mxu0 %v9572_v12  ;;  %v5247_v12 = vld [vmem:[%s16248_s5 + $0xd8] sm:$0x3] }
 0x81e   : > { %9575 = vmatprep.subr.bf16.mxu0 %v9574_v50 }
 0x820   : > { %v5124_v30 = vpop.f32.mrb[96].mxu0 }
 0x821   : > { %v5125_v47 = vadd.f32 %v5124_v30, %v5020_v34  ;;  %9577 = vmatpush1.bf16.msra.mxu0 %v9576_v55  ;;  %v5126_v1 = vpop.f32.mrb[97].mxu0  ;;  %v8909_v55 = vld [vmem:[%s16248_s5 + $0x710] sm:$0xff]  ;;  %v8922_v30 = vld [vmem:[%s16248_s5 + $0x778] sm:$0xff] }
 0x822   : > { %8694 = vmatprep.subr.msk.mxu0 %vm853_vm1, %v8690_v4  ;;  %v8913_v34 = vld [vmem:[%s16248_s5 + $0x730] sm:$0xff]  ;;  %v9762_v37 = vpack.c.bf16 %v8922_v30, %v8918_v39  ;;  %v8976_v39 = vld [vmem:[%s16248_s5 + $0x8c8] sm:$0xff] }
 0x823   : > { %v5147_v27 = vmax.f32 %v5125_v47, 0.0  ;;  %v9760_v47 = vpack.c.bf16 %v8913_v34, %v8909_v55  ;;  %v8959_v55 = vld [vmem:[%s16248_s5 + $0x870] sm:$0xff]  ;;  %v8980_v30 = vld [vmem:[%s16248_s5 + $0x8e8] sm:$0xff] }
 0x824   : > { %v8963_v34 = vld [vmem:[%s16248_s5 + $0x890] sm:$0xff] }
 0x825   : > { %8695 = vmatpush1.msk.msra.mxu0 %vm853_vm1, %v8689_v5  ;;  %v5158_v45 = vsel %vm5151_vm4, %v5147_v27, -inf  ;;  %v8921_v5 = vld [vmem:[%s16248_s5 + $0x770] sm:$0xff]  ;;  %v8948_v27 = vld [vmem:[%s16248_s5 + $0x818] sm:$0xff] }
 0x826   : > { %8696 = vmatmul.mubr.msk.f32.vlgmr.msra.gmra.mrb[106].mxu0 %vm5151_vm4, %v5278_v51  ;;  %9579 = vmatprep.subr.bf16.mxu0 %v9578_v31  ;;  %v5242_v51 = vld [vmem:[%s16248_s5 + $0xb0] sm:$0xff] }
 0x827   : > { %9581 = vmatpush1.bf16.msra.mxu0 %v9580_v8  ;;  %5513 = vmatprep.mubr.f32.mxu0 %v10432_v28  ;;  %v9600_v0 = vpack.c.bf16 %v5242_v51, %v5238_v2  ;;  %v8930_v8 = vld [vmem:[%s16248_s5 + $0x7b8] sm:$0xff]  ;;  %v8965_v2 = vld [vmem:[%s16248_s5 + $0x8a0] sm:$0x3] }
 0x828   : > { %9583 = vmatprep.subr.bf16.mxu0 %v9582_v24  ;;  %v9764_v24 = vpack.c.bf16 %v8921_v5, %v8917_v16  ;;  %v9794_v16 = vpack.c.bf16 %v8980_v30, %v8976_v39  ;;  %v9029_v39 = vld [vmem:[%s16248_s5 + $0xa40] sm:$0xff] }
 0x82b   : > { %9585 = vmatpush1.bf16.msra.mxu0 %v9584_v54  ;;  %v8934_v54 = vld [vmem:[%s16248_s5 + $0x7d8] sm:$0x3] }
 0x82c   : > { %9587 = vmatprep.subr.bf16.mxu0 %v9586_v32  ;;  %v8942_v32 = vld [vmem:[%s16248_s5 + $0x7e8] sm:$0xff] }
 0x82d   : > { %v9770_v22 = vpack.c.bf16 %v8946_v52, %v8942_v32  ;;  %v8995_v32 = vld [vmem:[%s16248_s5 + $0x960] sm:$0xff] }
 0x82f   : > { %9589 = vmatpush1.bf16.msra.mxu0 %v9588_v40  ;;  %v8945_v40 = vld [vmem:[%s16248_s5 + $0x800] sm:$0xff] }
 0x830   : > { %8697 = vmatprep.subr.msk.mxu0 %vm853_vm1, %v5245_v7  ;;  %v8950_v7 = vld [vmem:[%s16248_s5 + $0x828] sm:$0xff]  ;;  %v9772_v14 = vpack.c.bf16 %v8945_v40, %v8941_v15  ;;  %v8978_v40 = vld [vmem:[%s16248_s5 + $0x8d8] sm:$0xff] }
 0x831   : > { %v9774_v19 = vpack.c.bf16 %v8954_v59, %v8950_v7  ;;  %v9000_v15 = vld [vmem:[%s16248_s5 + $0x988] sm:$0x3]  ;;  %v8982_v7 = vld [vmem:[%s16248_s5 + $0x8f8] sm:$0xff]  ;;  %v8977_v59 = vld [vmem:[%s16248_s5 + $0x8d0] sm:$0xff] }
 0x833   : > { %8698 = vmatpush1.msk.msra.mxu0 %vm853_vm1, %v5244_v53  ;;  %v8953_v53 = vld [vmem:[%s16248_s5 + $0x840] sm:$0xff] }
 0x834   : > { %8699 = vmatmul.mubr.msk.f32.vlgmr.msra.gmra.mrb[104].mxu0 %vm5151_vm4, %v14380_v38  ;;  %9591 = vmatprep.subr.bf16.mxu0 %v9590_v60  ;;  %v5129_v49 = vpop.f32.mrb[98].mxu0  ;;  %v8958_v60 = vld [vmem:[%s16248_s5 + $0x868] sm:$0xff] }
 0x835   : > { %v5130_v29 = vadd.f32 %v5129_v49, %v5025_v36  ;;  %9593 = vmatpush1.bf16.msra.mxu0 %v9592_v13  ;;  %v5131_v43 = vpop.f32.mrb[99].mxu0  ;;  %5584 = vmatprep.mubr.f32.mxu0 %v10432_v28  ;;  %v8962_v13 = vld [vmem:[%s16248_s5 + $0x888] sm:$0xff]  ;;  %v8961_v36 = vld [vmem:[%s16248_s5 + $0x880] sm:$0xff]  ;;  %v8944_v49 = vld [vmem:[%s16248_s5 + $0x7f8] sm:$0xff] }
 0x836   : > { %9595 = vmatprep.subr.bf16.mxu0 %v9594_v58  ;;  %v9776_v58 = vpack.c.bf16 %v8953_v53, %v8949_v44  ;;  %v9778_v35 = vpack.c.bf16 %v8962_v13, %v8958_v60  ;;  %v9780_v41 = vpack.c.bf16 %v8961_v36, %v8957_v33  ;;  %v8947_v43 = vld [vmem:[%s16248_s5 + $0x810] sm:$0xff]  ;;  %v9782_v51 = vpack.c.bf16 %v8948_v27, %v8944_v49  ;;  %v8994_v33 = vld [vmem:[%s16248_s5 + $0x958] sm:$0xff] }
 0x837   : > { %v5148_v11 = vmax.f32 %v5130_v29, 0.0  ;;  %v8943_v29 = vld [vmem:[%s16248_s5 + $0x7f0] sm:$0xff]  ;;  %v9806_v44 = vpack.c.bf16 %v8982_v7, %v8978_v40  ;;  %v8998_v36 = vld [vmem:[%s16248_s5 + $0x978] sm:$0xff] }
 0x838   : > { %v8993_v49 = vld [vmem:[%s16248_s5 + $0x950] sm:$0xff] }
 0x839   : > { %v5159_v63 = vsel %vm5151_vm4, %v5148_v11, -inf  ;;  %9597 = vmatpush1.bf16.msra.mxu0 %v9596_v6  ;;  %v8952_v6 = vld [vmem:[%s16248_s5 + $0x838] sm:$0xff]  ;;  %v9784_v11 = vpack.c.bf16 %v8947_v43, %v8943_v29  ;;  %v8997_v27 = vld [vmem:[%s16248_s5 + $0x970] sm:$0xff] }
 0x83a   : > { %v5160_v42 = vmax.f32 %v5158_v45, %v5159_v63  ;;  %9599 = vmatprep.subr.bf16.mxu0 %v9598_v17  ;;  %v8956_v17 = vld [vmem:[%s16248_s5 + $0x858] sm:$0xff]  ;;  %v9816_v29 = vpack.c.bf16 %v8997_v27, %v8993_v49  ;;  %v9031_v40 = vld [vmem:[%s16248_s5 + $0xa50] sm:$0xff] }
 0x83b   : > { %v9786_v63 = vpack.c.bf16 %v8956_v17, %v8952_v6  ;;  %v9002_v43 = vld [vmem:[%s16248_s5 + $0x998] sm:$0x3]  ;;  %v9010_v6 = vld [vmem:[%s16248_s5 + $0x9a8] sm:$0xff] }
 0x83c   : > { %v5170_v50 = vrot.slane %v5160_v42, 1  ;;  %v9014_v17 = vld [vmem:[%s16248_s5 + $0x9c8] sm:$0xff] }
 0x83d   : > { %9601 = vmatpush1.bf16.msra.mxu0 %v9600_v0  ;;  %v8951_v0 = vld [vmem:[%s16248_s5 + $0x830] sm:$0xff] }
 0x83e   : > { %v5178_v23 = vmax.f32 %v5160_v42, %v5170_v50  ;;  %8700 = vmatprep.subr.msk.mxu0 %vm853_vm1, %v5247_v12  ;;  %v8955_v42 = vld [vmem:[%s16248_s5 + $0x850] sm:$0xff]  ;;  %v8960_v12 = vld [vmem:[%s16248_s5 + $0x878] sm:$0xff] }
 0x83f   : > { %v8964_v50 = vld [vmem:[%s16248_s5 + $0x898] sm:$0xff] }
 0x840   : > { %v5186_v4 = vrot.slane %v5178_v23, 1  ;;  %v5194_v18 = vrot.slane %v5178_v23, 2  ;;  %v5202_v57 = vrot.slane %v5178_v23, 3 }
 0x841   : > { %8701 = vmatpush1.msk.msra.mxu0 %vm853_vm1, %v5246_v10  ;;  %v9790_v10 = vpack.c.bf16 %v8964_v50, %v8960_v12  ;;  %v9017_v50 = vld [vmem:[%s16248_s5 + $0x9e0] sm:$0xff] }
 0x842   : > { %8702 = vmatmul.mubr.msk.f32.vlgmr.msra.gmra.mrb[106].mxu0 %vm5151_vm4, %v14380_v38  ;;  %v5210_v46 = vsel %vm16988_vm2, %v5178_v23, %v5186_v4  ;;  %v8926_v38 = vld [vmem:[%s16248_s5 + $0x798] sm:$0xff]  ;;  %v9788_v23 = vpack.c.bf16 %v8955_v42, %v8951_v0  ;;  %v9792_v4 = vpack.c.bf16 %v8963_v34, %v8959_v55  ;;  %v9818_v0 = vpack.c.bf16 %v9014_v17, %v9010_v6  ;;  %v9030_v55 = vld [vmem:[%s16248_s5 + $0xa48] sm:$0xff] }
 0x843   : > { %v5214_v1 = vsel %vm853_vm1, %v5210_v46, %v5194_v18  ;;  %v9766_v3 = vpack.c.bf16 %v8930_v8, %v8926_v38  ;;  %v8968_v18 = vld [vmem:[%s16248_s5 + $0x8b8] sm:$0x3]  ;;  %v8979_v46 = vld [vmem:[%s16248_s5 + $0x8e0] sm:$0xff]  ;;  %v9068_v17 = vld [vmem:[%s16248_s5 + $0xb48] sm:$0x3] }
 0x844   : > { %v15265_v31 = vsel %vm16989_vm11, %v5214_v1, %v5202_v57  ;;  %v8975_v57 = vld [vmem:[%s16248_s5 + $0x8c0] sm:$0xff]  ;;  %v8988_v1 = vld [vmem:[%s16248_s5 + $0x928] sm:$0xff] }
 0x845   : > { %8937 = vmatmul.mubr.msk.f32.vlgmr.msra.gmra.mrb[0].mxu1 %vm5151_vm4, %v15265_v31  ;;  %v6950_v45 = vrot.slane %v15265_v31, 1  ;;  %v9796_v5 = vpack.c.bf16 %v8979_v46, %v8975_v57  ;;  %v8983_v8 = vld [vmem:[%s16248_s5 + $0x900] sm:$0xff]  ;;  %v7140_v60 = vrot.slane %v15265_v31, 2  ;;  %v9034_v57 = vld [vmem:[%s16248_s5 + $0xa68] sm:$0x3]  ;;  %v9012_v46 = vld [vmem:[%s16248_s5 + $0x9b8] sm:$0xff] }
 0x846   : > { %9761 = vmatpush1.bf16.msra.mxu1 %v9760_v47  ;;  %6910 = vmatprep.mubr.f32.mxu1 %v10432_v28  ;;  %v8984_v47 = vld [vmem:[%s16248_s5 + $0x908] sm:$0xff] }
 0x847   : > { %9763 = vmatprep.subr.bf16.mxu1 %v9762_v37  ;;  %v8967_v37 = vld [vmem:[%s16248_s5 + $0x8b0] sm:$0x3]  ;;  %v9798_v38 = vpack.c.bf16 %v8988_v1, %v8984_v47  ;;  %v9016_v47 = vld [vmem:[%s16248_s5 + $0x9d8] sm:$0xff] }
 0x848   : > { %v9011_v1 = vld [vmem:[%s16248_s5 + $0x9b0] sm:$0xff] }
 0x84a   : > { %9765 = vmatpush1.bf16.msra.mxu1 %v9764_v24  ;;  %v8987_v24 = vld [vmem:[%s16248_s5 + $0x920] sm:$0xff] }
 0x84b   : > { %9767 = vmatprep.subr.bf16.mxu1 %v9766_v3  ;;  %v8992_v3 = vld [vmem:[%s16248_s5 + $0x948] sm:$0xff]  ;;  %v9800_v61 = vpack.c.bf16 %v8987_v24, %v8983_v8  ;;  %v9830_v8 = vpack.c.bf16 %v9016_v47, %v9012_v46  ;;  %v8301_v46 = vld [vmem:[%s16250_s7 + $0xa0] sm:$0xff] }
 0x84c   : > { %v8302_v47 = vld [vmem:[%s16250_s7 + $0xa8] sm:$0xff] }
 0x84e   : > { %9769 = vmatpush1.bf16.msra.mxu1 %v9768_v25  ;;  %v9802_v25 = vpack.c.bf16 %v8996_v56, %v8992_v3  ;;  %v7330_v3 = vrot.slane %v15265_v31, 3 }
 0x84f   : > { %8938 = vmatprep.subr.msk.mxu1 %vm853_vm1, %v8934_v54  ;;  %v8991_v54 = vld [vmem:[%s16248_s5 + $0x940] sm:$0xff] }
 0x850   : > { %v9804_v52 = vpack.c.bf16 %v8995_v32, %v8991_v54  ;;  %v9028_v54 = vld [vmem:[%s16248_s5 + $0xa38] sm:$0xff] }
 0x851   : > { %v9032_v32 = vld [vmem:[%s16248_s5 + $0xa58] sm:$0xff] }
 0x852   : > { %8939 = vmatpush1.msk.msra.mxu1 %vm853_vm1, %v8933_v20  ;;  %v8981_v20 = vld [vmem:[%s16248_s5 + $0x8f0] sm:$0xff] }
 0x853   : > { %8940 = vmatmul.mubr.msk.f32.vlgmr.msra.gmra.mrb[2].mxu1 %vm5151_vm4, %v15265_v31  ;;  %9771 = vmatprep.subr.bf16.mxu1 %v9770_v22  ;;  %v8986_v22 = vld [vmem:[%s16248_s5 + $0x918] sm:$0xff]  ;;  %v9808_v53 = vpack.c.bf16 %v8981_v20, %v8977_v59  ;;  %v9044_v20 = vld [vmem:[%s16248_s5 + $0xa88] sm:$0xff] }
 0x854   : > { %9773 = vmatpush1.bf16.msra.mxu1 %v9772_v14  ;;  %7029 = vmatprep.mubr.f32.mxu1 %v10432_v28  ;;  %v8990_v14 = vld [vmem:[%s16248_s5 + $0x938] sm:$0xff] }
 0x855   : > { %9775 = vmatprep.subr.bf16.mxu1 %v9774_v19  ;;  %v8999_v19 = vld [vmem:[%s16248_s5 + $0x980] sm:$0x3]  ;;  %v9810_v13 = vpack.c.bf16 %v8990_v14, %v8986_v22  ;;  %v9036_v59 = vld [vmem:[%s16248_s5 + $0xa78] sm:$0x3]  ;;  %v9048_v22 = vld [vmem:[%s16248_s5 + $0xaa8] sm:$0xff] }
 0x856   : > { %v9043_v14 = vld [vmem:[%s16248_s5 + $0xa80] sm:$0xff] }
 0x858   : > { %9777 = vmatpush1.bf16.msra.mxu1 %v9776_v58  ;;  %v8985_v58 = vld [vmem:[%s16248_s5 + $0x910] sm:$0xff] }
 0x859   : > { %9779 = vmatprep.subr.bf16.mxu1 %v9778_v35  ;;  %v8989_v35 = vld [vmem:[%s16248_s5 + $0x930] sm:$0xff] }
 0x85c   : > { %9781 = vmatpush1.bf16.msra.mxu1 %v9780_v41  ;;  %v9812_v41 = vpack.c.bf16 %v8989_v35, %v8985_v58 }
 0x85d   : > { %8969 = vmatprep.subr.msk.mxu1 %vm853_vm1, %v8966_v9  ;;  %v9814_v9 = vpack.c.bf16 %v8998_v36, %v8994_v33  ;;  %v9051_v33 = vld [vmem:[%s16248_s5 + $0xac0] sm:$0xff] }
 0x85e   : > { %v9055_v36 = vld [vmem:[%s16248_s5 + $0xae0] sm:$0xff] }
 0x85f   : > { %v9848_v49 = vpack.c.bf16 %v9055_v36, %v9051_v33 }
 0x860   : > { %8970 = vmatpush1.msk.msra.mxu1 %vm853_vm1, %v8965_v2  ;;  %v9009_v2 = vld [vmem:[%s16248_s5 + $0x9a0] sm:$0xff] }
 0x861   : > { %8971 = vmatmul.mubr.msk.f32.vlgmr.msra.gmra.mrb[0].mxu1 %vm5151_vm4, %v6950_v45  ;;  %9783 = vmatprep.subr.bf16.mxu1 %v9782_v51  ;;  %v9013_v51 = vld [vmem:[%s16248_s5 + $0x9c0] sm:$0xff] }
 0x862   : > { %9785 = vmatpush1.bf16.msra.mxu1 %v9784_v11  ;;  %7100 = vmatprep.mubr.f32.mxu1 %v10432_v28  ;;  %v9018_v11 = vld [vmem:[%s16248_s5 + $0x9e8] sm:$0xff]  ;;  %v9820_v42 = vpack.c.bf16 %v9013_v51, %v9009_v2  ;;  %v9046_v2 = vld [vmem:[%s16248_s5 + $0xa98] sm:$0xff] }
 0x863   : > { %9787 = vmatprep.subr.bf16.mxu1 %v9786_v63  ;;  %v9001_v63 = vld [vmem:[%s16248_s5 + $0x990] sm:$0x3]  ;;  %v9050_v51 = vld [vmem:[%s16248_s5 + $0xab8] sm:$0xff] }
 0x866   : > { %9789 = vmatpush1.bf16.msra.mxu1 %v9788_v23  ;;  %v9021_v23 = vld [vmem:[%s16248_s5 + $0xa00] sm:$0xff] }
 0x867   : > { %9791 = vmatprep.subr.bf16.mxu1 %v9790_v10  ;;  %v9026_v10 = vld [vmem:[%s16248_s5 + $0xa28] sm:$0xff]  ;;  %v9824_v34 = vpack.c.bf16 %v9021_v23, %v9017_v50  ;;  %v8297_v50 = vld [vmem:[%s16250_s7 + $0x80] sm:$0xff] }
 0x868   : > { %v8298_v23 = vld [vmem:[%s16250_s7 + $0x88] sm:$0xff] }
 0x86a   : > { %9793 = vmatpush1.bf16.msra.mxu1 %v9792_v4  ;;  %v9826_v4 = vpack.c.bf16 %v9030_v55, %v9026_v10  ;;  %v8281_v10 = vld [vmem:[%s16250_s7] sm:$0xff]  ;;  %v9938_v55 = vpack.c.bf16 %v8298_v23, %v8297_v50  ;;  %v9066_v50 = vld [vmem:[%s16248_s5 + $0xb38] sm:$0xff] }
 0x86b   : > { %8972 = vmatprep.subr.msk.mxu1 %vm853_vm1, %v8968_v18  ;;  %v9025_v18 = vld [vmem:[%s16248_s5 + $0xa20] sm:$0xff] }
 0x86c   : > { %v9828_v30 = vpack.c.bf16 %v9029_v39, %v9025_v18  ;;  %9939 = vmatprep.subr.bf16.mxu0 %v9938_v55  ;;  %v9061_v55 = vld [vmem:[%s16248_s5 + $0xb10] sm:$0xff] }
 0x86e   : > { %8973 = vmatpush1.msk.msra.mxu1 %vm853_vm1, %v8967_v37  ;;  %v9015_v37 = vld [vmem:[%s16248_s5 + $0x9d0] sm:$0xff] }
 0x86f   : > { %8974 = vmatmul.mubr.msk.f32.vlgmr.msra.gmra.mrb[2].mxu1 %vm5151_vm4, %v6950_v45  ;;  %9795 = vmatprep.subr.bf16.mxu1 %v9794_v16  ;;  %v9022_v45 = vld [vmem:[%s16248_s5 + $0xa08] sm:$0xff]  ;;  %v9020_v16 = vld [vmem:[%s16248_s5 + $0x9f8] sm:$0xff]  ;;  %v9832_v24 = vpack.c.bf16 %v9015_v37, %v9011_v1  ;;  %v9946_v37 = vpack.c.bf16 %v8302_v47, %v8301_v46 }
 0x870   : > { %9797 = vmatpush1.bf16.msra.mxu1 %v9796_v5  ;;  %7219 = vmatprep.mubr.f32.mxu1 %v10432_v28  ;;  %v9822_v12 = vpack.c.bf16 %v9022_v45, %v9018_v11  ;;  %v9024_v5 = vld [vmem:[%s16248_s5 + $0xa18] sm:$0xff]  ;;  %v9067_v11 = vld [vmem:[%s16248_s5 + $0xb40] sm:$0x3]  ;;  %v9854_v45 = vpack.c.bf16 %v9050_v51, %v9046_v2  ;;  %v9086_v46 = vld [vmem:[%s16248_s5 + $0xba8] sm:$0xff] }
 0x871   : > { %9799 = vmatprep.subr.bf16.mxu1 %v9798_v38  ;;  %v9033_v38 = vld [vmem:[%s16248_s5 + $0xa60] sm:$0x3]  ;;  %v9834_v56 = vpack.c.bf16 %v9024_v5, %v9020_v16  ;;  %v8286_v5 = vld [vmem:[%s16250_s7 + $0x28] sm:$0xff] }
 0x872   : > { %v8285_v16 = vld [vmem:[%s16250_s7 + $0x20] sm:$0xff]  ;;  %v9090_v47 = vld [vmem:[%s16248_s5 + $0xbc8] sm:$0xff] }
 0x874   : > { %9801 = vmatpush1.bf16.msra.mxu1 %v9800_v61  ;;  %v9019_v61 = vld [vmem:[%s16248_s5 + $0x9f0] sm:$0xff] }
 0x875   : > { %9803 = vmatprep.subr.bf16.mxu1 %v9802_v25  ;;  %v9023_v25 = vld [vmem:[%s16248_s5 + $0xa10] sm:$0xff] }
 0x876   : > { %v9836_v31 = vpack.c.bf16 %v9023_v25, %v9019_v61  ;;  %v8288_v61 = vld [vmem:[%s16250_s7 + $0x38] sm:$0xff]  ;;  %v8305_v25 = vld [vmem:[%s16250_s7 + $0xc0] sm:$0xff] }
 0x878   : > { %9805 = vmatpush1.bf16.msra.mxu1 %v9804_v52  ;;  %v9838_v52 = vpack.c.bf16 %v9032_v32, %v9028_v54  ;;  %v8306_v54 = vld [vmem:[%s16250_s7 + $0xc8] sm:$0xff]  ;;  %v5035_v32 = vadd.f32 %v15133_v62, %v14290_v26  ;;  %v8307_v26 = vld [vmem:[%s16250_s7 + $0xd0] sm:$0xff] }
 0x879   : > { %9003 = vmatprep.subr.msk.mxu1 %vm853_vm1, %v9000_v15  ;;  %v9027_v15 = vld [vmem:[%s16248_s5 + $0xa30] sm:$0xff] }
 0x87a   : > { %v9840_v7 = vpack.c.bf16 %v9031_v40, %v9027_v15  ;;  %v9954_v15 = vpack.c.bf16 %v8306_v54, %v8305_v25  ;;  %v8289_v40 = vld [vmem:[%s16250_s7 + $0x40] sm:$0xff] }
 0x87c   : > { %9004 = vmatpush1.msk.msra.mxu1 %vm853_vm1, %v8999_v19  ;;  %v9047_v19 = vld [vmem:[%s16248_s5 + $0xaa0] sm:$0xff] }
 0x87d   : > { %9005 = vmatmul.mubr.msk.f32.vlgmr.msra.gmra.mrb[0].mxu1 %vm5151_vm4, %v7140_v60  ;;  %9807 = vmatprep.subr.bf16.mxu1 %v9806_v44  ;;  %v9052_v44 = vld [vmem:[%s16248_s5 + $0xac8] sm:$0xff]  ;;  %v9844_v58 = vpack.c.bf16 %v9047_v19, %v9043_v14 }
 0x87e   : > { %9809 = vmatpush1.bf16.msra.mxu1 %v9808_v53  ;;  %7290 = vmatprep.mubr.f32.mxu1 %v10432_v28  ;;  %v9056_v53 = vld [vmem:[%s16248_s5 + $0xae8] sm:$0xff] }
 0x87f   : > { %9811 = vmatprep.subr.bf16.mxu1 %v9810_v13  ;;  %v9842_v13 = vpack.c.bf16 %v9048_v22, %v9044_v20  ;;  %v9846_v35 = vpack.c.bf16 %v9056_v53, %v9052_v44  ;;  %v8291_v53 = vld [vmem:[%s16250_s7 + $0x50] sm:$0xff] }
 0x882   : > { %9813 = vmatpush1.bf16.msra.mxu1 %v9812_v41  ;;  %v9060_v41 = vld [vmem:[%s16248_s5 + $0xb08] sm:$0xff] }
 0x883   : > { %9815 = vmatprep.subr.bf16.mxu1 %v9814_v9  ;;  %v9064_v9 = vld [vmem:[%s16248_s5 + $0xb28] sm:$0xff] }
 0x884   : > { %v9850_v27 = vpack.c.bf16 %v9064_v9, %v9060_v41  ;;  %v9045_v9 = vld [vmem:[%s16248_s5 + $0xa90] sm:$0xff] }
 0x886   : > { %9817 = vmatpush1.bf16.msra.mxu1 %v9816_v29  ;;  %v9059_v29 = vld [vmem:[%s16248_s5 + $0xb00] sm:$0xff] }
 0x887   : > { %9006 = vmatprep.subr.msk.mxu1 %vm853_vm1, %v9002_v43  ;;  %v9063_v43 = vld [vmem:[%s16248_s5 + $0xb20] sm:$0xff] }
 0x888   : > { %v9852_v6 = vpack.c.bf16 %v9063_v43, %v9059_v29  ;;  %v9054_v43 = vld [vmem:[%s16248_s5 + $0xad8] sm:$0xff] }
 0x88a   : > { %9007 = vmatpush1.msk.msra.mxu1 %vm853_vm1, %v9001_v63  ;;  %v5030_v63 = vadd.f32 %v15133_v62, %v14274_v48  ;;  %v8282_v48 = vld [vmem:[%s16250_s7 + $0x8] sm:$0xff]  ;;  %v8308_v62 = vld [vmem:[%s16250_s7 + $0xd8] sm:$0xff] }
 0x88b   : > { %9008 = vmatmul.mubr.msk.f32.vlgmr.msra.gmra.mrb[2].mxu1 %vm5151_vm4, %v7140_v60  ;;  %9819 = vmatprep.subr.bf16.mxu1 %v9818_v0  ;;  %v9035_v60 = vld [vmem:[%s16248_s5 + $0xa70] sm:$0x3]  ;;  %v9940_v18 = vpack.c.bf16 %v8282_v48, %v8281_v10  ;;  %v9958_v44 = vpack.c.bf16 %v8308_v62, %v8307_v26  ;;  %v9092_v26 = vld [vmem:[%s16248_s5 + $0xbd8] sm:$0xff]  ;;  %v9101_v62 = vld [vmem:[%s16248_s5 + $0xc20] sm:$0x3] }
 0x88c   : > { %9821 = vmatpush1.bf16.msra.mxu1 %v9820_v42  ;;  %7409 = vmatprep.mubr.f32.mxu1 %v10432_v28  ;;  %v9065_v48 = vld [vmem:[%s16248_s5 + $0xb30] sm:$0xff] }
 0x88d   : > { %9823 = vmatprep.subr.bf16.mxu1 %v9822_v12  ;;  %9941 = vmatpush3.bf16.msra.mxu0 %v9940_v18  ;;  %v9078_v18 = vld [vmem:[%s16248_s5 + $0xb68] sm:$0xff] }
 0x890   : > { %9825 = vmatpush1.bf16.msra.mxu1 %v9824_v34  ;;  %v8299_v34 = vld [vmem:[%s16250_s7 + $0x90] sm:$0xff] }
 0x891   : > { %9827 = vmatprep.subr.bf16.mxu1 %v9826_v4  ;;  %v8300_v4 = vld [vmem:[%s16250_s7 + $0x98] sm:$0xff] }
 0x892   : > { %v9942_v39 = vpack.c.bf16 %v8300_v4, %v8299_v34  ;;  %v9864_v34 = vpack.c.bf16 %v9065_v48, %v9061_v55  ;;  %v9070_v4 = vld [vmem:[%s16248_s5 + $0xb58] sm:$0x3]  ;;  %v9128_v55 = vld [vmem:[%s16248_s5 + $0xcc8] sm:$0xff] }
 0x893   : > { %v9132_v48 = vld [vmem:[%s16248_s5 + $0xce8] sm:$0xff] }
 0x894   : > { %9829 = vmatpush1.bf16.msra.mxu1 %v9828_v30  ;;  %v8283_v30 = vld [vmem:[%s16250_s7 + $0x10] sm:$0xff]  ;;  %9943 = vmatprep.subr.bf16.mxu0 %v9942_v39  ;;  %v9082_v39 = vld [vmem:[%s16248_s5 + $0xb88] sm:$0xff] }
 0x895   : > { %9037 = vmatprep.subr.msk.mxu1 %vm853_vm1, %v9034_v57  ;;  %v8284_v57 = vld [vmem:[%s16250_s7 + $0x18] sm:$0xff] }
 0x896   : > { %v9944_v1 = vpack.c.bf16 %v8284_v57, %v8283_v30  ;;  %v9077_v30 = vld [vmem:[%s16248_s5 + $0xb60] sm:$0xff] }
 0x897   : > { %v9081_v57 = vld [vmem:[%s16248_s5 + $0xb80] sm:$0xff] }
 0x898   : > { %9038 = vmatpush1.msk.msra.mxu1 %vm853_vm1, %v9033_v38  ;;  %v8303_v38 = vld [vmem:[%s16250_s7 + $0xb0] sm:$0xff]  ;;  %9945 = vmatpush3.bf16.msra.mxu0 %v9944_v1 }
 0x899   : > { %9039 = vmatmul.mubr.msk.f32.vlgmr.msra.gmra.mrb[0].mxu1 %vm5151_vm4, %v7330_v3  ;;  %9831 = vmatprep.subr.bf16.mxu1 %v9830_v8  ;;  %v8304_v8 = vld [vmem:[%s16250_s7 + $0xb8] sm:$0xff]  ;;  %v9069_v1 = vld [vmem:[%s16248_s5 + $0xb50] sm:$0x3] }
 0x89a   : > { %9833 = vmatpush1.bf16.msra.mxu1 %v9832_v24  ;;  %7480 = vmatprep.mubr.f32.mxu1 %v10432_v28  ;;  %v9948_v24 = vpack.c.bf16 %v8286_v5, %v8285_v16  ;;  %v9868_v16 = vpack.c.bf16 %v9081_v57, %v9077_v30  ;;  %v9870_v5 = vpack.c.bf16 %v9090_v47, %v9086_v46  ;;  %v9136_v57 = vld [vmem:[%s16248_s5 + $0xd08] sm:$0x3]  ;;  %v9114_v46 = vld [vmem:[%s16248_s5 + $0xc58] sm:$0xff] }
 0x89b   : > { %9835 = vmatprep.subr.bf16.mxu1 %v9834_v56  ;;  %9947 = vmatprep.subr.bf16.mxu0 %v9946_v37  ;;  %v8287_v56 = vld [vmem:[%s16250_s7 + $0x30] sm:$0xff]  ;;  %v9866_v37 = vpack.c.bf16 %v9082_v39, %v9078_v18  ;;  %v9127_v18 = vld [vmem:[%s16248_s5 + $0xcc0] sm:$0xff]  ;;  %v9118_v47 = vld [vmem:[%s16248_s5 + $0xc78] sm:$0xff] }
 0x89c   : > { %9949 = vmatpush3.bf16.msra.mxu0 %v9948_v24  ;;  %v9094_v24 = vld [vmem:[%s16248_s5 + $0xbe8] sm:$0xff]  ;;  %v9131_v39 = vld [vmem:[%s16248_s5 + $0xce0] sm:$0xff] }
 0x89d   : > { %v9900_v30 = vpack.c.bf16 %v9131_v39, %v9127_v18  ;;  %v9159_v18 = vld [vmem:[%s16248_s5 + $0xd90] sm:$0xff]  ;;  %v9164_v39 = vld [vmem:[%s16248_s5 + $0xdb8] sm:$0xff] }
 0x89e   : > { %9837 = vmatpush1.bf16.msra.mxu1 %v9836_v31  ;;  %v9952_v31 = vpack.c.bf16 %v8288_v61, %v8287_v56 }
 0x89f   : > { %9839 = vmatprep.subr.bf16.mxu1 %v9838_v52 }
 0x8a2   : > { %9841 = vmatpush1.bf16.msra.mxu1 %v9840_v7  ;;  %v8290_v7 = vld [vmem:[%s16250_s7 + $0x48] sm:$0xff] }
 0x8a3   : > { %9040 = vmatprep.subr.msk.mxu1 %vm853_vm1, %v9036_v59  ;;  %v9956_v19 = vpack.c.bf16 %v8290_v7, %v8289_v40  ;;  %v9080_v40 = vld [vmem:[%s16248_s5 + $0xb78] sm:$0xff] }
 0x8a4   : > { %v9084_v7 = vld [vmem:[%s16248_s5 + $0xb98] sm:$0xff] }
 0x8a6   : > { %9041 = vmatpush1.msk.msra.mxu1 %vm853_vm1, %v9035_v60  ;;  %v8292_v60 = vld [vmem:[%s16250_s7 + $0x58] sm:$0xff] }
 0x8a7   : > { %9042 = vmatmul.mubr.msk.f32.vlgmr.msra.gmra.mrb[2].mxu1 %vm5151_vm4, %v7330_v3  ;;  %9843 = vmatprep.subr.bf16.mxu1 %v9842_v13  ;;  %v9950_v3 = vpack.c.bf16 %v8304_v8, %v8303_v38  ;;  %v9960_v33 = vpack.c.bf16 %v8292_v60, %v8291_v53  ;;  %v9085_v38 = vld [vmem:[%s16248_s5 + $0xba0] sm:$0xff]  ;;  %v9087_v60 = vld [vmem:[%s16248_s5 + $0xbb0] sm:$0xff] }
 0x8a8   : > { %9845 = vmatpush1.bf16.msra.mxu1 %v9844_v58  ;;  %7599 = vmatprep.mubr.f32.mxu1 %v10432_v28  ;;  %v9089_v8 = vld [vmem:[%s16248_s5 + $0xbc0] sm:$0xff] }
 0x8a9   : > { %9847 = vmatprep.subr.bf16.mxu1 %v9846_v35  ;;  %9951 = vmatprep.subr.bf16.mxu0 %v9950_v3  ;;  %v9098_v3 = vld [vmem:[%s16248_s5 + $0xc08] sm:$0xff]  ;;  %v9872_v61 = vpack.c.bf16 %v9089_v8, %v9085_v38  ;;  %v9135_v38 = vld [vmem:[%s16248_s5 + $0xd00] sm:$0x3]  ;;  %v9902_v8 = vpack.c.bf16 %v9118_v47, %v9114_v46  ;;  %v9163_v46 = vld [vmem:[%s16248_s5 + $0xdb0] sm:$0xff] }
 0x8aa   : > { %9953 = vmatpush3.bf16.msra.mxu0 %v9952_v31  ;;  %v9874_v54 = vpack.c.bf16 %v9098_v3, %v9094_v24  ;;  %v9097_v31 = vld [vmem:[%s16248_s5 + $0xc00] sm:$0xff]  ;;  %v9167_v47 = vld [vmem:[%s16248_s5 + $0xdd0] sm:$0xff] }
 0x8ab   : > { %9955 = vmatprep.subr.bf16.mxu0 %v9954_v15  ;;  %v9102_v15 = vld [vmem:[%s16248_s5 + $0xc28] sm:$0x3] }
 0x8ac   : > { %9849 = vmatpush1.bf16.msra.mxu1 %v9848_v49  ;;  %v9049_v49 = vld [vmem:[%s16248_s5 + $0xab0] sm:$0xff] }
 0x8ad   : > { %9851 = vmatprep.subr.bf16.mxu1 %v9850_v27  ;;  %v9856_v51 = vpack.c.bf16 %v9049_v49, %v9045_v9  ;;  %v9095_v49 = vld [vmem:[%s16248_s5 + $0xbf0] sm:$0xff] }
 0x8ae   : > { %9957 = vmatpush3.bf16.msra.mxu0 %v9956_v19 }
 0x8af   : > { %9959 = vmatprep.subr.bf16.mxu0 %v9958_v44 }
 0x8b0   : > { %9853 = vmatpush1.bf16.msra.mxu1 %v9852_v6  ;;  %v9058_v6 = vld [vmem:[%s16248_s5 + $0xaf8] sm:$0xff] }
 0x8b1   : > { %9071 = vmatprep.subr.msk.mxu1 %vm853_vm1, %v9068_v17 }
 0x8b2   : > { %9961 = vmatpush3.bf16.msra.mxu0 %v9960_v33 }
 0x8b4   : > { %9072 = vmatpush1.msk.msra.mxu1 %vm853_vm1, %v9067_v11 }
 0x8b5   : > { %9855 = vmatprep.subr.bf16.mxu1 %v9854_v45  ;;  %v9858_v45 = vpack.c.bf16 %v9058_v6, %v9054_v43  ;;  %v9104_v43 = vld [vmem:[%s16248_s5 + $0xc38] sm:$0x3]  ;;  %v9112_v6 = vld [vmem:[%s16248_s5 + $0xc48] sm:$0xff] }
 0x8cf   : > { %v5134_v0 = vpop.f32.mrb[100].mxu0 }
 0x8d0   : > { %v5135_v42 = vadd.f32 %v5134_v0, %v5030_v63  ;;  %v5136_v12 = vpop.f32.mrb[101].mxu0  ;;  %v9053_v63 = vld [vmem:[%s16248_s5 + $0xad0] sm:$0xff] }
 0x8d1   : > { %v9057_v0 = vld [vmem:[%s16248_s5 + $0xaf0] sm:$0xff]  ;;  %v9062_v12 = vld [vmem:[%s16248_s5 + $0xb18] sm:$0xff] }
 0x8d2   : > { %v5149_v59 = vmax.f32 %v5135_v42, 0.0  ;;  %v9860_v23 = vpack.c.bf16 %v9057_v0, %v9053_v63  ;;  %v9862_v10 = vpack.c.bf16 %v9066_v50, %v9062_v12  ;;  %v9103_v63 = vld [vmem:[%s16248_s5 + $0xc30] sm:$0x3] }
 0x8d4   : > { %v5161_v13 = vsel %vm5151_vm4, %v5149_v59, -inf  ;;  %v9079_v59 = vld [vmem:[%s16248_s5 + $0xb70] sm:$0xff] }
 0x8e7   : > { %v5139_v52 = vpop.f32.mrb[102].mxu0 }
 0x8e8   : > { %v5140_v20 = vadd.f32 %v5139_v52, %v5035_v32  ;;  %v5141_v22 = vpop.f32.mrb[103].mxu0  ;;  %v9093_v32 = vld [vmem:[%s16248_s5 + $0xbe0] sm:$0xff] }
 0x8e9   : > { %v9876_v52 = vpack.c.bf16 %v9097_v31, %v9093_v32  ;;  %v9088_v22 = vld [vmem:[%s16248_s5 + $0xbb8] sm:$0xff]  ;;  %v9125_v32 = vld [vmem:[%s16248_s5 + $0xcb0] sm:$0xff] }
 0x8ea   : > { %v5150_v14 = vmax.f32 %v5140_v20, 0.0  ;;  %v9083_v20 = vld [vmem:[%s16248_s5 + $0xb90] sm:$0xff]  ;;  %v9882_v53 = vpack.c.bf16 %v9092_v26, %v9088_v22  ;;  %v9130_v31 = vld [vmem:[%s16248_s5 + $0xcd8] sm:$0xff]  ;;  %v9146_v26 = vld [vmem:[%s16248_s5 + $0xd28] sm:$0xff] }
 0x8eb   : > { %v9880_v19 = vpack.c.bf16 %v9083_v20, %v9079_v59  ;;  %v9133_v59 = vld [vmem:[%s16248_s5 + $0xcf0] sm:$0xff]  ;;  %v9138_v22 = vld [vmem:[%s16248_s5 + $0xd18] sm:$0x3] }
 0x8ec   : > { %v5162_v58 = vsel %vm5151_vm4, %v5150_v14, -inf  ;;  %v9878_v14 = vpack.c.bf16 %v9084_v7, %v9080_v40  ;;  %v9129_v7 = vld [vmem:[%s16248_s5 + $0xcd0] sm:$0xff] }
 0x8ed   : > { %v5163_v35 = vmax.f32 %v5161_v13, %v5162_v58  ;;  %v9091_v13 = vld [vmem:[%s16248_s5 + $0xbd0] sm:$0xff]  ;;  %v9096_v58 = vld [vmem:[%s16248_s5 + $0xbf8] sm:$0xff]  ;;  %v9912_v20 = vpack.c.bf16 %v9133_v59, %v9129_v7  ;;  %v16063_v7 = vld [vmem:[%s16249_s6] sm:$0xf] }
 0x8ee   : > { %v16992_v59 = vld [vmem:[#allocation11_spill] sm:$0xff] }
 0x8ef   : > { %v5171_v36 = vrot.slane %v5163_v35, 1 }
 0x8f1   : > { %v5179_v41 = vmax.f32 %v5163_v35, %v5171_v36  ;;  %v9100_v35 = vld [vmem:[%s16248_s5 + $0xc18] sm:$0xff]  ;;  %v9884_v36 = vpack.c.bf16 %v9091_v13, %v9087_v60  ;;  %v9137_v60 = vld [vmem:[%s16248_s5 + $0xd10] sm:$0x3] }
 0x8f2   : > { %v9886_v9 = vpack.c.bf16 %v9100_v35, %v9096_v58 }
 0x8f3   : > { %v5187_v27 = vrot.slane %v5179_v41, 1  ;;  %v5195_v29 = vrot.slane %v5179_v41, 2  ;;  %v5203_v17 = vrot.slane %v5179_v41, 3 }
 0x8f5   : > { %v5211_v2 = vsel %vm16990_vm13, %v5179_v41, %v5187_v27  ;;  %v9099_v27 = vld [vmem:[%s16248_s5 + $0xc10] sm:$0xff] }
 0x8f6   : > { %v5215_v11 = vsel %vm853_vm1, %v5211_v2, %v5195_v29  ;;  %v9888_v29 = vpack.c.bf16 %v9099_v27, %v9095_v49  ;;  %v9111_v2 = vld [vmem:[%s16248_s5 + $0xc40] sm:$0xff]  ;;  %v9162_v49 = vld [vmem:[%s16248_s5 + $0xda8] sm:$0xff] }
 0x8f7   : > { %v15721_v42 = vsel %vm16991_vm3, %v5215_v11, %v5203_v17  ;;  %v9116_v17 = vld [vmem:[%s16248_s5 + $0xc68] sm:$0xff] }
 0x8f8   : > { %9073 = vmatmul.mubr.msk.f32.vlgmr.msra.gmra.mrb[0].mxu1 %vm5151_vm4, %v15721_v42  ;;  %v7710_v44 = vrot.slane %v15721_v42, 1  ;;  %v9120_v11 = vld [vmem:[%s16248_s5 + $0xc88] sm:$0xff]  ;;  %v9890_v0 = vpack.c.bf16 %v9116_v17, %v9112_v6  ;;  %v7900_v3 = vrot.slane %v15721_v42, 2  ;;  %v9161_v6 = vld [vmem:[%s16248_s5 + $0xda0] sm:$0xff] }
 0x8f9   : > { %9857 = vmatpush1.bf16.msra.mxu1 %v9856_v51  ;;  %7670 = vmatprep.mubr.f32.mxu1 %v10432_v28  ;;  %v9115_v51 = vld [vmem:[%s16248_s5 + $0xc60] sm:$0xff]  ;;  %v9166_v27 = vld [vmem:[%s16248_s5 + $0xdc8] sm:$0xff] }
 0x8fa   : > { %9859 = vmatprep.subr.bf16.mxu1 %v9858_v45  ;;  %v9124_v45 = vld [vmem:[%s16248_s5 + $0xca8] sm:$0xff]  ;;  %v9892_v12 = vpack.c.bf16 %v9115_v51, %v9111_v2  ;;  %v9165_v17 = vld [vmem:[%s16248_s5 + $0xdc0] sm:$0xff] }
 0x8fb   : > { %v9894_v50 = vpack.c.bf16 %v9124_v45, %v9120_v11  ;;  %v9924_v2 = vpack.c.bf16 %v9165_v17, %v9161_v6  ;;  %v9170_v51 = vld [vmem:[%s16248_s5 + $0xde8] sm:$0x3]  ;;  %v9148_v11 = vld [vmem:[%s16248_s5 + $0xd38] sm:$0xff] }
 0x8fc   : > { %v9152_v45 = vld [vmem:[%s16248_s5 + $0xd58] sm:$0xff]  ;;  %v8318_v6 = vld [vmem:[%s16250_s7 + $0x128] sm:$0xff] }
 0x8fd   : > { %9861 = vmatpush1.bf16.msra.mxu1 %v9860_v23  ;;  %v9119_v23 = vld [vmem:[%s16248_s5 + $0xc80] sm:$0xff] }
 0x8fe   : > { %9863 = vmatprep.subr.bf16.mxu1 %v9862_v10  ;;  %v9123_v10 = vld [vmem:[%s16248_s5 + $0xca0] sm:$0xff] }
 0x901   : > { %9865 = vmatpush1.bf16.msra.mxu1 %v9864_v34  ;;  %v9896_v34 = vpack.c.bf16 %v9123_v10, %v9119_v23  ;;  %v9169_v23 = vld [vmem:[%s16248_s5 + $0xde0] sm:$0x3]  ;;  %v9926_v10 = vpack.c.bf16 %v9152_v45, %v9148_v11 }
 0x902   : > { %9074 = vmatprep.subr.msk.mxu1 %vm853_vm1, %v9070_v4  ;;  %v9898_v4 = vpack.c.bf16 %v9132_v48, %v9128_v55  ;;  %v8090_v48 = vrot.slane %v15721_v42, 3 }
 0x905   : > { %9075 = vmatpush1.msk.msra.mxu1 %vm853_vm1, %v9069_v1  ;;  %v9113_v1 = vld [vmem:[%s16248_s5 + $0xc50] sm:$0xff] }
 0x906   : > { %9076 = vmatmul.mubr.msk.f32.vlgmr.msra.gmra.mrb[2].mxu1 %vm5151_vm4, %v15721_v42  ;;  %9867 = vmatprep.subr.bf16.mxu1 %v9866_v37  ;;  %v9117_v37 = vld [vmem:[%s16248_s5 + $0xc70] sm:$0xff] }
 0x907   : > { %v15778_v56 = vpop.f32.mrb[104].mxu0  ;;  %9869 = vmatpush1.bf16.msra.mxu1 %v9868_v16  ;;  %7789 = vmatprep.mubr.f32.mxu1 %v10432_v28  ;;  %v9122_v16 = vld [vmem:[%s16248_s5 + $0xc98] sm:$0xff]  ;;  %v9904_v24 = vpack.c.bf16 %v9117_v37, %v9113_v1  ;;  %v9936_v1 = vpack.c.bf16 %v9167_v47, %v9163_v46  ;;  %v8329_v47 = vld [vmem:[%s16250_s7 + $0x180] sm:$0xff] }
 0x908   : > { %v15781_v25 = vpop.f32.mrb[105].mxu0  ;;  %9871 = vmatprep.subr.bf16.mxu1 %v9870_v5  ;;  %v9126_v5 = vld [vmem:[%s16248_s5 + $0xcb8] sm:$0xff] }
 0x909   : > { %v9172_v37 = vld [vmem:[%s16248_s5 + $0xdf8] sm:$0x3] }
 0x90b   : > { %9873 = vmatpush1.bf16.msra.mxu1 %v9872_v61  ;;  %v9906_v61 = vpack.c.bf16 %v9126_v5, %v9122_v16  ;;  %v9171_v16 = vld [vmem:[%s16248_s5 + $0xdf0] sm:$0x3]  ;;  %v8309_v5 = vld [vmem:[%s16250_s7 + $0xe0] sm:$0xff] }
 0x90c   : > { %9875 = vmatprep.subr.bf16.mxu1 %v9874_v54  ;;  %v9121_v54 = vld [vmem:[%s16248_s5 + $0xc90] sm:$0xff] }
 0x90f   : > { %9877 = vmatpush1.bf16.msra.mxu1 %v9876_v52  ;;  %v9134_v52 = vld [vmem:[%s16248_s5 + $0xcf8] sm:$0xff] }
 0x910   : > { %9105 = vmatprep.subr.msk.mxu1 %vm853_vm1, %v9102_v15  ;;  %v9908_v15 = vpack.c.bf16 %v9125_v32, %v9121_v54  ;;  %v9910_v40 = vpack.c.bf16 %v9134_v52, %v9130_v31  ;;  %v8312_v32 = vld [vmem:[%s16250_s7 + $0xf8] sm:$0xff]  ;;  %v8295_v31 = vld [vmem:[%s16250_s7 + $0x70] sm:$0xff] }
 0x911   : > { %v8296_v52 = vld [vmem:[%s16250_s7 + $0x78] sm:$0xff] }
 0x913   : > { %9106 = vmatpush1.msk.msra.mxu1 %vm853_vm1, %v9101_v62  ;;  %v9150_v62 = vld [vmem:[%s16248_s5 + $0xd48] sm:$0xff] }
 0x914   : > { %9107 = vmatmul.mubr.msk.f32.vlgmr.msra.gmra.mrb[0].mxu1 %vm5151_vm4, %v7710_v44  ;;  %9879 = vmatprep.subr.bf16.mxu1 %v9878_v14  ;;  %v9145_v14 = vld [vmem:[%s16248_s5 + $0xd20] sm:$0xff]  ;;  %v9914_v13 = vpack.c.bf16 %v9150_v62, %v9146_v26 }
 0x915   : > { %v15829_v33 = vpop.f32.mrb[106].mxu0  ;;  %9881 = vmatpush1.bf16.msra.mxu1 %v9880_v19  ;;  %7860 = vmatprep.mubr.f32.mxu1 %v10432_v28  ;;  %v9149_v19 = vld [vmem:[%s16248_s5 + $0xd40] sm:$0xff] }
 0x916   : > { %v15832_v41 = vpop.f32.mrb[107].mxu0  ;;  %9883 = vmatprep.subr.bf16.mxu1 %v9882_v53  ;;  %v9158_v53 = vld [vmem:[%s16248_s5 + $0xd88] sm:$0xff]  ;;  %v9916_v58 = vpack.c.bf16 %v9149_v19, %v9145_v14 }
 0x919   : > { %9885 = vmatpush1.bf16.msra.mxu1 %v9884_v36  ;;  %v9153_v36 = vld [vmem:[%s16248_s5 + $0xd60] sm:$0xff] }
 0x91a   : > { %9887 = vmatprep.subr.bf16.mxu1 %v9886_v9  ;;  %v9157_v9 = vld [vmem:[%s16248_s5 + $0xd80] sm:$0xff] }
 0x91d   : > { %9889 = vmatpush1.bf16.msra.mxu1 %v9888_v29  ;;  %v9920_v29 = vpack.c.bf16 %v9157_v9, %v9153_v36 }
 0x91e   : > { %9108 = vmatprep.subr.msk.mxu1 %vm853_vm1, %v9104_v43  ;;  %v9922_v43 = vpack.c.bf16 %v9166_v27, %v9162_v49 }
 0x921   : > { %9109 = vmatpush1.msk.msra.mxu1 %vm853_vm1, %v9103_v63  ;;  %v9147_v63 = vld [vmem:[%s16248_s5 + $0xd30] sm:$0xff] }
 0x922   : > { %9110 = vmatmul.mubr.msk.f32.vlgmr.msra.gmra.mrb[2].mxu1 %vm5151_vm4, %v7710_v44  ;;  %9891 = vmatprep.subr.bf16.mxu1 %v9890_v0  ;;  %v9154_v44 = vld [vmem:[%s16248_s5 + $0xd68] sm:$0xff]  ;;  %v9151_v0 = vld [vmem:[%s16248_s5 + $0xd50] sm:$0xff] }
 0x923   : > { %9893 = vmatpush1.bf16.msra.mxu1 %v9892_v12  ;;  %7979 = vmatprep.mubr.f32.mxu1 %v10432_v28  ;;  %v9918_v35 = vpack.c.bf16 %v9158_v53, %v9154_v44  ;;  %v9156_v12 = vld [vmem:[%s16248_s5 + $0xd78] sm:$0xff]  ;;  %v9928_v55 = vpack.c.bf16 %v9151_v0, %v9147_v63  ;;  %v8319_v63 = vld [vmem:[%s16250_s7 + $0x130] sm:$0xff] }
 0x924   : > { %9895 = vmatprep.subr.bf16.mxu1 %v9894_v50  ;;  %v9160_v50 = vld [vmem:[%s16248_s5 + $0xd98] sm:$0xff] }
 0x925   : > { %v8320_v0 = vld [vmem:[%s16250_s7 + $0x138] sm:$0xff] }
 0x927   : > { %9897 = vmatpush1.bf16.msra.mxu1 %v9896_v34  ;;  %v9930_v34 = vpack.c.bf16 %v9160_v50, %v9156_v12 }
 0x928   : > { %9899 = vmatprep.subr.bf16.mxu1 %v9898_v4  ;;  %v9155_v4 = vld [vmem:[%s16248_s5 + $0xd70] sm:$0xff] }
 0x929   : > { %v9932_v42 = vpack.c.bf16 %v9159_v18, %v9155_v4  ;;  %v8325_v18 = vld [vmem:[%s16250_s7 + $0x160] sm:$0xff] }
 0x92b   : > { %9901 = vmatpush1.bf16.msra.mxu1 %v9900_v30  ;;  %v9168_v30 = vld [vmem:[%s16248_s5 + $0xdd8] sm:$0xff] }
 0x92c   : > { %9139 = vmatprep.subr.msk.mxu1 %vm853_vm1, %v9136_v57  ;;  %v9934_v57 = vpack.c.bf16 %v9168_v30, %v9164_v39  ;;  %v8326_v39 = vld [vmem:[%s16250_s7 + $0x168] sm:$0xff] }
 0x92d   : > { %v9989_v30 = vpack.c.bf16 %v8326_v39, %v8325_v18 }
 0x92f   : > { %9140 = vmatpush1.msk.msra.mxu1 %vm853_vm1, %v9135_v38  ;;  %v8310_v38 = vld [vmem:[%s16250_s7 + $0xe8] sm:$0xff] }
 0x930   : > { %9141 = vmatmul.mubr.msk.f32.vlgmr.msra.gmra.mrb[0].mxu1 %vm5151_vm4, %v7900_v3  ;;  %9903 = vmatprep.subr.bf16.mxu1 %v9902_v8  ;;  %v9962_v8 = vpack.c.bf16 %v8310_v38, %v8309_v5  ;;  %v8332_v5 = vld [vmem:[%s16250_s7 + $0x198] sm:$0xff] }
 0x931   : > { %9905 = vmatpush1.bf16.msra.mxu1 %v9904_v24  ;;  %8050 = vmatprep.mubr.f32.mxu1 %v10432_v28  ;;  %v8293_v24 = vld [vmem:[%s16250_s7 + $0x60] sm:$0xff] }
 0x932   : > { %9907 = vmatprep.subr.bf16.mxu1 %v9906_v61  ;;  %v8311_v61 = vld [vmem:[%s16250_s7 + $0xf0] sm:$0xff]  ;;  %9963 = vmatprep.subr.bf16.mxu0 %v9962_v8  ;;  %v8333_v8 = vld [vmem:[%s16250_s7 + $0x1a0] sm:$0xff] }
 0x935   : > { %9909 = vmatpush1.bf16.msra.mxu1 %v9908_v15  ;;  %v9966_v15 = vpack.c.bf16 %v8312_v32, %v8311_v61  ;;  %v8335_v61 = vld [vmem:[%s16250_s7 + $0x1b0] sm:$0xff] }
 0x936   : > { %9911 = vmatprep.subr.bf16.mxu1 %v9910_v40  ;;  %v9968_v40 = vpack.c.bf16 %v8296_v52, %v8295_v31  ;;  %v8337_v31 = vld [vmem:[%s16250_s7 + $0x1c0] sm:$0xff]  ;;  %v8338_v52 = vld [vmem:[%s16250_s7 + $0x1c8] sm:$0xff] }
 0x939   : > { %9913 = vmatpush1.bf16.msra.mxu1 %v9912_v20  ;;  %v8259_v20 = vsub.s32 1, %v16992_v59 }
 0x93a   : > { %9142 = vmatprep.subr.msk.mxu1 %vm853_vm1, %v9138_v22  ;;  %v16993_v22 = vld [vmem:[#allocation12_spill] sm:$0xff] }
 0x93b   : > { %v8256_v26 = vrot.slane %v16063_v7, %v16993_v22  ;;  %v8260_v14 = vrot.slane %v16063_v7, %v8259_v20  ;;  %v8340_v20 = vld [vmem:[%s16250_s7 + $0x1d8] sm:$0xff]  ;;  %v8263_v22 = vsub.s32 2, %v16992_v59 }
 0x93d   : > { %9143 = vmatpush1.msk.msra.mxu1 %vm853_vm1, %v9137_v60 }
 0x93e   : > { %9144 = vmatmul.mubr.msk.f32.vlgmr.msra.gmra.mrb[2].mxu1 %vm5151_vm4, %v7900_v3  ;;  %9915 = vmatprep.subr.bf16.mxu1 %v9914_v13  ;;  %v8294_v3 = vld [vmem:[%s16250_s7 + $0x68] sm:$0xff]  ;;  %v8313_v13 = vld [vmem:[%s16250_s7 + $0x100] sm:$0xff] }
 0x93f   : > { %9917 = vmatpush1.bf16.msra.mxu1 %v9916_v58  ;;  %8169 = vmatprep.mubr.f32.mxu1 %v10432_v28  ;;  %v9964_v54 = vpack.c.bf16 %v8294_v3, %v8293_v24  ;;  %v8314_v58 = vld [vmem:[%s16250_s7 + $0x108] sm:$0xff] }
 0x940   : > { %9919 = vmatprep.subr.bf16.mxu1 %v9918_v35  ;;  %v9971_v9 = vpack.c.bf16 %v8314_v58, %v8313_v13  ;;  %v8334_v24 = vld [vmem:[%s16250_s7 + $0x1a8] sm:$0xff] }
 0x941   : > { %9965 = vmatpush3.bf16.msra.mxu0 %v9964_v54  ;;  %v10001_v3 = vpack.c.bf16 %v8334_v24, %v8333_v8  ;;  %v8336_v54 = vld [vmem:[%s16250_s7 + $0x1b8] sm:$0xff] }
 0x942   : > { %9967 = vmatprep.subr.bf16.mxu0 %v9966_v15  ;;  %v10004_v32 = vpack.c.bf16 %v8336_v54, %v8335_v61  ;;  %v10007_v15 = vpack.c.bf16 %v8338_v52, %v8337_v31 }
 0x943   : > { %9921 = vmatpush1.bf16.msra.mxu1 %v9920_v29  ;;  %v8267_v29 = vsub.s32 3, %v16992_v59 }
 0x944   : > { %9923 = vmatprep.subr.bf16.mxu1 %v9922_v43  ;;  %v8317_v43 = vld [vmem:[%s16250_s7 + $0x120] sm:$0xff] }
 0x945   : > { %9969 = vmatpush3.bf16.msra.mxu0 %v9968_v40  ;;  %v8339_v40 = vld [vmem:[%s16250_s7 + $0x1d0] sm:$0xff] }
 0x946   : > { %9970 = vmatprep.subr.bf16.mxu0 %v16896_v21 }
 0x947   : > { %9925 = vmatpush1.bf16.msra.mxu1 %v9924_v2  ;;  %v8268_v2 = vrot.slane %v16063_v7, %v8267_v29 }
 0x948   : > { %9173 = vmatprep.subr.msk.mxu1 %vm853_vm1, %v9170_v51  ;;  %v9977_v51 = vpack.c.bf16 %v8318_v6, %v8317_v43 }
 0x94b   : > { %9174 = vmatpush1.msk.msra.mxu1 %vm853_vm1, %v9169_v23  ;;  %v9980_v23 = vpack.c.bf16 %v8320_v0, %v8319_v63 }
 0x94c   : > { %9175 = vmatmul.mubr.msk.f32.vlgmr.msra.gmra.mrb[0].mxu1 %vm5151_vm4, %v8090_v48  ;;  %9927 = vmatprep.subr.bf16.mxu1 %v9926_v10  ;;  %v8322_v10 = vld [vmem:[%s16250_s7 + $0x148] sm:$0xff] }
 0x94d   : > { %9929 = vmatpush1.bf16.msra.mxu1 %v9928_v55  ;;  %8240 = vmatprep.mubr.f32.mxu1 %v10432_v28 }
 0x94e   : > { %9931 = vmatprep.subr.bf16.mxu1 %v9930_v34  ;;  %v8324_v34 = vld [vmem:[%s16250_s7 + $0x158] sm:$0xff] }
 0x951   : > { %9933 = vmatpush1.bf16.msra.mxu1 %v9932_v42  ;;  %v8327_v42 = vld [vmem:[%s16250_s7 + $0x170] sm:$0xff] }
 0x952   : > { %9935 = vmatprep.subr.bf16.mxu1 %v9934_v57  ;;  %v8328_v57 = vld [vmem:[%s16250_s7 + $0x178] sm:$0xff] }
 0x953   : > { %v9992_v46 = vpack.c.bf16 %v8328_v57, %v8327_v42 }
 0x955   : > { %9937 = vmatpush1.bf16.msra.mxu1 %v9936_v1  ;;  %v8330_v1 = vld [vmem:[%s16250_s7 + $0x188] sm:$0xff] }
 0x956   : > { %9176 = vmatprep.subr.msk.mxu1 %vm853_vm1, %v9172_v37  ;;  %v9995_v37 = vpack.c.bf16 %v8330_v1, %v8329_v47 }
 0x959   : > { %9177 = vmatpush1.msk.msra.mxu1 %vm853_vm1, %v9171_v16  ;;  %vm16994_vm1 = vmmov %vm16986_vm0  ;;  %v8331_v16 = vld [vmem:[%s16250_s7 + $0x190] sm:$0xff] }
 0x95a   : > { %9178 = vmatmul.mubr.msk.f32.vlgmr.msra.gmra.mrb[2].mxu1 %vm5151_vm4, %v8090_v48  ;;  %v9998_v38 = vpack.c.bf16 %v8332_v5, %v8331_v16  ;;  %vm16995_vm4 = vcmask 1043456  }
 0xa1f   : > { %v8171_v62 = vpop.f32.mrb[0].mxu1 }
 0xa20   : > { %v10015_v19 = vadd.f32 %v8171_v62, %v15778_v56  ;;  %v8173_v44 = vpop.f32.mrb[1].mxu1  ;;  %v8315_v56 = vld [vmem:[%s16250_s7 + $0x110] sm:$0xff]  ;;  %v8341_v62 = vld [vmem:[%s16250_s7 + $0x1e0] sm:$0xff] }
 0xa21   : > { %v10016_v53 = vadd.f32 %v8173_v44, %v15781_v25  ;;  %v8316_v25 = vld [vmem:[%s16250_s7 + $0x118] sm:$0xff] }
 0xa22   : > { %v8273_v60 = vadd.f32 %v10015_v19, %v8256_v26  ;;  %v9974_v27 = vpack.c.bf16 %v8316_v25, %v8315_v56  ;;  %v10010_v26 = vpack.c.bf16 %v8340_v20, %v8339_v40  ;;  %v8264_v19 = vrot.slane %v16063_v7, %v8263_v22 }
 0xa23   : > { %v8274_v35 = vadd.f32 %v10016_v53, %v8260_v14  ;;  %v8342_v14 = vld [vmem:[%s16250_s7 + $0x1e8] sm:$0xff]  ;;  %v8343_v53 = vld [vmem:[%s16250_s7 + $0x1f0] sm:$0xf] }
 0xa24   : > { %v8277_v49 = vmax.f32 %v8273_v60, 0.0  ;;  %v10013_v44 = vpack.c.bf16 %v8342_v14, %v8341_v62 }
 0xa25   : > { %v8278_v36 = vmax.f32 %v8274_v35, 0.0 }
 0xa27   : > { %8415 = vmatprep.mubr.f32.mxu0 %v8278_v36 }
 0xa28   : > { %8416 = vmatmul.mubr.f32.vlgmr.msra.gmra.mrb[108].mxu0 %v8277_v49 }
 0xa29   : > { %9972 = vmatpush1.bf16.msra.mxu0 %v9971_v9 }
 0xa2a   : > { %9973 = vmatprep.subr.bf16.mxu0 %v16896_v21 }
 0xa2d   : > { %9975 = vmatpush1.bf16.msra.mxu0 %v9974_v27  ;;  %v8242_v17 = vpop.f32.mrb[2].mxu1 }
 0xa2e   : > { %v16093_v11 = vadd.f32 %v8242_v17, %v15829_v33  ;;  %v8244_v45 = vpop.f32.mrb[3].mxu1  ;;  %9976 = vmatprep.subr.bf16.mxu0 %v16896_v21  ;;  %v8321_v33 = vld [vmem:[%s16250_s7 + $0x140] sm:$0xff] }
 0xa2f   : > { %v10018_v12 = vadd.f32 %v8244_v45, %v15832_v41  ;;  %v9983_v48 = vpack.c.bf16 %v8322_v10, %v8321_v33  ;;  %v8323_v41 = vld [vmem:[%s16250_s7 + $0x150] sm:$0xff] }
 0xa30   : > { %v9986_v4 = vpack.c.bf16 %v8324_v34, %v8323_v41  ;;  %v8275_v59 = vadd.f32 %v16093_v11, %v8264_v19 }
 0xa31   : > { %v8276_v50 = vadd.f32 %v10018_v12, %v8268_v2  ;;  %9978 = vmatpush1.bf16.msra.mxu0 %v9977_v51 }
 0xa32   : > { %9979 = vmatprep.subr.bf16.mxu0 %v16896_v21  ;;  %v8279_v60 = vmax.f32 %v8275_v59, 0.0 }
 0xa33   : > { %v8280_v55 = vmax.f32 %v8276_v50, 0.0 }
 0xa35   : > { %9981 = vmatpush1.bf16.msra.mxu0 %v9980_v23  ;;  %9180 = vmatprep.mubr.msk.f32.mxu0 %vm16994_vm1, %v8280_v55 }
 0xa36   : > { %9982 = vmatprep.subr.bf16.mxu0 %v16896_v21 }
 0xa39   : > { %9984 = vmatpush1.bf16.msra.mxu0 %v9983_v48 }
 0xa3a   : > { %9985 = vmatprep.subr.bf16.mxu0 %v16896_v21 }
 0xa3d   : > { %9987 = vmatpush1.bf16.msra.mxu0 %v9986_v4 }
 0xa3e   : > { %9988 = vmatprep.subr.bf16.mxu0 %v16896_v21 }
 0xa41   : > { %9990 = vmatpush1.bf16.msra.mxu0 %v9989_v30 }
 0xa42   : > { %9991 = vmatprep.subr.bf16.mxu0 %v16896_v21 }
 0xa45   : > { %9993 = vmatpush1.bf16.msra.mxu0 %v9992_v46 }
 0xa46   : > { %9994 = vmatprep.subr.bf16.mxu0 %v16896_v21 }
 0xa49   : > { %9996 = vmatpush1.bf16.msra.mxu0 %v9995_v37 }
 0xa4a   : > { %9997 = vmatprep.subr.bf16.mxu0 %v16896_v21 }
 0xa4d   : > { %9999 = vmatpush1.bf16.msra.mxu0 %v9998_v38 }
 0xa4e   : > { %10000 = vmatprep.subr.bf16.mxu0 %v16896_v21 }
 0xa51   : > { %10002 = vmatpush1.bf16.msra.mxu0 %v10001_v3 }
 0xa52   : > { %10003 = vmatprep.subr.bf16.mxu0 %v16896_v21 }
 0xa55   : > { %10005 = vmatpush1.bf16.msra.mxu0 %v10004_v32 }
 0xa56   : > { %10006 = vmatprep.subr.bf16.mxu0 %v16896_v21 }
 0xa59   : > { %10008 = vmatpush1.bf16.msra.mxu0 %v10007_v15 }
 0xa5a   : > { %10009 = vmatprep.subr.bf16.mxu0 %v16896_v21 }
 0xa5d   : > { %10011 = vmatpush1.bf16.msra.mxu0 %v10010_v26 }
 0xa5e   : > { %10012 = vmatprep.subr.bf16.mxu0 %v16896_v21  ;;  %v8344_v21 = vld [vmem:[%s16251_s8] sm:$0x1] }
 0xa61   : > { %10014 = vmatpush1.bf16.msra.mxu0 %v10013_v44 }
 0xa62   : > { %8481 = vmatprep.subr.mxu0 %v10432_v28 }
 0xa65   : > { %9179 = vmatpush1.msk.msra.mxu0 %vm16995_vm4, %v8343_v53 }
 0xa66   : > { %8486 = vmatmul.mubr.f32.vlgmr.msra.gmra.mrb[110].mxu0 %v8279_v60 }
 0xafb   : > { %v9348_v13 = vpop.f32.mrb[108].mxu0 }
 0xafc   : > { %v9349_v58 = vpop.f32.mrb[109].mxu0 }
 0xafd   : > { %v9350_v7 = vadd.f32 %v9349_v58, %v9348_v13 }
 0xaff   : > { %v8418_v35 = vadd.f32 %v9350_v7, %v8344_v21 }
 0xb39   : > { %v8487_v36 = vpop.f32.mrb[110].mxu0 }
 0xb3a   : > { %v8488_v28 = vadd.f32 %v8487_v36, %v8418_v35  ;;  %v8489_v9 = vpop.f32.mrb[111].mxu0 }
 0xb3c   : > { %v8492_v49 = vsel %vm8491_vm12, %v8488_v28, -inf }
 0xb3d   : > { %8493 = vmax.xlane.f32.xlu0 %v8492_v49 }
 0xbca   : > { %v8494_v56 = vpop.xlane.xlu0 %8493 }
 0xbcb   : > { %v8495_v25 = vsub.f32 %v8488_v28, %v8494_v56 }
 0xbcd   : > { %v8496_v27 = vmul.f32 1.442695, %v8495_v25 }
 0xbcf   : > { %10334 = vpow2.f32 %v8496_v27 }
 0xbd9   : > { %v10335_v29 = vpop.eup %10334 }
 0xbda   : > { %v8498_v43 = vsel %vm8491_vm12, %v10335_v29, 0.0 }
 0xbdb   : > { %8499 = vadd.xlane.f32.xlu1 %v8498_v43 }
 0xc68   : > { %v8500_v6 = vpop.xlane.xlu1 %8499 }
 0xc69   : > { %10336 = vlog2.f32 %v8500_v6 }
 0xc73   : > { %v10337_v17 = vpop.eup %10336 }
 0xc74   : > { %v8502_v2 = vmul.f32 0.6931472, %v10337_v17 }
 0xc76   : > { %v8503_v51 = vadd.f32 %v8502_v2, %v8494_v56 }
 0xc78   : > { %v8504_v11 = vsub.f32 %v8488_v28, %v8503_v51 }
 0xc7a   : > { %8505 = vst.msk [vmem:[%s322_s15] sm:$0x1] %vm8491_vm12, %v8504_v11 }
 0xc7b   : > { %10358 = shalt.err (!%p10355_p3)
}
 0xc7c   : > { %s10359_s28 = scalar_lea.hbm %s16200_s29, 16  ;;  %s10363_s27 = scalar_lea.hbm %s16252_s9, 32 }
 0xc7d   : > { %p10360_p4 = scmp.ne.s32.totalorder %s16200_s29, %s10359_s28  ;;  %p10364_p9 = scmp.lt.u32.totalorder %s16200_s29, %s16252_s9 }
 0xc7e   : > { %p10365_p10 = scmp.lt.u32.totalorder %s10363_s27, %s10359_s28  ;;  %p10367_p12 = scmp.lt.u32.totalorder %s10359_s28, %s16200_s29 }
 0xc7f   : > { %p10361_p7 = pnand %p10360_p4, %p10522_p5 }
 0xc80   : > { %p10366_p11 = por %p10365_p10, %p10364_p9 }
 0xc81   : > { %p10362_p8 = pneg %p10361_p7 }
 0xc82   : > { %p10368_p13 = por %p10367_p12, %p10366_p11 }
 0xc84   : > { %p10369_p0 = pnand %p10368_p13, %p10362_p8 }
 0xc86   : > { %10372 = shalt.err (!%p10369_p0)
}
 0xc87   : > { %10076 = dma.vmem_to_hbm [thread:$0]  (%p10522_p5), %s16202_s30, 16, %s16200_s29, %s8507_s0  }
 0xc88 PF: > { %s16996_s24 = sld [smem:[#allocation7_spill]]  ;;  %s16997_s1 = sld [smem:[#allocation5_spill]] }
 0xc8e   : > { %p10082_p1 = scmp.ge.s32.totalorder %s16996_s24, 2  ;;  %s8531_s22 = sand.u32 1, %s16997_s1  }
 0xc8f   : > { %s8532_s2 = scalar_lea.sflag [#allocation3], %s8531_s22 }
 0xc90   : > { %p10079_p2 = pnand %p10082_p1, %p10526_p6 }
 0xc92   : > { %10390 = dma.done.wait (!%p10079_p2), %s8532_s2, 16  }
 0xc93   : > { %10392 = vsyncadd (!%p10079_p2), %s8532_s2, 4294967280  ;;  %s16999_s12 = sld [smem:[#allocation8_spill]]  ;;  %s17000_s3 = sld [smem:[#allocation6_spill]] }
 0xc94   : > { %s17001_s11 = sld [smem:[#allocation9_spill]]  ;;  %s17002_s30 = smov %s10399_s10 }
 0xc99   : > { %p19_p3 = scmp.ge.s32.totalorder %s16999_s12, 4   ;;  %s17003_s10 = smov %s17000_s3 }
 0xc9b   :  { %21 = sbr.rel (!%p19_p3) target bundleno = 8 (0x8), region = 106 }
 0xca2   :  { %8536 = vsyncpa [#allocation3], 1 }
 0xca3   :  { %8538 = vsyncpa [#allocation3 + $0x1], 1 }

</bundles_post_ra>
